<compile_context>
chip_gen: v6e
topology: v6e:2x2x1
jax: 0.10.0
libtpu: 0.0.40
codegen_flags: <defaults>
</compile_context>

<pallas_src>
import math
from functools import partial

import jax
import jax.numpy as jnp
from jax.experimental import pallas as pl
from jax.experimental.pallas import tpu as pltpu

# ----------------------------- model dimensions -----------------------------
C = 7                      # number of one-hot identifier classes (d_m)
INPUT_SIZE = 2 + C         # = 9   (t, z, one-hot m)  -> "input_size"
OUTPUT_SIZE = 4            # "output_size"
DIM_TIME = 8               # positional-encoder width
HALF_TIME = DIM_TIME // 2
DIM_KEYS = INPUT_SIZE      # defaults: dim_keys = input_size
DIM_VALS = INPUT_SIZE      # dim_vals = input_size
LATENT = INPUT_SIZE        # latent_size = input_size
D_S = INPUT_SIZE + DIM_TIME - 1     # feature width of s = 16 (== packed element width)
D_K = DIM_KEYS + D_S                # attention key width = 25

FOLD = 8                   # set elements folded into the lane axis
F_IN = D_S                 # per-element packed input width [t x8 | v | m] = 16
GW = D_S + DIM_VALS        # fused per-element group width (enc | val) = 25
LIN = FOLD * F_IN          # folded input lane width  = 128
LG = FOLD * GW             # folded fused lane width  = 200


# --------------------------- packed parameter slab ---------------------------
def _build_slab_layout():
    specs = [
        ("scales", (1, LIN)), ("phase", (1, LIN)), ("pemask", (1, LIN)),
        ("w1bd", (LIN, LG)), ("b1t", (1, LG)),
        ("w2bd", (LG, LG)), ("b2t", (1, LG)),
        ("qbd", (LIN, FOLD)),
        ("csum", (LG, D_S)),
        ("pexp", (FOLD, LG)),
        ("waF", (LG, LATENT)),
        ("wd1", (D_S, D_S)), ("bd1", (1, D_S)),
        ("wd2", (D_S, DIM_KEYS)), ("bd2", (1, DIM_KEYS)),
        ("qfs", (DIM_KEYS, 1)),
        ("ba", (1, LATENT)),
        ("wh1", (LATENT, LATENT)), ("bh1", (1, LATENT)),
        ("wh2", (LATENT, OUTPUT_SIZE)), ("bh2", (1, OUTPUT_SIZE)),
    ]
    layout, row = {}, 0
    for name, shape in specs:
        layout[name] = (row, shape)
        row += ((shape[0] + 7) // 8) * 8        # 8-row (sublane) aligned block starts
    return layout, row


SLAB_LAYOUT, SLAB_ROWS = _build_slab_layout()   # 1024 rows
SLAB_COLS = 256                                 # lane-dense slab (≈1 MiB, resident)


def pack_params(p):
    """Fuse + fold + pack all weights into one (SLAB_ROWS, 256) f32 slab (pure JAX)."""
    inv_sqrt = 1.0 / math.sqrt(float(D_K))

    # positional encoder: one sin per lane, phase pi/2 turns the cos lanes into sin.
    scales = p["scales"].reshape(-1)                                       # (4,)
    scales16 = jnp.concatenate(
        [scales, scales, jnp.ones((F_IN - DIM_TIME,), jnp.float32)])
    phase16 = jnp.concatenate(
        [jnp.zeros((HALF_TIME,), jnp.float32),
         jnp.full((HALF_TIME,), math.pi / 2, jnp.float32),
         jnp.zeros((F_IN - DIM_TIME,), jnp.float32)])
    pemask16 = jnp.concatenate(
        [jnp.ones((DIM_TIME,), jnp.float32), jnp.zeros((F_IN - DIM_TIME,), jnp.float32)])
    scales128 = jnp.tile(scales16, (FOLD,)).reshape(1, LIN)
    phase128 = jnp.tile(phase16, (FOLD,)).reshape(1, LIN)
    pemask128 = jnp.tile(pemask16, (FOLD,)).reshape(1, LIN)

    # learned query split; 1/sqrt(d_k) folded in.
    q = p["q"]                                                             # (25, 1)
    q_fs = q[:DIM_KEYS, :] * inv_sqrt                                      # (9, 1)
    q_s = q[DIM_KEYS:, :] * inv_sqrt                                       # (16, 1)

    # fused per-element layers (encoder hidden | value hidden).
    w1f = jnp.concatenate([p["we1"], p["wv1"]], axis=1)                    # (16, 25)
    b1f = jnp.concatenate([p["be1"], p["bv1"]], axis=1)                    # (1, 25)
    w2f = jnp.zeros((GW, GW), jnp.float32)
    w2f = w2f.at[0:D_S, 0:D_S].set(p["we2"])
    w2f = w2f.at[D_S:GW, D_S:GW].set(p["wv2"])
    b2f = jnp.concatenate([p["be2"], p["bv2"]], axis=1)                    # (1, 25)

    def blockdiag(blk, n):
        r, c = blk.shape
        out = jnp.zeros((n * r, n * c), jnp.float32)
        for j in range(n):
            out = out.at[j * r:(j + 1) * r, j * c:(j + 1) * c].set(blk)
        return out

    w1bd = blockdiag(w1f, FOLD)                                            # (128, 200)
    w2bd = blockdiag(w2f, FOLD)                                            # (200, 200)
    b1t = jnp.tile(b1f, (1, FOLD))                                         # (1, 200)
    b2t = jnp.tile(b2f, (1, FOLD))                                         # (1, 200)

    # folded helpers: score projection, pooling collapse, weight expansion,
    # weighted-value collapse fused with the attention output Linear.
    qbd = jnp.zeros((LIN, FOLD), jnp.float32)
    csum = jnp.zeros((LG, D_S), jnp.float32)
    pexp = jnp.zeros((FOLD, LG), jnp.float32)
    waF = jnp.zeros((LG, LATENT), jnp.float32)
    eye_e = jnp.eye(D_S, dtype=jnp.float32)
    for j in range(FOLD):
        qbd = qbd.at[j * F_IN:(j + 1) * F_IN, j].set(q_s[:, 0])
        csum = csum.at[j * GW:j * GW + D_S, :].set(eye_e)
        pexp = pexp.at[j, j * GW:(j + 1) * GW].set(1.0)
        waF = waF.at[j * GW + D_S:(j + 1) * GW, :].set(p["wa"])

    entries = {
        "scales": scales128, "phase": phase128, "pemask": pemask128,
        "w1bd": w1bd, "b1t": b1t, "w2bd": w2bd, "b2t": b2t,
        "qbd": qbd, "csum": csum, "pexp": pexp, "waF": waF,
        "wd1": p["wd1"], "bd1": p["bd1"], "wd2": p["wd2"], "bd2": p["bd2"],
        "qfs": q_fs, "ba": p["ba"],
        "wh1": p["wh1"], "bh1": p["bh1"], "wh2": p["wh2"], "bh2": p["bh2"],
    }
    slab = jnp.zeros((SLAB_ROWS, SLAB_COLS), jnp.float32)
    for name, (row, shape) in SLAB_LAYOUT.items():
        slab = slab.at[row:row + shape[0], 0:shape[1]].set(
            entries[name].astype(jnp.float32))
    return slab


def _w(w_ref, name):
    row, (nr, nc) = SLAB_LAYOUT[name]
    return w_ref[row:row + nr, 0:nc]


# --------------------------------- kernel -----------------------------------
def setfunc_kernel(x_ref, w_ref, y_ref):
    x = x_ref[...]                                   # (TB, N/8, 128): 8 elems x [t x8|v|m]
    tb, n8, _ = x.shape
    mm = tb * n8
    x2 = x.reshape(mm, LIN)

    # ---- positional encoding: one sin + phase (cos via sin(z + pi/2)), blend by mask
    z = x2 * _w(w_ref, "scales") + _w(w_ref, "phase")
    s = x2 + _w(w_ref, "pemask") * (jnp.sin(z) - x2)                        # (M, 128)

    # ---- per-element attention scores: s . q_s / sqrt(d_k)  (scale folded into qbd)
    sc = jnp.dot(s, _w(w_ref, "qbd"), preferred_element_type=jnp.float32)   # (M, 8)

    # ---- fused per-element MLPs (encoder + value), block-diagonal over the 8 folds
    h = jnp.dot(s, _w(w_ref, "w1bd"), preferred_element_type=jnp.float32) + _w(w_ref, "b1t")
    h = jnp.maximum(h, 0.0)
    g = jnp.dot(h, _w(w_ref, "w2bd"), preferred_element_type=jnp.float32) + _w(w_ref, "b2t")
    # g: (M, 200), lane group j = [e (16) | V (9)] of folded element j

    # ---- DeepSet key encoder: decoder(nanmean(e, set axis))
    g_nan = jnp.isnan(g)
    e_part = jnp.sum(jnp.where(g_nan, 0.0, g).reshape(tb, n8, LG), axis=1)     # (TB, 200)
    c_part = jnp.sum(jnp.where(g_nan, 0.0, 1.0).reshape(tb, n8, LG), axis=1)   # (TB, 200)
    csum = _w(w_ref, "csum")                                                   # (200, 16)
    pooled = (jnp.dot(e_part, csum, preferred_element_type=jnp.float32)
              / jnp.dot(c_part, csum, preferred_element_type=jnp.float32))     # (TB, 16)
    hd = jnp.maximum(
        jnp.dot(pooled, _w(w_ref, "wd1"), preferred_element_type=jnp.float32)
        + _w(w_ref, "bd1"), 0.0)
    fs = (jnp.dot(hd, _w(w_ref, "wd2"), preferred_element_type=jnp.float32)
          + _w(w_ref, "bd2"))                                                  # (TB, 9)
    score_fs = jnp.dot(fs, _w(w_ref, "qfs"),
                       preferred_element_type=jnp.float32)                     # (TB, 1)

    # ---- masked softmax over the set (normalisation deferred to the pooled output)
    sc3 = sc.reshape(tb, n8, FOLD) + score_fs.reshape(tb, 1, 1)                # (TB, N/8, 8)
    sc3 = jnp.where(jnp.isnan(sc3), -1e30, sc3)
    smax = jnp.max(jnp.max(sc3, axis=2, keepdims=True), axis=1, keepdims=True)  # (TB,1,1)
    p = jnp.exp(sc3 - smax)                                                     # (TB,N/8,8)
    sum_p = jnp.sum(jnp.sum(p, axis=2, keepdims=True), axis=1)                  # (TB, 1)

    # ---- weighted value sum in the folded layout; attention output Linear fused in
    p_ex = jnp.dot(p.reshape(mm, FOLD), _w(w_ref, "pexp"),
                   preferred_element_type=jnp.float32)                          # (M, 200)
    pw_sum = jnp.sum((p_ex * g).reshape(tb, n8, LG), axis=1)                    # (TB, 200)
    zl = (jnp.dot(pw_sum, _w(w_ref, "waF"), preferred_element_type=jnp.float32)
          / sum_p + _w(w_ref, "ba"))                                            # (TB, 9)

    # ---- head MLP (Dropout == identity in eval mode)
    hh = jnp.maximum(
        jnp.dot(zl, _w(w_ref, "wh1"), preferred_element_type=jnp.float32)
        + _w(w_ref, "bh1"), 0.0)
    y = (jnp.dot(hh, _w(w_ref, "wh2"), preferred_element_type=jnp.float32)
         + _w(w_ref, "bh2"))                                                    # (TB, 4)
    y_ref[...] = y


# --------------------------------- wrapper ----------------------------------
@partial(jax.jit, static_argnames=("tb",))
def setfunc_forward(t, v, m, params, tb=32):
    """t: (B, N) timestamps, v: (B, N) values, m: (B, N, C) one-hot ids -> (B, OUTPUT_SIZE)."""
    B, N = t.shape
    assert N % FOLD == 0, "set size N must be a multiple of 8 (lane folding)"
    n8 = N // FOLD

    # lane-folded input: 8 elements per 128-lane group, each element = [t x8 | v | m].
    t8 = jnp.broadcast_to(t[..., None].astype(jnp.float32), (B, N, DIM_TIME))
    feats = jnp.concatenate(
        [t8, v[..., None].astype(jnp.float32), m.astype(jnp.float32)], axis=-1)  # (B, N, 16)
    x = feats.reshape(B, n8, LIN)                                                # (B, N/8, 128)

    if B <= tb:
        TB, B_pad = B, B
    else:
        TB = tb                      # multiple of 8; TB*N/8 folded rows feed the MXU
        B_pad = pl.cdiv(B, TB) * TB
    if B_pad != B:
        x = jnp.pad(x, ((0, B_pad - B), (0, 0), (0, 0)))   # benign zero sets, sliced off

    slab = pack_params(params)

    out = pl.pallas_call(
        setfunc_kernel,
        out_shape=jax.ShapeDtypeStruct((B_pad, OUTPUT_SIZE), jnp.float32),
        grid=(B_pad // TB,),
        in_specs=[
            pl.BlockSpec((TB, n8, LIN), lambda b: (b, 0, 0)),
            pl.BlockSpec((SLAB_ROWS, SLAB_COLS), lambda b: (0, 0)),   # constant -> resident
        ],
        out_specs=pl.BlockSpec((TB, OUTPUT_SIZE), lambda b: (b, 0)),
        compiler_params=pltpu.CompilerParams(dimension_semantics=("parallel",)),
    )(x, slab)
    return out[:B]


# ------------------------- deterministic parameters -------------------------
def init_params(key):
    def linear(k, fan_in, fan_out):
        k1, k2 = jax.random.split(k)
        bound = 1.0 / math.sqrt(fan_in)
        w = jax.random.uniform(k1, (fan_in, fan_out), jnp.float32, -bound, bound)
        b = jax.random.uniform(k2, (1, fan_out), jnp.float32, -bound, bound)
        return w, b

    keys = jax.random.split(key, 11)
    p = {}
    # positional encoder scales: scale ** (-2k / (dim_time - 2)), scale = 10
    k_idx = jnp.arange(DIM_TIME // 2, dtype=jnp.float32)
    p["scales"] = (10.0 ** (-2.0 * k_idx / (DIM_TIME - 2))).reshape(1, DIM_TIME // 2)
    # DeepSet encoder MLP: D_S -> D_S (hidden D_S)
    p["we1"], p["be1"] = linear(keys[0], D_S, D_S)
    p["we2"], p["be2"] = linear(keys[1], D_S, D_S)
    # DeepSet decoder MLP: D_S -> DIM_KEYS (hidden D_S)
    p["wd1"], p["bd1"] = linear(keys[2], D_S, D_S)
    p["wd2"], p["bd2"] = linear(keys[3], D_S, DIM_KEYS)
    # value MLP: D_S -> DIM_VALS (hidden DIM_VALS)
    p["wv1"], p["bv1"] = linear(keys[4], D_S, DIM_VALS)
    p["wv2"], p["bv2"] = linear(keys[5], DIM_VALS, DIM_VALS)
    # attention: learned query (D_K, 1), output Linear DIM_VALS -> LATENT
    p["q"] = jax.random.normal(keys[6], (D_K, 1), jnp.float32)
    p["wa"], p["ba"] = linear(keys[7], DIM_VALS, LATENT)
    # head MLP: LATENT -> OUTPUT_SIZE (hidden LATENT)
    p["wh1"], p["bh1"] = linear(keys[8], LATENT, LATENT)
    p["wh2"], p["bh2"] = linear(keys[9], LATENT, OUTPUT_SIZE)
    return p


# ------------------------------ pure-JAX reference --------------------------
def reference_forward(t, v, m, p):
    def mlp(x, w1, b1, w2, b2):
        return jnp.maximum(x @ w1 + b1, 0.0) @ w2 + b2

    B, N = t.shape
    z = t[..., None] * p["scales"][0]                       # (B, N, DIM_TIME//2)
    tf = jnp.concatenate([jnp.sin(z), jnp.cos(z)], axis=-1)
    s = jnp.concatenate([tf, v[..., None], m], axis=-1)     # (B, N, D_S)
    e = mlp(s, p["we1"], p["be1"], p["we2"], p["be2"])
    pooled = jnp.nanmean(e, axis=-2)                        # (B, D_S)
    fs = mlp(pooled, p["wd1"], p["bd1"], p["wd2"], p["bd2"])  # (B, DIM_KEYS)
    K = jnp.concatenate(
        [jnp.broadcast_to(fs[:, None, :], (B, N, DIM_KEYS)), s], axis=-1)
    V = mlp(s, p["wv1"], p["bv1"], p["wv2"], p["bv2"])
    scores = (K @ p["q"])[..., 0] / math.sqrt(float(K.shape[-1]))   # (B, N)
    mask = jnp.isnan(s[..., 0])
    scores = jnp.where(mask, -jnp.inf, scores)
    w = jax.nn.softmax(scores, axis=-1)
    zv = jnp.einsum("bn,bnd->bd", w, V)
    zl = zv @ p["wa"] + p["ba"]
    return mlp(zl, p["wh1"], p["bh1"], p["wh2"], p["bh2"])


# ----------------------------------- main ------------------------------------
if __name__ == "__main__":
    key = jax.random.PRNGKey(0)
    kp, kt, kv, km = jax.random.split(key, 4)

    B, N = 64, 64           # grid of 2 steps with TB=32 sets (256 folded rows per step)
    params = init_params(kp)

    t = jnp.sort(jax.random.uniform(kt, (B, N), jnp.float32, 0.0, 10.0), axis=-1)
    v = jax.random.normal(kv, (B, N), jnp.float32)
    ids = jax.random.randint(km, (B, N), 0, C)
    m = jax.nn.one_hot(ids, C, dtype=jnp.float32)

    y = setfunc_forward(t, v, m, params)
    y = jax.block_until_ready(y)

    y_ref = reference_forward(t, v, m, params)
    if not jnp.allclose(y, y_ref, rtol=2e-3, atol=2e-3):
        err = jnp.max(jnp.abs(y - y_ref))
        raise AssertionError(f"mismatch: max abs err = {err}\npallas={y[:2]}\nref={y_ref[:2]}")

    print("KERNEL_OK")
</pallas_src>

<mosaic_0001>
module attributes {stable_mosaic.version = 11 : i64} {
  func.func @setfunc_kernel(%arg0: i32, %arg1: memref<32x8x128xf32, #tpu.memory_space<vmem>>, %arg2: memref<1024x256xf32, #tpu.memory_space<vmem>>, %arg3: memref<32x4xf32, #tpu.memory_space<vmem>>) attributes {dimension_semantics = [#tpu.dimension_semantics<parallel>], iteration_bounds = array<i64: 2>, scalar_prefetch = 0 : i64, scratch_operands = 0 : i64, tpu.core_type = #tpu.core_type<tc>, window_params = [{transform_indices = @transform_0, window_bounds = array<i64: 32, 8, 128>}, {pipeline_mode = #tpu.pipeline_mode<synchronous>, transform_indices = @transform_1, window_bounds = array<i64: 1024, 256>}, {transform_indices = @transform_2, window_bounds = array<i64: 32, 4>}]} {
    %c0 = arith.constant 0 : index
    %c0_0 = arith.constant 0 : index
    %c0_1 = arith.constant 0 : index
    %0 = vector.load %arg1[%c0, %c0_0, %c0_1] : memref<32x8x128xf32, #tpu.memory_space<vmem>>, vector<32x8x128xf32>
    %1 = vector.shape_cast %0 : vector<32x8x128xf32> to vector<256x128xf32>
    %c0_2 = arith.constant 0 : index
    %c0_3 = arith.constant 0 : index
    %2 = vector.load %arg2[%c0_2, %c0_3] : memref<1024x256xf32, #tpu.memory_space<vmem>>, vector<1x128xf32>
    %3 = vector.broadcast %2 : vector<1x128xf32> to vector<256x128xf32>
    %4 = arith.mulf %1, %3 : vector<256x128xf32>
    %c8 = arith.constant 8 : index
    %c0_4 = arith.constant 0 : index
    %5 = vector.load %arg2[%c8, %c0_4] : memref<1024x256xf32, #tpu.memory_space<vmem>>, vector<1x128xf32>
    %6 = vector.broadcast %5 : vector<1x128xf32> to vector<256x128xf32>
    %7 = arith.addf %4, %6 : vector<256x128xf32>
    %c16 = arith.constant 16 : index
    %c0_5 = arith.constant 0 : index
    %8 = vector.load %arg2[%c16, %c0_5] : memref<1024x256xf32, #tpu.memory_space<vmem>>, vector<1x128xf32>
    %9 = math.sin %7 : vector<256x128xf32>
    %10 = arith.subf %9, %1 : vector<256x128xf32>
    %11 = vector.broadcast %8 : vector<1x128xf32> to vector<256x128xf32>
    %12 = arith.mulf %11, %10 : vector<256x128xf32>
    %13 = arith.addf %1, %12 : vector<256x128xf32>
    %c368 = arith.constant 368 : index
    %c0_6 = arith.constant 0 : index
    %14 = vector.load %arg2[%c368, %c0_6] : memref<1024x256xf32, #tpu.memory_space<vmem>>, vector<128x8xf32>
    %cst = arith.constant dense<0.000000e+00> : vector<256x8xf32>
    %15 = tpu.matmul %13, %14, %cst {dimension_numbers = #tpu.dot_dimension_numbers<[1], [0], [0], [1], [0, 0, 1, 1], [], []>} : vector<256x128xf32>, vector<128x8xf32>, vector<256x8xf32> -> vector<256x8xf32>
    %c24 = arith.constant 24 : index
    %c0_7 = arith.constant 0 : index
    %16 = vector.load %arg2[%c24, %c0_7] : memref<1024x256xf32, #tpu.memory_space<vmem>>, vector<128x200xf32>
    %cst_8 = arith.constant dense<0.000000e+00> : vector<256x200xf32>
    %17 = tpu.matmul %13, %16, %cst_8 {dimension_numbers = #tpu.dot_dimension_numbers<[1], [0], [0], [1], [0, 0, 1, 1], [], []>} : vector<256x128xf32>, vector<128x200xf32>, vector<256x200xf32> -> vector<256x200xf32>
    %c152 = arith.constant 152 : index
    %c0_9 = arith.constant 0 : index
    %18 = vector.load %arg2[%c152, %c0_9] : memref<1024x256xf32, #tpu.memory_space<vmem>>, vector<1x200xf32>
    %19 = vector.broadcast %18 : vector<1x200xf32> to vector<256x200xf32>
    %20 = arith.addf %17, %19 : vector<256x200xf32>
    %cst_10 = arith.constant 0.000000e+00 : f32
    %21 = vector.broadcast %cst_10 : f32 to vector<256x200xf32>
    %22 = arith.maximumf %20, %21 : vector<256x200xf32>
    %c160 = arith.constant 160 : index
    %c0_11 = arith.constant 0 : index
    %23 = vector.load %arg2[%c160, %c0_11] : memref<1024x256xf32, #tpu.memory_space<vmem>>, vector<200x200xf32>
    %cst_12 = arith.constant dense<0.000000e+00> : vector<256x200xf32>
    %24 = tpu.matmul %22, %23, %cst_12 {dimension_numbers = #tpu.dot_dimension_numbers<[1], [0], [0], [1], [0, 0, 1, 1], [], []>} : vector<256x200xf32>, vector<200x200xf32>, vector<256x200xf32> -> vector<256x200xf32>
    %c360 = arith.constant 360 : index
    %c0_13 = arith.constant 0 : index
    %25 = vector.load %arg2[%c360, %c0_13] : memref<1024x256xf32, #tpu.memory_space<vmem>>, vector<1x200xf32>
    %26 = vector.broadcast %25 : vector<1x200xf32> to vector<256x200xf32>
    %27 = arith.addf %24, %26 : vector<256x200xf32>
    %28 = arith.cmpf one, %27, %27 : vector<256x200xf32>
    %cst_14 = arith.constant 0.000000e+00 : f32
    %29 = vector.broadcast %cst_14 : f32 to vector<256x200xf32>
    %30 = arith.select %28, %29, %27 : vector<256x200xi1>, vector<256x200xf32>
    %31 = vector.shape_cast %30 : vector<256x200xf32> to vector<32x8x200xf32>
    %cst_15 = arith.constant dense<0.000000e+00> : vector<32x200xf32>
    %32 = vector.multi_reduction <add>, %31, %cst_15 [1] : vector<32x8x200xf32> to vector<32x200xf32>
    %cst_16 = arith.constant 0.000000e+00 : f32
    %cst_17 = arith.constant 1.000000e+00 : f32
    %33 = vector.broadcast %cst_16 : f32 to vector<256x200xf32>
    %34 = vector.broadcast %cst_17 : f32 to vector<256x200xf32>
    %35 = arith.select %28, %33, %34 : vector<256x200xi1>, vector<256x200xf32>
    %36 = vector.shape_cast %35 : vector<256x200xf32> to vector<32x8x200xf32>
    %cst_18 = arith.constant dense<0.000000e+00> : vector<32x200xf32>
    %37 = vector.multi_reduction <add>, %36, %cst_18 [1] : vector<32x8x200xf32> to vector<32x200xf32>
    %c496 = arith.constant 496 : index
    %c0_19 = arith.constant 0 : index
    %38 = vector.load %arg2[%c496, %c0_19] : memref<1024x256xf32, #tpu.memory_space<vmem>>, vector<200x16xf32>
    %cst_20 = arith.constant dense<0.000000e+00> : vector<32x16xf32>
    %39 = tpu.matmul %32, %38, %cst_20 {dimension_numbers = #tpu.dot_dimension_numbers<[1], [0], [0], [1], [0, 0, 1, 1], [], []>} : vector<32x200xf32>, vector<200x16xf32>, vector<32x16xf32> -> vector<32x16xf32>
    %cst_21 = arith.constant dense<0.000000e+00> : vector<32x16xf32>
    %40 = tpu.matmul %37, %38, %cst_21 {dimension_numbers = #tpu.dot_dimension_numbers<[1], [0], [0], [1], [0, 0, 1, 1], [], []>} : vector<32x200xf32>, vector<200x16xf32>, vector<32x16xf32> -> vector<32x16xf32>
    %41 = arith.divf %39, %40 : vector<32x16xf32>
    %c904 = arith.constant 904 : index
    %c0_22 = arith.constant 0 : index
    %42 = vector.load %arg2[%c904, %c0_22] : memref<1024x256xf32, #tpu.memory_space<vmem>>, vector<16x16xf32>
    %cst_23 = arith.constant dense<0.000000e+00> : vector<32x16xf32>
    %43 = tpu.matmul %41, %42, %cst_23 {dimension_numbers = #tpu.dot_dimension_numbers<[1], [0], [0], [1], [0, 0, 1, 1], [], []>} : vector<32x16xf32>, vector<16x16xf32>, vector<32x16xf32> -> vector<32x16xf32>
    %c920 = arith.constant 920 : index
    %c0_24 = arith.constant 0 : index
    %44 = vector.load %arg2[%c920, %c0_24] : memref<1024x256xf32, #tpu.memory_space<vmem>>, vector<1x16xf32>
    %45 = vector.broadcast %44 : vector<1x16xf32> to vector<32x16xf32>
    %46 = arith.addf %43, %45 : vector<32x16xf32>
    %cst_25 = arith.constant 0.000000e+00 : f32
    %47 = vector.broadcast %cst_25 : f32 to vector<32x16xf32>
    %48 = arith.maximumf %46, %47 : vector<32x16xf32>
    %c928 = arith.constant 928 : index
    %c0_26 = arith.constant 0 : index
    %49 = vector.load %arg2[%c928, %c0_26] : memref<1024x256xf32, #tpu.memory_space<vmem>>, vector<16x9xf32>
    %cst_27 = arith.constant dense<0.000000e+00> : vector<32x9xf32>
    %50 = tpu.matmul %48, %49, %cst_27 {dimension_numbers = #tpu.dot_dimension_numbers<[1], [0], [0], [1], [0, 0, 1, 1], [], []>} : vector<32x16xf32>, vector<16x9xf32>, vector<32x9xf32> -> vector<32x9xf32>
    %c944 = arith.constant 944 : index
    %c0_28 = arith.constant 0 : index
    %51 = vector.load %arg2[%c944, %c0_28] : memref<1024x256xf32, #tpu.memory_space<vmem>>, vector<1x9xf32>
    %52 = vector.broadcast %51 : vector<1x9xf32> to vector<32x9xf32>
    %53 = arith.addf %50, %52 : vector<32x9xf32>
    %c952 = arith.constant 952 : index
    %c0_29 = arith.constant 0 : index
    %54 = vector.load %arg2[%c952, %c0_29] : memref<1024x256xf32, #tpu.memory_space<vmem>>, vector<9x1xf32>
    %cst_30 = arith.constant dense<0.000000e+00> : vector<32x1xf32>
    %55 = tpu.matmul %53, %54, %cst_30 {dimension_numbers = #tpu.dot_dimension_numbers<[1], [0], [0], [1], [0, 0, 1, 1], [], []>} : vector<32x9xf32>, vector<9x1xf32>, vector<32x1xf32> -> vector<32x1xf32>
    %56 = vector.shape_cast %15 : vector<256x8xf32> to vector<32x8x8xf32>
    %57 = vector.shape_cast %55 : vector<32x1xf32> to vector<32x1x1xf32>
    %58 = vector.broadcast %57 : vector<32x1x1xf32> to vector<32x8x8xf32>
    %59 = arith.addf %56, %58 : vector<32x8x8xf32>
    %60 = arith.cmpf one, %59, %59 : vector<32x8x8xf32>
    %cst_31 = arith.constant -1.000000e+30 : f32
    %61 = vector.broadcast %cst_31 : f32 to vector<32x8x8xf32>
    %62 = arith.select %60, %61, %59 : vector<32x8x8xi1>, vector<32x8x8xf32>
    %cst_32 = arith.constant dense<0xFF800000> : vector<32x8xf32>
    %63 = vector.multi_reduction <maximumf>, %62, %cst_32 [2] : vector<32x8x8xf32> to vector<32x8xf32>
    %64 = vector.shape_cast %63 : vector<32x8xf32> to vector<32x8x1xf32>
    %cst_33 = arith.constant dense<0xFF800000> : vector<32x1xf32>
    %65 = vector.multi_reduction <maximumf>, %64, %cst_33 [1] : vector<32x8x1xf32> to vector<32x1xf32>
    %66 = vector.shape_cast %65 : vector<32x1xf32> to vector<32x1x1xf32>
    %67 = vector.broadcast %66 : vector<32x1x1xf32> to vector<32x8x8xf32>
    %68 = arith.subf %62, %67 : vector<32x8x8xf32>
    %69 = math.exp %68 : vector<32x8x8xf32>
    %cst_34 = arith.constant dense<0.000000e+00> : vector<32x8xf32>
    %70 = vector.multi_reduction <add>, %69, %cst_34 [2] : vector<32x8x8xf32> to vector<32x8xf32>
    %71 = vector.shape_cast %70 : vector<32x8xf32> to vector<32x8x1xf32>
    %cst_35 = arith.constant dense<0.000000e+00> : vector<32x1xf32>
    %72 = vector.multi_reduction <add>, %71, %cst_35 [1] : vector<32x8x1xf32> to vector<32x1xf32>
    %73 = vector.shape_cast %69 : vector<32x8x8xf32> to vector<256x8xf32>
    %c696 = arith.constant 696 : index
    %c0_36 = arith.constant 0 : index
    %74 = vector.load %arg2[%c696, %c0_36] : memref<1024x256xf32, #tpu.memory_space<vmem>>, vector<8x200xf32>
    %cst_37 = arith.constant dense<0.000000e+00> : vector<256x200xf32>
    %75 = tpu.matmul %73, %74, %cst_37 {dimension_numbers = #tpu.dot_dimension_numbers<[1], [0], [0], [1], [0, 0, 1, 1], [], []>} : vector<256x8xf32>, vector<8x200xf32>, vector<256x200xf32> -> vector<256x200xf32>
    %76 = arith.mulf %75, %27 : vector<256x200xf32>
    %77 = vector.shape_cast %76 : vector<256x200xf32> to vector<32x8x200xf32>
    %cst_38 = arith.constant dense<0.000000e+00> : vector<32x200xf32>
    %78 = vector.multi_reduction <add>, %77, %cst_38 [1] : vector<32x8x200xf32> to vector<32x200xf32>
    %c704 = arith.constant 704 : index
    %c0_39 = arith.constant 0 : index
    %79 = vector.load %arg2[%c704, %c0_39] : memref<1024x256xf32, #tpu.memory_space<vmem>>, vector<200x9xf32>
    %cst_40 = arith.constant dense<0.000000e+00> : vector<32x9xf32>
    %80 = tpu.matmul %78, %79, %cst_40 {dimension_numbers = #tpu.dot_dimension_numbers<[1], [0], [0], [1], [0, 0, 1, 1], [], []>} : vector<32x200xf32>, vector<200x9xf32>, vector<32x9xf32> -> vector<32x9xf32>
    %81 = vector.broadcast %72 : vector<32x1xf32> to vector<32x9xf32>
    %82 = arith.divf %80, %81 : vector<32x9xf32>
    %c968 = arith.constant 968 : index
    %c0_41 = arith.constant 0 : index
    %83 = vector.load %arg2[%c968, %c0_41] : memref<1024x256xf32, #tpu.memory_space<vmem>>, vector<1x9xf32>
    %84 = vector.broadcast %83 : vector<1x9xf32> to vector<32x9xf32>
    %85 = arith.addf %82, %84 : vector<32x9xf32>
    %c976 = arith.constant 976 : index
    %c0_42 = arith.constant 0 : index
    %86 = vector.load %arg2[%c976, %c0_42] : memref<1024x256xf32, #tpu.memory_space<vmem>>, vector<9x9xf32>
    %cst_43 = arith.constant dense<0.000000e+00> : vector<32x9xf32>
    %87 = tpu.matmul %85, %86, %cst_43 {dimension_numbers = #tpu.dot_dimension_numbers<[1], [0], [0], [1], [0, 0, 1, 1], [], []>} : vector<32x9xf32>, vector<9x9xf32>, vector<32x9xf32> -> vector<32x9xf32>
    %c992 = arith.constant 992 : index
    %c0_44 = arith.constant 0 : index
    %88 = vector.load %arg2[%c992, %c0_44] : memref<1024x256xf32, #tpu.memory_space<vmem>>, vector<1x9xf32>
    %89 = vector.broadcast %88 : vector<1x9xf32> to vector<32x9xf32>
    %90 = arith.addf %87, %89 : vector<32x9xf32>
    %cst_45 = arith.constant 0.000000e+00 : f32
    %91 = vector.broadcast %cst_45 : f32 to vector<32x9xf32>
    %92 = arith.maximumf %90, %91 : vector<32x9xf32>
    %c1000 = arith.constant 1000 : index
    %c0_46 = arith.constant 0 : index
    %93 = vector.load %arg2[%c1000, %c0_46] : memref<1024x256xf32, #tpu.memory_space<vmem>>, vector<9x4xf32>
    %cst_47 = arith.constant dense<0.000000e+00> : vector<32x4xf32>
    %94 = tpu.matmul %92, %93, %cst_47 {dimension_numbers = #tpu.dot_dimension_numbers<[1], [0], [0], [1], [0, 0, 1, 1], [], []>} : vector<32x9xf32>, vector<9x4xf32>, vector<32x4xf32> -> vector<32x4xf32>
    %c1016 = arith.constant 1016 : index
    %c0_48 = arith.constant 0 : index
    %95 = vector.load %arg2[%c1016, %c0_48] : memref<1024x256xf32, #tpu.memory_space<vmem>>, vector<1x4xf32>
    %96 = vector.broadcast %95 : vector<1x4xf32> to vector<32x4xf32>
    %97 = arith.addf %94, %96 : vector<32x4xf32>
    %c0_49 = arith.constant 0 : index
    %c0_50 = arith.constant 0 : index
    %98 = vector.load %arg3[%c0_49, %c0_50] : memref<32x4xf32, #tpu.memory_space<vmem>>, vector<32x4xf32>
    tpu.vector_store %arg3[%c0_49, %c0_50], %97 {strides = array<i32>} : memref<32x4xf32, #tpu.memory_space<vmem>>, vector<32x4xf32>,
    return
  }
  func.func @transform_0(%arg0: i32) -> (i32, i32, i32) {
    %c0_i32 = arith.constant 0 : i32
    %c0_i32_0 = arith.constant 0 : i32
    %c0_i32_1 = arith.constant 0 : i32
    return %arg0, %c0_i32, %c0_i32_0 : i32, i32, i32
  }
  func.func @transform_1(%arg0: i32) -> (i32, i32) {
    %c0_i32 = arith.constant 0 : i32
    %c0_i32_0 = arith.constant 0 : i32
    %c0_i32_1 = arith.constant 0 : i32
    return %c0_i32, %c0_i32_0 : i32, i32
  }
  func.func @transform_2(%arg0: i32) -> (i32, i32) {
    %c0_i32 = arith.constant 0 : i32
    %c0_i32_0 = arith.constant 0 : i32
    return %arg0, %c0_i32 : i32, i32
  }
}

</mosaic_0001>

<bundles_post_ra>
// kernel: tile.26
= control target key start
LH: loop header
LB: loop body
LE: loop exit
PB: predicated region body
PF: predicated region fallthrough
CT: control target
= control target key end

     0   :  { %s22_s0 = inlined_call_operand.vmem [shape: f32[16], index: 0, kind: input, shape index: {}]   ;;  %s23_s1 = inlined_call_operand.vmem [shape: f32[8,16], index: 1, kind: output, shape index: {}]  }
   0x1   :  { %v4_v0 = vld [vmem:[%s22_s0] ss:$0 sm:$0xff] }
   0x2   :  { %5 = vst [vmem:[%s23_s1] sm:$0xff] %v4_v0 }

// kernel: setfunc_forward.1
= control target key start
LH: loop header
LB: loop body
LE: loop exit
PB: predicated region body
PF: predicated region fallthrough
CT: control target
= control target key end

     0   :  { %s10019_s9 = smov 0   ;;  %s16011_s0 = inlined_call_operand.vmem [shape: f32[64,8,128], index: 0, kind: input, shape index: {}]   ;;  %s16012_s1 = inlined_call_operand.vmem [shape: f32[1024,256], index: 1, kind: input, shape index: {}]   ;;  %s16013_s2 = inlined_call_operand.vmem [shape: f32[64,4], index: 2, kind: output, shape index: {}]  }
   0x1 LB: > { %s9151_s10 = sadd.s32 4294967295, %s9992_s9   ;;  %p9155_p0 = scmp.ge.s32.totalorder %s9992_s9, 1  ;;  %s9992_s9 = sphi %s10019_s9, %s12_s9  }
   0x2   : > { %p113_p1 = scmp.lt.s32.totalorder %s9992_s9, 3 }
   0x4   : > { %p114_p2 = pnand %p9155_p0, %p113_p1 }
   0x6   : > { %117 = sbr.rel (%p114_p2) target bundleno = 3417 (0xd59), region = 28 }
   0xb   : > { %v3942_v0 = vld [vmem:[%s16012_s1 + $0x128] sm:$0xff]  ;;  %v3941_v1 = vld [vmem:[%s16012_s1 + $0x120] sm:$0xff]  ;;  %v3940_v2 = vld [vmem:[%s16012_s1 + $0x118] sm:$0xff]  ;;  %s9156_s17 = sshll.u32 %s9151_s10, 5  ;;  %v16021_v4 = vmov 0.0   ;;  %s9158_s29 = sshll.u32 %s9151_s10, 2 }
   0xc   : > { %3956 = vmatprep.subr.mxu1 %v3942_v0  ;;  %v3939_v3 = vld [vmem:[%s16012_s1 + $0x110] sm:$0xff]  ;;  %4020 = vmatprep.mubr.f32.mxu1 %v16021_v4  ;;  %p136_p3 = scmp.lt.s32.totalorder %s9156_s17, 63  ;;  %v3938_v5 = vld [vmem:[%s16012_s1 + $0x108] sm:$0xff]  ;;  %v3937_v6 = vld [vmem:[%s16012_s1 + $0x100] sm:$0xff]  ;;  %p142_p4 = scmp.lt.s32.totalorder %s9158_s29, 7 }
   0xd   : > { %3957 = vmatpush1.msra.mxu1 %v3941_v1  ;;  %v3936_v7 = vld [vmem:[%s16012_s1 + $0xf8] sm:$0xff]  ;;  %v3935_v8 = vld [vmem:[%s16012_s1 + $0xf0] sm:$0xff]  ;;  %v3934_v9 = vld [vmem:[%s16012_s1 + $0xe8] sm:$0xff] }
   0xe   : > { %3958 = vmatprep.subr.mxu1 %v3940_v2  ;;  %s16453_s17 = smov (!%p136_p3, %s9156_s17), 63  ;;  %v3933_v10 = vld [vmem:[%s16012_s1 + $0xe0] sm:$0xff]  ;;  %v3932_v11 = vld [vmem:[%s16012_s1 + $0xd8] sm:$0xff]  ;;  %v3931_v12 = vld [vmem:[%s16012_s1 + $0xd0] sm:$0xff]  ;;  %s16455_s29 = smov (!%p142_p4, %s9158_s29), 7 }
   0xf   : > { %3959 = vmatpush1.msra.mxu1 %v3939_v3  ;;  %s9157_s28 = sshll.u32 %s16453_s17, 3  ;;  %v3930_v13 = vld [vmem:[%s16012_s1 + $0xc8] sm:$0xff]  ;;  %v3929_v15 = vld [vmem:[%s16012_s1 + $0xc0] sm:$0xff]  ;;  %v10088_v17 = vld [vmem:[%s16012_s1 + $0x10] ss:$0 sm:$0xff]  ;;  %s9159_s30 = sshll.u32 %s16455_s29, 3 }
  0x10   : > { %3960 = vmatprep.subr.mxu1 %v3938_v5  ;;  %s10063_s7 = scalar_lea.vmem %s16011_s0, %s9157_s28  ;;  %v10083_v16 = vld [vmem:[%s16012_s1] ss:$0 sm:$0xff]  ;;  %v3928_v18 = vld [vmem:[%s16012_s1 + $0xb8] sm:$0xff]  ;;  %v3927_v22 = vld [vmem:[%s16012_s1 + $0xb0] sm:$0xff]  ;;  %s145_s8 = scalar_lea.vmem %s16013_s2, %s9159_s30 }
  0x11   : > { %3961 = vmatpush1.msra.mxu1 %v3937_v6  ;;  %v10075_v14 = vld [vmem:[%s10063_s7] sm:$0xff]  ;;  %v10096_v20 = vld [vmem:[%s10063_s7 + $0x8] sm:$0xff]  ;;  %v149_v21 = vld [vmem:[%s10063_s7 + $0x10] sm:$0xff] }
  0x12   : > { %3962 = vmatprep.subr.mxu1 %v3936_v7  ;;  %v180_v19 = vmul.f32 %v10083_v16, %v10075_v14  ;;  %v181_v23 = vmul.f32 %v10083_v16, %v10096_v20  ;;  %v182_v24 = vmul.f32 %v10083_v16, %v149_v21  ;;  %v3926_v25 = vld [vmem:[%s16012_s1 + $0xa8] sm:$0xff]  ;;  %v3925_v27 = vld [vmem:[%s16012_s1 + $0xa0] sm:$0xff]  ;;  %v3924_v30 = vld [vmem:[%s16012_s1 + $0x98] sm:$0xff] }
  0x13   : > { %3963 = vmatpush1.msra.mxu1 %v3935_v8  ;;  %v3923_v33 = vld [vmem:[%s16012_s1 + $0x90] sm:$0xff]  ;;  %v3922_v36 = vld [vmem:[%s16012_s1 + $0x88] sm:$0xff]  ;;  %v150_v39 = vld [vmem:[%s10063_s7 + $0x18] sm:$0xff] }
  0x14   : > { %3964 = vmatprep.subr.mxu1 %v3934_v9  ;;  %v10109_v26 = vadd.f32 %v10088_v17, %v180_v19  ;;  %v10115_v28 = vadd.f32 %v10088_v17, %v181_v23  ;;  %v10118_v29 = vadd.f32 %v10088_v17, %v182_v24  ;;  %v3921_v40 = vld [vmem:[%s16012_s1 + $0x80] sm:$0xff]  ;;  %v3920_v44 = vld [vmem:[%s16012_s1 + $0x78] sm:$0xff]  ;;  %v3919_v46 = vld [vmem:[%s16012_s1 + $0x70] sm:$0xff]  ;;  %v183_v49 = vmul.f32 %v10083_v16, %v150_v39 }
  0x15   : > { %3965 = vmatpush1.msra.mxu1 %v3933_v10  ;;  %v3918_v50 = vld [vmem:[%s16012_s1 + $0x68] sm:$0xff]  ;;  %v3917_v53 = vld [vmem:[%s16012_s1 + $0x60] sm:$0xff]  ;;  %v3916_v58 = vld [vmem:[%s16012_s1 + $0x58] sm:$0xff]  ;;  %v16026_v24 = vmov 920167782  }
  0x16   : > { %3966 = vmatprep.subr.mxu1 %v3932_v11  ;;  %v246_v31 = vand.u32 2147483647, %v10109_v26  ;;  %v249_v32 = vand.u32 2139095040, %v10109_v26  ;;  %v350_v34 = vand.u32 2147483647, %v10115_v28  ;;  %v353_v35 = vand.u32 2139095040, %v10115_v28 }
  0x17   : > { %3967 = vmatpush1.msra.mxu1 %v3931_v12  ;;  %v457_v43 = vand.u32 2139095040, %v10118_v29  ;;  %v454_v56 = vand.u32 2147483647, %v10118_v29  ;;  %v3915_v59 = vld [vmem:[%s16012_s1 + $0x50] sm:$0xff]  ;;  %v10163_v61 = vadd.f32 %v10088_v17, %v183_v49  ;;  %v3914_v62 = vld [vmem:[%s16012_s1 + $0x48] sm:$0xff]  ;;  %v3913_v3 = vld [vmem:[%s16012_s1 + $0x40] sm:$0xff] }
  0x18   : > { %3968 = vmatprep.subr.mxu1 %v3930_v13  ;;  %v250_v37 = vshrl.u32 %v249_v32, 23  ;;  %v253_v38 = vand.u32 8388607, %v246_v31  ;;  %v354_v41 = vshrl.u32 %v353_v35, 23  ;;  %v357_v42 = vand.u32 8388607, %v350_v34 }
  0x19   : > { %3969 = vmatpush1.msra.mxu1 %v3929_v15  ;;  %v458_v48 = vshrl.u32 %v457_v43, 23  ;;  %v10181_v7 = vand.u32 8388607, %v454_v56  ;;  %v3912_v9 = vld [vmem:[%s16012_s1 + $0x38] sm:$0xff]  ;;  %v16032_v11 = vmov 683565275  }
  0x1a   : > { %3970 = vmatprep.subr.mxu1 %v3928_v18  ;;  %v9160_v45 = vadd.s32 4294967169, %v250_v37  ;;  %v9164_v47 = vadd.s32 4294967169, %v354_v41  ;;  %v254_v51 = vor.u32 8388608, %v253_v38  ;;  %v358_v54 = vor.u32 8388608, %v357_v42  ;;  %v3911_v21 = vld [vmem:[%s16012_s1 + $0x30] sm:$0xff] }
  0x1b   : > { %3971 = vmatpush1.msra.mxu1 %v3927_v22  ;;  %v9168_v57 = vadd.s32 4294967169, %v458_v48  ;;  %v16017_v13 = vmov 2475754826   ;;  %v16015_v18 = vmov 2131351028   ;;  %vm248_vm12 = vcmp.lt.s32.totalorder %v10109_v26, 0 }
  0x1c   : > { %3972 = vmatprep.subr.mxu1 %v3926_v25  ;;  %v256_v52 = vadd.s32 1, %v9160_v45  ;;  %v360_v55 = vadd.s32 1, %v9164_v47  ;;  %v10170_v1 = vshll.u32 %v254_v51, 8  ;;  %v10177_v6 = vshll.u32 %v358_v54, 8 }
  0x1d   : > { %3973 = vmatpush1.msra.mxu1 %v3925_v27  ;;  %v10183_v8 = vadd.s32 1, %v9168_v57  ;;  %v16028_v22 = vmov 2102212464   ;;  %v16024_v37 = vmov 1326507024  }
  0x1e   : > { %3974 = vmatprep.subr.mxu1 %v3924_v30  ;;  %vm257_vm0 = vcmp.gt.s32.totalorder %v256_v52, 0  ;;  %vm361_vm1 = vcmp.gt.s32.totalorder %v360_v55, 0  ;;  %vm10305_vm14 = vcmp.le.f32.partialorder %v246_v31, 0.7853982 }
  0x1f   : > { %3975 = vmatpush1.msra.mxu1 %v3923_v33  ;;  %v258_v60 = vsel %vm257_vm0, %v256_v52, 0  ;;  %v362_v2 = vsel %vm361_vm1, %v360_v55, 0  ;;  %vm465_vm6 = vcmp.gt.s32.totalorder %v10183_v8, 0 }
  0x20   : > { %3976 = vmatprep.subr.mxu1 %v3922_v36  ;;  %v10168_v63 = vshrl.u32 %v258_v60, 5  ;;  %v260_v0 = vand.u32 31, %v258_v60  ;;  %v10175_v5 = vand.u32 31, %v362_v2  ;;  %v10197_v27 = vshrl.u32 %v362_v2, 5 }
  0x21   : > { %3977 = vmatpush1.msra.mxu1 %v3921_v40 }
  0x22   : > { %3978 = vmatprep.subr.mxu1 %v3920_v44  ;;  %v261_v10 = vsub.s32 32, %v260_v0  ;;  %v263_v12 = vshll.u32 %v16032_v11, %v260_v0  ;;  %v266_v15 = vshll.u32 %v16017_v13, %v260_v0  ;;  %v269_v19 = vshll.u32 %v16015_v18, %v260_v0 }
  0x23   : > { %3979 = vmatpush1.msra.mxu1 %v3919_v46  ;;  %v272_v23 = vshll.u32 %v16028_v22, %v260_v0  ;;  %v275_v25 = vshll.u32 %v16026_v24, %v260_v0  ;;  %vm278_vm2 = vcmp.lt.s32.totalorder %v10168_v63, 1  ;;  %vm279_vm3 = vcmp.lt.s32.totalorder %v10168_v63, 2 }
  0x24   : > { %3980 = vmatprep.subr.mxu1 %v3918_v50  ;;  %v262_v30 = vshrl.u32 %v16032_v11, %v261_v10  ;;  %v264_v32 = vshrl.u32 %v16017_v13, %v261_v10  ;;  %v267_v33 = vshrl.u32 %v16015_v18, %v261_v10  ;;  %v270_v35 = vshrl.u32 %v16028_v22, %v261_v10 }
  0x25   : > { %3981 = vmatpush1.msra.mxu1 %v3917_v53  ;;  %v273_v36 = vshrl.u32 %v16026_v24, %v261_v10  ;;  %v276_v38 = vshrl.u32 %v16024_v37, %v261_v10  ;;  %vm281_vm4 = vcmp.lt.s32.totalorder %v10168_v63, 4  ;;  %v365_v42 = vsub.s32 32, %v10175_v5 }
  0x26   : > { %3982 = vmatprep.subr.mxu1 %v3916_v58  ;;  %v265_v39 = vor.u32 %v264_v32, %v263_v12  ;;  %v268_v40 = vor.u32 %v267_v33, %v266_v15  ;;  %v271_v41 = vor.u32 %v270_v35, %v269_v19  ;;  %vm280_vm5 = vcmp.lt.s32.totalorder %v10168_v63, 3 }
  0x27   : > { %3983 = vmatpush1.msra.mxu1 %v3915_v59  ;;  %v274_v43 = vor.u32 %v273_v36, %v272_v23  ;;  %v277_v44 = vor.u32 %v276_v38, %v275_v25  ;;  %v367_v45 = vshll.u32 %v16032_v11, %v10175_v5  ;;  %v370_v53 = vshll.u32 %v16017_v13, %v10175_v5 }
  0x28   : > { %3984 = vmatprep.subr.mxu1 %v3914_v62  ;;  %v282_v46 = vsel %vm278_vm2, %v262_v30, %v265_v39  ;;  %v283_v47 = vsel %vm281_vm4, %v271_v41, 2102212464  ;;  %v286_v48 = vsel %vm278_vm2, %v265_v39, %v268_v40  ;;  %v290_v49 = vsel %vm278_vm2, %v268_v40, %v271_v41 }
  0x29   : > { %3985 = vmatpush1.msra.mxu1 %v3913_v3  ;;  %v284_v50 = vsel %vm280_vm5, %v268_v40, %v283_v47  ;;  %v287_v51 = vsel %vm281_vm4, %v274_v43, 920167782  ;;  %v291_v52 = vsel %vm281_vm4, %v277_v44, 1326507024  ;;  %v366_v57 = vshrl.u32 %v16032_v11, %v365_v42 }
  0x2a   : > { %3986 = vmatprep.subr.mxu1 %v3912_v9  ;;  %v288_v54 = vsel %vm280_vm5, %v271_v41, %v287_v51  ;;  %v292_v55 = vsel %vm280_vm5, %v274_v43, %v291_v52  ;;  %v368_v58 = vshrl.u32 %v16017_v13, %v365_v42  ;;  %v285_v59 = vsel %vm279_vm3, %v282_v46, %v284_v50 }
  0x2b   : > { %3987 = vmatpush1.msra.mxu1 %v3911_v21  ;;  %v289_v60 = vsel %vm279_vm3, %v286_v48, %v288_v54  ;;  %v293_v62 = vsel %vm279_vm3, %v290_v49, %v292_v55  ;;  %v371_v0 = vshrl.u32 %v16015_v18, %v365_v42  ;;  %v373_v19 = vshll.u32 %v16015_v18, %v10175_v5  ;;  %v151_v55 = vld [vmem:[%s10063_s7 + $0x20] sm:$0xff] }
  0x2c   : > { %6099 = vmatprep.subr.mxu1 %v16021_v4  ;;  %v10237_v2 = vmul.u32.u64.low %v10170_v1, %v293_v62  ;;  %v10238_v3 = vmul.u32.u64.high %v10170_v1, %v293_v62, %v10237_v2  ;;  %v10241_v9 = vmul.u32.u64.low %v10170_v1, %v289_v60  ;;  %v10242_v10 = vmul.u32.u64.high %v10170_v1, %v289_v60, %v10241_v9 }
  0x2d   : > { %v369_v12 = vor.u32 %v368_v58, %v367_v45  ;;  %v372_v15 = vor.u32 %v371_v0, %v370_v53  ;;  %v374_v21 = vshrl.u32 %v16028_v22, %v365_v42  ;;  %v376_v63 = vshll.u32 %v16028_v22, %v10175_v5 }
  0x2e   : > { %v377_v23 = vshrl.u32 %v16026_v24, %v365_v42  ;;  %v379_v25 = vshll.u32 %v16026_v24, %v10175_v5  ;;  %v380_v30 = vshrl.u32 %v16024_v37, %v365_v42  ;;  %v301_v32 = vmul.u32 %v10170_v1, %v285_v59 }
  0x2f   : > { %v375_v33 = vor.u32 %v374_v21, %v373_v19  ;;  %vm382_vm7 = vcmp.lt.s32.totalorder %v10197_v27, 1  ;;  %vm383_vm8 = vcmp.lt.s32.totalorder %v10197_v27, 2  ;;  %vm303_vm9 = vc.u32 %v10238_v3, %v10241_v9 }
  0x30   : > { %v304_v35 = vadd.s32 1, %v10242_v10  ;;  %v378_v36 = vor.u32 %v377_v23, %v376_v63  ;;  %vm384_vm10 = vcmp.lt.s32.totalorder %v10197_v27, 3  ;;  %v381_v38 = vor.u32 %v380_v30, %v379_v25 }
  0x31   : > { %vm385_vm11 = vcmp.lt.s32.totalorder %v10197_v27, 4  ;;  %v386_v5 = vsel %vm382_vm7, %v366_v57, %v369_v12  ;;  %v390_v39 = vsel %vm382_vm7, %v369_v12, %v372_v15  ;;  %v394_v42 = vsel %vm382_vm7, %v372_v15, %v375_v33  ;;  %v152_v57 = vld [vmem:[%s10063_s7 + $0x28] sm:$0xff] }
  0x32   : > { %v305_v1 = vsel %vm303_vm9, %v304_v35, %v10242_v10  ;;  %v387_v40 = vsel %vm385_vm11, %v375_v33, 2102212464  ;;  %v391_v41 = vsel %vm385_vm11, %v378_v36, 920167782  ;;  %v395_v46 = vsel %vm385_vm11, %v381_v38, 1326507024 }
  0x33   : > { %v306_v43 = vadd.s32 %v305_v1, %v301_v32  ;;  %v388_v44 = vsel %vm384_vm10, %v372_v15, %v387_v40  ;;  %v392_v45 = vsel %vm384_vm10, %v375_v33, %v391_v41  ;;  %v396_v49 = vsel %vm384_vm10, %v378_v36, %v395_v46 }
  0x34   : > { %v389_v47 = vsel %vm383_vm8, %v386_v5, %v388_v44  ;;  %v393_v48 = vsel %vm383_vm8, %v390_v39, %v392_v45  ;;  %v466_v50 = vsel %vm465_vm6, %v10183_v8, 0  ;;  %v397_v52 = vsel %vm383_vm8, %v394_v42, %v396_v49 }
  0x35   : > { %v307_v51 = vadd.s32 536870912, %v306_v43  ;;  %v10273_v53 = vmul.u32.u64.low %v10177_v6, %v393_v48  ;;  %v10274_v54 = vmul.u32.u64.high %v10177_v6, %v393_v48, %v10273_v53  ;;  %v462_v60 = vor.u32 8388608, %v10181_v7 }
  0x36   : > { %v10280_v58 = vmul.u32.u64.low %v10177_v6, %v397_v52  ;;  %v10281_v59 = vmul.u32.u64.high %v10177_v6, %v397_v52, %v10280_v58  ;;  %v558_v62 = vand.u32 2147483647, %v10163_v61  ;;  %v468_v0 = vand.u32 31, %v466_v50 }
  0x37   : > { %v308_v8 = vshrl.u32 %v307_v51, 30  ;;  %v405_v27 = vmul.u32 %v10177_v6, %v389_v47  ;;  %v10287_v2 = vmul.f32 %v10083_v16, %v151_v55  ;;  %v10290_v10 = vmul.f32 %v10083_v16, %v152_v57 }
  0x38   : > { %v408_v15 = vadd.s32 1, %v10274_v54  ;;  %v469_v19 = vsub.s32 32, %v468_v0  ;;  %vm407_vm13 = vc.u32 %v10281_v59, %v10273_v53  ;;  %v10296_v7 = vshll.u32 %v462_v60, 8 }
  0x39   : > { %v309_v12 = vshll.u32 %v308_v8, 30  ;;  %v561_v21 = vand.u32 2139095040, %v10163_v61  ;;  %v10301_v6 = vand.u32 8388607, %v558_v62  ;;  %v332_v23 = vsub.s32 4, %v308_v8 }
  0x3a   : > { %v409_v25 = vsel %vm407_vm13, %v408_v15, %v10274_v54  ;;  %v467_v30 = vshrl.u32 %v466_v50, 5  ;;  %v471_v33 = vshll.u32 %v16032_v11, %v468_v0  ;;  %v472_v35 = vshrl.u32 %v16017_v13, %v469_v19 }
  0x3b   : > { %v10309_v63 = vsub.s32 %v306_v43, %v309_v12  ;;  %v410_v32 = vadd.s32 %v409_v25, %v405_v27  ;;  %v474_v36 = vshll.u32 %v16017_v13, %v468_v0  ;;  %v475_v31 = vshrl.u32 %v16015_v18, %v469_v19 }
  0x3c   : > { %v477_v5 = vshll.u32 %v16015_v18, %v468_v0  ;;  %v478_v39 = vshrl.u32 %v16028_v22, %v469_v19  ;;  %v302_v1 = vadd.s32 %v10241_v9, %v10238_v3  ;;  %v480_v41 = vshll.u32 %v16028_v22, %v468_v0 }
  0x3d   : > { %v312_v38 = vsub.s32 0, %v10309_v63  ;;  %v411_v40 = vadd.s32 536870912, %v410_v32  ;;  %v562_v42 = vshrl.u32 %v561_v21, 23  ;;  %v333_v44 = vsel %vm248_vm12, %v332_v23, %v308_v8 }
  0x3e   : > { %v481_v45 = vshrl.u32 %v16026_v24, %v469_v19  ;;  %vm489_vm15 = vcmp.lt.s32.totalorder %v467_v30, 4  ;;  %v470_v47 = vshrl.u32 %v16032_v11, %v469_v19  ;;  %v483_v48 = vshll.u32 %v16026_v24, %v468_v0 }
  0x3f   : > { %v9161_v43 = vmin.u32 %v312_v38, %v10309_v63  ;;  %v10326_v46 = vshrl.u32 %v411_v40, 30  ;;  %v484_v3 = vshrl.u32 %v16024_v37, %v469_v19  ;;  %v473_v49 = vor.u32 %v472_v35, %v471_v33 }
  0x40   : > { %v476_v50 = vor.u32 %v475_v31, %v474_v36  ;;  %v479_v51 = vor.u32 %v478_v39, %v477_v5  ;;  %v482_v54 = vor.u32 %v481_v45, %v480_v41  ;;  %vm486_vm0 = vcmp.lt.s32.totalorder %v467_v30, 1 }
  0x41   : > { %v314_v9 = vclz %v9161_v43  ;;  %v413_v52 = vshll.u32 %v10326_v46, 30  ;;  %vm488_vm1 = vcmp.lt.s32.totalorder %v467_v30, 3  ;;  %v485_v57 = vor.u32 %v484_v3, %v483_v48 }
  0x42   : > { %v491_v58 = vsel %vm489_vm15, %v479_v51, 2102212464  ;;  %v9172_v60 = vadd.s32 4294967169, %v562_v42  ;;  %v335_v8 = vsel %vm10305_vm14, 0, %v333_v44  ;;  %vm487_vm2 = vcmp.lt.s32.totalorder %v467_v30, 2 }
  0x43   : > { %v9162_v55 = vadd.s32 4294967294, %v314_v9  ;;  %v10335_v0 = vsub.s32 %v410_v32, %v413_v52  ;;  %v495_v27 = vsel %vm489_vm15, %v482_v54, 920167782  ;;  %v490_v12 = vsel %vm486_vm0, %v470_v47, %v473_v49 }
  0x44   : > { %v494_v15 = vsel %vm486_vm0, %v473_v49, %v476_v50  ;;  %v496_v19 = vsel %vm488_vm1, %v479_v51, %v495_v27  ;;  %v492_v25 = vsel %vm488_vm1, %v476_v50, %v491_v58  ;;  %v498_v33 = vsel %vm486_vm0, %v476_v50, %v479_v51 }
  0x45   : > { %vm9163_vm3 = vcmp.lt.s32.totalorder %v9162_v55, 0  ;;  %v416_v23 = vsub.s32 0, %v10335_v0  ;;  %v499_v38 = vsel %vm489_vm15, %v485_v57, 1326507024  ;;  %vm352_vm4 = vcmp.lt.s32.totalorder %v10115_v28, 0 }
  0x46   : > { %v317_v21 = vsel %vm9163_vm3, 0, %v9162_v55  ;;  %v497_v5 = vsel %vm487_vm2, %v494_v15, %v496_v19  ;;  %v500_v39 = vsel %vm488_vm1, %v482_v54, %v499_v38  ;;  %v568_v43 = vadd.s32 1, %v9172_v60 }
  0x47   : > { %v318_v35 = vsub.s32 32, %v317_v21  ;;  %v319_v32 = vshll.u32 %v10309_v63, %v317_v21  ;;  %v322_v36 = vsub.s32 4294967266, %v317_v21  ;;  %v9165_v31 = vmin.u32 %v416_v23, %v10335_v0 }
  0x48   : > { %v501_v42 = vsel %vm487_vm2, %v498_v33, %v500_v39  ;;  %v339_v44 = vadd.s32 3, %v335_v8  ;;  %v493_v63 = vsel %vm487_vm2, %v490_v12, %v492_v25  ;;  %v566_v47 = vor.u32 8388608, %v10301_v6 }
  0x49   : > { %v320_v40 = vshrl.u32 %v302_v1, %v318_v35  ;;  %v323_v41 = vadd.s32 127, %v322_v36  ;;  %v418_v45 = vclz %v9165_v31  ;;  %vm569_vm5 = vcmp.gt.s32.totalorder %v568_v43, 0 }
  0x4a   : > { %v10354_v9 = vmul.u32.u64.low %v10296_v7, %v501_v42  ;;  %v10355_v49 = vmul.u32.u64.high %v10296_v7, %v501_v42, %v10354_v9  ;;  %v10358_v51 = vmul.u32.u64.low %v10296_v7, %v497_v5  ;;  %v10359_v1 = vmul.u32.u64.high %v10296_v7, %v497_v5, %v10358_v51 }
  0x4b   : > { %v321_v48 = vor.u32 %v320_v40, %v319_v32  ;;  %v324_v3 = vshll.u32 %v323_v41, 23  ;;  %v9166_v50 = vadd.s32 4294967294, %v418_v45  ;;  %v436_v30 = vsub.s32 4, %v10326_v46 }
  0x4c   : > { %v570_v55 = vsel %vm569_vm5, %v568_v43, 0  ;;  %v10363_v57 = vand.u32 3, %v339_v44  ;;  %v406_v58 = vadd.s32 %v10273_v53, %v10281_v59  ;;  %v509_v12 = vmul.u32 %v10296_v7, %v493_v63 }
  0x4d   : > { %v325_v52 = vor.u32 4788187, %v324_v3  ;;  %v328_v54 = vcvt.s32.f32 %v321_v48  ;;  %vm9167_vm6 = vcmp.lt.s32.totalorder %v9166_v50, 0  ;;  %v572_v60 = vand.u32 31, %v570_v55 }
  0x4e   : > { %v421_v27 = vsel %vm9167_vm6, 0, %v9166_v50  ;;  %vm511_vm7 = vc.u32 %v10355_v49, %v10358_v51  ;;  %vm10372_vm8 = vcmp.le.f32.partialorder %v350_v34, 0.7853982  ;;  %v512_v53 = vadd.s32 1, %v10359_v1 }
  0x4f   : > { %v326_v8 = vand.u32 2147483647, %v325_v52  ;;  %v422_v19 = vsub.s32 32, %v421_v27  ;;  %v423_v21 = vshll.u32 %v10335_v0, %v421_v27  ;;  %v426_v23 = vsub.s32 4294967266, %v421_v27 }
  0x50   : > { %v437_v7 = vsel %vm352_vm4, %v436_v30, %v10326_v46  ;;  %v10381_v25 = vshrl.u32 %v570_v55, 5  ;;  %v573_v33 = vsub.s32 32, %v572_v60  ;;  %v513_v34 = vsel %vm511_vm7, %v512_v53, %v10359_v1 }
  0x51   : > { %v329_v59 = vmul.f32 %v328_v54, %v326_v8  ;;  %v424_v35 = vshrl.u32 %v406_v58, %v422_v19  ;;  %v427_v32 = vadd.s32 127, %v426_v23  ;;  %v575_v36 = vshll.u32 %v16032_v11, %v572_v60 }
  0x52   : > { %v514_v31 = vadd.s32 %v513_v34, %v509_v12  ;;  %v576_v0 = vshrl.u32 %v16017_v13, %v573_v33  ;;  %v578_v5 = vshll.u32 %v16017_v13, %v572_v60  ;;  %v579_v41 = vshrl.u32 %v16015_v18, %v573_v33 }
  0x53   : > { %v330_v38 = vxor.u32 2147483648, %v329_v59  ;;  %v425_v39 = vor.u32 %v424_v35, %v423_v21  ;;  %v428_v40 = vshll.u32 %v427_v32, 23  ;;  %v581_v46 = vshll.u32 %v16015_v18, %v572_v60 }
  0x54   : > { %v515_v43 = vadd.s32 536870912, %v514_v31  ;;  %v582_v44 = vshrl.u32 %v16028_v22, %v573_v33  ;;  %v584_v45 = vshll.u32 %v16028_v22, %v572_v60  ;;  %v577_v9 = vor.u32 %v576_v0, %v575_v36 }
  0x55   : > { %v331_v42 = vsel %vm248_vm12, %v330_v38, %v329_v59  ;;  %v429_v48 = vor.u32 4788187, %v428_v40  ;;  %v432_v3 = vcvt.s32.f32 %v425_v39  ;;  %v580_v1 = vor.u32 %v579_v41, %v578_v5 }
  0x56   : > { %v334_v63 = vsel %vm10305_vm14, %v10109_v26, %v331_v42  ;;  %v516_v50 = vshrl.u32 %v515_v43, 30  ;;  %v585_v52 = vshrl.u32 %v16026_v24, %v573_v33  ;;  %v587_v30 = vshll.u32 %v16026_v24, %v572_v60 }
  0x57   : > { %9747 = vcosq.f32 %v334_v63  ;;  %v430_v54 = vand.u32 2147483647, %v429_v48  ;;  %v588_v55 = vshrl.u32 %v16024_v37, %v573_v33  ;;  %v439_v58 = vsel %vm10372_vm8, 0, %v437_v7 }
  0x58   : > { %9749 = vsinq.f32 %v334_v63  ;;  %v517_v8 = vshll.u32 %v516_v50, 30  ;;  %v586_v16 = vor.u32 %v585_v52, %v584_v45  ;;  %vm590_vm9 = vcmp.lt.s32.totalorder %v10381_v25, 1 }
  0x59   : > { %v433_v27 = vmul.f32 %v432_v3, %v430_v54  ;;  %v574_v12 = vshrl.u32 %v16032_v11, %v573_v33  ;;  %v583_v19 = vor.u32 %v582_v44, %v581_v46  ;;  %v10405_v21 = vshll.u32 %v566_v47, 8 }
  0x5a   : > { %vm456_vm10 = vcmp.lt.s32.totalorder %v10118_v29, 0  ;;  %v10408_v60 = vsub.s32 %v514_v31, %v517_v8  ;;  %v589_v23 = vor.u32 %v588_v55, %v587_v30  ;;  %vm592_vm11 = vcmp.lt.s32.totalorder %v10381_v25, 3 }
  0x5b   : > { %vm593_vm12 = vcmp.lt.s32.totalorder %v10381_v25, 4  ;;  %v434_v53 = vxor.u32 2147483648, %v433_v27  ;;  %vm591_vm13 = vcmp.lt.s32.totalorder %v10381_v25, 2  ;;  %v598_v6 = vsel %vm590_vm9, %v577_v9, %v580_v1 }
  0x5c   : > { %v595_v59 = vsel %vm593_vm12, %v583_v19, 2102212464  ;;  %v443_v47 = vadd.s32 3, %v439_v58  ;;  %v520_v7 = vsub.s32 0, %v10408_v60  ;;  %v540_v33 = vsub.s32 4, %v516_v50 }
  0x5d   : > { %v599_v35 = vsel %vm593_vm12, %v586_v16, 920167782  ;;  %v435_v32 = vsel %vm352_vm4, %v434_v53, %v433_v27  ;;  %v594_v34 = vsel %vm590_vm9, %v574_v12, %v577_v9  ;;  %v596_v36 = vsel %vm592_vm11, %v580_v1, %v595_v59 }
  0x5e   : > { %v600_v38 = vsel %vm592_vm11, %v583_v19, %v599_v35  ;;  %vm338_vm14 = vweird.f32 %v10109_v26  ;;  %v438_v31 = vsel %vm10372_vm8, %v10115_v28, %v435_v32  ;;  %v9169_v0 = vmin.u32 %v520_v7, %v10408_v60 }
  0x5f   : > { %v601_v5 = vsel %vm591_vm13, %v598_v6, %v600_v38  ;;  %v602_v39 = vsel %vm590_vm9, %v580_v1, %v583_v19  ;;  %9751 = vcosq.f32 %v438_v31  ;;  %v603_v40 = vsel %vm593_vm12, %v589_v23, 1326507024 }
  0x60   : > { %v10440_v41 = vmul.u32.u64.low %v10405_v21, %v601_v5  ;;  %v10441_v46 = vmul.u32.u64.high %v10405_v21, %v601_v5, %v10440_v41  ;;  %vm341_vm15 = vcmp.lt.s32.totalorder %v10363_v57, 2  ;;  %9753 = vsinq.f32 %v438_v31 }
  0x61   : > { %vm10447_vm0 = vcmp.le.f32.partialorder %v454_v56, 0.7853982  ;;  %v522_v42 = vclz %v9169_v0  ;;  %vm342_vm1 = vcmp.eq.s32.totalorder %v10363_v57, 0  ;;  %vm345_vm2 = vcmp.eq.s32.totalorder %v10363_v57, 2 }
  0x62   : > { %v604_v43 = vsel %vm592_vm11, %v586_v16, %v603_v40  ;;  %v10457_v44 = vadd.f32 %v10088_v17, %v10287_v2  ;;  %v10459_v45 = vand.u32 3, %v443_v47  ;;  %v597_v56 = vsel %vm591_vm13, %v594_v34, %v596_v36 }
  0x63   : > { %v9170_v63 = vadd.s32 4294967294, %v522_v42  ;;  %v605_v48 = vsel %vm591_vm13, %v602_v39, %v604_v43  ;;  %v510_v9 = vadd.s32 %v10358_v51, %v10355_v49  ;;  %v541_v1 = vsel %vm456_vm10, %v540_v33, %v516_v50 }
  0x64   : > { %v9748_v3 = vpop.eup %9747  ;;  %v10470_v52 = vmul.u32.u64.low %v10405_v21, %v605_v48  ;;  %v10471_v2 = vmul.u32.u64.high %v10405_v21, %v605_v48, %v10470_v52  ;;  %v616_v55 = vadd.s32 1, %v10441_v46  ;;  %v665_v58 = vand.u32 2139095040, %v10457_v44 }
  0x65   : > { %v9750_v54 = vpop.eup %9749  ;;  %v346_v30 = vxor.u32 2147483648, %v9748_v3  ;;  %vm9171_vm3 = vcmp.lt.s32.totalorder %v9170_v63, 0  ;;  %v613_v16 = vmul.u32 %v10405_v21, %v597_v56  ;;  %v662_v49 = vand.u32 2147483647, %v10457_v44 }
  0x66   : > { %v343_v25 = vxor.u32 2147483648, %v9750_v54  ;;  %v525_v8 = vsel %vm9171_vm3, 0, %v9170_v63  ;;  %v543_v23 = vsel %vm10447_vm0, 0, %v541_v1  ;;  %vm615_vm4 = vc.u32 %v10471_v2, %v10440_v41 }
  0x67   : > { %v347_v51 = vsel %vm345_vm2, %v346_v30, %v9750_v54  ;;  %v526_v50 = vsub.s32 32, %v525_v8  ;;  %v527_v27 = vshll.u32 %v10408_v60, %v525_v8  ;;  %v530_v12 = vsub.s32 4294967266, %v525_v8  ;;  %v10492_v60 = vld [vmem:[%s16012_s1 + $0x20] ss:$0 sm:$0xff] }
  0x68   : > { %v344_v19 = vsel %vm342_vm1, %v9748_v3, %v343_v25  ;;  %v666_v53 = vshrl.u32 %v665_v58, 23  ;;  %v617_v47 = vsel %vm615_vm4, %v616_v55, %v10441_v46  ;;  %v669_v32 = vand.u32 8388607, %v662_v49 }
  0x69   : > { %v348_v21 = vsel %vm341_vm15, %v344_v19, %v347_v51  ;;  %v528_v59 = vshrl.u32 %v510_v9, %v526_v50  ;;  %v531_v6 = vadd.s32 127, %v530_v12  ;;  %v618_v33 = vadd.s32 %v617_v47, %v613_v16 }
  0x6a   : > { %v349_v7 = vsel %vm338_vm14, nan, %v348_v21  ;;  %v9176_v35 = vadd.s32 4294967169, %v666_v53  ;;  %vm445_vm5 = vcmp.lt.s32.totalorder %v10459_v45, 2  ;;  %vm446_vm6 = vcmp.eq.s32.totalorder %v10459_v45, 0 }
  0x6b   : > { %v3574_v57 = vsub.f32 %v349_v7, %v10075_v14  ;;  %v529_v34 = vor.u32 %v528_v59, %v527_v27  ;;  %v532_v36 = vshll.u32 %v531_v6, 23  ;;  %vm449_vm7 = vcmp.eq.s32.totalorder %v10459_v45, 2 }
  0x6c   : > { %v619_v38 = vadd.s32 536870912, %v618_v33  ;;  %v672_v31 = vadd.s32 1, %v9176_v35  ;;  %v9752_v0 = vpop.eup %9751  ;;  %v547_v40 = vadd.s32 3, %v543_v23  ;;  %v670_v63 = vor.u32 8388608, %v669_v32 }
  0x6d   : > { %v3606_v26 = vmul.f32 %v3574_v57, %v10492_v60  ;;  %v533_v5 = vor.u32 4788187, %v532_v36  ;;  %v536_v39 = vcvt.s32.f32 %v529_v34  ;;  %v9754_v46 = vpop.eup %9753  ;;  %v450_v42 = vxor.u32 2147483648, %v9752_v0 }
  0x6e   : > { %v10503_v43 = vshrl.u32 %v619_v38, 30  ;;  %vm673_vm8 = vcmp.gt.s32.totalorder %v672_v31, 0  ;;  %v447_v48 = vxor.u32 2147483648, %v9754_v46  ;;  %vm442_vm9 = vweird.f32 %v10115_v28 }
  0x6f   : > { %v3638_v56 = vadd.f32 %v3606_v26, %v10075_v14  ;;  %v534_v3 = vand.u32 2147483647, %v533_v5  ;;  %v674_v9 = vsel %vm673_vm8, %v672_v31, 0  ;;  %v451_v1 = vsel %vm449_vm7, %v450_v42, %v9754_v46 }
  0x70   : > { %v621_v52 = vshll.u32 %v10503_v43, 30  ;;  %v448_v54 = vsel %vm446_vm6, %v9752_v0, %v447_v48  ;;  %v10512_v55 = vand.u32 3, %v547_v40  ;;  %v676_v58 = vand.u32 31, %v674_v9 }
  0x71   : > { %4021 = vmatmul.mubr.f32.vlgmr.msra.gmra.mxu1 %v3638_v56  ;;  %v537_v30 = vmul.f32 %v536_v39, %v534_v3  ;;  %9501 = vmatprep.mubr.f32.mxu0 %v3638_v56  ;;  %v452_v14 = vsel %vm445_vm5, %v448_v54, %v451_v1  ;;  %v614_v28 = vadd.s32 %v10440_v41, %v10471_v2  ;;  %v10525_v27 = vshll.u32 %v670_v63, 8  ;;  %v10633_v39 = vld [vmem:[%s16012_s1 + $0x10] ss:$0 sm:$0xff] }
  0x72   : > { %4026 = vmatprep.mubr.f32.mxu1 %v16021_v4  ;;  %v10519_v25 = vsub.s32 %v618_v33, %v621_v52  ;;  %v10523_v8 = vadd.f32 %v10088_v17, %v10290_v10  ;;  %v453_v16 = vsel %vm442_vm9, nan, %v452_v14  ;;  %v677_v50 = vsub.s32 32, %v676_v58 }
  0x73   : > { %v538_v51 = vxor.u32 2147483648, %v537_v30  ;;  %v3575_v12 = vsub.f32 %v453_v16, %v10096_v20  ;;  %v675_v45 = vshrl.u32 %v674_v9, 5  ;;  %v679_v2 = vshll.u32 %v16032_v11, %v676_v58 }
  0x74   : > { %v624_v19 = vsub.s32 0, %v10519_v25  ;;  %v766_v23 = vand.u32 2147483647, %v10523_v8  ;;  %v680_v17 = vshrl.u32 %v16017_v13, %v677_v50  ;;  %v682_v10 = vshll.u32 %v16017_v13, %v676_v58 }
  0x75   : > { %v539_v41 = vsel %vm456_vm10, %v538_v51, %v537_v30  ;;  %v3607_v53 = vmul.f32 %v3575_v12, %v10492_v60  ;;  %vm560_vm11 = vcmp.lt.s32.totalorder %v10163_v61, 0  ;;  %v644_v6 = vsub.s32 4, %v10503_v43 }
  0x76   : > { %v542_v21 = vsel %vm10447_vm0, %v10118_v29, %v539_v41  ;;  %v9173_v59 = vmin.u32 %v624_v19, %v10519_v25  ;;  %v683_v47 = vshrl.u32 %v16015_v18, %v677_v50  ;;  %v685_v7 = vshll.u32 %v16015_v18, %v676_v58 }
  0x77   : > { %9755 = vcosq.f32 %v542_v21  ;;  %v769_v33 = vand.u32 2139095040, %v10523_v8  ;;  %v10546_v35 = vadd.f32 %v3607_v53, %v10096_v20  ;;  %v678_v15 = vshrl.u32 %v16032_v11, %v677_v50 }
  0x78   : > { %9757 = vsinq.f32 %v542_v21  ;;  %v626_v32 = vclz %v9173_v59  ;;  %v681_v57 = vor.u32 %v680_v17, %v679_v2  ;;  %v684_v34 = vor.u32 %v683_v47, %v682_v10 }
  0x79   : > { %v686_v36 = vshrl.u32 %v16028_v22, %v677_v50  ;;  %vm694_vm10 = vcmp.lt.s32.totalorder %v675_v45, 1  ;;  %4027 = vmatmul.mubr.f32.gmra.mxu1 %v10546_v35  ;;  %v688_v31 = vshll.u32 %v16028_v22, %v676_v58  ;;  %v689_v0 = vshrl.u32 %v16026_v24, %v677_v50 }
  0x7a   : > { %v9174_v38 = vadd.s32 4294967294, %v626_v32  ;;  %v691_v26 = vshll.u32 %v16026_v24, %v676_v58  ;;  %4032 = vmatprep.mubr.f32.mxu1 %v16021_v4  ;;  %v692_v5 = vshrl.u32 %v16024_v37, %v677_v50  ;;  %vm695_vm12 = vcmp.lt.s32.totalorder %v675_v45, 2 }
  0x7b   : > { %v687_v20 = vor.u32 %v686_v36, %v685_v7  ;;  %vm696_vm13 = vcmp.lt.s32.totalorder %v675_v45, 3  ;;  %vm10558_vm14 = vcmp.le.f32.partialorder %v558_v62, 0.7853982  ;;  %v690_v40 = vor.u32 %v689_v0, %v688_v31 }
  0x7c   : > { %vm9175_vm15 = vcmp.lt.s32.totalorder %v9174_v38, 0  ;;  %vm697_vm0 = vcmp.lt.s32.totalorder %v675_v45, 4  ;;  %v698_v46 = vsel %vm694_vm10, %v678_v15, %v681_v57  ;;  %v693_v63 = vor.u32 %v692_v5, %v691_v26  ;;  %v10606_v5 = vld [vmem:[%s16012_s1] ss:$0 sm:$0xff] }
  0x7d   : > { %v629_v42 = vsel %vm9175_vm15, 0, %v9174_v38  ;;  %v699_v56 = vsel %vm697_vm0, %v687_v20, 2102212464  ;;  %v702_v48 = vsel %vm694_vm10, %v681_v57, %v684_v34  ;;  %v645_v62 = vsel %vm560_vm11, %v644_v6, %v10503_v43  ;;  %v10591_v57 = vld [vmem:[%s10063_s7 + $0x30] sm:$0xff] }
  0x7e   : > { %v630_v3 = vsub.s32 32, %v629_v42  ;;  %v631_v9 = vshll.u32 %v10519_v25, %v629_v42  ;;  %v634_v1 = vsub.s32 4294967266, %v629_v42  ;;  %v700_v52 = vsel %vm696_vm13, %v684_v34, %v699_v56 }
  0x7f   : > { %v703_v54 = vsel %vm697_vm0, %v690_v40, 920167782  ;;  %v706_v30 = vsel %vm694_vm10, %v684_v34, %v687_v20  ;;  %v707_v58 = vsel %vm697_vm0, %v693_v63, 1326507024  ;;  %v701_v12 = vsel %vm695_vm12, %v698_v46, %v700_v52 }
  0x80   : > { %v632_v14 = vshrl.u32 %v614_v28, %v630_v3  ;;  %v635_v16 = vadd.s32 127, %v634_v1  ;;  %v704_v51 = vsel %vm696_vm13, %v687_v20, %v703_v54  ;;  %v708_v50 = vsel %vm696_vm13, %v690_v40, %v707_v58  ;;  %v9956_v1 = vld [vmem:[%s10063_s7 + $0x10] sm:$0xff] }
  0x81   : > { %v705_v25 = vsel %vm695_vm12, %v702_v48, %v704_v51  ;;  %v709_v19 = vsel %vm695_vm12, %v706_v30, %v708_v50  ;;  %v770_v41 = vshrl.u32 %v769_v33, 23  ;;  %vm549_vm1 = vcmp.lt.s32.totalorder %v10512_v55, 2 }
  0x82   : > { %v633_v2 = vor.u32 %v632_v14, %v631_v9  ;;  %v636_v43 = vshll.u32 %v635_v16, 23  ;;  %v10576_v17 = vmul.u32.u64.low %v10525_v27, %v709_v19  ;;  %v10577_v10 = vmul.u32.u64.high %v10525_v27, %v709_v19, %v10576_v17 }
  0x83   : > { %v10581_v28 = vmul.u32.u64.low %v10525_v27, %v705_v25  ;;  %v10582_v53 = vmul.u32.u64.high %v10525_v27, %v705_v25, %v10581_v28  ;;  %v9180_v21 = vadd.s32 4294967169, %v770_v41  ;;  %vm550_vm2 = vcmp.eq.s32.totalorder %v10512_v55, 0 }
  0x84   : > { %v9756_v59 = vpop.eup %9755  ;;  %vm553_vm3 = vcmp.eq.s32.totalorder %v10512_v55, 2  ;;  %v637_v45 = vor.u32 4788187, %v636_v43  ;;  %v640_v6 = vcvt.s32.f32 %v633_v2  ;;  %v647_v33 = vsel %vm10558_vm14, 0, %v645_v62 }
  0x85   : > { %v9758_v47 = vpop.eup %9757  ;;  %v554_v7 = vxor.u32 2147483648, %v9756_v59  ;;  %v717_v32 = vmul.u32 %v10525_v27, %v701_v12  ;;  %v776_v15 = vadd.s32 1, %v9180_v21  ;;  %vm719_vm4 = vc.u32 %v10577_v10, %v10581_v28 }
  0x86   : > { %v551_v34 = vxor.u32 2147483648, %v9758_v47  ;;  %v638_v36 = vand.u32 2147483647, %v637_v45  ;;  %v773_v38 = vand.u32 8388607, %v766_v23  ;;  %vm546_vm5 = vweird.f32 %v10118_v29 }
  0x87   : > { %v555_v31 = vsel %vm553_vm3, %v554_v7, %v9758_v47  ;;  %v720_v0 = vadd.s32 1, %v10582_v53  ;;  %vm777_vm6 = vcmp.gt.s32.totalorder %v776_v15, 0  ;;  %v186_v29 = vmul.f32 %v10606_v5, %v10591_v57 }
  0x88   : > { %v552_v27 = vsel %vm550_vm2, %v9756_v59, %v551_v34  ;;  %v641_v26 = vmul.f32 %v640_v6, %v638_v36  ;;  %v778_v20 = vsel %vm777_vm6, %v776_v15, 0  ;;  %v651_v46 = vadd.s32 3, %v647_v33 }
  0x89   : > { %v556_v40 = vsel %vm549_vm1, %v552_v27, %v555_v31  ;;  %v721_v42 = vsel %vm719_vm4, %v720_v0, %v10582_v53  ;;  %v780_v63 = vand.u32 31, %v778_v20  ;;  %v774_v9 = vor.u32 8388608, %v773_v38 }
  0x8a   : > { %v557_v56 = vsel %vm546_vm5, nan, %v556_v40  ;;  %v642_v48 = vxor.u32 2147483648, %v641_v26  ;;  %v722_v3 = vadd.s32 %v721_v42, %v717_v32  ;;  %v779_v62 = vshrl.u32 %v778_v20, 5 }
  0x8b   : > { %v3576_v52 = vsub.f32 %v557_v56, %v9956_v1  ;;  %v781_v54 = vsub.s32 32, %v780_v63  ;;  %v783_v30 = vshll.u32 %v16032_v11, %v780_v63  ;;  %v786_v55 = vshll.u32 %v16017_v13, %v780_v63 }
  0x8c   : > { %v643_v58 = vsel %vm560_vm11, %v642_v48, %v641_v26  ;;  %v723_v14 = vadd.s32 536870912, %v722_v3  ;;  %v789_v16 = vshll.u32 %v16015_v18, %v780_v63  ;;  %v792_v25 = vshll.u32 %v16028_v22, %v780_v63 }
  0x8d   : > { %v3608_v51 = vmul.f32 %v3576_v52, %v10492_v60  ;;  %v646_v50 = vsel %vm10558_vm14, %v10163_v61, %v643_v58  ;;  %v784_v12 = vshrl.u32 %v16017_v13, %v781_v54  ;;  %v787_v41 = vshrl.u32 %v16015_v18, %v781_v54 }
  0x8e   : > { %9759 = vcosq.f32 %v646_v50  ;;  %v724_v19 = vshrl.u32 %v723_v14, 30  ;;  %v790_v2 = vshrl.u32 %v16028_v22, %v781_v54  ;;  %v793_v17 = vshrl.u32 %v16026_v24, %v781_v54 }
  0x8f   : > { %v10627_v43 = vadd.f32 %v9956_v1, %v3608_v51  ;;  %9761 = vsinq.f32 %v646_v50  ;;  %v10636_v53 = vadd.f32 %v10633_v39, %v186_v29  ;;  %v782_v59 = vshrl.u32 %v16032_v11, %v781_v54 }
  0x90   : > { %v725_v21 = vshll.u32 %v724_v19, 30  ;;  %v785_v45 = vor.u32 %v784_v12, %v783_v30  ;;  %v788_v6 = vor.u32 %v787_v41, %v786_v55  ;;  %v794_v47 = vor.u32 %v793_v17, %v792_v25 }
  0x91   : > { %4033 = vmatmul.mubr.f32.gmra.mxu1 %v10627_v43  ;;  %v795_v7 = vshll.u32 %v16026_v24, %v780_v63  ;;  %v796_v33 = vshrl.u32 %v16024_v37, %v781_v54  ;;  %vm798_vm7 = vcmp.lt.s32.totalorder %v779_v62, 1  ;;  %v652_v32 = vand.u32 3, %v651_v46 }
  0x92   : > { %4038 = vmatprep.mubr.f32.mxu1 %v16021_v4  ;;  %v10643_v15 = vsub.s32 %v722_v3, %v725_v21  ;;  %v791_v34 = vor.u32 %v790_v2, %v789_v16  ;;  %v814_v36 = vshll.u32 %v774_v9, 8  ;;  %vm800_vm8 = vcmp.lt.s32.totalorder %v779_v62, 3 }
  0x93   : > { %v797_v38 = vor.u32 %v796_v33, %v795_v7  ;;  %vm801_vm9 = vcmp.lt.s32.totalorder %v779_v62, 4  ;;  %v873_v31 = vand.u32 2139095040, %v10636_v53  ;;  %vm799_vm11 = vcmp.lt.s32.totalorder %v779_v62, 2 }
  0x94   : > { %v728_v0 = vsub.s32 0, %v10643_v15  ;;  %v803_v27 = vsel %vm801_vm9, %v791_v34, 2102212464  ;;  %v806_v26 = vsel %vm798_vm7, %v785_v45, %v788_v6  ;;  %v802_v20 = vsel %vm798_vm7, %v782_v59, %v785_v45 }
  0x95   : > { %v804_v29 = vsel %vm800_vm8, %v788_v6, %v803_v27  ;;  %v807_v40 = vsel %vm801_vm9, %v794_v47, 920167782  ;;  %v811_v46 = vsel %vm801_vm9, %v797_v38, 1326507024  ;;  %vm650_vm10 = vweird.f32 %v10163_v61 }
  0x96   : > { %v9177_v42 = vmin.u32 %v728_v0, %v10643_v15  ;;  %v808_v63 = vsel %vm800_vm8, %v791_v34, %v807_v40  ;;  %v810_v56 = vsel %vm798_vm7, %v788_v6, %v791_v34  ;;  %vm664_vm12 = vcmp.lt.s32.totalorder %v10457_v44, 0 }
  0x97   : > { %v809_v48 = vsel %vm799_vm11, %v806_v26, %v808_v63  ;;  %v812_v3 = vsel %vm800_vm8, %v794_v47, %v811_v46  ;;  %v874_v9 = vshrl.u32 %v873_v31, 23  ;;  %vm653_vm13 = vcmp.lt.s32.totalorder %v652_v32, 2 }
  0x98   : > { %v730_v1 = vclz %v9177_v42  ;;  %v748_v52 = vsub.s32 4, %v724_v19  ;;  %v805_v54 = vsel %vm799_vm11, %v802_v20, %v804_v29  ;;  %v813_v30 = vsel %vm799_vm11, %v810_v56, %v812_v3  ;;  %v9958_v29 = vld [vmem:[%s10063_s7 + $0x18] sm:$0xff] }
  0x99   : > { %v10659_v58 = vmul.u32.u64.low %v814_v36, %v809_v48  ;;  %v10660_v14 = vmul.u32.u64.high %v814_v36, %v809_v48, %v10659_v58  ;;  %v9184_v55 = vadd.s32 4294967169, %v874_v9  ;;  %vm654_vm14 = vcmp.eq.s32.totalorder %v652_v32, 0 }
  0x9a   : > { %v9178_v16 = vadd.s32 4294967294, %v730_v1  ;;  %v10663_v51 = vmul.u32.u64.low %v814_v36, %v813_v30  ;;  %v10664_v50 = vmul.u32.u64.high %v814_v36, %v813_v30, %v10663_v51  ;;  %vm657_vm15 = vcmp.eq.s32.totalorder %v652_v32, 2 }
  0x9b   : > { %v9760_v12 = vpop.eup %9759  ;;  %v718_v25 = vadd.s32 %v10581_v28, %v10577_v10  ;;  %v870_v41 = vand.u32 2147483647, %v10636_v53  ;;  %v880_v2 = vadd.s32 1, %v9184_v55  ;;  %v10671_v21 = vsel %vm664_vm12, %v748_v52, %v724_v19 }
  0x9c   : > { %v9762_v62 = vpop.eup %9761  ;;  %v658_v17 = vxor.u32 2147483648, %v9760_v12  ;;  %vm9179_vm0 = vcmp.lt.s32.totalorder %v9178_v16, 0  ;;  %v821_v59 = vmul.u32 %v814_v36, %v805_v54  ;;  %v824_v47 = vadd.s32 1, %v10660_v14 }
  0x9d   : > { %v655_v45 = vxor.u32 2147483648, %v9762_v62  ;;  %v733_v6 = vsel %vm9179_vm0, 0, %v9178_v16  ;;  %vm881_vm1 = vcmp.gt.s32.totalorder %v880_v2, 0  ;;  %vm823_vm2 = vc.u32 %v10664_v50, %v10659_v58 }
  0x9e   : > { %v659_v7 = vsel %vm657_vm15, %v658_v17, %v9762_v62  ;;  %v734_v33 = vsub.s32 32, %v733_v6  ;;  %v735_v10 = vshll.u32 %v10643_v15, %v733_v6  ;;  %v738_v28 = vsub.s32 4294967266, %v733_v6 }
  0x9f   : > { %v656_v34 = vsel %vm654_vm14, %v9760_v12, %v655_v45  ;;  %v877_v19 = vand.u32 8388607, %v870_v41  ;;  %v882_v36 = vsel %vm881_vm1, %v880_v2, 0  ;;  %v825_v27 = vsel %vm823_vm2, %v824_v47, %v10660_v14  ;;  %v10701_v14 = vld [vmem:[%s10063_s7 + $0x38] sm:$0xff] }
  0xa0   : > { %v660_v38 = vsel %vm653_vm13, %v656_v34, %v659_v7  ;;  %v736_v31 = vshrl.u32 %v718_v25, %v734_v33  ;;  %v739_v0 = vadd.s32 127, %v738_v28  ;;  %v826_v15 = vadd.s32 %v825_v27, %v821_v59 }
  0xa1   : > { %v661_v26 = vsel %vm650_vm10, nan, %v660_v38  ;;  %v884_v20 = vand.u32 31, %v882_v36  ;;  %vm10687_vm3 = vcmp.le.f32.partialorder %v662_v49, 0.7853982  ;;  %v878_v1 = vor.u32 8388608, %v877_v19 }
  0xa2   : > { %v3577_v40 = vsub.f32 %v661_v26, %v9958_v29  ;;  %v737_v32 = vor.u32 %v736_v31, %v735_v10  ;;  %v740_v42 = vshll.u32 %v739_v0, 23  ;;  %v751_v63 = vsel %vm10687_vm3, 0, %v10671_v21 }
  0xa3   : > { %v827_v56 = vadd.s32 536870912, %v826_v15  ;;  %v885_v61 = vsub.s32 32, %v884_v20  ;;  %v887_v49 = vshll.u32 %v16032_v11, %v884_v20  ;;  %v890_v30 = vshll.u32 %v16017_v13, %v884_v20 }
  0xa4   : > { %v3609_v48 = vmul.f32 %v3577_v40, %v10492_v60  ;;  %v741_v3 = vor.u32 4788187, %v740_v42  ;;  %v744_v9 = vcvt.s32.f32 %v737_v32  ;;  %v896_v12 = vshll.u32 %v16028_v22, %v884_v20 }
  0xa5   : > { %v10695_v52 = vshrl.u32 %v827_v56, 30  ;;  %v888_v54 = vshrl.u32 %v16017_v13, %v885_v61  ;;  %v891_v51 = vshrl.u32 %v16015_v18, %v885_v61  ;;  %v883_v2 = vshrl.u32 %v882_v36, 5 }
  0xa6   : > { %v10703_v55 = vadd.f32 %v9958_v29, %v3609_v48  ;;  %v742_v16 = vand.u32 2147483647, %v741_v3  ;;  %v893_v62 = vshll.u32 %v16015_v18, %v884_v20  ;;  %v894_v17 = vshrl.u32 %v16028_v22, %v885_v61 }
  0xa7   : > { %v829_v25 = vshll.u32 %v10695_v52, 30  ;;  %v897_v59 = vshrl.u32 %v16026_v24, %v885_v61  ;;  %v899_v45 = vshll.u32 %v16026_v24, %v884_v20  ;;  %v187_v6 = vmul.f32 %v10606_v5, %v10701_v14 }
  0xa8   : > { %4039 = vmatmul.mubr.f32.gmra.mxu1 %v10703_v55  ;;  %v745_v21 = vmul.f32 %v744_v9, %v742_v16  ;;  %v886_v7 = vshrl.u32 %v16032_v11, %v885_v61  ;;  %v900_v33 = vshrl.u32 %v16024_v37, %v885_v61  ;;  %v10720_v10 = vshll.u32 %v878_v1, 8 }
  0xa9   : > { %4044 = vmatprep.mubr.f32.mxu1 %v16021_v4  ;;  %v10716_v47 = vsub.s32 %v826_v15, %v829_v25  ;;  %v889_v34 = vor.u32 %v888_v54, %v887_v49  ;;  %v892_v19 = vor.u32 %v891_v51, %v890_v30  ;;  %v898_v36 = vor.u32 %v897_v59, %v896_v12 }
  0xaa   : > { %v746_v28 = vxor.u32 2147483648, %v745_v21  ;;  %v895_v31 = vor.u32 %v894_v17, %v893_v62  ;;  %vm902_vm4 = vcmp.lt.s32.totalorder %v883_v2, 1  ;;  %vm903_vm5 = vcmp.lt.s32.totalorder %v883_v2, 2 }
  0xab   : > { %v832_v38 = vsub.s32 0, %v10716_v47  ;;  %v901_v27 = vor.u32 %v900_v33, %v899_v45  ;;  %vm904_vm6 = vcmp.lt.s32.totalorder %v883_v2, 3  ;;  %vm905_vm7 = vcmp.lt.s32.totalorder %v883_v2, 4 }
  0xac   : > { %v747_v0 = vsel %vm664_vm12, %v746_v28, %v745_v21  ;;  %v906_v20 = vsel %vm902_vm4, %v886_v7, %v889_v34  ;;  %v907_v29 = vsel %vm905_vm7, %v895_v31, 2102212464  ;;  %v910_v32 = vsel %vm902_vm4, %v889_v34, %v892_v19 }
  0xad   : > { %v750_v26 = vsel %vm10687_vm3, %v10457_v44, %v747_v0  ;;  %v9181_v15 = vmin.u32 %v832_v38, %v10716_v47  ;;  %v908_v40 = vsel %vm904_vm6, %v892_v19, %v907_v29  ;;  %v911_v42 = vsel %vm905_vm7, %v898_v36, 920167782 }
  0xae   : > { %9763 = vcosq.f32 %v750_v26  ;;  %v914_v61 = vsel %vm902_vm4, %v892_v19, %v895_v31  ;;  %v755_v48 = vadd.s32 3, %v751_v63  ;;  %v852_v3 = vsub.s32 4, %v10695_v52 }
  0xaf   : > { %9765 = vsinq.f32 %v750_v26  ;;  %v834_v56 = vclz %v9181_v15  ;;  %v912_v46 = vsel %vm904_vm6, %v895_v31, %v911_v42  ;;  %v915_v9 = vsel %vm905_vm7, %v901_v27, 1326507024 }
  0xb0   : > { %v909_v49 = vsel %vm903_vm5, %v906_v20, %v908_v40  ;;  %v913_v54 = vsel %vm903_vm5, %v910_v32, %v912_v46  ;;  %v916_v30 = vsel %vm904_vm6, %v898_v36, %v915_v9  ;;  %v10744_v63 = vadd.f32 %v10633_v39, %v187_v6  ;;  %v10762_v36 = vld [vmem:[%s10063_s7 + $0x40] sm:$0xff] }
  0xb1   : > { %v9182_v1 = vadd.s32 4294967294, %v834_v56  ;;  %v917_v16 = vsel %vm903_vm5, %v914_v61, %v916_v30  ;;  %v10740_v51 = vmul.u32.u64.low %v10720_v10, %v913_v54  ;;  %v10741_v12 = vmul.u32.u64.high %v10720_v10, %v913_v54, %v10740_v51 }
  0xb2   : > { %v822_v25 = vadd.s32 %v10659_v58, %v10664_v50  ;;  %v10749_v62 = vmul.u32.u64.low %v10720_v10, %v917_v16  ;;  %v10750_v17 = vmul.u32.u64.high %v10720_v10, %v917_v16, %v10749_v62  ;;  %vm768_vm9 = vcmp.lt.s32.totalorder %v10523_v8, 0 }
  0xb3   : > { %vm9183_vm8 = vcmp.lt.s32.totalorder %v9182_v1, 0  ;;  %v977_v21 = vand.u32 2139095040, %v10744_v63  ;;  %v925_v6 = vmul.u32 %v10720_v10, %v909_v49  ;;  %v756_v33 = vand.u32 3, %v755_v48 }
  0xb4   : > { %v837_v2 = vsel %vm9183_vm8, 0, %v9182_v1  ;;  %v853_v58 = vsel %vm768_vm9, %v852_v3, %v10695_v52  ;;  %v928_v50 = vadd.s32 1, %v10741_v12  ;;  %vm927_vm11 = vc.u32 %v10750_v17, %v10740_v51 }
  0xb5   : > { %v838_v59 = vsub.s32 32, %v837_v2  ;;  %v839_v45 = vshll.u32 %v10716_v47, %v837_v2  ;;  %v842_v7 = vsub.s32 4294967266, %v837_v2  ;;  %v978_v28 = vshrl.u32 %v977_v21, 23 }
  0xb6   : > { %vm10766_vm10 = vcmp.le.f32.partialorder %v766_v23, 0.7853982  ;;  %v929_v10 = vsel %vm927_vm11, %v928_v50, %v10741_v12  ;;  %v974_v38 = vand.u32 2147483647, %v10744_v63  ;;  %vm757_vm12 = vcmp.lt.s32.totalorder %v756_v33, 2 }
  0xb7   : > { %v840_v34 = vshrl.u32 %v822_v25, %v838_v59  ;;  %v843_v19 = vadd.s32 127, %v842_v7  ;;  %v9188_v52 = vadd.s32 4294967169, %v978_v28  ;;  %v855_v27 = vsel %vm10766_vm10, 0, %v853_v58  ;;  %v9959_v58 = vld [vmem:[%s10063_s7 + $0x20] sm:$0xff] }
  0xb8   : > { %v930_v26 = vadd.s32 %v929_v10, %v925_v6  ;;  %vm758_vm13 = vcmp.eq.s32.totalorder %v756_v33, 0  ;;  %v188_v23 = vmul.f32 %v10606_v5, %v10762_v36  ;;  %vm761_vm14 = vcmp.eq.s32.totalorder %v756_v33, 2 }
  0xb9   : > { %v841_v31 = vor.u32 %v840_v34, %v839_v45  ;;  %v844_v0 = vshll.u32 %v843_v19, 23  ;;  %v984_v15 = vadd.s32 1, %v9188_v52  ;;  %v859_v61 = vadd.s32 3, %v855_v27 }
  0xba   : > { %v931_v32 = vadd.s32 536870912, %v930_v26  ;;  %v981_v48 = vand.u32 8388607, %v974_v38  ;;  %vm754_vm0 = vweird.f32 %v10457_v44  ;;  %v10782_v30 = vadd.f32 %v10633_v39, %v188_v23 }
  0xbb   : > { %v9764_v20 = vpop.eup %9763  ;;  %v845_v29 = vor.u32 4788187, %v844_v0  ;;  %v848_v40 = vcvt.s32.f32 %v841_v31  ;;  %vm985_vm15 = vcmp.gt.s32.totalorder %v984_v15, 0  ;;  %v10787_v2 = vand.u32 3, %v859_v61 }
  0xbc   : > { %v9766_v42 = vpop.eup %9765  ;;  %v762_v56 = vxor.u32 2147483648, %v9764_v20  ;;  %v10778_v9 = vshrl.u32 %v931_v32, 30  ;;  %v986_v1 = vsel %vm985_vm15, %v984_v15, 0  ;;  %v982_v21 = vor.u32 8388608, %v981_v48 }
  0xbd   : > { %v759_v3 = vxor.u32 2147483648, %v9766_v42  ;;  %v846_v46 = vand.u32 2147483647, %v845_v29  ;;  %v988_v54 = vand.u32 31, %v986_v1  ;;  %v926_v44 = vadd.s32 %v10740_v51, %v10750_v17 }
  0xbe   : > { %v763_v49 = vsel %vm761_vm14, %v762_v56, %v9766_v42  ;;  %v933_v25 = vshll.u32 %v10778_v9, 30  ;;  %v1081_v19 = vand.u32 2139095040, %v10782_v30  ;;  %v10806_v27 = vshll.u32 %v982_v21, 8 }
  0xbf   : > { %v760_v16 = vsel %vm758_vm13, %v9764_v20, %v759_v3  ;;  %v849_v12 = vmul.f32 %v848_v40, %v846_v46  ;;  %v989_v59 = vsub.s32 32, %v988_v54  ;;  %v991_v28 = vshll.u32 %v16032_v11, %v988_v54 }
  0xc0   : > { %v764_v62 = vsel %vm757_vm12, %v760_v16, %v763_v49  ;;  %v10790_v6 = vsub.s32 %v930_v26, %v933_v25  ;;  %v994_v34 = vshll.u32 %v16017_v13, %v988_v54  ;;  %v997_v0 = vshll.u32 %v16015_v18, %v988_v54 }
  0xc1   : > { %v765_v45 = vsel %vm754_vm0, nan, %v764_v62  ;;  %v850_v7 = vxor.u32 2147483648, %v849_v12  ;;  %v992_v52 = vshrl.u32 %v16017_v13, %v989_v59  ;;  %v995_v31 = vshrl.u32 %v16015_v18, %v989_v59 }
  0xc2   : > { %v3578_v50 = vsub.f32 %v765_v45, %v9959_v58  ;;  %v936_v10 = vsub.s32 0, %v10790_v6  ;;  %v987_v15 = vshrl.u32 %v986_v1, 5  ;;  %v990_v23 = vshrl.u32 %v16032_v11, %v989_v59 }
  0xc3   : > { %v851_v33 = vsel %vm768_vm9, %v850_v7, %v849_v12  ;;  %v998_v29 = vshrl.u32 %v16028_v22, %v989_v59  ;;  %v1000_v40 = vshll.u32 %v16028_v22, %v988_v54  ;;  %v993_v47 = vor.u32 %v992_v52, %v991_v28 }
  0xc4   : > { %v3610_v51 = vmul.f32 %v3578_v50, %v10492_v60  ;;  %v854_v17 = vsel %vm10766_vm10, %v10523_v8, %v851_v33  ;;  %v9185_v26 = vmin.u32 %v936_v10, %v10790_v6  ;;  %v996_v42 = vor.u32 %v995_v31, %v994_v34 }
  0xc5   : > { %9767 = vcosq.f32 %v854_v17  ;;  %v1082_v56 = vshrl.u32 %v1081_v19, 23  ;;  %v999_v61 = vor.u32 %v998_v29, %v997_v0  ;;  %v1001_v48 = vshrl.u32 %v16026_v24, %v989_v59 }
  0xc6   : > { %v10810_v20 = vadd.f32 %v9959_v58, %v3610_v51  ;;  %9769 = vsinq.f32 %v854_v17  ;;  %v938_v32 = vclz %v9185_v26  ;;  %v1003_v3 = vshll.u32 %v16026_v24, %v988_v54 }
  0xc7   : > { %v1004_v46 = vshrl.u32 %v16024_v37, %v989_v59  ;;  %vm872_vm1 = vcmp.lt.s32.totalorder %v10636_v53, 0  ;;  %vm1006_vm2 = vcmp.lt.s32.totalorder %v987_v15, 1  ;;  %vm1007_vm3 = vcmp.lt.s32.totalorder %v987_v15, 2 }
  0xc8   : > { %4045 = vmatmul.mubr.f32.gmra.mxu1 %v10810_v20  ;;  %v9186_v1 = vadd.s32 4294967294, %v938_v32  ;;  %vm1008_vm4 = vcmp.lt.s32.totalorder %v987_v15, 3  ;;  %v1002_v49 = vor.u32 %v1001_v48, %v1000_v40  ;;  %vm1009_vm5 = vcmp.lt.s32.totalorder %v987_v15, 4 }
  0xc9   : > { %4050 = vmatprep.mubr.f32.mxu1 %v16021_v4  ;;  %v1005_v16 = vor.u32 %v1004_v46, %v1003_v3  ;;  %v1010_v12 = vsel %vm1006_vm2, %v990_v23, %v993_v47  ;;  %v1011_v25 = vsel %vm1009_vm5, %v999_v61, 2102212464  ;;  %v1014_v62 = vsel %vm1006_vm2, %v993_v47, %v996_v42 }
  0xca   : > { %vm9187_vm6 = vcmp.lt.s32.totalorder %v9186_v1, 0  ;;  %v1018_v21 = vsel %vm1006_vm2, %v996_v42, %v999_v61  ;;  %vm10822_vm7 = vcmp.le.f32.partialorder %v870_v41, 0.7853982  ;;  %v1012_v45 = vsel %vm1008_vm4, %v996_v42, %v1011_v25 }
  0xcb   : > { %v941_v59 = vsel %vm9187_vm6, 0, %v9186_v1  ;;  %v1015_v7 = vsel %vm1009_vm5, %v1002_v49, 920167782  ;;  %v1019_v58 = vsel %vm1009_vm5, %v1005_v16, 1326507024  ;;  %vm858_vm8 = vweird.f32 %v10523_v8  ;;  %v10852_v1 = vld [vmem:[%s10063_s7 + $0x48] sm:$0xff] }
  0xcc   : > { %v942_v50 = vsub.s32 32, %v941_v59  ;;  %v943_v28 = vshll.u32 %v10790_v6, %v941_v59  ;;  %v946_v34 = vsub.s32 4294967266, %v941_v59  ;;  %v9192_v19 = vadd.s32 4294967169, %v1082_v56 }
  0xcd   : > { %v956_v33 = vsub.s32 4, %v10778_v9  ;;  %v1013_v10 = vsel %vm1007_vm3, %v1010_v12, %v1012_v45  ;;  %v1016_v41 = vsel %vm1008_vm4, %v999_v61, %v1015_v7  ;;  %v1020_v52 = vsel %vm1008_vm4, %v1002_v49, %v1019_v58 }
  0xce   : > { %v944_v31 = vshrl.u32 %v926_v44, %v942_v50  ;;  %v947_v51 = vadd.s32 127, %v946_v34  ;;  %v1017_v17 = vsel %vm1007_vm3, %v1014_v62, %v1016_v41  ;;  %v1021_v0 = vsel %vm1007_vm3, %v1018_v21, %v1020_v52 }
  0xcf   : > { %v10836_v26 = vmul.u32.u64.low %v10806_v27, %v1021_v0  ;;  %v10837_v23 = vmul.u32.u64.high %v10806_v27, %v1021_v0, %v10836_v26  ;;  %v10840_v6 = vmul.u32.u64.low %v10806_v27, %v1017_v17  ;;  %v10841_v29 = vmul.u32.u64.high %v10806_v27, %v1017_v17, %v10840_v6 }
  0xd0   : > { %vm862_vm9 = vcmp.eq.s32.totalorder %v10787_v2, 0  ;;  %v945_v40 = vor.u32 %v944_v31, %v943_v28  ;;  %v948_v32 = vshll.u32 %v947_v51, 23  ;;  %v1088_v44 = vadd.s32 1, %v9192_v19 }
  0xd1   : > { %vm865_vm11 = vcmp.eq.s32.totalorder %v10787_v2, 2  ;;  %v957_v15 = vsel %vm872_vm1, %v956_v33, %v10778_v9  ;;  %v1029_v42 = vmul.u32 %v10806_v27, %v1013_v10  ;;  %v1078_v56 = vand.u32 2147483647, %v10782_v30  ;;  %v9960_v10 = vld [vmem:[%s10063_s7 + $0x28] sm:$0xff] }
  0xd2   : > { %v9768_v47 = vpop.eup %9767  ;;  %v949_v3 = vor.u32 4788187, %v948_v32  ;;  %v952_v46 = vcvt.s32.f32 %v945_v40  ;;  %vm1089_vm10 = vcmp.gt.s32.totalorder %v1088_v44, 0  ;;  %vm861_vm12 = vcmp.lt.s32.totalorder %v10787_v2, 2 }
  0xd3   : > { %v9770_v61 = vpop.eup %9769  ;;  %v866_v48 = vxor.u32 2147483648, %v9768_v47  ;;  %vm1031_vm13 = vc.u32 %v10837_v23, %v10840_v6  ;;  %v1032_v16 = vadd.s32 1, %v10841_v29  ;;  %v959_v12 = vsel %vm10822_vm7, 0, %v957_v15 }
  0xd4   : > { %v863_v49 = vxor.u32 2147483648, %v9770_v61  ;;  %v950_v27 = vand.u32 2147483647, %v949_v3  ;;  %v1090_v25 = vsel %vm1089_vm10, %v1088_v44, 0  ;;  %v189_v45 = vmul.f32 %v10606_v5, %v10852_v1 }
  0xd5   : > { %v867_v9 = vsel %vm865_vm11, %v866_v48, %v9770_v61  ;;  %v1033_v21 = vsel %vm1031_vm13, %v1032_v16, %v10841_v29  ;;  %v1092_v59 = vand.u32 31, %v1090_v25  ;;  %v1085_v28 = vand.u32 8388607, %v1078_v56 }
  0xd6   : > { %v864_v62 = vsel %vm862_vm9, %v9768_v47, %v863_v49  ;;  %v953_v58 = vmul.f32 %v952_v46, %v950_v27  ;;  %v1034_v50 = vadd.s32 %v1033_v21, %v1029_v42  ;;  %v963_v19 = vadd.s32 3, %v959_v12 }
  0xd7   : > { %v868_v7 = vsel %vm861_vm12, %v864_v62, %v867_v9  ;;  %v1093_v33 = vsub.s32 32, %v1092_v59  ;;  %v1095_v2 = vshll.u32 %v16032_v11, %v1092_v59  ;;  %v1098_v51 = vshll.u32 %v16017_v13, %v1092_v59 }
  0xd8   : > { %v869_v34 = vsel %vm858_vm8, nan, %v868_v7  ;;  %v954_v52 = vxor.u32 2147483648, %v953_v58  ;;  %v1035_v31 = vadd.s32 536870912, %v1034_v50  ;;  %v1091_v17 = vshrl.u32 %v1090_v25, 5 }
  0xd9   : > { %v3579_v41 = vsub.f32 %v869_v34, %v9960_v10  ;;  %v1096_v0 = vshrl.u32 %v16017_v13, %v1093_v33  ;;  %v1099_v26 = vshrl.u32 %v16015_v18, %v1093_v33  ;;  %v1101_v29 = vshll.u32 %v16015_v18, %v1092_v59 }
  0xda   : > { %v955_v40 = vsel %vm872_vm1, %v954_v52, %v953_v58  ;;  %v1036_v32 = vshrl.u32 %v1035_v31, 30  ;;  %v1102_v44 = vshrl.u32 %v16028_v22, %v1093_v33  ;;  %v1086_v15 = vor.u32 8388608, %v1085_v28 }
  0xdb   : > { %v3611_v8 = vmul.f32 %v3579_v41, %v10492_v60  ;;  %v958_v47 = vsel %vm10822_vm7, %v10636_v53, %v955_v40  ;;  %v1097_v42 = vor.u32 %v1096_v0, %v1095_v2  ;;  %v1104_v61 = vshll.u32 %v16028_v22, %v1092_v59 }
  0xdc   : > { %9771 = vcosq.f32 %v958_v47  ;;  %v1037_v3 = vshll.u32 %v1036_v32, 30  ;;  %v1100_v46 = vor.u32 %v1099_v26, %v1098_v51  ;;  %v1105_v60 = vshrl.u32 %v16026_v24, %v1093_v33 }
  0xdd   : > { %v10885_v48 = vadd.f32 %v9960_v10, %v3611_v8  ;;  %9773 = vsinq.f32 %v958_v47  ;;  %v1107_v49 = vshll.u32 %v16026_v24, %v1092_v59  ;;  %v1108_v16 = vshrl.u32 %v16024_v37, %v1093_v33 }
  0xde   : > { %v10891_v54 = vsub.s32 %v1034_v50, %v1037_v3  ;;  %v1094_v9 = vshrl.u32 %v16032_v11, %v1093_v33  ;;  %v1103_v27 = vor.u32 %v1102_v44, %v1101_v29  ;;  %vm1110_vm14 = vcmp.lt.s32.totalorder %v1091_v17, 1 }
  0xdf   : > { %4051 = vmatmul.mubr.f32.gmra.mxu1 %v10885_v48  ;;  %v1106_v12 = vor.u32 %v1105_v60, %v1104_v61  ;;  %v1109_v25 = vor.u32 %v1108_v16, %v1107_v49  ;;  %vm1112_vm15 = vcmp.lt.s32.totalorder %v1091_v17, 3  ;;  %v964_v62 = vand.u32 3, %v963_v19 }
  0xe0   : > { %4056 = vmatprep.mubr.f32.mxu1 %v16021_v4  ;;  %v1040_v21 = vsub.s32 0, %v10891_v54  ;;  %vm1111_vm0 = vcmp.lt.s32.totalorder %v1091_v17, 2  ;;  %vm1113_vm1 = vcmp.lt.s32.totalorder %v1091_v17, 4  ;;  %v1118_v7 = vsel %vm1110_vm14, %v1097_v42, %v1100_v46 }
  0xe1   : > { %v1115_v59 = vsel %vm1113_vm1, %v1103_v27, 2102212464  ;;  %v1119_v58 = vsel %vm1113_vm1, %v1106_v12, 920167782  ;;  %v1126_v50 = vshll.u32 %v1086_v15, 8  ;;  %v1114_v34 = vsel %vm1110_vm14, %v1094_v9, %v1097_v42 }
  0xe2   : > { %v9189_v28 = vmin.u32 %v1040_v21, %v10891_v54  ;;  %v1120_v33 = vsel %vm1112_vm15, %v1103_v27, %v1119_v58  ;;  %v10901_v2 = vadd.f32 %v10633_v39, %v189_v45  ;;  %v1116_v19 = vsel %vm1112_vm15, %v1100_v46, %v1115_v59  ;;  %v10933_v59 = vld [vmem:[%s10063_s7 + $0x50] sm:$0xff] }
  0xe3   : > { %v1121_v10 = vsel %vm1111_vm0, %v1118_v7, %v1120_v33  ;;  %v1122_v41 = vsel %vm1110_vm14, %v1100_v46, %v1103_v27  ;;  %v1123_v52 = vsel %vm1113_vm1, %v1109_v25, 1326507024  ;;  %vm962_vm2 = vweird.f32 %v10636_v53  ;;  %v10959_v53 = vld [vmem:[%s16012_s1 + $0x20] ss:$0 sm:$0xff] }
  0xe4   : > { %vm10909_vm3 = vcmp.le.f32.partialorder %v974_v38, 0.7853982  ;;  %vm976_vm4 = vcmp.lt.s32.totalorder %v10744_v63, 0  ;;  %v1042_v51 = vclz %v9189_v28  ;;  %v1060_v45 = vsub.s32 4, %v1036_v32 }
  0xe5   : > { %vm965_vm5 = vcmp.lt.s32.totalorder %v964_v62, 2  ;;  %v1124_v0 = vsel %vm1112_vm15, %v1106_v12, %v1123_v52  ;;  %v10915_v26 = vmul.u32.u64.low %v1126_v50, %v1121_v10  ;;  %v10916_v29 = vmul.u32.u64.high %v1126_v50, %v1121_v10, %v10915_v26 }
  0xe6   : > { %v9190_v8 = vadd.s32 4294967294, %v1042_v51  ;;  %v1117_v40 = vsel %vm1111_vm0, %v1114_v34, %v1116_v19  ;;  %v1125_v44 = vsel %vm1111_vm0, %v1122_v41, %v1124_v0  ;;  %v1185_v38 = vand.u32 2139095040, %v10901_v2 }
  0xe7   : > { %vm966_vm6 = vcmp.eq.s32.totalorder %v964_v62, 0  ;;  %vm969_vm7 = vcmp.eq.s32.totalorder %v964_v62, 2  ;;  %v10922_v47 = vmul.u32.u64.low %v1126_v50, %v1125_v44  ;;  %v10923_v15 = vmul.u32.u64.high %v1126_v50, %v1125_v44, %v10922_v47 }
  0xe8   : > { %v1030_v42 = vadd.s32 %v10840_v6, %v10837_v23  ;;  %vm9191_vm8 = vcmp.lt.s32.totalorder %v9190_v8, 0  ;;  %v1061_v61 = vsel %vm976_vm4, %v1060_v45, %v1036_v32  ;;  %v1186_v3 = vshrl.u32 %v1185_v38, 23 }
  0xe9   : > { %v9772_v46 = vpop.eup %9771  ;;  %v1045_v60 = vsel %vm9191_vm8, 0, %v9190_v8  ;;  %v1133_v17 = vmul.u32 %v1126_v50, %v1117_v40  ;;  %v1136_v49 = vadd.s32 1, %v10916_v29  ;;  %v1182_v16 = vand.u32 2147483647, %v10901_v2 }
  0xea   : > { %v9774_v9 = vpop.eup %9773  ;;  %v970_v27 = vxor.u32 2147483648, %v9772_v46  ;;  %v1046_v12 = vsub.s32 32, %v1045_v60  ;;  %v1047_v25 = vshll.u32 %v10891_v54, %v1045_v60  ;;  %v1050_v21 = vsub.s32 4294967266, %v1045_v60 }
  0xeb   : > { %v967_v23 = vxor.u32 2147483648, %v9774_v9  ;;  %v1063_v6 = vsel %vm10909_vm3, 0, %v1061_v61  ;;  %vm1135_vm9 = vc.u32 %v10923_v15, %v10915_v26  ;;  %v9196_v32 = vadd.s32 4294967169, %v1186_v3 }
  0xec   : > { %v971_v7 = vsel %vm969_vm7, %v970_v27, %v9774_v9  ;;  %v1048_v58 = vshrl.u32 %v1030_v42, %v1046_v12  ;;  %v1051_v50 = vadd.s32 127, %v1050_v21  ;;  %v1137_v28 = vsel %vm1135_vm9, %v1136_v49, %v10916_v29  ;;  %v158_v29 = vld [vmem:[%s10063_s7 + $0x58] sm:$0xff] }
  0xed   : > { %v968_v54 = vsel %vm966_vm6, %v9772_v46, %v967_v23  ;;  %v1138_v34 = vadd.s32 %v1137_v28, %v1133_v17  ;;  %v1192_v33 = vadd.s32 1, %v9196_v32  ;;  %v190_v19 = vmul.f32 %v10606_v5, %v10933_v59 }
  0xee   : > { %v972_v10 = vsel %vm965_vm5, %v968_v54, %v971_v7  ;;  %v1049_v41 = vor.u32 %v1048_v58, %v1047_v25  ;;  %v1052_v52 = vshll.u32 %v1051_v50, 23  ;;  %v1067_v51 = vadd.s32 3, %v1063_v6 }
  0xef   : > { %v973_v45 = vsel %vm962_vm2, nan, %v972_v10  ;;  %v1139_v0 = vadd.s32 536870912, %v1138_v34  ;;  %v1189_v8 = vand.u32 8388607, %v1182_v16  ;;  %vm1193_vm11 = vcmp.gt.s32.totalorder %v1192_v33, 0 }
  0xf0   : > { %v3580_v40 = vsub.f32 %v973_v45, %v10591_v57  ;;  %v1053_v44 = vor.u32 4788187, %v1052_v52  ;;  %v1056_v38 = vcvt.s32.f32 %v1049_v41  ;;  %v1194_v47 = vsel %vm1193_vm11, %v1192_v33, 0 }
  0xf1   : > { %v10951_v42 = vshrl.u32 %v1139_v0, 30  ;;  %v1196_v62 = vand.u32 31, %v1194_v47  ;;  %v10954_v61 = vadd.f32 %v10633_v39, %v190_v19  ;;  %v10962_v60 = vand.u32 3, %v1067_v51 }
  0xf2   : > { %v3612_v3 = vmul.f32 %v10959_v53, %v3580_v40  ;;  %v1054_v46 = vand.u32 2147483647, %v1053_v44  ;;  %v10965_v17 = vmul.f32 %v10606_v5, %v158_v29  ;;  %v1190_v9 = vor.u32 8388608, %v1189_v8 }
  0xf3   : > { %v1141_v49 = vshll.u32 %v10951_v42, 30  ;;  %v1197_v27 = vsub.s32 32, %v1196_v62  ;;  %v1286_v12 = vand.u32 2147483647, %v10954_v61  ;;  %v1199_v23 = vshll.u32 %v16032_v11, %v1196_v62 }
  0xf4   : > { %v10970_v25 = vadd.f32 %v3612_v3, %v10591_v57  ;;  %v1057_v21 = vmul.f32 %v1056_v38, %v1054_v46  ;;  %v1202_v6 = vshll.u32 %v16017_v13, %v1196_v62  ;;  %v1134_v32 = vadd.s32 %v10915_v26, %v10923_v15 }
  0xf5   : > { %v10976_v7 = vsub.s32 %v1138_v34, %v1141_v49  ;;  %v1200_v5 = vshrl.u32 %v16017_v13, %v1197_v27  ;;  %v1205_v58 = vshll.u32 %v16015_v18, %v1196_v62  ;;  %v1195_v28 = vshrl.u32 %v1194_v47, 5 }
  0xf6   : > { %4057 = vmatmul.mubr.f32.gmra.mxu1 %v10970_v25  ;;  %v1058_v50 = vxor.u32 2147483648, %v1057_v21  ;;  %v1203_v57 = vshrl.u32 %v16015_v18, %v1197_v27  ;;  %v1206_v54 = vshrl.u32 %v16028_v22, %v1197_v27  ;;  %vm1080_vm10 = vcmp.lt.s32.totalorder %v10782_v30, 0 }
  0xf7   : > { %4062 = vmatprep.mubr.f32.mxu1 %v16021_v4  ;;  %v1144_v26 = vsub.s32 0, %v10976_v7  ;;  %v1198_v15 = vshrl.u32 %v16032_v11, %v1197_v27  ;;  %v1208_v34 = vshll.u32 %v16028_v22, %v1196_v62  ;;  %v1289_v33 = vand.u32 2139095040, %v10954_v61 }
  0xf8   : > { %v1059_v19 = vsel %vm976_vm4, %v1058_v50, %v1057_v21  ;;  %v1201_v10 = vor.u32 %v1200_v5, %v1199_v23  ;;  %v1204_v41 = vor.u32 %v1203_v57, %v1202_v6  ;;  %v1209_v52 = vshrl.u32 %v16026_v24, %v1197_v27 }
  0xf9   : > { %v1062_v51 = vsel %vm10909_vm3, %v10744_v63, %v1059_v19  ;;  %v9193_v45 = vmin.u32 %v1144_v26, %v10976_v7  ;;  %v1207_v0 = vor.u32 %v1206_v54, %v1205_v58  ;;  %v1211_v8 = vshll.u32 %v16026_v24, %v1196_v62 }
  0xfa   : > { %9775 = vcosq.f32 %v1062_v51  ;;  %vm10999_vm12 = vcmp.le.f32.partialorder %v1078_v56, 0.7853982  ;;  %v1210_v40 = vor.u32 %v1209_v52, %v1208_v34  ;;  %v1212_v44 = vshrl.u32 %v16024_v37, %v1197_v27 }
  0xfb   : > { %vm1214_vm13 = vcmp.lt.s32.totalorder %v1195_v28, 1  ;;  %9777 = vsinq.f32 %v1062_v51  ;;  %v1146_v38 = vclz %v9193_v45  ;;  %v1230_v31 = vshll.u32 %v1190_v9, 8 }
  0xfc   : > { %v1290_v47 = vshrl.u32 %v1289_v33, 23  ;;  %v1164_v3 = vsub.s32 4, %v10951_v42  ;;  %v1213_v46 = vor.u32 %v1212_v44, %v1211_v8  ;;  %vm1215_vm14 = vcmp.lt.s32.totalorder %v1195_v28, 2 }
  0xfd   : > { %vm1216_vm15 = vcmp.lt.s32.totalorder %v1195_v28, 3  ;;  %v9194_v62 = vadd.s32 4294967294, %v1146_v38  ;;  %vm1217_vm0 = vcmp.lt.s32.totalorder %v1195_v28, 4  ;;  %v1218_v49 = vsel %vm1214_vm13, %v1198_v15, %v1201_v10 }
  0xfe   : > { %v1222_v56 = vsel %vm1214_vm13, %v1201_v10, %v1204_v41  ;;  %v1219_v21 = vsel %vm1217_vm0, %v1207_v0, 2102212464  ;;  %v1223_v23 = vsel %vm1217_vm0, %v1210_v40, 920167782  ;;  %v1226_v6 = vsel %vm1214_vm13, %v1204_v41, %v1207_v0 }
  0xff   : > { %v1227_v5 = vsel %vm1217_vm0, %v1213_v46, 1326507024  ;;  %vm9195_vm1 = vcmp.lt.s32.totalorder %v9194_v62, 0  ;;  %v1220_v27 = vsel %vm1216_vm15, %v1204_v41, %v1219_v21  ;;  %v1224_v58 = vsel %vm1216_vm15, %v1207_v0, %v1223_v23 }
 0x100   : > { %v1228_v50 = vsel %vm1216_vm15, %v1210_v40, %v1227_v5  ;;  %v1149_v57 = vsel %vm9195_vm1, 0, %v9194_v62  ;;  %v1165_v9 = vsel %vm1080_vm10, %v1164_v3, %v10951_v42  ;;  %v1225_v54 = vsel %vm1215_vm14, %v1222_v56, %v1224_v58 }
 0x101   : > { %v1229_v26 = vsel %vm1215_vm14, %v1226_v6, %v1228_v50  ;;  %v1150_v34 = vsub.s32 32, %v1149_v57  ;;  %v1151_v15 = vshll.u32 %v10976_v7, %v1149_v57  ;;  %v1154_v33 = vsub.s32 4294967266, %v1149_v57 }
 0x102   : > { %v1221_v19 = vsel %vm1215_vm14, %v1218_v49, %v1220_v27  ;;  %v11012_v10 = vmul.u32.u64.low %v1230_v31, %v1229_v26  ;;  %v11013_v52 = vmul.u32.u64.high %v1230_v31, %v1229_v26, %v11012_v10  ;;  %v1167_v42 = vsel %vm10999_vm12, 0, %v1165_v9 }
 0x103   : > { %v11015_v41 = vmul.u32.u64.low %v1230_v31, %v1225_v54  ;;  %v11016_v51 = vmul.u32.u64.high %v1230_v31, %v1225_v54, %v11015_v41  ;;  %v1152_v45 = vshrl.u32 %v1134_v32, %v1150_v34  ;;  %v1155_v0 = vadd.s32 127, %v1154_v33 }
 0x104   : > { %v9200_v8 = vadd.s32 4294967169, %v1290_v47  ;;  %vm1070_vm2 = vcmp.eq.s32.totalorder %v10962_v60, 0  ;;  %v1293_v7 = vand.u32 8388607, %v1286_v12  ;;  %v1237_v44 = vmul.u32 %v1230_v31, %v1221_v19 }
 0x105   : > { %v1153_v28 = vor.u32 %v1152_v45, %v1151_v15  ;;  %v1156_v40 = vshll.u32 %v1155_v0, 23  ;;  %vm1073_vm3 = vcmp.eq.s32.totalorder %v10962_v60, 2  ;;  %v1171_v3 = vadd.s32 3, %v1167_v42 }
 0x106   : > { %v1296_v38 = vadd.s32 1, %v9200_v8  ;;  %vm1239_vm4 = vc.u32 %v11013_v52, %v11015_v41  ;;  %v1240_v32 = vadd.s32 1, %v11016_v51  ;;  %v11030_v49 = vadd.f32 %v10633_v39, %v10965_v17 }
 0x107   : > { %v9776_v46 = vpop.eup %9775  ;;  %v1157_v62 = vor.u32 4788187, %v1156_v40  ;;  %v1160_v47 = vcvt.s32.f32 %v1153_v28  ;;  %v1294_v23 = vor.u32 8388608, %v1293_v7  ;;  %vm1069_vm6 = vcmp.lt.s32.totalorder %v10962_v60, 2 }
 0x108   : > { %vm1297_vm5 = vcmp.gt.s32.totalorder %v1296_v38, 0  ;;  %v9778_v56 = vpop.eup %9777  ;;  %v1074_v21 = vxor.u32 2147483648, %v9776_v46  ;;  %v1241_v31 = vsel %vm1239_vm4, %v1240_v32, %v11016_v51  ;;  %vm1066_vm7 = vweird.f32 %v10744_v63 }
 0x109   : > { %v1298_v6 = vsel %vm1297_vm5, %v1296_v38, 0  ;;  %v1071_v5 = vxor.u32 2147483648, %v9778_v56  ;;  %v1158_v27 = vand.u32 2147483647, %v1157_v62  ;;  %v1242_v58 = vadd.s32 %v1241_v31, %v1237_v44 }
 0x10a   : > { %v1075_v50 = vsel %vm1073_vm3, %v1074_v21, %v9778_v56  ;;  %v11037_v57 = vand.u32 3, %v1171_v3  ;;  %v1300_v39 = vand.u32 31, %v1298_v6  ;;  %v1390_v26 = vand.u32 2147483647, %v11030_v49 }
 0x10b   : > { %v1072_v17 = vsel %vm1070_vm2, %v9776_v46, %v1071_v5  ;;  %v1161_v9 = vmul.f32 %v1160_v47, %v1158_v27  ;;  %v1243_v54 = vadd.s32 536870912, %v1242_v58  ;;  %v11042_v33 = vshll.u32 %v1294_v23, 8 }
 0x10c   : > { %v1076_v34 = vsel %vm1069_vm6, %v1072_v17, %v1075_v50  ;;  %v1301_v15 = vsub.s32 32, %v1300_v39  ;;  %v1393_v19 = vand.u32 2139095040, %v11030_v49  ;;  %v1303_v45 = vshll.u32 %v16032_v11, %v1300_v39 }
 0x10d   : > { %v1077_v63 = vsel %vm1066_vm7, nan, %v1076_v34  ;;  %v1162_v10 = vxor.u32 2147483648, %v1161_v9  ;;  %v11045_v51 = vshrl.u32 %v1243_v54, 30  ;;  %v1306_v42 = vshll.u32 %v16017_v13, %v1300_v39 }
 0x10e   : > { %v3581_v0 = vsub.f32 %v1077_v63, %v10701_v14  ;;  %v1304_v60 = vshrl.u32 %v16017_v13, %v1301_v15  ;;  %v1307_v8 = vshrl.u32 %v16015_v18, %v1301_v15  ;;  %v1309_v40 = vshll.u32 %v16015_v18, %v1300_v39 }
 0x10f   : > { %v1163_v7 = vsel %vm1080_vm10, %v1162_v10, %v1161_v9  ;;  %v1245_v28 = vshll.u32 %v11045_v51, 30  ;;  %v1310_v44 = vshrl.u32 %v16028_v22, %v1301_v15  ;;  %v1299_v32 = vshrl.u32 %v1298_v6, 5 }
 0x110   : > { %v3613_v38 = vmul.f32 %v10959_v53, %v3581_v0  ;;  %v1166_v3 = vsel %vm10999_vm12, %v10782_v30, %v1163_v7  ;;  %v1394_v46 = vshrl.u32 %v1393_v19, 23  ;;  %v1302_v47 = vshrl.u32 %v16032_v11, %v1301_v15 }
 0x111   : > { %9779 = vcosq.f32 %v1166_v3  ;;  %v11061_v62 = vsub.s32 %v1242_v58, %v1245_v28  ;;  %v1305_v56 = vor.u32 %v1304_v60, %v1303_v45  ;;  %v1308_v31 = vor.u32 %v1307_v8, %v1306_v42 }
 0x112   : > { %v11065_v21 = vadd.f32 %v3613_v38, %v10701_v14  ;;  %9781 = vsinq.f32 %v1166_v3  ;;  %v1312_v23 = vshll.u32 %v16028_v22, %v1300_v39  ;;  %v1311_v27 = vor.u32 %v1310_v44, %v1309_v40 }
 0x113   : > { %v1248_v5 = vsub.s32 0, %v11061_v62  ;;  %v1313_v29 = vshrl.u32 %v16026_v24, %v1301_v15  ;;  %v1315_v6 = vshll.u32 %v16026_v24, %v1300_v39  ;;  %v1238_v58 = vadd.s32 %v11015_v41, %v11013_v52 }
 0x114   : > { %4063 = vmatmul.mubr.f32.gmra.mxu1 %v11065_v21  ;;  %v1316_v50 = vshrl.u32 %v16024_v37, %v1301_v15  ;;  %vm1318_vm8 = vcmp.lt.s32.totalorder %v1299_v32, 1  ;;  %v9204_v14 = vadd.s32 4294967169, %v1394_v46  ;;  %vm1184_vm9 = vcmp.lt.s32.totalorder %v10901_v2, 0 }
 0x115   : > { %4068 = vmatprep.mubr.f32.mxu1 %v16021_v4  ;;  %v9197_v17 = vmin.u32 %v1248_v5, %v11061_v62  ;;  %v1314_v9 = vor.u32 %v1313_v29, %v1312_v23  ;;  %vm1321_vm11 = vcmp.lt.s32.totalorder %v1299_v32, 4  ;;  %v11080_v39 = vand.u32 8388607, %v1390_v26 }
 0x116   : > { %v1317_v54 = vor.u32 %v1316_v50, %v1315_v6  ;;  %vm1319_vm10 = vcmp.lt.s32.totalorder %v1299_v32, 2  ;;  %vm1320_vm12 = vcmp.lt.s32.totalorder %v1299_v32, 3  ;;  %v1323_v52 = vsel %vm1321_vm11, %v1311_v27, 2102212464 }
 0x117   : > { %vm1174_vm13 = vcmp.eq.s32.totalorder %v11037_v57, 0  ;;  %v1250_v41 = vclz %v9197_v17  ;;  %v1322_v34 = vsel %vm1318_vm8, %v1302_v47, %v1305_v56  ;;  %v1326_v15 = vsel %vm1318_vm8, %v1305_v56, %v1308_v31 }
 0x118   : > { %v1330_v19 = vsel %vm1318_vm8, %v1308_v31, %v1311_v27  ;;  %vm1173_vm14 = vcmp.lt.s32.totalorder %v11037_v57, 2  ;;  %v1324_v63 = vsel %vm1320_vm12, %v1308_v31, %v1323_v52  ;;  %v1327_v10 = vsel %vm1321_vm11, %v1314_v9, 920167782 }
 0x119   : > { %v1331_v45 = vsel %vm1321_vm11, %v1317_v54, 1326507024  ;;  %v1400_v0 = vadd.s32 1, %v9204_v14  ;;  %vm1170_vm15 = vweird.f32 %v10782_v30  ;;  %v9198_v60 = vadd.s32 4294967294, %v1250_v41 }
 0x11a   : > { %v1268_v42 = vsub.s32 4, %v11045_v51  ;;  %v1328_v8 = vsel %vm1320_vm12, %v1311_v27, %v1327_v10  ;;  %v1332_v7 = vsel %vm1320_vm12, %v1314_v9, %v1331_v45  ;;  %v1325_v28 = vsel %vm1319_vm10, %v1322_v34, %v1324_v63 }
 0x11b   : > { %v1329_v40 = vsel %vm1319_vm10, %v1326_v15, %v1328_v8  ;;  %v1333_v44 = vsel %vm1319_vm10, %v1330_v19, %v1332_v7  ;;  %vm1401_vm0 = vcmp.gt.s32.totalorder %v1400_v0, 0  ;;  %vm9199_vm1 = vcmp.lt.s32.totalorder %v9198_v60, 0 }
 0x11c   : > { %v11096_v38 = vmul.u32.u64.low %v11042_v33, %v1333_v44  ;;  %v11097_v3 = vmul.u32.u64.high %v11042_v33, %v1333_v44, %v11096_v38  ;;  %v1402_v46 = vsel %vm1401_vm0, %v1400_v0, 0  ;;  %v1253_v47 = vsel %vm9199_vm1, 0, %v9198_v60 }
 0x11d   : > { %v11100_v56 = vmul.u32.u64.low %v11042_v33, %v1329_v40  ;;  %v11101_v31 = vmul.u32.u64.high %v11042_v33, %v1329_v40, %v11100_v56  ;;  %v11104_v23 = vshrl.u32 %v1402_v46, 5  ;;  %v1254_v5 = vsub.s32 32, %v1253_v47 }
 0x11e   : > { %v1255_v27 = vshll.u32 %v11061_v62, %v1253_v47  ;;  %v1258_v32 = vsub.s32 4294967266, %v1253_v47  ;;  %v1404_v29 = vand.u32 31, %v1402_v46  ;;  %v9780_v6 = vpop.eup %9779  ;;  %vm1177_vm2 = vcmp.eq.s32.totalorder %v11037_v57, 2 }
 0x11f   : > { %v11111_v50 = vsel %vm1184_vm9, %v1268_v42, %v11045_v51  ;;  %v1341_v14 = vmul.u32 %v11042_v33, %v1325_v28  ;;  %v1398_v17 = vor.u32 8388608, %v11080_v39  ;;  %v9782_v9 = vpop.eup %9781  ;;  %v1178_v54 = vxor.u32 2147483648, %v9780_v6 }
 0x120   : > { %v1256_v52 = vshrl.u32 %v1238_v58, %v1254_v5  ;;  %v1259_v41 = vadd.s32 127, %v1258_v32  ;;  %vm1422_vm3 = vcmp.lt.s32.totalorder %v11104_v23, 1  ;;  %v1175_v62 = vxor.u32 2147483648, %v9782_v9 }
 0x121   : > { %vm1343_vm4 = vc.u32 %v11097_v3, %v11100_v56  ;;  %v1344_v34 = vadd.s32 1, %v11101_v31  ;;  %v1405_v15 = vsub.s32 32, %v1404_v29  ;;  %v1179_v19 = vsel %vm1177_vm2, %v1178_v54, %v9782_v9 }
 0x122   : > { %vm11121_vm5 = vcmp.le.f32.partialorder %v1182_v16, 0.7853982  ;;  %v1257_v51 = vor.u32 %v1256_v52, %v1255_v27  ;;  %v1260_v63 = vshll.u32 %v1259_v41, 23  ;;  %v1407_v58 = vshll.u32 %v16032_v11, %v1404_v29 }
 0x123   : > { %v1176_v10 = vsel %vm1174_vm13, %v9780_v6, %v1175_v62  ;;  %v1345_v45 = vsel %vm1343_vm4, %v1344_v34, %v11101_v31  ;;  %v1408_v0 = vshrl.u32 %v16017_v13, %v1405_v15  ;;  %vm1423_vm6 = vcmp.lt.s32.totalorder %v11104_v23, 2  ;;  %v11148_v34 = vld [vmem:[%s10063_s7 + $0x60] sm:$0xff] }
 0x124   : > { %vm1425_vm7 = vcmp.lt.s32.totalorder %v11104_v23, 4  ;;  %v1180_v16 = vsel %vm1173_vm14, %v1176_v10, %v1179_v19  ;;  %v1261_v60 = vor.u32 4788187, %v1260_v63  ;;  %v1264_v42 = vcvt.s32.f32 %v1257_v51 }
 0x125   : > { %v1346_v8 = vadd.s32 %v1345_v45, %v1341_v14  ;;  %v1181_v7 = vsel %vm1170_vm15, nan, %v1180_v16  ;;  %v1409_v28 = vor.u32 %v1408_v0, %v1407_v58  ;;  %v1410_v40 = vshll.u32 %v16017_v13, %v1404_v29  ;;  %v11168_v0 = vld [vmem:[%s16012_s1] ss:$0 sm:$0xff] }
 0x126   : > { %v1411_v44 = vshrl.u32 %v16015_v18, %v1405_v15  ;;  %v3582_v38 = vsub.f32 %v1181_v7, %v10762_v36  ;;  %v1262_v46 = vand.u32 2147483647, %v1261_v60  ;;  %v1413_v31 = vshll.u32 %v16015_v18, %v1404_v29 }
 0x127   : > { %v1347_v47 = vadd.s32 536870912, %v1346_v8  ;;  %v1414_v5 = vshrl.u32 %v16028_v22, %v1405_v15  ;;  %v1416_v27 = vshll.u32 %v16028_v22, %v1404_v29  ;;  %v1417_v30 = vshrl.u32 %v16026_v24, %v1405_v15 }
 0x128   : > { %v1412_v57 = vor.u32 %v1411_v44, %v1410_v40  ;;  %v3614_v32 = vmul.f32 %v10959_v53, %v3582_v38  ;;  %v1265_v6 = vmul.f32 %v1264_v42, %v1262_v46  ;;  %v1419_v9 = vshll.u32 %v16026_v24, %v1404_v29 }
 0x129   : > { %v1348_v14 = vshrl.u32 %v1347_v47, 30  ;;  %v1406_v54 = vshrl.u32 %v16032_v11, %v1405_v15  ;;  %v1415_v52 = vor.u32 %v1414_v5, %v1413_v31  ;;  %v1418_v41 = vor.u32 %v1417_v30, %v1416_v27  ;;  %v11200_v31 = vld [vmem:[%s16012_s1 + $0x10] ss:$0 sm:$0xff] }
 0x12a   : > { %v1420_v62 = vshrl.u32 %v16024_v37, %v1405_v15  ;;  %v11151_v19 = vadd.f32 %v3614_v32, %v10762_v36  ;;  %v1266_v51 = vxor.u32 2147483648, %v1265_v6  ;;  %vm1424_vm8 = vcmp.lt.s32.totalorder %v11104_v23, 3 }
 0x12b   : > { %v1349_v63 = vshll.u32 %v1348_v14, 30  ;;  %v1427_v10 = vsel %vm1425_vm7, %v1415_v52, 2102212464  ;;  %v1430_v29 = vsel %vm1422_vm3, %v1409_v28, %v1412_v57  ;;  %v1431_v45 = vsel %vm1425_vm7, %v1418_v41, 920167782 }
 0x12c   : > { %v1421_v58 = vor.u32 %v1420_v62, %v1419_v9  ;;  %4069 = vmatmul.mubr.f32.gmra.mxu1 %v11151_v19  ;;  %v1267_v36 = vsel %vm1184_vm9, %v1266_v51, %v1265_v6  ;;  %v192_v16 = vmul.f32 %v11168_v0, %v11148_v34  ;;  %v1271_v42 = vsel %vm11121_vm5, 0, %v11111_v50  ;;  %v11218_v62 = vld [vmem:[%s10063_s7 + $0x68] sm:$0xff] }
 0x12d   : > { %v11163_v15 = vsub.s32 %v1346_v8, %v1349_v63  ;;  %4074 = vmatprep.mubr.f32.mxu1 %v16021_v4  ;;  %v1270_v60 = vsel %vm11121_vm5, %v10901_v2, %v1267_v36  ;;  %v1426_v8 = vsel %vm1422_vm3, %v1406_v54, %v1409_v28  ;;  %v1432_v7 = vsel %vm1424_vm8, %v1415_v52, %v1431_v45 }
 0x12e   : > { %9783 = vcosq.f32 %v1270_v60  ;;  %v1428_v44 = vsel %vm1424_vm8, %v1412_v57, %v1427_v10  ;;  %v1433_v38 = vsel %vm1423_vm6, %v1430_v29, %v1432_v7  ;;  %v1434_v33 = vsel %vm1422_vm3, %v1412_v57, %v1415_v52 }
 0x12f   : > { %v1352_v40 = vsub.s32 0, %v11163_v15  ;;  %9785 = vsinq.f32 %v1270_v60  ;;  %v1435_v50 = vsel %vm1425_vm7, %v1421_v58, 1326507024  ;;  %v1438_v28 = vshll.u32 %v1398_v17, 8 }
 0x130   : > { %v1436_v47 = vsel %vm1424_vm8, %v1418_v41, %v1435_v50  ;;  %v11203_v5 = vadd.f32 %v11200_v31, %v192_v16  ;;  %v1275_v57 = vadd.s32 3, %v1271_v42  ;;  %v1372_v32 = vsub.s32 4, %v1348_v14 }
 0x131   : > { %v9201_v46 = vmin.u32 %v1352_v40, %v11163_v15  ;;  %v1437_v27 = vsel %vm1423_vm6, %v1434_v33, %v1436_v47  ;;  %v11207_v39 = vmul.u32.u64.low %v1438_v28, %v1433_v38  ;;  %v11208_v30 = vmul.u32.u64.high %v1438_v28, %v1433_v38, %v11207_v39 }
 0x132   : > { %v1429_v6 = vsel %vm1423_vm6, %v1426_v8, %v1428_v44  ;;  %v11212_v9 = vmul.u32.u64.low %v1438_v28, %v1437_v27  ;;  %v11213_v54 = vmul.u32.u64.high %v1438_v28, %v1437_v27, %v11212_v9  ;;  %vm1288_vm9 = vcmp.lt.s32.totalorder %v10954_v61, 0 }
 0x133   : > { %v1354_v17 = vclz %v9201_v46  ;;  %v1497_v41 = vand.u32 2139095040, %v11203_v5  ;;  %v1276_v51 = vand.u32 3, %v1275_v57  ;;  %v1445_v63 = vmul.u32 %v1438_v28, %v1429_v6 }
 0x134   : > { %v1448_v58 = vadd.s32 1, %v11208_v30  ;;  %v1494_v10 = vand.u32 2147483647, %v11203_v5  ;;  %vm1274_vm11 = vweird.f32 %v10901_v2  ;;  %v1342_v23 = vadd.s32 %v11100_v56, %v11097_v3 }
 0x135   : > { %v9202_v52 = vadd.s32 4294967294, %v1354_v17  ;;  %v1373_v29 = vsel %vm1288_vm9, %v1372_v32, %v1348_v14  ;;  %v1498_v45 = vshrl.u32 %v1497_v41, 23  ;;  %vm11229_vm12 = vcmp.le.f32.partialorder %v1286_v12, 0.7853982 }
 0x136   : > { %vm1447_vm13 = vc.u32 %v11213_v54, %v11207_v39  ;;  %v193_v60 = vmul.f32 %v11168_v0, %v11218_v62  ;;  %v1375_v14 = vsel %vm11229_vm12, 0, %v1373_v29  ;;  %v1501_v40 = vand.u32 8388607, %v1494_v10 }
 0x137   : > { %vm9203_vm10 = vcmp.lt.s32.totalorder %v9202_v52, 0  ;;  %v1449_v8 = vsel %vm1447_vm13, %v1448_v58, %v11208_v30  ;;  %v9208_v12 = vadd.s32 4294967169, %v1498_v45  ;;  %vm1277_vm14 = vcmp.lt.s32.totalorder %v1276_v51, 2 }
 0x138   : > { %v1357_v16 = vsel %vm9203_vm10, 0, %v9202_v52  ;;  %v1450_v7 = vadd.s32 %v1449_v8, %v1445_v63  ;;  %vm1278_vm15 = vcmp.eq.s32.totalorder %v1276_v51, 0  ;;  %vm1281_vm0 = vcmp.eq.s32.totalorder %v1276_v51, 2 }
 0x139   : > { %v1358_v42 = vsub.s32 32, %v1357_v16  ;;  %v1359_v3 = vshll.u32 %v11163_v15, %v1357_v16  ;;  %v1362_v56 = vsub.s32 4294967266, %v1357_v16  ;;  %v1504_v28 = vadd.s32 1, %v9208_v12 }
 0x13a   : > { %v1451_v50 = vadd.s32 536870912, %v1450_v7  ;;  %v11243_v15 = vadd.f32 %v11200_v31, %v193_v60  ;;  %v1379_v30 = vadd.s32 3, %v1375_v14  ;;  %v1502_v6 = vor.u32 8388608, %v1501_v40 }
 0x13b   : > { %v1360_v44 = vshrl.u32 %v1342_v23, %v1358_v42  ;;  %v1363_v38 = vadd.s32 127, %v1362_v56  ;;  %v9784_v33 = vpop.eup %9783  ;;  %vm1505_vm1 = vcmp.gt.s32.totalorder %v1504_v28, 0  ;;  %v1446_v56 = vadd.s32 %v11207_v39, %v11213_v54 }
 0x13c   : > { %v9786_v46 = vpop.eup %9785  ;;  %v1282_v47 = vxor.u32 2147483648, %v9784_v33  ;;  %v11245_v32 = vshrl.u32 %v1451_v50, 30  ;;  %v1506_v63 = vsel %vm1505_vm1, %v1504_v28, 0  ;;  %v1601_v29 = vand.u32 2139095040, %v11243_v15 }
 0x13d   : > { %v1361_v57 = vor.u32 %v1360_v44, %v1359_v3  ;;  %v1364_v27 = vshll.u32 %v1363_v38, 23  ;;  %v1279_v17 = vxor.u32 2147483648, %v9786_v46  ;;  %v11251_v60 = vand.u32 3, %v1379_v30 }
 0x13e   : > { %v1283_v9 = vsel %vm1281_vm0, %v1282_v47, %v9786_v46  ;;  %v1453_v23 = vshll.u32 %v11245_v32, 30  ;;  %v1508_v42 = vand.u32 31, %v1506_v63  ;;  %v1598_v14 = vand.u32 2147483647, %v11243_v15 }
 0x13f   : > { %v1365_v52 = vor.u32 4788187, %v1364_v27  ;;  %v1368_v41 = vcvt.s32.f32 %v1361_v57  ;;  %v1280_v58 = vsel %vm1278_vm15, %v9784_v33, %v1279_v17  ;;  %v11260_v38 = vshll.u32 %v1502_v6, 8 }
 0x140   : > { %v1284_v45 = vsel %vm1277_vm14, %v1280_v58, %v1283_v9  ;;  %v11256_v8 = vsub.s32 %v1450_v7, %v1453_v23  ;;  %v1509_v44 = vsub.s32 32, %v1508_v42  ;;  %v11263_v33 = vshrl.u32 %v1506_v63, 5 }
 0x141   : > { %v1366_v16 = vand.u32 2147483647, %v1365_v52  ;;  %v1285_v3 = vsel %vm1274_vm11, nan, %v1284_v45  ;;  %v1511_v50 = vshll.u32 %v16032_v11, %v1508_v42  ;;  %v1602_v2 = vshrl.u32 %v1601_v29, 23 }
 0x142   : > { %v3583_v12 = vsub.f32 %v1285_v3, %v10852_v1  ;;  %v1456_v51 = vsub.s32 0, %v11256_v8  ;;  %v1512_v54 = vshrl.u32 %v16017_v13, %v1509_v44  ;;  %v1514_v7 = vshll.u32 %v16017_v13, %v1508_v42 }
 0x143   : > { %v1369_v40 = vmul.f32 %v1368_v41, %v1366_v16  ;;  %v1476_v47 = vsub.s32 4, %v11245_v32  ;;  %v1515_v57 = vshrl.u32 %v16015_v18, %v1509_v44  ;;  %v11274_v27 = vand.u32 8388607, %v1598_v14 }
 0x144   : > { %v3615_v28 = vmul.f32 %v10959_v53, %v3583_v12  ;;  %v9205_v46 = vmin.u32 %v1456_v51, %v11256_v8  ;;  %v1517_v6 = vshll.u32 %v16015_v18, %v1508_v42  ;;  %v1518_v9 = vshrl.u32 %v16028_v22, %v1509_v44 }
 0x145   : > { %v1370_v39 = vxor.u32 2147483648, %v1369_v40  ;;  %vm1392_vm2 = vcmp.lt.s32.totalorder %v11030_v49, 0  ;;  %vm1526_vm3 = vcmp.lt.s32.totalorder %v11263_v33, 1  ;;  %v9212_v63 = vadd.s32 4294967169, %v1602_v2 }
 0x146   : > { %v11277_v30 = vadd.f32 %v3615_v28, %v10852_v1  ;;  %v1458_v41 = vclz %v9205_v46  ;;  %v1510_v1 = vshrl.u32 %v16032_v11, %v1509_v44  ;;  %v1513_v58 = vor.u32 %v1512_v54, %v1511_v50 }
 0x147   : > { %v1371_v17 = vsel %vm1288_vm9, %v1370_v39, %v1369_v40  ;;  %v1516_v23 = vor.u32 %v1515_v57, %v1514_v7  ;;  %v1520_v36 = vshll.u32 %v16028_v22, %v1508_v42  ;;  %v1521_v45 = vshrl.u32 %v16026_v24, %v1509_v44 }
 0x148   : > { %v1374_v52 = vsel %vm11229_vm12, %v10954_v61, %v1371_v17  ;;  %4075 = vmatmul.mubr.f32.gmra.mxu1 %v11277_v30  ;;  %v9206_v29 = vadd.s32 4294967294, %v1458_v41  ;;  %v1519_v16 = vor.u32 %v1518_v9, %v1517_v6  ;;  %v1523_v3 = vshll.u32 %v16026_v24, %v1508_v42 }
 0x149   : > { %9787 = vcosq.f32 %v1374_v52  ;;  %4080 = vmatprep.mubr.f32.mxu1 %v16021_v4  ;;  %v1524_v12 = vshrl.u32 %v16024_v37, %v1509_v44  ;;  %vm1527_vm4 = vcmp.lt.s32.totalorder %v11263_v33, 2  ;;  %vm11298_vm5 = vcmp.le.f32.partialorder %v1390_v26, 0.7853982 }
 0x14a   : > { %9789 = vsinq.f32 %v1374_v52  ;;  %vm9207_vm6 = vcmp.lt.s32.totalorder %v9206_v29, 0  ;;  %v1522_v51 = vor.u32 %v1521_v45, %v1520_v36  ;;  %vm1528_vm7 = vcmp.lt.s32.totalorder %v11263_v33, 3 }
 0x14b   : > { %vm1529_vm8 = vcmp.lt.s32.totalorder %v11263_v33, 4  ;;  %v1461_v50 = vsel %vm9207_vm6, 0, %v9206_v29  ;;  %v1525_v2 = vor.u32 %v1524_v12, %v1523_v3  ;;  %v1530_v42 = vsel %vm1526_vm3, %v1510_v1, %v1513_v58 }
 0x14c   : > { %v1531_v44 = vsel %vm1529_vm8, %v1519_v16, 2102212464  ;;  %v1462_v28 = vsub.s32 32, %v1461_v50  ;;  %v1463_v39 = vshll.u32 %v11256_v8, %v1461_v50  ;;  %v1466_v54 = vsub.s32 4294967266, %v1461_v50 }
 0x14d   : > { %v1534_v26 = vsel %vm1526_vm3, %v1513_v58, %v1516_v23  ;;  %v1532_v7 = vsel %vm1528_vm7, %v1516_v23, %v1531_v44  ;;  %v1535_v46 = vsel %vm1529_vm8, %v1522_v51, 920167782  ;;  %v1538_v57 = vsel %vm1526_vm3, %v1516_v23, %v1519_v16 }
 0x14e   : > { %v1539_v17 = vsel %vm1529_vm8, %v1525_v2, 1326507024  ;;  %v1464_v6 = vshrl.u32 %v1446_v56, %v1462_v28  ;;  %v1467_v9 = vadd.s32 127, %v1466_v54  ;;  %v1536_v52 = vsel %vm1528_vm7, %v1519_v16, %v1535_v46 }
 0x14f   : > { %v1540_v8 = vsel %vm1528_vm7, %v1522_v51, %v1539_v17  ;;  %vm1378_vm9 = vweird.f32 %v10954_v61  ;;  %v1477_v41 = vsel %vm1392_vm2, %v1476_v47, %v11245_v32  ;;  %v1537_v1 = vsel %vm1527_vm4, %v1534_v26, %v1536_v52 }
 0x150   : > { %v1541_v58 = vsel %vm1527_vm4, %v1538_v57, %v1540_v8  ;;  %v1608_v56 = vadd.s32 1, %v9212_v63  ;;  %v1465_v23 = vor.u32 %v1464_v6, %v1463_v39  ;;  %v1468_v29 = vshll.u32 %v1467_v9, 23 }
 0x151   : > { %v11326_v36 = vmul.u32.u64.low %v11260_v38, %v1541_v58  ;;  %v11327_v45 = vmul.u32.u64.high %v11260_v38, %v1541_v58, %v11326_v36  ;;  %v1533_v16 = vsel %vm1527_vm4, %v1530_v42, %v1532_v7  ;;  %vm1381_vm10 = vcmp.lt.s32.totalorder %v11251_v60, 2 }
 0x152   : > { %v11332_v3 = vmul.u32.u64.low %v11260_v38, %v1537_v1  ;;  %v11333_v12 = vmul.u32.u64.high %v11260_v38, %v1537_v1, %v11332_v3  ;;  %vm1609_vm11 = vcmp.gt.s32.totalorder %v1608_v56, 0  ;;  %v1469_v32 = vor.u32 4788187, %v1468_v29 }
 0x153   : > { %v1472_v47 = vcvt.s32.f32 %v1465_v23  ;;  %v1610_v63 = vsel %vm1609_vm11, %v1608_v56, 0  ;;  %vm1382_vm12 = vcmp.eq.s32.totalorder %v11251_v60, 0  ;;  %vm1385_vm13 = vcmp.eq.s32.totalorder %v11251_v60, 2 }
 0x154   : > { %v1479_v51 = vsel %vm11298_vm5, 0, %v1477_v41  ;;  %v1612_v33 = vand.u32 31, %v1610_v63  ;;  %v1470_v2 = vand.u32 2147483647, %v1469_v32  ;;  %v1549_v42 = vmul.u32 %v11260_v38, %v1533_v16 }
 0x155   : > { %vm1551_vm14 = vc.u32 %v11327_v45, %v11332_v3  ;;  %v1606_v44 = vor.u32 8388608, %v11274_v27  ;;  %v1552_v54 = vadd.s32 1, %v11333_v12  ;;  %v1483_v17 = vadd.s32 3, %v1479_v51 }
 0x156   : > { %v9788_v50 = vpop.eup %9787  ;;  %v1613_v26 = vsub.s32 32, %v1612_v33  ;;  %v1615_v7 = vshll.u32 %v16032_v11, %v1612_v33  ;;  %v1473_v57 = vmul.f32 %v1472_v47, %v1470_v2  ;;  %v11347_v6 = vshrl.u32 %v1610_v63, 5  ;;  %v11372_v2 = vld [vmem:[%s10063_s7 + $0x70] sm:$0xff] }
 0x157   : > { %v9790_v28 = vpop.eup %9789  ;;  %v1386_v39 = vxor.u32 2147483648, %v9788_v50  ;;  %v1553_v9 = vsel %vm1551_vm14, %v1552_v54, %v11333_v12  ;;  %v1618_v27 = vshll.u32 %v16017_v13, %v1612_v33  ;;  %v1621_v29 = vshll.u32 %v16015_v18, %v1612_v33 }
 0x158   : > { %v1383_v46 = vxor.u32 2147483648, %v9790_v28  ;;  %v1616_v52 = vshrl.u32 %v16017_v13, %v1613_v26  ;;  %v1474_v41 = vxor.u32 2147483648, %v1473_v57  ;;  %v1554_v1 = vadd.s32 %v1553_v9, %v1549_v42  ;;  %v162_v42 = vld [vmem:[%s10063_s7 + $0x78] sm:$0xff] }
 0x159   : > { %v1387_v38 = vsel %vm1385_vm13, %v1386_v39, %v9790_v28  ;;  %v1619_v58 = vshrl.u32 %v16015_v18, %v1613_v26  ;;  %v1624_v36 = vshll.u32 %v16028_v22, %v1612_v33  ;;  %v1622_v47 = vshrl.u32 %v16028_v22, %v1613_v26 }
 0x15a   : > { %v1384_v8 = vsel %vm1382_vm12, %v9788_v50, %v1383_v46  ;;  %v1617_v23 = vor.u32 %v1616_v52, %v1615_v7  ;;  %v1475_v12 = vsel %vm1392_vm2, %v1474_v41, %v1473_v57  ;;  %v1555_v32 = vadd.s32 536870912, %v1554_v1 }
 0x15b   : > { %v1388_v56 = vsel %vm1381_vm10, %v1384_v8, %v1387_v38  ;;  %v1478_v60 = vsel %vm11298_vm5, %v11030_v49, %v1475_v12  ;;  %v1620_v51 = vor.u32 %v1619_v58, %v1618_v27  ;;  %v1625_v50 = vshrl.u32 %v16026_v24, %v1613_v26 }
 0x15c   : > { %v1389_v16 = vsel %vm1378_vm9, nan, %v1388_v56  ;;  %9791 = vcosq.f32 %v1478_v60  ;;  %v1556_v61 = vshrl.u32 %v1555_v32, 30  ;;  %v1627_v28 = vshll.u32 %v16026_v24, %v1612_v33 }
 0x15d   : > { %v3584_v63 = vsub.f32 %v1389_v16, %v10933_v59  ;;  %v1628_v39 = vshrl.u32 %v16024_v37, %v1613_v26  ;;  %9793 = vsinq.f32 %v1478_v60  ;;  %v1626_v7 = vor.u32 %v1625_v50, %v1624_v36 }
 0x15e   : > { %vm1630_vm15 = vcmp.lt.s32.totalorder %v11347_v6, 1  ;;  %v1557_v40 = vshll.u32 %v1556_v61, 30  ;;  %v1623_v46 = vor.u32 %v1622_v47, %v1621_v29  ;;  %v194_v57 = vmul.f32 %v11168_v0, %v11372_v2 }
 0x15f   : > { %v3616_v54 = vmul.f32 %v10959_v53, %v3584_v63  ;;  %v195_v38 = vmul.f32 %v11168_v0, %v162_v42  ;;  %v1629_v52 = vor.u32 %v1628_v39, %v1627_v28  ;;  %vm1632_vm0 = vcmp.lt.s32.totalorder %v11347_v6, 3 }
 0x160   : > { %vm1633_vm1 = vcmp.lt.s32.totalorder %v11347_v6, 4  ;;  %v11387_v53 = vsub.s32 %v1554_v1, %v1557_v40  ;;  %v1614_v33 = vshrl.u32 %v16032_v11, %v1613_v26  ;;  %vm1631_vm2 = vcmp.lt.s32.totalorder %v11347_v6, 2 }
 0x161   : > { %v11383_v9 = vadd.f32 %v3616_v54, %v10933_v59  ;;  %v1638_v27 = vsel %vm1630_vm15, %v1617_v23, %v1620_v51  ;;  %v1484_v8 = vand.u32 3, %v1483_v17  ;;  %v1635_v59 = vsel %vm1633_vm1, %v1623_v46, 2102212464 }
 0x162   : > { %v1639_v41 = vsel %vm1633_vm1, %v1626_v7, 920167782  ;;  %v1646_v58 = vshll.u32 %v1606_v44, 8  ;;  %v1560_v1 = vsub.s32 0, %v11387_v53  ;;  %v1580_v26 = vsub.s32 4, %v1556_v61 }
 0x163   : > { %4081 = vmatmul.mubr.f32.gmra.mxu1 %v11383_v9  ;;  %v1640_v56 = vsel %vm1632_vm0, %v1623_v46, %v1639_v41  ;;  %v1642_v29 = vsel %vm1630_vm15, %v1620_v51, %v1623_v46  ;;  %vm1496_vm3 = vcmp.lt.s32.totalorder %v11203_v5, 0  ;;  %v1643_v36 = vsel %vm1633_vm1, %v1629_v52, 1326507024 }
 0x164   : > { %4086 = vmatprep.mubr.f32.mxu1 %v16021_v4  ;;  %v1641_v17 = vsel %vm1631_vm2, %v1638_v27, %v1640_v56  ;;  %v11410_v44 = vadd.f32 %v11200_v31, %v194_v57  ;;  %vm1482_vm4 = vweird.f32 %v11030_v49  ;;  %v9209_v16 = vmin.u32 %v1560_v1, %v11387_v53 }
 0x165   : > { %v1634_v12 = vsel %vm1630_vm15, %v1614_v33, %v1617_v23  ;;  %v1636_v32 = vsel %vm1632_vm0, %v1620_v51, %v1635_v59  ;;  %v1644_v47 = vsel %vm1632_vm0, %v1626_v7, %v1643_v36  ;;  %vm11422_vm5 = vcmp.le.f32.partialorder %v1494_v10, 0.7853982 }
 0x166   : > { %v1645_v60 = vsel %vm1631_vm2, %v1642_v29, %v1644_v47  ;;  %v11428_v50 = vmul.u32.u64.low %v1646_v58, %v1641_v17  ;;  %v11429_v42 = vmul.u32.u64.high %v1646_v58, %v1641_v17, %v11428_v50  ;;  %vm1485_vm6 = vcmp.lt.s32.totalorder %v1484_v8, 2 }
 0x167   : > { %v1562_v23 = vclz %v9209_v16  ;;  %v1581_v51 = vsel %vm1496_vm3, %v1580_v26, %v1556_v61  ;;  %v11435_v28 = vadd.f32 %v11200_v31, %v195_v38  ;;  %v1637_v10 = vsel %vm1631_vm2, %v1634_v12, %v1636_v32 }
 0x168   : > { %v11439_v39 = vmul.u32.u64.low %v1646_v58, %v1645_v60  ;;  %v11440_v54 = vmul.u32.u64.high %v1646_v58, %v1645_v60, %v11439_v39  ;;  %v1705_v7 = vand.u32 2139095040, %v11410_v44  ;;  %vm1486_vm7 = vcmp.eq.s32.totalorder %v1484_v8, 0 }
 0x169   : > { %vm1489_vm8 = vcmp.eq.s32.totalorder %v1484_v8, 2  ;;  %v1550_v40 = vadd.s32 %v11332_v3, %v11327_v45  ;;  %v9210_v46 = vadd.s32 4294967294, %v1562_v23  ;;  %v9792_v57 = vpop.eup %9791  ;;  %v1583_v61 = vsel %vm11422_vm5, 0, %v1581_v51 }
 0x16a   : > { %v1656_v38 = vadd.s32 1, %v11429_v42  ;;  %v1702_v6 = vand.u32 2147483647, %v11410_v44  ;;  %v1706_v52 = vshrl.u32 %v1705_v7, 23  ;;  %v9794_v33 = vpop.eup %9793  ;;  %v1490_v27 = vxor.u32 2147483648, %v9792_v57  ;;  %v9964_v7 = vld [vmem:[%s10063_s7 + $0x58] sm:$0xff] }
 0x16b   : > { %vm9211_vm9 = vcmp.lt.s32.totalorder %v9210_v46, 0  ;;  %v1653_v59 = vmul.u32 %v1646_v58, %v1637_v10  ;;  %v16014_v41 = vand.u32 2147483647, %v11435_v28  ;;  %v1487_v1 = vxor.u32 2147483648, %v9794_v33 }
 0x16c   : > { %v1565_v26 = vsel %vm9211_vm9, 0, %v9210_v46  ;;  %vm1655_vm11 = vc.u32 %v11440_v54, %v11428_v50  ;;  %v1809_v45 = vand.u32 2139095040, %v11435_v28  ;;  %v1491_v3 = vsel %vm1489_vm8, %v1490_v27, %v9794_v33 }
 0x16d   : > { %v1566_v56 = vsub.s32 32, %v1565_v26  ;;  %v1567_v29 = vshll.u32 %v11387_v53, %v1565_v26  ;;  %v1570_v17 = vsub.s32 4294967266, %v1565_v26  ;;  %v1488_v36 = vsel %vm1486_vm7, %v9792_v57, %v1487_v1 }
 0x16e   : > { %v1657_v58 = vsel %vm1655_vm11, %v1656_v38, %v11429_v42  ;;  %v9216_v16 = vadd.s32 4294967169, %v1706_v52  ;;  %v1709_v12 = vand.u32 8388607, %v1702_v6  ;;  %v1492_v32 = vsel %vm1485_vm6, %v1488_v36, %v1491_v3  ;;  %v163_v3 = vld [vmem:[%s10063_s7 + $0x80] sm:$0xff] }
 0x16f   : > { %v1568_v47 = vshrl.u32 %v1550_v40, %v1566_v56  ;;  %v1571_v60 = vadd.s32 127, %v1570_v17  ;;  %v1658_v23 = vadd.s32 %v1657_v58, %v1653_v59  ;;  %v1493_v51 = vsel %vm1482_vm4, nan, %v1492_v32  ;;  %v11468_v40 = vld [vmem:[%s16012_s1 + $0x20] ss:$0 sm:$0xff] }
 0x170   : > { %v1712_v10 = vadd.s32 1, %v9216_v16  ;;  %v1810_v39 = vshrl.u32 %v1809_v45, 23  ;;  %v1813_v53 = vand.u32 8388607, %v16014_v41  ;;  %v3585_v42 = vsub.f32 %v1493_v51, %v9964_v7 }
 0x171   : > { %v1569_v46 = vor.u32 %v1568_v47, %v1567_v29  ;;  %v1572_v57 = vshll.u32 %v1571_v60, 23  ;;  %v1659_v38 = vadd.s32 536870912, %v1658_v23  ;;  %v1587_v52 = vadd.s32 3, %v1583_v61 }
 0x172   : > { %vm1713_vm10 = vcmp.gt.s32.totalorder %v1712_v10, 0  ;;  %v9220_v8 = vadd.s32 4294967169, %v1810_v39  ;;  %v3617_v49 = vmul.f32 %v11468_v40, %v3585_v42  ;;  %v1710_v1 = vor.u32 8388608, %v1709_v12 }
 0x173   : > { %v1573_v33 = vor.u32 4788187, %v1572_v57  ;;  %v1576_v27 = vcvt.s32.f32 %v1569_v46  ;;  %v11471_v59 = vshrl.u32 %v1659_v38, 30  ;;  %v1714_v26 = vsel %vm1713_vm10, %v1712_v10, 0 }
 0x174   : > { %v1814_v45 = vor.u32 8388608, %v1813_v53  ;;  %v11474_v56 = vadd.f32 %v9964_v7, %v3617_v49  ;;  %v1816_v17 = vadd.s32 1, %v9220_v8  ;;  %v1716_v36 = vand.u32 31, %v1714_v26 }
 0x175   : > { %v1574_v61 = vand.u32 2147483647, %v1573_v33  ;;  %v1661_v29 = vshll.u32 %v11471_v59, 30  ;;  %v11478_v16 = vand.u32 3, %v1587_v52  ;;  %v11483_v47 = vmul.f32 %v11168_v0, %v163_v3 }
 0x176   : > { %4087 = vmatmul.mubr.f32.gmra.mxu1 %v11474_v56  ;;  %v1654_v12 = vadd.s32 %v11428_v50, %v11440_v54  ;;  %v1717_v60 = vsub.s32 32, %v1716_v36  ;;  %v11488_v51 = vshll.u32 %v1710_v1, 8  ;;  %v11490_v10 = vshll.u32 %v1814_v45, 8 }
 0x177   : > { %v1577_v58 = vmul.f32 %v1576_v27, %v1574_v61  ;;  %v11480_v32 = vsub.s32 %v1658_v23, %v1661_v29  ;;  %4092 = vmatprep.mubr.f32.mxu1 %v16021_v4  ;;  %v1719_v7 = vshll.u32 %v16032_v11, %v1716_v36  ;;  %vm1817_vm12 = vcmp.gt.s32.totalorder %v1816_v17, 0 }
 0x178   : > { %v1715_v23 = vshrl.u32 %v1714_v26, 5  ;;  %v1720_v42 = vshrl.u32 %v16017_v13, %v1717_v60  ;;  %v1722_v46 = vshll.u32 %v16017_v13, %v1716_v36  ;;  %v1723_v57 = vshrl.u32 %v16015_v18, %v1717_v60 }
 0x179   : > { %v1578_v39 = vxor.u32 2147483648, %v1577_v58  ;;  %v1664_v53 = vsub.s32 0, %v11480_v32  ;;  %vm1600_vm13 = vcmp.lt.s32.totalorder %v11243_v15, 0  ;;  %v1725_v38 = vshll.u32 %v16015_v18, %v1716_v36 }
 0x17a   : > { %v1726_v52 = vshrl.u32 %v16028_v22, %v1717_v60  ;;  %v1684_v49 = vsub.s32 4, %v11471_v59  ;;  %v1728_v33 = vshll.u32 %v16028_v22, %v1716_v36  ;;  %v1818_v27 = vsel %vm1817_vm12, %v1816_v17, 0 }
 0x17b   : > { %v1579_v50 = vsel %vm1496_vm3, %v1578_v39, %v1577_v58  ;;  %v9213_v54 = vmin.u32 %v1664_v53, %v11480_v32  ;;  %v1718_v26 = vshrl.u32 %v16032_v11, %v1717_v60  ;;  %v1721_v45 = vor.u32 %v1720_v42, %v1719_v7 }
 0x17c   : > { %v1582_v8 = vsel %vm11422_vm5, %v11203_v5, %v1579_v50  ;;  %v1724_v3 = vor.u32 %v1723_v57, %v1722_v46  ;;  %v1729_v61 = vshrl.u32 %v16026_v24, %v1717_v60  ;;  %v1731_v29 = vshll.u32 %v16026_v24, %v1716_v36 }
 0x17d   : > { %9795 = vcosq.f32 %v1582_v8  ;;  %v1666_v1 = vclz %v9213_v54  ;;  %vm11513_vm14 = vcmp.le.f32.partialorder %v1598_v14, 0.7853982  ;;  %v1727_v39 = vor.u32 %v1726_v52, %v1725_v38 }
 0x17e   : > { %9797 = vsinq.f32 %v1582_v8  ;;  %v1732_v17 = vshrl.u32 %v16024_v37, %v1717_v60  ;;  %vm1734_vm15 = vcmp.lt.s32.totalorder %v1715_v23, 1  ;;  %v1730_v53 = vor.u32 %v1729_v61, %v1728_v33 }
 0x17f   : > { %v9214_v58 = vadd.s32 4294967294, %v1666_v1  ;;  %vm1735_vm0 = vcmp.lt.s32.totalorder %v1715_v23, 2  ;;  %vm1736_vm1 = vcmp.lt.s32.totalorder %v1715_v23, 3  ;;  %vm1737_vm2 = vcmp.lt.s32.totalorder %v1715_v23, 4 }
 0x180   : > { %v1733_v7 = vor.u32 %v1732_v17, %v1731_v29  ;;  %v1738_v42 = vsel %vm1734_vm15, %v1718_v26, %v1721_v45  ;;  %v1739_v36 = vsel %vm1737_vm2, %v1727_v39, 2102212464  ;;  %vm1593_vm4 = vcmp.eq.s32.totalorder %v11478_v16, 2 }
 0x181   : > { %vm9215_vm3 = vcmp.lt.s32.totalorder %v9214_v58, 0  ;;  %v1740_v46 = vsel %vm1736_vm1, %v1724_v3, %v1739_v36  ;;  %v1742_v57 = vsel %vm1734_vm15, %v1721_v45, %v1724_v3  ;;  %v1743_v60 = vsel %vm1737_vm2, %v1730_v53, 920167782 }
 0x182   : > { %v1669_v14 = vsel %vm9215_vm3, 0, %v9214_v58  ;;  %vm1590_vm5 = vcmp.eq.s32.totalorder %v11478_v16, 0  ;;  %v1746_v52 = vsel %vm1734_vm15, %v1724_v3, %v1727_v39  ;;  %vm1589_vm6 = vcmp.lt.s32.totalorder %v11478_v16, 2 }
 0x183   : > { %v1670_v50 = vsub.s32 32, %v1669_v14  ;;  %v1671_v54 = vshll.u32 %v11480_v32, %v1669_v14  ;;  %v1674_v38 = vsub.s32 4294967266, %v1669_v14  ;;  %v11531_v8 = vsel %vm1600_vm13, %v1684_v49, %v11471_v59 }
 0x184   : > { %v1741_v33 = vsel %vm1735_vm0, %v1738_v42, %v1740_v46  ;;  %v1744_v1 = vsel %vm1736_vm1, %v1727_v39, %v1743_v60  ;;  %v1747_v26 = vsel %vm1737_vm2, %v1733_v7, 1326507024  ;;  %vm1586_vm7 = vweird.f32 %v11203_v5 }
 0x185   : > { %v1672_v45 = vshrl.u32 %v1654_v12, %v1670_v50  ;;  %v1675_v32 = vadd.s32 127, %v1674_v38  ;;  %v1745_v61 = vsel %vm1735_vm0, %v1742_v57, %v1744_v1  ;;  %v1748_v3 = vsel %vm1736_vm1, %v1730_v53, %v1747_v26 }
 0x186   : > { %v1749_v29 = vsel %vm1735_vm0, %v1746_v52, %v1748_v3  ;;  %v11541_v58 = vmul.u32.u64.low %v11488_v51, %v1745_v61  ;;  %v11542_v59 = vmul.u32.u64.high %v11488_v51, %v1745_v61, %v11541_v58  ;;  %v1820_v49 = vand.u32 31, %v1818_v27 }
 0x187   : > { %v1673_v17 = vor.u32 %v1672_v45, %v1671_v54  ;;  %v1676_v39 = vshll.u32 %v1675_v32, 23  ;;  %v11546_v7 = vmul.u32.u64.low %v11488_v51, %v1749_v29  ;;  %v11547_v42 = vmul.u32.u64.high %v11488_v51, %v1749_v29, %v11546_v7 }
 0x188   : > { %v1687_v12 = vsel %vm11513_vm14, 0, %v11531_v8  ;;  %v1757_v53 = vmul.u32 %v11488_v51, %v1741_v33  ;;  %v11553_v23 = vshrl.u32 %v1818_v27, 5  ;;  %v1821_v36 = vsub.s32 32, %v1820_v49 }
 0x189   : > { %v1677_v14 = vor.u32 4788187, %v1676_v39  ;;  %v1680_v46 = vcvt.s32.f32 %v1673_v17  ;;  %v1823_v57 = vshll.u32 %v16032_v11, %v1820_v49  ;;  %v1826_v60 = vshll.u32 %v16017_v13, %v1820_v49 }
 0x18a   : > { %v9796_v50 = vpop.eup %9795  ;;  %v1760_v54 = vadd.s32 1, %v11542_v59  ;;  %v1824_v38 = vshrl.u32 %v16017_v13, %v1821_v36  ;;  %v1829_v52 = vshll.u32 %v16015_v18, %v1820_v49  ;;  %v1832_v8 = vshll.u32 %v16028_v22, %v1820_v49 }
 0x18b   : > { %v9798_v1 = vpop.eup %9797  ;;  %v1594_v51 = vxor.u32 2147483648, %v9796_v50  ;;  %v1678_v27 = vand.u32 2147483647, %v1677_v14  ;;  %vm1759_vm8 = vc.u32 %v11547_v42, %v11541_v58  ;;  %v1827_v33 = vshrl.u32 %v16015_v18, %v1821_v36 }
 0x18c   : > { %v1591_v26 = vxor.u32 2147483648, %v9798_v1  ;;  %v1761_v45 = vsel %vm1759_vm8, %v1760_v54, %v11542_v59  ;;  %v1822_v32 = vshrl.u32 %v16032_v11, %v1821_v36  ;;  %v1835_v61 = vshll.u32 %v16026_v24, %v1820_v49 }
 0x18d   : > { %v1595_v3 = vsel %vm1593_vm4, %v1594_v51, %v9798_v1  ;;  %v1681_v29 = vmul.f32 %v1680_v46, %v1678_v27  ;;  %v1762_v17 = vadd.s32 %v1761_v45, %v1757_v53  ;;  %v1830_v39 = vshrl.u32 %v16028_v22, %v1821_v36 }
 0x18e   : > { %v1592_v7 = vsel %vm1590_vm5, %v9796_v50, %v1591_v26  ;;  %v1825_v14 = vor.u32 %v1824_v38, %v1823_v57  ;;  %v1833_v41 = vshrl.u32 %v16026_v24, %v1821_v36  ;;  %v1836_v18 = vshrl.u32 %v16024_v37, %v1821_v36 }
 0x18f   : > { %v1596_v59 = vsel %vm1589_vm6, %v1592_v7, %v1595_v3  ;;  %v1682_v54 = vxor.u32 2147483648, %v1681_v29  ;;  %v1763_v49 = vadd.s32 536870912, %v1762_v17  ;;  %v1828_v13 = vor.u32 %v1827_v33, %v1826_v60 }
 0x190   : > { %v1597_v46 = vsel %vm1586_vm7, nan, %v1596_v59  ;;  %v1831_v53 = vor.u32 %v1830_v39, %v1829_v52  ;;  %v1834_v1 = vor.u32 %v1833_v41, %v1832_v8  ;;  %vm1838_vm9 = vcmp.lt.s32.totalorder %v11553_v23, 1 }
 0x191   : > { %v3586_v50 = vsub.f32 %v1597_v46, %v11148_v34  ;;  %v1683_v57 = vsel %vm1600_vm13, %v1682_v54, %v1681_v29  ;;  %v1764_v38 = vshrl.u32 %v1763_v49, 30  ;;  %v1837_v36 = vor.u32 %v1836_v18, %v1835_v61 }
 0x192   : > { %v1686_v16 = vsel %vm11513_vm14, %v11243_v15, %v1683_v57  ;;  %vm1839_vm11 = vcmp.lt.s32.totalorder %v11553_v23, 2  ;;  %vm1840_vm10 = vcmp.lt.s32.totalorder %v11553_v23, 3  ;;  %vm1841_vm12 = vcmp.lt.s32.totalorder %v11553_v23, 4 }
 0x193   : > { %v3618_v5 = vmul.f32 %v11468_v40, %v3586_v50  ;;  %9799 = vcosq.f32 %v1686_v16  ;;  %v1765_v41 = vshll.u32 %v1764_v38, 30  ;;  %v1842_v60 = vsel %vm1838_vm9, %v1822_v32, %v1825_v14 }
 0x194   : > { %9801 = vsinq.f32 %v1686_v16  ;;  %v1843_v52 = vsel %vm1841_vm12, %v1831_v53, 2102212464  ;;  %v1846_v18 = vsel %vm1838_vm9, %v1825_v14, %v1828_v13  ;;  %v1847_v63 = vsel %vm1841_vm12, %v1834_v1, 920167782 }
 0x195   : > { %v11594_v8 = vadd.f32 %v3618_v5, %v11148_v34  ;;  %v11596_v51 = vsub.s32 %v1762_v17, %v1765_v41  ;;  %v1844_v27 = vsel %vm1840_vm10, %v1828_v13, %v1843_v52  ;;  %v1850_v33 = vsel %vm1838_vm9, %v1828_v13, %v1831_v53 }
 0x196   : > { %v1691_v26 = vadd.s32 3, %v1687_v12  ;;  %v1848_v45 = vsel %vm1840_vm10, %v1831_v53, %v1847_v63  ;;  %v1851_v32 = vsel %vm1841_vm12, %v1837_v36, 1326507024  ;;  %v11606_v61 = vadd.f32 %v11200_v31, %v11483_v47  ;;  %v11631_v53 = vld [vmem:[%s10063_s7 + $0x88] sm:$0xff] }
 0x197   : > { %4093 = vmatmul.mubr.f32.gmra.mxu1 %v11594_v8  ;;  %v1768_v34 = vsub.s32 0, %v11596_v51  ;;  %v1849_v3 = vsel %vm1839_vm11, %v1846_v18, %v1848_v45  ;;  %v1852_v13 = vsel %vm1840_vm10, %v1834_v1, %v1851_v32  ;;  %v1845_v12 = vsel %vm1839_vm11, %v1842_v60, %v1844_v27 }
 0x198   : > { %4098 = vmatprep.mubr.f32.mxu1 %v16021_v4  ;;  %v1853_v29 = vsel %vm1839_vm11, %v1850_v33, %v1852_v13  ;;  %v11620_v47 = vmul.u32.u64.low %v11490_v10, %v1849_v3  ;;  %v11621_v17 = vmul.u32.u64.high %v11490_v10, %v1849_v3, %v11620_v47  ;;  %v1788_v7 = vsub.s32 4, %v1764_v38 }
 0x199   : > { %v9217_v39 = vmin.u32 %v1768_v34, %v11596_v51  ;;  %v11625_v14 = vmul.u32.u64.low %v11490_v10, %v1853_v29  ;;  %v11626_v59 = vmul.u32.u64.high %v11490_v10, %v1853_v29, %v11625_v14  ;;  %v1692_v54 = vand.u32 3, %v1691_v26 }
 0x19a   : > { %v1910_v49 = vand.u32 2147483647, %v11606_v61  ;;  %v1913_v46 = vand.u32 2139095040, %v11606_v61  ;;  %vm1690_vm13 = vweird.f32 %v11243_v15  ;;  %v1861_v1 = vmul.u32 %v11490_v10, %v1845_v12 }
 0x19b   : > { %v1770_v23 = vclz %v9217_v39  ;;  %vm11637_vm14 = vcmp.le.f32.partialorder %v1702_v6, 0.7853982  ;;  %vm1704_vm15 = vcmp.lt.s32.totalorder %v11410_v44, 0  ;;  %v1864_v57 = vadd.s32 1, %v11621_v17 }
 0x19c   : > { %v1914_v36 = vshrl.u32 %v1913_v46, 23  ;;  %v1789_v5 = vsel %vm1704_vm15, %v1788_v7, %v1764_v38  ;;  %vm1863_vm0 = vc.u32 %v11626_v59, %v11620_v47  ;;  %v197_v10 = vmul.f32 %v11168_v0, %v11631_v53 }
 0x19d   : > { %v9218_v16 = vadd.s32 4294967294, %v1770_v23  ;;  %vm1693_vm1 = vcmp.lt.s32.totalorder %v1692_v54, 2  ;;  %v1865_v6 = vsel %vm1863_vm0, %v1864_v57, %v11621_v17  ;;  %v1917_v60 = vand.u32 8388607, %v1910_v49 }
 0x19e   : > { %v9224_v41 = vadd.s32 4294967169, %v1914_v36  ;;  %vm1694_vm2 = vcmp.eq.s32.totalorder %v1692_v54, 0  ;;  %v1758_v52 = vadd.s32 %v11541_v58, %v11547_v42  ;;  %v1866_v18 = vadd.s32 %v1865_v6, %v1861_v1 }
 0x19f   : > { %vm9219_vm3 = vcmp.lt.s32.totalorder %v9218_v16, 0  ;;  %vm1697_vm4 = vcmp.eq.s32.totalorder %v1692_v54, 2  ;;  %v1791_v27 = vsel %vm11637_vm14, 0, %v1789_v5  ;;  %v1918_v12 = vor.u32 8388608, %v1917_v60 }
 0x1a0   : > { %v9800_v63 = vpop.eup %9799  ;;  %v1773_v38 = vsel %vm9219_vm3, 0, %v9218_v16  ;;  %v1920_v0 = vadd.s32 1, %v9224_v41  ;;  %v1867_v13 = vadd.s32 536870912, %v1866_v18  ;;  %v11658_v46 = vadd.f32 %v11200_v31, %v197_v10 }
 0x1a1   : > { %v9802_v33 = vpop.eup %9801  ;;  %v1698_v26 = vxor.u32 2147483648, %v9800_v63  ;;  %v1774_v45 = vsub.s32 32, %v1773_v38  ;;  %v1775_v32 = vshll.u32 %v11596_v51, %v1773_v38  ;;  %v1778_v34 = vsub.s32 4294967266, %v1773_v38 }
 0x1a2   : > { %v1695_v3 = vxor.u32 2147483648, %v9802_v33  ;;  %vm1921_vm5 = vcmp.gt.s32.totalorder %v1920_v0, 0  ;;  %v1868_v7 = vshrl.u32 %v1867_v13, 30  ;;  %vm1808_vm6 = vcmp.lt.s32.totalorder %v11435_v28, 0 }
 0x1a3   : > { %v1699_v58 = vsel %vm1697_vm4, %v1698_v26, %v9802_v33  ;;  %v1776_v42 = vshrl.u32 %v1758_v52, %v1774_v45  ;;  %v1779_v29 = vadd.s32 127, %v1778_v34  ;;  %v1922_v17 = vsel %vm1921_vm5, %v1920_v0, 0 }
 0x1a4   : > { %v1696_v39 = vsel %vm1694_vm2, %v9800_v63, %v1695_v3  ;;  %v1924_v14 = vand.u32 31, %v1922_v17  ;;  %v11664_v36 = vadd.s32 3, %v1791_v27  ;;  %v1869_v16 = vshll.u32 %v1868_v7, 30 }
 0x1a5   : > { %v1700_v23 = vsel %vm1693_vm1, %v1696_v39, %v1699_v58  ;;  %v1777_v1 = vor.u32 %v1776_v42, %v1775_v32  ;;  %v1780_v51 = vshll.u32 %v1779_v29, 23  ;;  %v1862_v31 = vadd.s32 %v11620_v47, %v11626_v59  ;;  %v11776_v58 = vld [vmem:[%s16012_s1 + $0x10] ss:$0 sm:$0xff] }
 0x1a6   : > { %v1701_v57 = vsel %vm1690_vm13, nan, %v1700_v23  ;;  %v1925_v5 = vsub.s32 32, %v1924_v14  ;;  %v11668_v10 = vsub.s32 %v1866_v18, %v1869_v16  ;;  %v11670_v54 = vshll.u32 %v1918_v12, 8 }
 0x1a7   : > { %v3587_v6 = vsub.f32 %v1701_v57, %v11218_v62  ;;  %v1781_v41 = vor.u32 4788187, %v1780_v51  ;;  %v1784_v60 = vcvt.s32.f32 %v1777_v1  ;;  %v2014_v52 = vand.u32 2147483647, %v11658_v46 }
 0x1a8   : > { %v2017_v63 = vand.u32 2139095040, %v11658_v46  ;;  %v1892_v27 = vsub.s32 4, %v1868_v7  ;;  %v1927_v0 = vshll.u32 %v16032_v11, %v1924_v14  ;;  %v1872_v33 = vsub.s32 0, %v11668_v10 }
 0x1a9   : > { %v3619_v15 = vmul.f32 %v11468_v40, %v3587_v6  ;;  %v1782_v38 = vand.u32 2147483647, %v1781_v41  ;;  %v16146_v26 = vmov 2475754826   ;;  %v16147_v59 = vmov 2131351028  }
 0x1aa   : > { %v1928_v45 = vshrl.u32 %v16146_v26, %v1925_v5  ;;  %v1930_v47 = vshll.u32 %v16146_v26, %v1924_v14  ;;  %v1931_v18 = vshrl.u32 %v16147_v59, %v1925_v5  ;;  %v1933_v3 = vshll.u32 %v16147_v59, %v1924_v14 }
 0x1ab   : > { %v11681_v32 = vadd.f32 %v3619_v15, %v11218_v62  ;;  %v1785_v34 = vmul.f32 %v1784_v60, %v1782_v38  ;;  %v1934_v13 = vshrl.u32 %v16028_v22, %v1925_v5  ;;  %v16148_v12 = vand.u32 2147483647, %v11435_v28 }
 0x1ac   : > { %v9221_v42 = vmin.u32 %v1872_v33, %v11668_v10  ;;  %v1923_v29 = vshrl.u32 %v1922_v17, 5  ;;  %v1936_v39 = vshll.u32 %v16028_v22, %v1924_v14  ;;  %v2018_v23 = vshrl.u32 %v2017_v63, 23 }
 0x1ad   : > { %vm11687_vm7 = vcmp.le.f32.partialorder %v16148_v12, 0.7853982  ;;  %4099 = vmatmul.mubr.f32.gmra.mxu1 %v11681_v32  ;;  %v1786_v62 = vxor.u32 2147483648, %v1785_v34  ;;  %v1893_v1 = vsel %vm1808_vm6, %v1892_v27, %v1868_v7  ;;  %v1937_v51 = vshrl.u32 %v16026_v24, %v1925_v5 }
 0x1ae   : > { %v1939_v57 = vshll.u32 %v16026_v24, %v1924_v14  ;;  %4104 = vmatprep.mubr.f32.mxu1 %v16021_v4  ;;  %v1874_v16 = vclz %v9221_v42  ;;  %v1926_v6 = vshrl.u32 %v16032_v11, %v1925_v5  ;;  %v1929_v41 = vor.u32 %v1928_v45, %v1927_v0 }
 0x1af   : > { %v1932_v17 = vor.u32 %v1931_v18, %v1930_v47  ;;  %v1787_v60 = vsel %vm1704_vm15, %v1786_v62, %v1785_v34  ;;  %v1935_v63 = vor.u32 %v1934_v13, %v1933_v3  ;;  %v1938_v15 = vor.u32 %v1937_v51, %v1936_v39 }
 0x1b0   : > { %v1940_v38 = vshrl.u32 %v16024_v37, %v1925_v5  ;;  %v1790_v7 = vsel %vm11637_vm14, %v11410_v44, %v1787_v60  ;;  %v9222_v27 = vadd.s32 4294967294, %v1874_v16  ;;  %vm1942_vm8 = vcmp.lt.s32.totalorder %v1923_v29, 1 }
 0x1b1   : > { %vm1943_vm9 = vcmp.lt.s32.totalorder %v1923_v29, 2  ;;  %9803 = vcosq.f32 %v1790_v7  ;;  %vm1944_vm11 = vcmp.lt.s32.totalorder %v1923_v29, 3  ;;  %vm1945_vm10 = vcmp.lt.s32.totalorder %v1923_v29, 4 }
 0x1b2   : > { %v1941_v14 = vor.u32 %v1940_v38, %v1939_v57  ;;  %9805 = vsinq.f32 %v1790_v7  ;;  %vm9223_vm12 = vcmp.lt.s32.totalorder %v9222_v27, 0  ;;  %v1946_v0 = vsel %vm1942_vm8, %v1926_v6, %v1929_v41 }
 0x1b3   : > { %v1947_v33 = vsel %vm1945_vm10, %v1935_v63, 2102212464  ;;  %v1877_v45 = vsel %vm9223_vm12, 0, %v9222_v27  ;;  %v1950_v5 = vsel %vm1942_vm8, %v1929_v41, %v1932_v17  ;;  %v1951_v18 = vsel %vm1945_vm10, %v1938_v15, 920167782 }
 0x1b4   : > { %v1948_v47 = vsel %vm1944_vm11, %v1932_v17, %v1947_v33  ;;  %v1878_v50 = vsub.s32 32, %v1877_v45  ;;  %v1879_v34 = vshll.u32 %v11668_v10, %v1877_v45  ;;  %v1882_v3 = vsub.s32 4294967266, %v1877_v45 }
 0x1b5   : > { %v1954_v13 = vsel %vm1942_vm8, %v1932_v17, %v1935_v63  ;;  %v1895_v12 = vsel %vm11687_vm7, 0, %v1893_v1  ;;  %v1952_v42 = vsel %vm1944_vm11, %v1935_v63, %v1951_v18  ;;  %v1955_v39 = vsel %vm1945_vm10, %v1941_v14, 1326507024 }
 0x1b6   : > { %v9228_v62 = vadd.s32 4294967169, %v2018_v23  ;;  %v1880_v51 = vshrl.u32 %v1862_v31, %v1878_v50  ;;  %v1883_v57 = vadd.s32 127, %v1882_v3  ;;  %v1953_v16 = vsel %vm1943_vm9, %v1950_v5, %v1952_v42  ;;  %v11737_v5 = vld [vmem:[%s10063_s7 + $0x90] sm:$0xff] }
 0x1b7   : > { %v1956_v6 = vsel %vm1944_vm11, %v1938_v15, %v1955_v39  ;;  %v1949_v41 = vsel %vm1943_vm9, %v1946_v0, %v1948_v47  ;;  %v11719_v60 = vmul.u32.u64.low %v11670_v54, %v1953_v16  ;;  %v11720_v17 = vmul.u32.u64.high %v11670_v54, %v1953_v16, %v11719_v60  ;;  %v11746_v39 = vld [vmem:[%s16012_s1] ss:$0 sm:$0xff] }
 0x1b8   : > { %v1957_v10 = vsel %vm1943_vm9, %v1954_v13, %v1956_v6  ;;  %v1881_v1 = vor.u32 %v1880_v51, %v1879_v34  ;;  %v1884_v63 = vshll.u32 %v1883_v57, 23  ;;  %v1796_v38 = vand.u32 3, %v11664_v36 }
 0x1b9   : > { %v11724_v23 = vmul.u32.u64.low %v11670_v54, %v1957_v10  ;;  %v11725_v31 = vmul.u32.u64.high %v11670_v54, %v1957_v10, %v11724_v23  ;;  %v2024_v7 = vadd.s32 1, %v9228_v62  ;;  %v1965_v29 = vmul.u32 %v11670_v54, %v1949_v41 }
 0x1ba   : > { %v1885_v15 = vor.u32 4788187, %v1884_v63  ;;  %v1888_v27 = vcvt.s32.f32 %v1881_v1  ;;  %v1899_v14 = vadd.s32 3, %v1895_v12  ;;  %v1968_v0 = vadd.s32 1, %v11720_v17 }
 0x1bb   : > { %vm2025_vm13 = vcmp.gt.s32.totalorder %v2024_v7, 0  ;;  %vm1967_vm14 = vc.u32 %v11725_v31, %v11719_v60  ;;  %v11734_v45 = vand.u32 8388607, %v2014_v52  ;;  %vm1794_vm15 = vweird.f32 %v11410_v44 }
 0x1bc   : > { %v1886_v33 = vand.u32 2147483647, %v1885_v15  ;;  %v2026_v47 = vsel %vm2025_vm13, %v2024_v7, 0  ;;  %vm1797_vm0 = vcmp.lt.s32.totalorder %v1796_v38, 2  ;;  %v1969_v36 = vsel %vm1967_vm14, %v1968_v0, %v11720_v17 }
 0x1bd   : > { %v2028_v54 = vand.u32 31, %v2026_v47  ;;  %vm1798_vm1 = vcmp.eq.s32.totalorder %v1796_v38, 0  ;;  %vm1801_vm2 = vcmp.eq.s32.totalorder %v1796_v38, 2  ;;  %v1970_v34 = vadd.s32 %v1969_v36, %v1965_v29 }
 0x1be   : > { %v9804_v18 = vpop.eup %9803  ;;  %v1889_v50 = vmul.f32 %v1888_v27, %v1886_v33  ;;  %v11741_v12 = vand.u32 3, %v1899_v14  ;;  %v198_v62 = vmul.f32 %v11746_v39, %v11737_v5  ;;  %v2022_v6 = vor.u32 8388608, %v11734_v45 }
 0x1bf   : > { %v9806_v3 = vpop.eup %9805  ;;  %v1802_v13 = vxor.u32 2147483648, %v9804_v18  ;;  %v2029_v42 = vsub.s32 32, %v2028_v54  ;;  %v1971_v16 = vadd.s32 536870912, %v1970_v34  ;;  %v11751_v10 = vshrl.u32 %v2026_v47, 5 }
 0x1c0   : > { %v1799_v51 = vxor.u32 2147483648, %v9806_v3  ;;  %v1890_v57 = vxor.u32 2147483648, %v1889_v50  ;;  %v2031_v17 = vshll.u32 %v16032_v11, %v2028_v54  ;;  %v2034_v1 = vshll.u32 %v16146_v26, %v2028_v54 }
 0x1c1   : > { %v1803_v41 = vsel %vm1801_vm2, %v1802_v13, %v9806_v3  ;;  %v11758_v7 = vshrl.u32 %v1971_v16, 30  ;;  %v2037_v15 = vshll.u32 %v16147_v59, %v2028_v54  ;;  %v2032_v14 = vshrl.u32 %v16146_v26, %v2029_v42 }
 0x1c2   : > { %v1800_v63 = vsel %vm1798_vm1, %v9804_v18, %v1799_v51  ;;  %v1891_v23 = vsel %vm1808_vm6, %v1890_v57, %v1889_v50  ;;  %v2035_v0 = vshrl.u32 %v16147_v59, %v2029_v42  ;;  %v2038_v47 = vshrl.u32 %v16028_v22, %v2029_v42 }
 0x1c3   : > { %v1804_v27 = vsel %vm1797_vm0, %v1800_v63, %v1803_v41  ;;  %v1894_v29 = vsel %vm11687_vm7, %v11435_v28, %v1891_v23  ;;  %v1973_v45 = vshll.u32 %v11758_v7, 30  ;;  %v2040_v38 = vshll.u32 %v16028_v22, %v2028_v54 }
 0x1c4   : > { %v1805_v33 = vsel %vm1794_vm15, nan, %v1804_v27  ;;  %9807 = vcosq.f32 %v1894_v29  ;;  %v11779_v18 = vadd.f32 %v11776_v58, %v198_v62  ;;  %v2030_v50 = vshrl.u32 %v16032_v11, %v2029_v42 }
 0x1c5   : > { %v3588_v36 = vsub.f32 %v1805_v33, %v11372_v2  ;;  %9809 = vsinq.f32 %v1894_v29  ;;  %v11781_v44 = vsub.s32 %v1970_v34, %v1973_v45  ;;  %v2041_v3 = vshrl.u32 %v16026_v24, %v2029_v42 }
 0x1c6   : > { %v2043_v13 = vshll.u32 %v16026_v24, %v2028_v54  ;;  %v2033_v57 = vor.u32 %v2032_v14, %v2031_v17  ;;  %v2036_v16 = vor.u32 %v2035_v0, %v2034_v1  ;;  %v2044_v41 = vshrl.u32 %v16024_v37, %v2029_v42 }
 0x1c7   : > { %v3620_v51 = vmul.f32 %v11468_v40, %v3588_v36  ;;  %v1976_v63 = vsub.s32 0, %v11781_v44  ;;  %v2039_v23 = vor.u32 %v2038_v47, %v2037_v15  ;;  %v2042_v27 = vor.u32 %v2041_v3, %v2040_v38 }
 0x1c8   : > { %vm2046_vm3 = vcmp.lt.s32.totalorder %v11751_v10, 1  ;;  %v2045_v62 = vor.u32 %v2044_v41, %v2043_v13  ;;  %vm2049_vm4 = vcmp.lt.s32.totalorder %v11751_v10, 4  ;;  %v2121_v54 = vand.u32 2139095040, %v11779_v18 }
 0x1c9   : > { %v11791_v34 = vadd.f32 %v3620_v51, %v11372_v2  ;;  %vm1902_vm5 = vcmp.eq.s32.totalorder %v11741_v12, 0  ;;  %v9225_v17 = vmin.u32 %v1976_v63, %v11781_v44  ;;  %vm2048_vm6 = vcmp.lt.s32.totalorder %v11751_v10, 3 }
 0x1ca   : > { %v2051_v42 = vsel %vm2049_vm4, %v2039_v23, 2102212464  ;;  %vm1901_vm7 = vcmp.lt.s32.totalorder %v11741_v12, 2  ;;  %vm2047_vm8 = vcmp.lt.s32.totalorder %v11751_v10, 2  ;;  %v2054_v2 = vsel %vm2046_vm3, %v2033_v57, %v2036_v16 }
 0x1cb   : > { %4105 = vmatmul.mubr.f32.gmra.mxu1 %v11791_v34  ;;  %v2055_v1 = vsel %vm2049_vm4, %v2042_v27, 920167782  ;;  %v2062_v15 = vshll.u32 %v2022_v6, 8  ;;  %vm1898_vm9 = vweird.f32 %v11435_v28  ;;  %v1978_v29 = vclz %v9225_v17 }
 0x1cc   : > { %4110 = vmatprep.mubr.f32.mxu1 %v16021_v4  ;;  %v2050_v14 = vsel %vm2046_vm3, %v2030_v50, %v2033_v57  ;;  %v2058_v0 = vsel %vm2046_vm3, %v2036_v16, %v2039_v23  ;;  %v16020_v33 = vand.u32 2147483647, %v11779_v18  ;;  %v2052_v45 = vsel %vm2048_vm6, %v2036_v16, %v2051_v42 }
 0x1cd   : > { %v2056_v47 = vsel %vm2048_vm6, %v2039_v23, %v2055_v1  ;;  %v2059_v6 = vsel %vm2049_vm4, %v2045_v62, 1326507024  ;;  %v2122_v36 = vshrl.u32 %v2121_v54, 23  ;;  %v1966_v38 = vadd.s32 %v11719_v60, %v11725_v31 }
 0x1ce   : > { %v9226_v3 = vadd.s32 4294967294, %v1978_v29  ;;  %v2057_v50 = vsel %vm2047_vm8, %v2054_v2, %v2056_v47  ;;  %v2060_v13 = vsel %vm2048_vm6, %v2042_v27, %v2059_v6  ;;  %v2053_v63 = vsel %vm2047_vm8, %v2050_v14, %v2052_v45 }
 0x1cf   : > { %v2061_v51 = vsel %vm2047_vm8, %v2058_v0, %v2060_v13  ;;  %v11828_v57 = vmul.u32.u64.low %v2062_v15, %v2057_v50  ;;  %v11829_v16 = vmul.u32.u64.high %v2062_v15, %v2057_v50, %v11828_v57  ;;  %v9232_v41 = vadd.s32 4294967169, %v2122_v36 }
 0x1d0   : > { %vm9227_vm11 = vcmp.lt.s32.totalorder %v9226_v3, 0  ;;  %v11834_v60 = vmul.u32.u64.low %v2062_v15, %v2061_v51  ;;  %v11835_v31 = vmul.u32.u64.high %v2062_v15, %v2061_v51, %v11834_v60  ;;  %vm1905_vm10 = vcmp.eq.s32.totalorder %v11741_v12, 2 }
 0x1d1   : > { %v9808_v23 = vpop.eup %9807  ;;  %v1981_v62 = vsel %vm9227_vm11, 0, %v9226_v3  ;;  %v1996_v27 = vsub.s32 4, %v11758_v7  ;;  %v2128_v54 = vadd.s32 1, %v9232_v41  ;;  %v2069_v47 = vmul.u32 %v2062_v15, %v2053_v63 }
 0x1d2   : > { %v9810_v17 = vpop.eup %9809  ;;  %v1906_v42 = vxor.u32 2147483648, %v9808_v23  ;;  %v1982_v2 = vsub.s32 32, %v1981_v62  ;;  %v1983_v1 = vshll.u32 %v11781_v44, %v1981_v62  ;;  %v1986_v29 = vsub.s32 4294967266, %v1981_v62 }
 0x1d3   : > { %v1903_v0 = vxor.u32 2147483648, %v9810_v17  ;;  %v2072_v10 = vadd.s32 1, %v11829_v16  ;;  %vm2129_vm12 = vcmp.gt.s32.totalorder %v2128_v54, 0  ;;  %vm11843_vm13 = vcmp.le.f32.partialorder %v1910_v49, 0.7853982 }
 0x1d4   : > { %v1907_v14 = vsel %vm1905_vm10, %v1906_v42, %v9810_v17  ;;  %v1984_v6 = vshrl.u32 %v1966_v38, %v1982_v2  ;;  %v1987_v36 = vadd.s32 127, %v1986_v29  ;;  %v2125_v3 = vand.u32 8388607, %v16020_v33  ;;  %v9969_v33 = vld [vmem:[%s10063_s7 + $0x80] sm:$0xff] }
 0x1d5   : > { %v1904_v44 = vsel %vm1902_vm5, %v9808_v23, %v1903_v0  ;;  %vm1912_vm14 = vcmp.lt.s32.totalorder %v11606_v61, 0  ;;  %vm2071_vm15 = vc.u32 %v11835_v31, %v11828_v57  ;;  %v2130_v15 = vsel %vm2129_vm12, %v2128_v54, 0  ;;  %v9968_v23 = vld [vmem:[%s10063_s7 + $0x78] sm:$0xff] }
 0x1d6   : > { %v1908_v49 = vsel %vm1901_vm7, %v1904_v44, %v1907_v14  ;;  %v1985_v50 = vor.u32 %v1984_v6, %v1983_v1  ;;  %v1988_v13 = vshll.u32 %v1987_v36, 23  ;;  %v2073_v38 = vsel %vm2071_vm15, %v2072_v10, %v11829_v16 }
 0x1d7   : > { %v1909_v51 = vsel %vm1898_vm9, nan, %v1908_v49  ;;  %v1997_v41 = vsel %vm1912_vm14, %v1996_v27, %v11758_v7  ;;  %v2074_v63 = vadd.s32 %v2073_v38, %v2069_v47  ;;  %v2132_v60 = vand.u32 31, %v2130_v15  ;;  %v11870_v27 = vld [vmem:[%s10063_s7 + $0x98] sm:$0xff] }
 0x1d8   : > { %v3589_v62 = vsub.f32 %v1909_v51, %v9968_v23  ;;  %v1989_v54 = vor.u32 4788187, %v1988_v13  ;;  %v1992_v17 = vcvt.s32.f32 %v1985_v50  ;;  %v2126_v12 = vor.u32 8388608, %v2125_v3 }
 0x1d9   : > { %v2075_v42 = vadd.s32 536870912, %v2074_v63  ;;  %v11863_v2 = vshrl.u32 %v2130_v15, 5  ;;  %v2133_v1 = vsub.s32 32, %v2132_v60  ;;  %v2135_v16 = vshll.u32 %v16032_v11, %v2132_v60 }
 0x1da   : > { %v3621_v28 = vmul.f32 %v11468_v40, %v3589_v62  ;;  %v1990_v29 = vand.u32 2147483647, %v1989_v54  ;;  %v2138_v0 = vshll.u32 %v16146_v26, %v2132_v60  ;;  %v2141_v7 = vshll.u32 %v16147_v59, %v2132_v60 }
 0x1db   : > { %v2076_v47 = vshrl.u32 %v2075_v42, 30  ;;  %v2136_v10 = vshrl.u32 %v16146_v26, %v2133_v1  ;;  %v2139_v14 = vshrl.u32 %v16147_v59, %v2133_v1  ;;  %v2144_v6 = vshll.u32 %v16028_v22, %v2132_v60 }
 0x1dc   : > { %v11875_v36 = vadd.f32 %v9968_v23, %v3621_v28  ;;  %v1993_v3 = vmul.f32 %v1992_v17, %v1990_v29  ;;  %v2142_v44 = vshrl.u32 %v16028_v22, %v2133_v1  ;;  %v2145_v40 = vshrl.u32 %v16026_v24, %v2133_v1 }
 0x1dd   : > { %v1999_v15 = vsel %vm11843_vm13, 0, %v1997_v41  ;;  %v2077_v49 = vshll.u32 %v2076_v47, 30  ;;  %v199_v50 = vmul.f32 %v11746_v39, %v11870_v27  ;;  %v2134_v38 = vshrl.u32 %v16032_v11, %v2133_v1 }
 0x1de   : > { %16153 = vst [vmem:[#allocation2_spill] sm:$0xff] %v11875_v36  ;;  %4111 = vmatmul.mubr.f32.gmra.mxu1 %v11875_v36  ;;  %v1994_v13 = vxor.u32 2147483648, %v1993_v3  ;;  %v2147_v51 = vshll.u32 %v16026_v24, %v2132_v60  ;;  %v11886_v23 = vshll.u32 %v2126_v12, 8  ;;  %v2137_v54 = vor.u32 %v2136_v10, %v2135_v16 }
 0x1df   : > { %4116 = vmatprep.mubr.f32.mxu1 %v16021_v4  ;;  %v11889_v62 = vsub.s32 %v2074_v63, %v2077_v49  ;;  %v2140_v17 = vor.u32 %v2139_v14, %v2138_v0  ;;  %v2148_v41 = vshrl.u32 %v16024_v37, %v2133_v1  ;;  %v2143_v28 = vor.u32 %v2142_v44, %v2141_v7  ;;  %v11908_v7 = vld [vmem:[%s10063_s7 + $0xa0] sm:$0xff] }
 0x1e0   : > { %v1995_v42 = vsel %vm1912_vm14, %v1994_v13, %v1993_v3  ;;  %v2146_v29 = vor.u32 %v2145_v40, %v2144_v6  ;;  %vm2150_vm0 = vcmp.lt.s32.totalorder %v11863_v2, 1  ;;  %vm2151_vm1 = vcmp.lt.s32.totalorder %v11863_v2, 2 }
 0x1e1   : > { %v1998_v60 = vsel %vm11843_vm13, %v11606_v61, %v1995_v42  ;;  %v2080_v12 = vsub.s32 0, %v11889_v62  ;;  %v2149_v63 = vor.u32 %v2148_v41, %v2147_v51  ;;  %vm2152_vm2 = vcmp.lt.s32.totalorder %v11863_v2, 3 }
 0x1e2   : > { %9811 = vcosq.f32 %v1998_v60  ;;  %vm2153_vm3 = vcmp.lt.s32.totalorder %v11863_v2, 4  ;;  %v2154_v1 = vsel %vm2150_vm0, %v2134_v38, %v2137_v54  ;;  %v2158_v45 = vsel %vm2150_vm0, %v2137_v54, %v2140_v17 }
 0x1e3   : > { %9813 = vsinq.f32 %v1998_v60  ;;  %v9229_v16 = vmin.u32 %v2080_v12, %v11889_v62  ;;  %v2155_v0 = vsel %vm2153_vm3, %v2143_v28, 2102212464  ;;  %v2159_v14 = vsel %vm2153_vm3, %v2146_v29, 920167782 }
 0x1e4   : > { %v2156_v10 = vsel %vm2152_vm2, %v2140_v17, %v2155_v0  ;;  %v2162_v6 = vsel %vm2150_vm0, %v2140_v17, %v2143_v28  ;;  %v2163_v3 = vsel %vm2153_vm3, %v2149_v63, 1326507024  ;;  %v2003_v44 = vadd.s32 3, %v1999_v15 }
 0x1e5   : > { %vm2016_vm4 = vcmp.lt.s32.totalorder %v11658_v46, 0  ;;  %v2082_v40 = vclz %v9229_v16  ;;  %v11916_v49 = vadd.f32 %v11776_v58, %v199_v50  ;;  %v2100_v13 = vsub.s32 4, %v2076_v47 }
 0x1e6   : > { %v2160_v38 = vsel %vm2152_vm2, %v2143_v28, %v2159_v14  ;;  %v2164_v51 = vsel %vm2152_vm2, %v2146_v29, %v2163_v3  ;;  %v200_v54 = vmul.f32 %v11746_v39, %v11908_v7  ;;  %v2157_v15 = vsel %vm2151_vm1, %v2154_v1, %v2156_v10 }
 0x1e7   : > { %v9230_v41 = vadd.s32 4294967294, %v2082_v40  ;;  %v2161_v17 = vsel %vm2151_vm1, %v2158_v45, %v2160_v38  ;;  %v2165_v50 = vsel %vm2151_vm1, %v2162_v6, %v2164_v51  ;;  %v2004_v12 = vand.u32 3, %v2003_v44 }
 0x1e8   : > { %v11931_v42 = vmul.u32.u64.low %v11886_v23, %v2165_v50  ;;  %v11932_v60 = vmul.u32.u64.high %v11886_v23, %v2165_v50, %v11931_v42  ;;  %v11935_v28 = vmul.u32.u64.low %v11886_v23, %v2161_v17  ;;  %v11936_v29 = vmul.u32.u64.high %v11886_v23, %v2161_v17, %v11935_v28 }
 0x1e9   : > { %v2070_v63 = vadd.s32 %v11828_v57, %v11835_v31  ;;  %vm9231_vm5 = vcmp.lt.s32.totalorder %v9230_v41, 0  ;;  %v2225_v1 = vand.u32 2139095040, %v11916_v49  ;;  %v2101_v2 = vsel %vm2016_vm4, %v2100_v13, %v2076_v47 }
 0x1ea   : > { %v2085_v16 = vsel %vm9231_vm5, 0, %v9230_v41  ;;  %v2173_v0 = vmul.u32 %v11886_v23, %v2157_v15  ;;  %v16019_v45 = vand.u32 2147483647, %v11916_v49  ;;  %vm11948_vm6 = vcmp.le.f32.partialorder %v2014_v52, 0.7853982 }
 0x1eb   : > { %v2086_v10 = vsub.s32 32, %v2085_v16  ;;  %v2087_v14 = vshll.u32 %v11889_v62, %v2085_v16  ;;  %v2090_v6 = vsub.s32 4294967266, %v2085_v16  ;;  %v2226_v3 = vshrl.u32 %v2225_v1, 23 }
 0x1ec   : > { %vm2175_vm7 = vc.u32 %v11932_v60, %v11935_v28  ;;  %v2176_v31 = vadd.s32 1, %v11936_v29  ;;  %v11955_v47 = vadd.f32 %v11776_v58, %v200_v54  ;;  %v2103_v62 = vsel %vm11948_vm6, 0, %v2101_v2 }
 0x1ed   : > { %v2088_v23 = vshrl.u32 %v2070_v63, %v2086_v10  ;;  %v2091_v44 = vadd.s32 127, %v2090_v6  ;;  %v9236_v40 = vadd.s32 4294967169, %v2226_v3  ;;  %vm2005_vm8 = vcmp.lt.s32.totalorder %v2004_v12, 2 }
 0x1ee   : > { %vm2009_vm9 = vcmp.eq.s32.totalorder %v2004_v12, 2  ;;  %v2177_v52 = vsel %vm2175_vm7, %v2176_v31, %v11936_v29  ;;  %v2229_v13 = vand.u32 8388607, %v16019_v45  ;;  %vm2006_vm11 = vcmp.eq.s32.totalorder %v2004_v12, 0  ;;  %v168_v29 = vld [vmem:[%s10063_s7 + $0xa8] sm:$0xff] }
 0x1ef   : > { %v9812_v38 = vpop.eup %9811  ;;  %v2089_v51 = vor.u32 %v2088_v23, %v2087_v14  ;;  %v2092_v41 = vshll.u32 %v2091_v44, 23  ;;  %v2178_v15 = vadd.s32 %v2177_v52, %v2173_v0  ;;  %v2232_v54 = vadd.s32 1, %v9236_v40 }
 0x1f0   : > { %v9814_v17 = vpop.eup %9813  ;;  %v2010_v50 = vxor.u32 2147483648, %v9812_v38  ;;  %v2107_v42 = vadd.s32 3, %v2103_v62  ;;  %v2329_v63 = vand.u32 2139095040, %v11955_v47  ;;  %vm2002_vm10 = vweird.f32 %v11606_v61 }
 0x1f1   : > { %v2007_v1 = vxor.u32 2147483648, %v9814_v17  ;;  %v2093_v16 = vor.u32 4788187, %v2092_v41  ;;  %v2096_v2 = vcvt.s32.f32 %v2089_v51  ;;  %v2179_v10 = vadd.s32 536870912, %v2178_v15 }
 0x1f2   : > { %v2011_v6 = vsel %vm2009_vm9, %v2010_v50, %v9814_v17  ;;  %v2230_v14 = vor.u32 8388608, %v2229_v13  ;;  %vm2233_vm12 = vcmp.gt.s32.totalorder %v2232_v54, 0  ;;  %v2330_v40 = vshrl.u32 %v2329_v63, 23 }
 0x1f3   : > { %v2008_v0 = vsel %vm2006_vm11, %v9812_v38, %v2007_v1  ;;  %v2094_v3 = vand.u32 2147483647, %v2093_v16  ;;  %v2180_v31 = vshrl.u32 %v2179_v10, 30  ;;  %v2234_v23 = vsel %vm2233_vm12, %v2232_v54, 0 }
 0x1f4   : > { %v2012_v44 = vsel %vm2005_vm8, %v2008_v0, %v2011_v6  ;;  %v2236_v62 = vand.u32 31, %v2234_v23  ;;  %v11968_v52 = vmul.f32 %v11746_v39, %v168_v29  ;;  %v11970_v45 = vand.u32 3, %v2107_v42  ;;  %v11986_v42 = vld [vmem:[%s16012_s1 + $0x20] ss:$0 sm:$0xff] }
 0x1f5   : > { %v2013_v51 = vsel %vm2002_vm10, nan, %v2012_v44  ;;  %v2097_v41 = vmul.f32 %v2096_v2, %v2094_v3  ;;  %v2181_v61 = vshll.u32 %v2180_v31, 30  ;;  %vm2120_vm13 = vcmp.lt.s32.totalorder %v11779_v18, 0 }
 0x1f6   : > { %v3590_v17 = vsub.f32 %v2013_v51, %v9969_v33  ;;  %v11975_v13 = vadd.s32 %v11935_v28, %v11932_v60  ;;  %v2237_v38 = vsub.s32 32, %v2236_v62  ;;  %v16023_v12 = vand.u32 2147483647, %v11955_v47 }
 0x1f7   : > { %v2098_v54 = vxor.u32 2147483648, %v2097_v41  ;;  %v11978_v50 = vsub.s32 %v2178_v15, %v2181_v61  ;;  %v2239_v63 = vshll.u32 %v16032_v11, %v2236_v62  ;;  %v11981_v1 = vshll.u32 %v2230_v14, 8 }
 0x1f8   : > { %v3622_v16 = vmul.f32 %v11986_v42, %v3590_v17  ;;  %v2240_v60 = vshrl.u32 %v16146_v26, %v2237_v38  ;;  %v2242_v28 = vshll.u32 %v16146_v26, %v2236_v62  ;;  %v9240_v2 = vadd.s32 4294967169, %v2330_v40 }
 0x1f9   : > { %v2099_v15 = vsel %vm2016_vm4, %v2098_v54, %v2097_v41  ;;  %v2184_v10 = vsub.s32 0, %v11978_v50  ;;  %v2243_v29 = vshrl.u32 %v16147_v59, %v2237_v38  ;;  %v2245_v6 = vshll.u32 %v16147_v59, %v2236_v62 }
 0x1fa   : > { %v11996_v14 = vadd.f32 %v9969_v33, %v3622_v16  ;;  %v2102_v0 = vsel %vm11948_vm6, %v11658_v46, %v2099_v15  ;;  %v2235_v3 = vshrl.u32 %v2234_v23, 5  ;;  %v2246_v44 = vshrl.u32 %v16028_v22, %v2237_v38 }
 0x1fb   : > { %9815 = vcosq.f32 %v2102_v0  ;;  %v9233_v40 = vmin.u32 %v2184_v10, %v11978_v50  ;;  %v2204_v51 = vsub.s32 4, %v2180_v31  ;;  %v2241_v41 = vor.u32 %v2240_v60, %v2239_v63 }
 0x1fc   : > { %16156 = vst [vmem:[#allocation3_spill] sm:$0xff] %v11996_v14  ;;  %4117 = vmatmul.mubr.f32.gmra.mxu1 %v11996_v14  ;;  %9817 = vsinq.f32 %v2102_v0  ;;  %v2244_v61 = vor.u32 %v2243_v29, %v2242_v28  ;;  %v2248_v17 = vshll.u32 %v16028_v22, %v2236_v62  ;;  %v2249_v33 = vshrl.u32 %v16026_v24, %v2237_v38 }
 0x1fd   : > { %4122 = vmatprep.mubr.f32.mxu1 %v16021_v4  ;;  %v2186_v57 = vclz %v9233_v40  ;;  %v2238_v23 = vshrl.u32 %v16032_v11, %v2237_v38  ;;  %v2247_v54 = vor.u32 %v2246_v44, %v2245_v6  ;;  %v2336_v16 = vadd.s32 1, %v9240_v2 }
 0x1fe   : > { %v2250_v15 = vor.u32 %v2249_v33, %v2248_v17  ;;  %v2251_v10 = vshll.u32 %v16026_v24, %v2236_v62  ;;  %v2252_v63 = vshrl.u32 %v16024_v37, %v2237_v38  ;;  %vm2254_vm14 = vcmp.lt.s32.totalorder %v2235_v3, 1 }
 0x1ff   : > { %v16157_v60 = vand.u32 2147483647, %v11779_v18  ;;  %v9234_v29 = vadd.s32 4294967294, %v2186_v57  ;;  %v2205_v0 = vsel %vm2120_vm13, %v2204_v51, %v2180_v31  ;;  %vm2256_vm0 = vcmp.lt.s32.totalorder %v2235_v3, 3 }
 0x200   : > { %vm2257_vm1 = vcmp.lt.s32.totalorder %v2235_v3, 4  ;;  %v2253_v6 = vor.u32 %v2252_v63, %v2251_v10  ;;  %vm2255_vm2 = vcmp.lt.s32.totalorder %v2235_v3, 2  ;;  %v2262_v62 = vsel %vm2254_vm14, %v2241_v41, %v2244_v61 }
 0x201   : > { %vm12012_vm15 = vcmp.le.f32.partialorder %v16157_v60, 0.7853982  ;;  %v2259_v2 = vsel %vm2257_vm1, %v2247_v54, 2102212464  ;;  %vm9235_vm3 = vcmp.lt.s32.totalorder %v9234_v29, 0  ;;  %v2258_v38 = vsel %vm2254_vm14, %v2238_v23, %v2241_v41 }
 0x202   : > { %v2260_v44 = vsel %vm2256_vm0, %v2244_v61, %v2259_v2  ;;  %v2263_v40 = vsel %vm2257_vm1, %v2250_v15, 920167782  ;;  %v2189_v17 = vsel %vm9235_vm3, 0, %v9234_v29  ;;  %v2266_v57 = vsel %vm2254_vm14, %v2244_v61, %v2247_v54 }
 0x203   : > { %v2264_v33 = vsel %vm2256_vm0, %v2247_v54, %v2263_v40  ;;  %v2267_v60 = vsel %vm2257_vm1, %v2253_v6, 1326507024  ;;  %vm2106_vm4 = vweird.f32 %v11658_v46  ;;  %v2190_v31 = vsub.s32 32, %v2189_v17 }
 0x204   : > { %v2191_v51 = vshll.u32 %v11978_v50, %v2189_v17  ;;  %v2194_v10 = vsub.s32 4294967266, %v2189_v17  ;;  %v2265_v63 = vsel %vm2255_vm2, %v2262_v62, %v2264_v33  ;;  %v2261_v4 = vsel %vm2255_vm2, %v2258_v38, %v2260_v44 }
 0x205   : > { %v2268_v41 = vsel %vm2256_vm0, %v2250_v15, %v2267_v60  ;;  %v12029_v23 = vmul.u32.u64.low %v11981_v1, %v2265_v63  ;;  %v12030_v29 = vmul.u32.u64.high %v11981_v1, %v2265_v63, %v12029_v23  ;;  %v2192_v61 = vshrl.u32 %v11975_v13, %v2190_v31 }
 0x206   : > { %v2195_v54 = vadd.s32 127, %v2194_v10  ;;  %v2269_v6 = vsel %vm2255_vm2, %v2266_v57, %v2268_v41  ;;  %vm2337_vm5 = vcmp.gt.s32.totalorder %v2336_v16, 0  ;;  %v12041_v62 = vand.u32 8388607, %v16023_v12 }
 0x207   : > { %v12036_v50 = vmul.u32.u64.low %v11981_v1, %v2269_v6  ;;  %v12037_v2 = vmul.u32.u64.high %v11981_v1, %v2269_v6, %v12036_v50  ;;  %v2338_v15 = vsel %vm2337_vm5, %v2336_v16, 0  ;;  %vm2110_vm6 = vcmp.eq.s32.totalorder %v11970_v45, 0 }
 0x208   : > { %v2193_v38 = vor.u32 %v2192_v61, %v2191_v51  ;;  %v2196_v44 = vshll.u32 %v2195_v54, 23  ;;  %v2340_v40 = vand.u32 31, %v2338_v15  ;;  %v9816_v17 = vpop.eup %9815  ;;  %vm2113_vm7 = vcmp.eq.s32.totalorder %v11970_v45, 2 }
 0x209   : > { %v2207_v13 = vsel %vm12012_vm15, 0, %v2205_v0  ;;  %v2277_v3 = vmul.u32 %v11981_v1, %v2261_v4  ;;  %v2280_v33 = vadd.s32 1, %v12030_v29  ;;  %v9818_v57 = vpop.eup %9817  ;;  %v2114_v60 = vxor.u32 2147483648, %v9816_v17 }
 0x20a   : > { %v2197_v31 = vor.u32 4788187, %v2196_v44  ;;  %v2200_v10 = vcvt.s32.f32 %v2193_v38  ;;  %v2341_v16 = vsub.s32 32, %v2340_v40  ;;  %vm2109_vm8 = vcmp.lt.s32.totalorder %v11970_v45, 2 }
 0x20b   : > { %v2111_v51 = vxor.u32 2147483648, %v9818_v57  ;;  %vm2279_vm9 = vc.u32 %v12037_v2, %v12029_v23  ;;  %v2334_v63 = vor.u32 8388608, %v12041_v62  ;;  %v2115_v41 = vsel %vm2113_vm7, %v2114_v60, %v9818_v57 }
 0x20c   : > { %v2198_v61 = vand.u32 2147483647, %v2197_v31  ;;  %v2211_v0 = vadd.s32 3, %v2207_v13  ;;  %v2281_v4 = vsel %vm2279_vm9, %v2280_v33, %v12030_v29  ;;  %v2343_v6 = vshll.u32 %v16032_v11, %v2340_v40 }
 0x20d   : > { %v2112_v1 = vsel %vm2110_vm6, %v9816_v17, %v2111_v51  ;;  %v2282_v54 = vadd.s32 %v2281_v4, %v2277_v3  ;;  %v2344_v50 = vshrl.u32 %v16146_v26, %v2341_v16  ;;  %v2346_v12 = vshll.u32 %v16146_v26, %v2340_v40 }
 0x20e   : > { %v2116_v38 = vsel %vm2109_vm8, %v2112_v1, %v2115_v41  ;;  %v2201_v44 = vmul.f32 %v2200_v10, %v2198_v61  ;;  %v2347_v37 = vshrl.u32 %v16147_v59, %v2341_v16  ;;  %v2339_v57 = vshrl.u32 %v2338_v15, 5 }
 0x20f   : > { %v2117_v62 = vsel %vm2106_vm4, nan, %v2116_v38  ;;  %v2283_v13 = vadd.s32 536870912, %v2282_v54  ;;  %v2349_v29 = vshll.u32 %v16147_v59, %v2340_v40  ;;  %v2350_v3 = vshrl.u32 %v16028_v22, %v2341_v16 }
 0x210   : > { %v3591_v45 = vsub.f32 %v2117_v62, %v11631_v53  ;;  %v2202_v17 = vxor.u32 2147483648, %v2201_v44  ;;  %v2352_v33 = vshll.u32 %v16028_v22, %v2340_v40  ;;  %v2345_v31 = vor.u32 %v2344_v50, %v2343_v6  ;;  %v12131_v22 = vld [vmem:[%s10063_s7 + $0xb0] sm:$0xff] }
 0x211   : > { %v2284_v60 = vshrl.u32 %v2283_v13, 30  ;;  %v2353_v10 = vshrl.u32 %v16026_v24, %v2341_v16  ;;  %v2355_v51 = vshll.u32 %v16026_v24, %v2340_v40  ;;  %v2348_v41 = vor.u32 %v2347_v37, %v2346_v12 }
 0x212   : > { %v3623_v46 = vmul.f32 %v11986_v42, %v3591_v45  ;;  %v2203_v15 = vsel %vm2120_vm13, %v2202_v17, %v2201_v44  ;;  %v16160_v61 = vmov 1326507024   ;;  %vm2358_vm11 = vcmp.lt.s32.totalorder %v2339_v57, 1 }
 0x213   : > { %v2356_v4 = vshrl.u32 %v16160_v61, %v2341_v16  ;;  %v2206_v1 = vsel %vm12012_vm15, %v11779_v18, %v2203_v15  ;;  %v2285_v38 = vshll.u32 %v2284_v60, 30  ;;  %v2354_v62 = vor.u32 %v2353_v10, %v2352_v33 }
 0x214   : > { %v12076_v6 = vadd.f32 %v3623_v46, %v11631_v53  ;;  %9819 = vcosq.f32 %v2206_v1  ;;  %v2351_v40 = vor.u32 %v2350_v3, %v2349_v29  ;;  %v2342_v37 = vshrl.u32 %v16032_v11, %v2341_v16 }
 0x215   : > { %v2357_v50 = vor.u32 %v2356_v4, %v2355_v51  ;;  %9821 = vsinq.f32 %v2206_v1  ;;  %v12078_v13 = vsub.s32 %v2282_v54, %v2285_v38  ;;  %vm2360_vm10 = vcmp.lt.s32.totalorder %v2339_v57, 3 }
 0x216   : > { %16161 = vst [vmem:[#allocation4_spill] sm:$0xff] %v12076_v6  ;;  %4123 = vmatmul.mubr.f32.gmra.mxu1 %v12076_v6  ;;  %vm2359_vm12 = vcmp.lt.s32.totalorder %v2339_v57, 2  ;;  %vm2361_vm13 = vcmp.lt.s32.totalorder %v2339_v57, 4  ;;  %v2366_v12 = vsel %vm2358_vm11, %v2345_v31, %v2348_v41  ;;  %v2374_v28 = vshll.u32 %v2334_v63, 8 }
 0x217   : > { %v16162_v44 = vmov 0.0   ;;  %v2288_v53 = vsub.s32 0, %v12078_v13  ;;  %v2363_v45 = vsel %vm2361_vm13, %v2351_v40, 2102212464  ;;  %v2367_v29 = vsel %vm2361_vm13, %v2354_v62, 920167782 }
 0x218   : > { %4128 = vmatprep.mubr.f32.mxu1 %v16162_v44  ;;  %v2212_v17 = vand.u32 3, %v2211_v0  ;;  %v2368_v54 = vsel %vm2360_vm10, %v2351_v40, %v2367_v29  ;;  %v2371_v3 = vsel %vm2361_vm13, %v2357_v50, 1326507024  ;;  %v12088_v16 = vadd.f32 %v11776_v58, %v11968_v52 }
 0x219   : > { %v9237_v33 = vmin.u32 %v2288_v53, %v12078_v13  ;;  %v2362_v10 = vsel %vm2358_vm11, %v2342_v37, %v2345_v31  ;;  %v2369_v63 = vsel %vm2359_vm12, %v2366_v12, %v2368_v54  ;;  %v2370_v51 = vsel %vm2358_vm11, %v2348_v41, %v2351_v40 }
 0x21a   : > { %v2364_v46 = vsel %vm2360_vm10, %v2348_v41, %v2363_v45  ;;  %v2372_v15 = vsel %vm2360_vm10, %v2354_v62, %v2371_v3  ;;  %v12096_v0 = vmul.u32.u64.low %v2374_v28, %v2369_v63  ;;  %v12097_v4 = vmul.u32.u64.high %v2374_v28, %v2369_v63, %v12096_v0 }
 0x21b   : > { %v2290_v1 = vclz %v9237_v33  ;;  %v2308_v38 = vsub.s32 4, %v2284_v60  ;;  %vm2210_vm14 = vweird.f32 %v11779_v18  ;;  %v16163_v52 = vand.u32 2147483647, %v11916_v49 }
 0x21c   : > { %v2373_v40 = vsel %vm2359_vm12, %v2370_v51, %v2372_v15  ;;  %v2433_v41 = vand.u32 2139095040, %v12088_v16  ;;  %v2365_v62 = vsel %vm2359_vm12, %v2362_v10, %v2364_v46  ;;  %vm2213_vm0 = vcmp.lt.s32.totalorder %v2212_v17, 2 }
 0x21d   : > { %vm12103_vm15 = vcmp.le.f32.partialorder %v16163_v52, 0.7853982  ;;  %v9238_v50 = vadd.s32 4294967294, %v2290_v1  ;;  %v12110_v37 = vmul.u32.u64.low %v2374_v28, %v2373_v40  ;;  %v12111_v12 = vmul.u32.u64.high %v2374_v28, %v2373_v40, %v12110_v37 }
 0x21e   : > { %vm2214_vm1 = vcmp.eq.s32.totalorder %v2212_v17, 0  ;;  %vm2224_vm2 = vcmp.lt.s32.totalorder %v11916_v49, 0  ;;  %v2434_v53 = vshrl.u32 %v2433_v41, 23  ;;  %v2278_v45 = vadd.s32 %v12029_v23, %v12037_v2 }
 0x21f   : > { %vm9239_vm3 = vcmp.lt.s32.totalorder %v9238_v50, 0  ;;  %v2309_v29 = vsel %vm2224_vm2, %v2308_v38, %v2284_v60  ;;  %v2384_v54 = vadd.s32 1, %v12097_v4  ;;  %v2381_v57 = vmul.u32 %v2374_v28, %v2365_v62 }
 0x220   : > { %v2293_v3 = vsel %vm9239_vm3, 0, %v9238_v50  ;;  %v16030_v33 = vand.u32 2147483647, %v12088_v16  ;;  %v9244_v10 = vadd.s32 4294967169, %v2434_v53  ;;  %vm2217_vm4 = vcmp.eq.s32.totalorder %v2212_v17, 2 }
 0x221   : > { %v9820_v63 = vpop.eup %9819  ;;  %v2294_v51 = vsub.s32 32, %v2293_v3  ;;  %v2295_v46 = vshll.u32 %v12078_v13, %v2293_v3  ;;  %v2298_v15 = vsub.s32 4294967266, %v2293_v3  ;;  %v2311_v23 = vsel %vm12103_vm15, 0, %v2309_v29 }
 0x222   : > { %v9822_v1 = vpop.eup %9821  ;;  %v2218_v52 = vxor.u32 2147483648, %v9820_v63  ;;  %vm2383_vm5 = vc.u32 %v12111_v12, %v12096_v0  ;;  %v2440_v2 = vadd.s32 1, %v9244_v10  ;;  %v2437_v13 = vand.u32 8388607, %v16030_v33 }
 0x223   : > { %v2215_v60 = vxor.u32 2147483648, %v9822_v1  ;;  %v2296_v28 = vshrl.u32 %v2278_v45, %v2294_v51  ;;  %v2299_v38 = vadd.s32 127, %v2298_v15  ;;  %v2385_v40 = vsel %vm2383_vm5, %v2384_v54, %v12097_v4 }
 0x224   : > { %v2219_v41 = vsel %vm2217_vm4, %v2218_v52, %v9822_v1  ;;  %v2386_v50 = vadd.s32 %v2385_v40, %v2381_v57  ;;  %vm2441_vm6 = vcmp.gt.s32.totalorder %v2440_v2, 0  ;;  %v2315_v57 = vadd.s32 3, %v2311_v23 }
 0x225   : > { %v2216_v62 = vsel %vm2214_vm1, %v9820_v63, %v2215_v60  ;;  %v2297_v37 = vor.u32 %v2296_v28, %v2295_v46  ;;  %v2300_v53 = vshll.u32 %v2299_v38, 23  ;;  %v2442_v29 = vsel %vm2441_vm6, %v2440_v2, 0 }
 0x226   : > { %v2220_v3 = vsel %vm2213_vm0, %v2216_v62, %v2219_v41  ;;  %v2387_v10 = vadd.s32 536870912, %v2386_v50  ;;  %v2444_v24 = vand.u32 31, %v2442_v29  ;;  %v2438_v1 = vor.u32 8388608, %v2437_v13 }
 0x227   : > { %v2221_v4 = vsel %vm2210_vm14, nan, %v2220_v3  ;;  %v2301_v45 = vor.u32 4788187, %v2300_v53  ;;  %v2304_v54 = vcvt.s32.f32 %v2297_v37  ;;  %v2443_v52 = vshrl.u32 %v2442_v29, 5 }
 0x228   : > { %v3592_v51 = vsub.f32 %v2221_v4, %v11737_v5  ;;  %v2388_v15 = vshrl.u32 %v2387_v10, 30  ;;  %v2445_v63 = vsub.s32 32, %v2444_v24  ;;  %v2447_v17 = vshll.u32 %v16032_v11, %v2444_v24 }
 0x229   : > { %v2302_v46 = vand.u32 2147483647, %v2301_v45  ;;  %v202_v2 = vmul.f32 %v11746_v39, %v12131_v22  ;;  %v2450_v18 = vshll.u32 %v16146_v26, %v2444_v24  ;;  %v2453_v38 = vshll.u32 %v16147_v59, %v2444_v24 }
 0x22a   : > { %v3624_v60 = vmul.f32 %v11986_v42, %v3592_v51  ;;  %v2389_v28 = vshll.u32 %v2388_v15, 30  ;;  %v2448_v40 = vshrl.u32 %v16146_v26, %v2445_v63  ;;  %v2451_v41 = vshrl.u32 %v16147_v59, %v2445_v63 }
 0x22b   : > { %v2305_v23 = vmul.f32 %v2304_v54, %v2302_v46  ;;  %v16166_v13 = vmov 2102212464   ;;  %vm2328_vm7 = vcmp.lt.s32.totalorder %v11955_v47, 0  ;;  %v16168_v29 = vmov 920167782  }
 0x22c   : > { %v2454_v62 = vshrl.u32 %v16166_v13, %v2445_v63  ;;  %v12146_v37 = vadd.f32 %v3624_v60, %v11737_v5  ;;  %v12149_v39 = vsub.s32 %v2386_v50, %v2389_v28  ;;  %v2456_v53 = vshll.u32 %v16166_v13, %v2444_v24 }
 0x22d   : > { %v2457_v3 = vshrl.u32 %v16168_v29, %v2445_v63  ;;  %v2306_v10 = vxor.u32 2147483648, %v2305_v23  ;;  %v12153_v4 = vand.u32 3, %v2315_v57  ;;  %v12155_v45 = vshll.u32 %v2438_v1, 8 }
 0x22e   : > { %16167 = vst [vmem:[#allocation5_spill] sm:$0xff] %v12146_v37  ;;  %v12158_v54 = vadd.f32 %v11776_v58, %v202_v2  ;;  %4129 = vmatmul.mubr.f32.gmra.mxu1 %v12146_v37  ;;  %v2392_v5 = vsub.s32 0, %v12149_v39  ;;  %v2446_v51 = vshrl.u32 %v16032_v11, %v2445_v63  ;;  %v2449_v50 = vor.u32 %v2448_v40, %v2447_v17 }
 0x22f   : > { %v2452_v46 = vor.u32 %v2451_v41, %v2450_v18  ;;  %4134 = vmatprep.mubr.f32.mxu1 %v16162_v44  ;;  %v2307_v60 = vsel %vm2224_vm2, %v2306_v10, %v2305_v23  ;;  %v2455_v57 = vor.u32 %v2454_v62, %v2453_v38  ;;  %v2459_v1 = vshll.u32 %v16168_v29, %v2444_v24 }
 0x230   : > { %v2460_v28 = vshrl.u32 %v16160_v61, %v2445_v63  ;;  %v2310_v58 = vsel %vm12103_vm15, %v11916_v49, %v2307_v60  ;;  %v9241_v2 = vmin.u32 %v2392_v5, %v12149_v39  ;;  %v2458_v33 = vor.u32 %v2457_v3, %v2456_v53 }
 0x231   : > { %vm2462_vm8 = vcmp.lt.s32.totalorder %v2443_v52, 1  ;;  %9823 = vcosq.f32 %v2310_v58  ;;  %v2412_v17 = vsub.s32 4, %v2388_v15  ;;  %vm2465_vm9 = vcmp.lt.s32.totalorder %v2443_v52, 4 }
 0x232   : > { %v2461_v18 = vor.u32 %v2460_v28, %v2459_v1  ;;  %9825 = vsinq.f32 %v2310_v58  ;;  %v2382_v38 = vadd.s32 %v12096_v0, %v12111_v12  ;;  %v2394_v23 = vclz %v9241_v2 }
 0x233   : > { %vm2464_vm11 = vcmp.lt.s32.totalorder %v2443_v52, 3  ;;  %vm2463_vm10 = vcmp.lt.s32.totalorder %v2443_v52, 2  ;;  %v2466_v24 = vsel %vm2462_vm8, %v2446_v51, %v2449_v50  ;;  %v2467_v63 = vsel %vm2465_vm9, %v2455_v57, 2102212464 }
 0x234   : > { %v2470_v31 = vsel %vm2462_vm8, %v2449_v50, %v2452_v46  ;;  %v9242_v40 = vadd.s32 4294967294, %v2394_v23  ;;  %v2468_v41 = vsel %vm2464_vm11, %v2452_v46, %v2467_v63  ;;  %v2471_v62 = vsel %vm2465_vm9, %v2458_v33, 920167782 }
 0x235   : > { %v2474_v53 = vsel %vm2462_vm8, %v2452_v46, %v2455_v57  ;;  %v2413_v3 = vsel %vm2328_vm7, %v2412_v17, %v2388_v15  ;;  %v2472_v10 = vsel %vm2464_vm11, %v2455_v57, %v2471_v62  ;;  %v2475_v0 = vsel %vm2465_vm9, %v2461_v18, 1326507024 }
 0x236   : > { %v2537_v12 = vand.u32 2139095040, %v12158_v54  ;;  %vm9243_vm12 = vcmp.lt.s32.totalorder %v9242_v40, 0  ;;  %v2469_v5 = vsel %vm2463_vm10, %v2466_v24, %v2468_v41  ;;  %v2473_v51 = vsel %vm2463_vm10, %v2470_v31, %v2472_v10 }
 0x237   : > { %v2476_v50 = vsel %vm2464_vm11, %v2458_v33, %v2475_v0  ;;  %v2397_v60 = vsel %vm9243_vm12, 0, %v9242_v40  ;;  %v12187_v46 = vmul.u32.u64.low %v12155_v45, %v2473_v51  ;;  %v12188_v28 = vmul.u32.u64.high %v12155_v45, %v2473_v51, %v12187_v46  ;;  %v12204_v40 = vld [vmem:[%s10063_s7 + $0xb8] sm:$0xff] }
 0x238   : > { %v2477_v1 = vsel %vm2463_vm10, %v2474_v53, %v2476_v50  ;;  %v2398_v15 = vsub.s32 32, %v2397_v60  ;;  %v2399_v57 = vshll.u32 %v12149_v39, %v2397_v60  ;;  %v2402_v58 = vsub.s32 4294967266, %v2397_v60 }
 0x239   : > { %v2538_v2 = vshrl.u32 %v2537_v12, 23  ;;  %v16169_v17 = vand.u32 2147483647, %v11955_v47  ;;  %v12198_v33 = vmul.u32.u64.low %v12155_v45, %v2477_v1  ;;  %v12199_v23 = vmul.u32.u64.high %v12155_v45, %v2477_v1, %v12198_v33 }
 0x23a   : > { %v2400_v52 = vshrl.u32 %v2382_v38, %v2398_v15  ;;  %v2403_v24 = vadd.s32 127, %v2402_v58  ;;  %v2485_v39 = vmul.u32 %v12155_v45, %v2469_v5  ;;  %v2488_v41 = vadd.s32 1, %v12188_v28 }
 0x23b   : > { %vm12193_vm13 = vcmp.le.f32.partialorder %v16169_v17, 0.7853982  ;;  %v9248_v31 = vadd.s32 4294967169, %v2538_v2  ;;  %v16031_v62 = vand.u32 2147483647, %v12158_v54  ;;  %vm2318_vm14 = vcmp.eq.s32.totalorder %v12153_v4, 0 }
 0x23c   : > { %v2415_v63 = vsel %vm12193_vm13, 0, %v2413_v3  ;;  %v2401_v53 = vor.u32 %v2400_v52, %v2399_v57  ;;  %v2404_v10 = vshll.u32 %v2403_v24, 23  ;;  %vm2321_vm15 = vcmp.eq.s32.totalorder %v12153_v4, 2  ;;  %v12215_v3 = vld [vmem:[%s16012_s1] ss:$0 sm:$0xff] }
 0x23d   : > { %v2544_v0 = vadd.s32 1, %v9248_v31  ;;  %v2419_v38 = vadd.s32 3, %v2415_v63  ;;  %vm2487_vm0 = vc.u32 %v12199_v23, %v12187_v46  ;;  %v203_v45 = vmul.f32 %v12215_v3, %v12204_v40 }
 0x23e   : > { %v9824_v12 = vpop.eup %9823  ;;  %v2405_v5 = vor.u32 4788187, %v2404_v10  ;;  %v2408_v51 = vcvt.s32.f32 %v2401_v53  ;;  %v2489_v50 = vsel %vm2487_vm0, %v2488_v41, %v12188_v28  ;;  %v2541_v57 = vand.u32 8388607, %v16031_v62  ;;  %v12233_v41 = vld [vmem:[%s16012_s1 + $0x10] ss:$0 sm:$0xff] }
 0x23f   : > { %vm2545_vm1 = vcmp.gt.s32.totalorder %v2544_v0, 0  ;;  %v9826_v60 = vpop.eup %9825  ;;  %v2322_v1 = vxor.u32 2147483648, %v9824_v12  ;;  %v2490_v15 = vadd.s32 %v2489_v50, %v2485_v39  ;;  %vm2317_vm2 = vcmp.lt.s32.totalorder %v12153_v4, 2 }
 0x240   : > { %v2546_v58 = vsel %vm2545_vm1, %v2544_v0, 0  ;;  %v2319_v2 = vxor.u32 2147483648, %v9826_v60  ;;  %v2406_v17 = vand.u32 2147483647, %v2405_v5  ;;  %vm2314_vm3 = vweird.f32 %v11916_v49 }
 0x241   : > { %v2548_v33 = vand.u32 31, %v2546_v58  ;;  %v2323_v52 = vsel %vm2321_vm15, %v2322_v1, %v9826_v60  ;;  %v12226_v24 = vand.u32 3, %v2419_v38  ;;  %v2491_v28 = vadd.s32 536870912, %v2490_v15 }
 0x242   : > { %v2320_v63 = vsel %vm2318_vm14, %v9824_v12, %v2319_v2  ;;  %v2409_v31 = vmul.f32 %v2408_v51, %v2406_v17  ;;  %v12236_v53 = vadd.f32 %v12233_v41, %v203_v45  ;;  %v12239_v10 = vadd.s32 %v12187_v46, %v12199_v23 }
 0x243   : > { %v2549_v39 = vsub.s32 32, %v2548_v33  ;;  %v2324_v49 = vsel %vm2317_vm2, %v2320_v63, %v2323_v52  ;;  %v2492_v0 = vshrl.u32 %v2491_v28, 30  ;;  %v2542_v38 = vor.u32 8388608, %v2541_v57 }
 0x244   : > { %v2325_v5 = vsel %vm2314_vm3, nan, %v2324_v49  ;;  %v2410_v50 = vxor.u32 2147483648, %v2409_v31  ;;  %vm2432_vm4 = vcmp.lt.s32.totalorder %v12088_v16, 0  ;;  %v2551_v4 = vshll.u32 %v16032_v11, %v2548_v33 }
 0x245   : > { %v2552_v12 = vshrl.u32 %v16146_v26, %v2549_v39  ;;  %v3593_v51 = vsub.f32 %v2325_v5, %v11870_v27  ;;  %v2493_v60 = vshll.u32 %v2492_v0, 30  ;;  %v2554_v45 = vshll.u32 %v16146_v26, %v2548_v33 }
 0x246   : > { %v2555_v1 = vshrl.u32 %v16147_v59, %v2549_v39  ;;  %v2411_v46 = vsel %vm2328_vm7, %v2410_v50, %v2409_v31  ;;  %v2547_v23 = vshrl.u32 %v2546_v58, 5  ;;  %v2557_v57 = vshll.u32 %v16147_v59, %v2548_v33 }
 0x247   : > { %v2558_v2 = vshrl.u32 %v16166_v13, %v2549_v39  ;;  %v3625_v17 = vmul.f32 %v11986_v42, %v3593_v51  ;;  %v2414_v52 = vsel %vm12193_vm13, %v11955_v47, %v2411_v46  ;;  %v12255_v28 = vsub.s32 %v2490_v15, %v2493_v60 }
 0x248   : > { %v2550_v63 = vshrl.u32 %v16032_v11, %v2549_v39  ;;  %9827 = vcosq.f32 %v2414_v52  ;;  %v2516_v49 = vsub.s32 4, %v2492_v0  ;;  %v2553_v5 = vor.u32 %v2552_v12, %v2551_v4 }
 0x249   : > { %v2560_v31 = vshll.u32 %v16166_v13, %v2548_v33  ;;  %v12260_v58 = vadd.f32 %v3625_v17, %v11870_v27  ;;  %9829 = vsinq.f32 %v2414_v52  ;;  %v2496_v50 = vsub.s32 0, %v12255_v28 }
 0x24a   : > { %v2556_v51 = vor.u32 %v2555_v1, %v2554_v45  ;;  %v2559_v62 = vor.u32 %v2558_v2, %v2557_v57  ;;  %v2561_v18 = vshrl.u32 %v16168_v29, %v2549_v39  ;;  %v2563_v15 = vshll.u32 %v16168_v29, %v2548_v33 }
 0x24b   : > { %16172 = vst [vmem:[#allocation6_spill] sm:$0xff] %v12260_v58  ;;  %v2564_v60 = vshrl.u32 %v16160_v61, %v2549_v39  ;;  %4135 = vmatmul.mubr.f32.gmra.mxu1 %v12260_v58  ;;  %v16173_v4 = vand.u32 2147483647, %v12088_v16  ;;  %v9245_v27 = vmin.u32 %v2496_v50, %v12255_v28  ;;  %vm2566_vm6 = vcmp.lt.s32.totalorder %v2547_v23, 1 }
 0x24c   : > { %v2582_v46 = vshll.u32 %v2542_v38, 8  ;;  %v2641_v45 = vand.u32 2139095040, %v12236_v53  ;;  %4140 = vmatprep.mubr.f32.mxu1 %v16162_v44  ;;  %v2562_v1 = vor.u32 %v2561_v18, %v2560_v31  ;;  %vm2568_vm7 = vcmp.lt.s32.totalorder %v2547_v23, 3  ;;  %v12281_v18 = vld [vmem:[%s10063_s7 + $0xc0] sm:$0xff] }
 0x24d   : > { %vm12269_vm5 = vcmp.le.f32.partialorder %v16173_v4, 0.7853982  ;;  %v2565_v33 = vor.u32 %v2564_v60, %v2563_v15  ;;  %vm2569_vm8 = vcmp.lt.s32.totalorder %v2547_v23, 4  ;;  %v2498_v39 = vclz %v9245_v27 }
 0x24e   : > { %v2517_v57 = vsel %vm2432_vm4, %v2516_v49, %v2492_v0  ;;  %vm2567_vm9 = vcmp.lt.s32.totalorder %v2547_v23, 2  ;;  %v2570_v2 = vsel %vm2566_vm6, %v2550_v63, %v2553_v5  ;;  %v2571_v17 = vsel %vm2569_vm8, %v2559_v62, 2102212464 }
 0x24f   : > { %v2574_v52 = vsel %vm2566_vm6, %v2553_v5, %v2556_v51  ;;  %v2575_v50 = vsel %vm2569_vm8, %v2562_v1, 920167782  ;;  %v2578_v4 = vsel %vm2566_vm6, %v2556_v51, %v2559_v62  ;;  %v9246_v38 = vadd.s32 4294967294, %v2498_v39 }
 0x250   : > { %v2572_v11 = vsel %vm2568_vm7, %v2556_v51, %v2571_v17  ;;  %v2576_v58 = vsel %vm2568_vm7, %v2559_v62, %v2575_v50  ;;  %v2579_v31 = vsel %vm2569_vm8, %v2565_v33, 1326507024  ;;  %vm2418_vm11 = vweird.f32 %v11955_v47 }
 0x251   : > { %v2573_v15 = vsel %vm2567_vm9, %v2570_v2, %v2572_v11  ;;  %v2577_v0 = vsel %vm2567_vm9, %v2574_v52, %v2576_v58  ;;  %v2580_v63 = vsel %vm2568_vm7, %v2562_v1, %v2579_v31  ;;  %v2642_v49 = vshrl.u32 %v2641_v45, 23 }
 0x252   : > { %vm9247_vm10 = vcmp.lt.s32.totalorder %v9246_v38, 0  ;;  %v2581_v5 = vsel %vm2567_vm9, %v2578_v4, %v2580_v63  ;;  %v12288_v60 = vmul.u32.u64.low %v2582_v46, %v2577_v0  ;;  %v12289_v27 = vmul.u32.u64.high %v2582_v46, %v2577_v0, %v12288_v60 }
 0x253   : > { %v2501_v62 = vsel %vm9247_vm10, 0, %v9246_v38  ;;  %v12292_v51 = vmul.u32.u64.low %v2582_v46, %v2581_v5  ;;  %v12293_v33 = vmul.u32.u64.high %v2582_v46, %v2581_v5, %v12292_v51  ;;  %v204_v39 = vmul.f32 %v12215_v3, %v12281_v18 }
 0x254   : > { %v2502_v11 = vsub.s32 32, %v2501_v62  ;;  %v2503_v58 = vshll.u32 %v12255_v28, %v2501_v62  ;;  %v2506_v2 = vsub.s32 4294967266, %v2501_v62  ;;  %v9252_v1 = vadd.s32 4294967169, %v2642_v49  ;;  %v172_v62 = vld [vmem:[%s10063_s7 + $0xc8] sm:$0xff] }
 0x255   : > { %vm2421_vm12 = vcmp.lt.s32.totalorder %v12226_v24, 2  ;;  %vm2425_vm13 = vcmp.eq.s32.totalorder %v12226_v24, 2  ;;  %v2519_v23 = vsel %vm12269_vm5, 0, %v2517_v57  ;;  %v2589_v45 = vmul.u32 %v2582_v46, %v2573_v15  ;;  %v9828_v17 = vpop.eup %9827 }
 0x256   : > { %v2504_v52 = vshrl.u32 %v12239_v10, %v2502_v11  ;;  %v2507_v50 = vadd.s32 127, %v2506_v2  ;;  %v2592_v4 = vadd.s32 1, %v12289_v27  ;;  %v2648_v38 = vadd.s32 1, %v9252_v1  ;;  %v9830_v31 = vpop.eup %9829 }
 0x257   : > { %vm2422_vm14 = vcmp.eq.s32.totalorder %v12226_v24, 0  ;;  %v2426_v28 = vxor.u32 2147483648, %v9828_v17  ;;  %vm2591_vm15 = vc.u32 %v12293_v33, %v12288_v60  ;;  %v2423_v63 = vxor.u32 2147483648, %v9830_v31 }
 0x258   : > { %v2505_v57 = vor.u32 %v2504_v52, %v2503_v58  ;;  %v2508_v46 = vshll.u32 %v2507_v50, 23  ;;  %v2593_v15 = vsel %vm2591_vm15, %v2592_v4, %v12289_v27  ;;  %v2523_v49 = vadd.s32 3, %v2519_v23 }
 0x259   : > { %v2427_v10 = vsel %vm2425_vm13, %v2426_v28, %v9830_v31  ;;  %v2594_v5 = vadd.s32 %v2593_v15, %v2589_v45  ;;  %vm2649_vm0 = vcmp.gt.s32.totalorder %v2648_v38, 0  ;;  %v2424_v51 = vsel %vm2422_vm14, %v9828_v17, %v2423_v63 }
 0x25a   : > { %v2509_v11 = vor.u32 4788187, %v2508_v46  ;;  %v2512_v2 = vcvt.s32.f32 %v2505_v57  ;;  %v2650_v1 = vsel %vm2649_vm0, %v2648_v38, 0  ;;  %v2428_v37 = vsel %vm2421_vm12, %v2424_v51, %v2427_v10 }
 0x25b   : > { %v2595_v0 = vadd.s32 536870912, %v2594_v5  ;;  %v2652_v6 = vand.u32 31, %v2650_v1  ;;  %v2429_v58 = vsel %vm2418_vm11, nan, %v2428_v37  ;;  %v12317_v52 = vadd.f32 %v12233_v41, %v204_v39 }
 0x25c   : > { %v2510_v27 = vand.u32 2147483647, %v2509_v11  ;;  %v12320_v23 = vmul.f32 %v12215_v3, %v172_v62  ;;  %v3594_v45 = vsub.f32 %v2429_v58, %v11908_v7  ;;  %v16176_v50 = vand.u32 2147483647, %v12236_v53 }
 0x25d   : > { %v2596_v17 = vshrl.u32 %v2595_v0, 30  ;;  %v2653_v4 = vsub.s32 32, %v2652_v6  ;;  %v12325_v31 = vand.u32 3, %v2523_v49  ;;  %v12327_v47 = vshrl.u32 %v2650_v1, 5  ;;  %v9973_v49 = vld [vmem:[%s10063_s7 + $0xa0] sm:$0xff] }
 0x25e   : > { %v2645_v24 = vand.u32 8388607, %v16176_v50  ;;  %v2513_v38 = vmul.f32 %v2512_v2, %v2510_v27  ;;  %v16177_v37 = vmov 683565275   ;;  %v3626_v39 = vmul.f32 %v11986_v42, %v3594_v45  ;;  %v3685_v45 = vld [vmem:[%s16012_s1 + $0x3d0] sm:$0xff] }
 0x25f   : > { %v2655_v28 = vshll.u32 %v16177_v37, %v2652_v6  ;;  %vm2536_vm1 = vcmp.lt.s32.totalorder %v12158_v54, 0  ;;  %v2597_v63 = vshll.u32 %v2596_v17, 30  ;;  %v2658_v7 = vshll.u32 %v16146_v26, %v2652_v6  ;;  %9469 = vmatprep.subr.mxu0 %v3685_v45 }
 0x260   : > { %v2661_v0 = vshll.u32 %v16147_v59, %v2652_v6  ;;  %v2514_v57 = vxor.u32 2147483648, %v2513_v38  ;;  %v2656_v46 = vshrl.u32 %v16146_v26, %v2653_v4  ;;  %v2659_v15 = vshrl.u32 %v16147_v59, %v2653_v4  ;;  %9470 = vmatpush3.msra.mxu0 %v3685_v45 }
 0x261   : > { %v2664_v10 = vshll.u32 %v16166_v13, %v2652_v6  ;;  %v12338_v62 = vadd.f32 %v9973_v49, %v3626_v39  ;;  %v12340_v51 = vsub.s32 %v2594_v5, %v2597_v63  ;;  %v2662_v42 = vshrl.u32 %v16166_v13, %v2653_v4 }
 0x262   : > { %v2665_v11 = vshrl.u32 %v16168_v29, %v2653_v4  ;;  %v2515_v2 = vsel %vm2432_vm4, %v2514_v57, %v2513_v38  ;;  %v2620_v1 = vsub.s32 4, %v2596_v17  ;;  %v2646_v58 = vor.u32 8388608, %v2645_v24  ;;  %v3684_v24 = vld [vmem:[%s16012_s1 + $0x3c0] sm:$0xff] }
 0x263   : > { %16178 = vst [vmem:[#allocation7_spill] sm:$0xff] %v12338_v62  ;;  %v2654_v27 = vshrl.u32 %v16177_v37, %v2653_v4  ;;  %4141 = vmatmul.mubr.f32.gmra.mxu1 %v12338_v62  ;;  %v2518_v5 = vsel %vm12269_vm5, %v12088_v16, %v2515_v2  ;;  %v2600_v50 = vsub.s32 0, %v12340_v51  ;;  %v2657_v39 = vor.u32 %v2656_v46, %v2655_v28 }
 0x264   : > { %v2660_v63 = vor.u32 %v2659_v15, %v2658_v7  ;;  %4146 = vmatprep.mubr.f32.mxu1 %v16162_v44  ;;  %9831 = vcosq.f32 %v2518_v5  ;;  %v2666_v38 = vor.u32 %v2665_v11, %v2664_v10  ;;  %v2667_v57 = vshll.u32 %v16168_v29, %v2652_v6  ;;  %9471 = vmatprep.subr.mxu0 %v3684_v24 }
 0x265   : > { %v2668_v49 = vshrl.u32 %v16160_v61, %v2653_v4  ;;  %9833 = vsinq.f32 %v2518_v5  ;;  %v16179_v12 = vand.u32 2147483647, %v12158_v54  ;;  %v9249_v7 = vmin.u32 %v2600_v50, %v12340_v51  ;;  %9472 = vmatpush3.msra.mxu0 %v3684_v24 }
 0x266   : > { %v2663_v46 = vor.u32 %v2662_v42, %v2661_v0  ;;  %vm2670_vm3 = vcmp.lt.s32.totalorder %v12327_v47, 1  ;;  %vm2672_vm4 = vcmp.lt.s32.totalorder %v12327_v47, 3  ;;  %vm2673_vm5 = vcmp.lt.s32.totalorder %v12327_v47, 4 }
 0x267   : > { %vm12363_vm2 = vcmp.le.f32.partialorder %v16179_v12, 0.7853982  ;;  %v2669_v15 = vor.u32 %v2668_v49, %v2667_v57  ;;  %v2745_v6 = vand.u32 2139095040, %v12317_v52  ;;  %v2590_v4 = vadd.s32 %v12288_v60, %v12293_v33 }
 0x268   : > { %v2602_v10 = vclz %v9249_v7  ;;  %vm2671_vm6 = vcmp.lt.s32.totalorder %v12327_v47, 2  ;;  %v2686_v11 = vshll.u32 %v2646_v58, 8  ;;  %v2621_v0 = vsel %vm2536_vm1, %v2620_v1, %v2596_v17 }
 0x269   : > { %v2675_v42 = vsel %vm2673_vm5, %v2663_v46, 2102212464  ;;  %v2678_v2 = vsel %vm2670_vm3, %v2657_v39, %v2660_v63  ;;  %v2679_v45 = vsel %vm2673_vm5, %v2666_v38, 920167782  ;;  %v2674_v60 = vsel %vm2670_vm3, %v2654_v27, %v2657_v39 }
 0x26a   : > { %v9250_v5 = vadd.s32 4294967294, %v2602_v10  ;;  %v2680_v33 = vsel %vm2672_vm4, %v2663_v46, %v2679_v45  ;;  %v2682_v58 = vsel %vm2670_vm3, %v2660_v63, %v2663_v46  ;;  %v2676_v17 = vsel %vm2672_vm4, %v2660_v63, %v2675_v42 }
 0x26b   : > { %v2681_v1 = vsel %vm2671_vm6, %v2678_v2, %v2680_v33  ;;  %v2683_v50 = vsel %vm2673_vm5, %v2669_v15, 1326507024  ;;  %v2746_v24 = vshrl.u32 %v2745_v6, 23  ;;  %v16037_v63 = vand.u32 2147483647, %v12317_v52 }
 0x26c   : > { %vm9251_vm7 = vcmp.lt.s32.totalorder %v9250_v5, 0  ;;  %v2684_v27 = vsel %vm2672_vm4, %v2666_v38, %v2683_v50  ;;  %v12397_v39 = vmul.u32.u64.low %v2686_v11, %v2681_v1  ;;  %v12398_v57 = vmul.u32.u64.high %v2686_v11, %v2681_v1, %v12397_v39 }
 0x26d   : > { %v2605_v49 = vsel %vm9251_vm7, 0, %v9250_v5  ;;  %v2685_v12 = vsel %vm2671_vm6, %v2682_v58, %v2684_v27  ;;  %v9256_v7 = vadd.s32 4294967169, %v2746_v24  ;;  %v2677_v6 = vsel %vm2671_vm6, %v2674_v60, %v2676_v17 }
 0x26e   : > { %v2606_v46 = vsub.s32 32, %v2605_v49  ;;  %v2607_v10 = vshll.u32 %v12340_v51, %v2605_v49  ;;  %v2610_v15 = vsub.s32 4294967266, %v2605_v49  ;;  %v2623_v38 = vsel %vm12363_vm2, 0, %v2621_v0 }
 0x26f   : > { %v12409_v42 = vmul.u32.u64.low %v2686_v11, %v2685_v12  ;;  %v12410_v2 = vmul.u32.u64.high %v2686_v11, %v2685_v12, %v12409_v42  ;;  %v2752_v45 = vadd.s32 1, %v9256_v7  ;;  %v2696_v58 = vadd.s32 1, %v12398_v57 }
 0x270   : > { %v2608_v5 = vshrl.u32 %v2590_v4, %v2606_v46  ;;  %v2611_v33 = vadd.s32 127, %v2610_v15  ;;  %v12415_v1 = vadd.f32 %v12233_v41, %v12320_v23  ;;  %vm2525_vm8 = vcmp.lt.s32.totalorder %v12325_v31, 2 }
 0x271   : > { %vm2529_vm9 = vcmp.eq.s32.totalorder %v12325_v31, 2  ;;  %v2693_v47 = vmul.u32 %v2686_v11, %v2677_v6  ;;  %vm2753_vm11 = vcmp.gt.s32.totalorder %v2752_v45, 0  ;;  %v9832_v51 = vpop.eup %9831  ;;  %v2627_v17 = vadd.s32 3, %v2623_v38 }
 0x272   : > { %v2609_v0 = vor.u32 %v2608_v5, %v2607_v10  ;;  %v2612_v60 = vshll.u32 %v2611_v33, 23  ;;  %v2754_v50 = vsel %vm2753_vm11, %v2752_v45, 0  ;;  %v9834_v24 = vpop.eup %9833  ;;  %vm2526_vm10 = vcmp.eq.s32.totalorder %v12325_v31, 0 }
 0x273   : > { %v2530_v4 = vxor.u32 2147483648, %v9832_v51  ;;  %vm2695_vm12 = vc.u32 %v12410_v2, %v12397_v39  ;;  %v2749_v23 = vand.u32 8388607, %v16037_v63  ;;  %v2527_v27 = vxor.u32 2147483648, %v9834_v24 }
 0x274   : > { %v2613_v49 = vor.u32 4788187, %v2612_v60  ;;  %v2616_v12 = vcvt.s32.f32 %v2609_v0  ;;  %v2697_v11 = vsel %vm2695_vm12, %v2696_v58, %v12398_v57  ;;  %vm2522_vm13 = vweird.f32 %v12088_v16  ;;  %v9974_v60 = vld [vmem:[%s10063_s7 + $0xa8] sm:$0xff] }
 0x275   : > { %v2531_v7 = vsel %vm2529_vm9, %v2530_v4, %v9834_v24  ;;  %v2698_v46 = vadd.s32 %v2697_v11, %v2693_v47  ;;  %v2756_v10 = vand.u32 31, %v2754_v50  ;;  %v2528_v15 = vsel %vm2526_vm10, %v9832_v51, %v2527_v27 }
 0x276   : > { %v2614_v6 = vand.u32 2147483647, %v2613_v49  ;;  %v12428_v38 = vand.u32 3, %v2627_v17  ;;  %v2532_v42 = vsel %vm2525_vm8, %v2528_v15, %v2531_v7  ;;  %v2750_v5 = vor.u32 8388608, %v2749_v23 }
 0x277   : > { %v2699_v45 = vadd.s32 536870912, %v2698_v46  ;;  %v2757_v33 = vsub.s32 32, %v2756_v10  ;;  %v2533_v0 = vsel %vm2522_vm13, nan, %v2532_v42  ;;  %v12432_v58 = vshrl.u32 %v2754_v50, 5  ;;  %v12446_v50 = vld [vmem:[%s16012_s1 + $0x20] ss:$0 sm:$0xff] }
 0x278   : > { %v2617_v57 = vmul.f32 %v2616_v12, %v2614_v6  ;;  %v2849_v16 = vand.u32 2139095040, %v12415_v1  ;;  %v3595_v24 = vsub.f32 %v2533_v0, %v9974_v60  ;;  %v2759_v51 = vshll.u32 %v16177_v37, %v2756_v10 }
 0x279   : > { %v12436_v47 = vshrl.u32 %v2699_v45, 30  ;;  %v2760_v17 = vshrl.u32 %v16146_v26, %v2757_v33  ;;  %v2762_v31 = vshll.u32 %v16146_v26, %v2756_v10  ;;  %v2763_v23 = vshrl.u32 %v16147_v59, %v2757_v33 }
 0x27a   : > { %v2618_v4 = vxor.u32 2147483648, %v2617_v57  ;;  %v2768_v27 = vshll.u32 %v16166_v13, %v2756_v10  ;;  %v3627_v49 = vmul.f32 %v12446_v50, %v3595_v24  ;;  %v2765_v11 = vshll.u32 %v16147_v59, %v2756_v10 }
 0x27b   : > { %v2701_v12 = vshll.u32 %v12436_v47, 30  ;;  %v2766_v7 = vshrl.u32 %v16166_v13, %v2757_v33  ;;  %v2758_v6 = vshrl.u32 %v16177_v37, %v2757_v33  ;;  %v2769_v42 = vshrl.u32 %v16168_v29, %v2757_v33 }
 0x27c   : > { %v2619_v15 = vsel %vm2536_vm1, %v2618_v4, %v2617_v57  ;;  %vm2774_vm14 = vcmp.lt.s32.totalorder %v12432_v58, 1  ;;  %v12457_v45 = vadd.f32 %v9974_v60, %v3627_v49  ;;  %v2761_v63 = vor.u32 %v2760_v17, %v2759_v51  ;;  %v3682_v49 = vld [vmem:[%s16012_s1 + $0x3a0] sm:$0xff] }
 0x27d   : > { %v2622_v0 = vsel %vm12363_vm2, %v12158_v54, %v2619_v15  ;;  %v12462_v24 = vsub.s32 %v2698_v46, %v2701_v12  ;;  %v2764_v62 = vor.u32 %v2763_v23, %v2762_v31  ;;  %v2770_v14 = vor.u32 %v2769_v42, %v2768_v27 }
 0x27e   : > { %16182 = vst [vmem:[#allocation8_spill] sm:$0xff] %v12457_v45  ;;  %9835 = vcosq.f32 %v2622_v0  ;;  %v2771_v57 = vshll.u32 %v16168_v29, %v2756_v10  ;;  %4147 = vmatmul.mubr.f32.gmra.mxu1 %v12457_v45  ;;  %v2767_v36 = vor.u32 %v2766_v7, %v2765_v11  ;;  %v2772_v60 = vshrl.u32 %v16160_v61, %v2757_v33  ;;  %v3683_v33 = vld [vmem:[%s16012_s1 + $0x3b0] sm:$0xff] }
 0x27f   : > { %9837 = vsinq.f32 %v2622_v0  ;;  %v2704_v4 = vsub.s32 0, %v12462_v24  ;;  %4152 = vmatprep.mubr.f32.mxu1 %v16162_v44  ;;  %vm2775_vm15 = vcmp.lt.s32.totalorder %v12432_v58, 2  ;;  %vm2776_vm0 = vcmp.lt.s32.totalorder %v12432_v58, 3  ;;  %9473 = vmatprep.subr.mxu0 %v3683_v33 }
 0x280   : > { %vm2777_vm1 = vcmp.lt.s32.totalorder %v12432_v58, 4  ;;  %v2790_v28 = vshll.u32 %v2750_v5, 8  ;;  %v2773_v10 = vor.u32 %v2772_v60, %v2771_v57  ;;  %v2778_v51 = vsel %vm2774_vm14, %v2758_v6, %v2761_v63  ;;  %9474 = vmatpush3.msra.mxu0 %v3683_v33 }
 0x281   : > { %v9253_v46 = vmin.u32 %v2704_v4, %v12462_v24  ;;  %v2779_v17 = vsel %vm2777_vm1, %v2767_v36, 2102212464  ;;  %v2782_v23 = vsel %vm2774_vm14, %v2761_v63, %v2764_v62  ;;  %v2783_v5 = vsel %vm2777_vm1, %v2770_v14, 920167782  ;;  %9475 = vmatprep.subr.mxu0 %v3682_v49 }
 0x282   : > { %v2780_v31 = vsel %vm2776_vm0, %v2764_v62, %v2779_v17  ;;  %v2850_v27 = vshrl.u32 %v2849_v16, 23  ;;  %v16183_v12 = vand.u32 2147483647, %v12236_v53  ;;  %vm2640_vm3 = vcmp.lt.s32.totalorder %v12236_v53, 0  ;;  %9476 = vmatpush3.msra.mxu0 %v3682_v49 }
 0x283   : > { %v2706_v7 = vclz %v9253_v46  ;;  %v2786_v63 = vsel %vm2774_vm14, %v2764_v62, %v2767_v36  ;;  %v2724_v16 = vsub.s32 4, %v12436_v47  ;;  %v2784_v15 = vsel %vm2776_vm0, %v2767_v36, %v2783_v5 }
 0x284   : > { %vm12491_vm2 = vcmp.le.f32.partialorder %v16183_v12, 0.7853982  ;;  %v2787_v6 = vsel %vm2777_vm1, %v2773_v10, 1326507024  ;;  %v9260_v42 = vadd.s32 4294967169, %v2850_v27  ;;  %vm2629_vm4 = vcmp.lt.s32.totalorder %v12428_v38, 2 }
 0x285   : > { %v9254_v0 = vadd.s32 4294967294, %v2706_v7  ;;  %v2781_v57 = vsel %vm2775_vm15, %v2778_v51, %v2780_v31  ;;  %v2785_v62 = vsel %vm2775_vm15, %v2782_v23, %v2784_v15  ;;  %v2788_v4 = vsel %vm2776_vm0, %v2770_v14, %v2787_v6 }
 0x286   : > { %v2694_v36 = vadd.s32 %v12397_v39, %v12410_v2  ;;  %v2789_v60 = vsel %vm2775_vm15, %v2786_v63, %v2788_v4  ;;  %v12514_v46 = vmul.u32.u64.low %v2790_v28, %v2785_v62  ;;  %v12515_v10 = vmul.u32.u64.high %v2790_v28, %v2785_v62, %v12514_v46  ;;  %v12537_v4 = vld [vmem:[%s10063_s7 + $0xd0] sm:$0xff] }
 0x287   : > { %vm9255_vm5 = vcmp.lt.s32.totalorder %v9254_v0, 0  ;;  %v12518_v17 = vmul.u32.u64.low %v2790_v28, %v2789_v60  ;;  %v12519_v51 = vmul.u32.u64.high %v2790_v28, %v2789_v60, %v12518_v17  ;;  %v2856_v33 = vadd.s32 1, %v9260_v42 }
 0x288   : > { %v2709_v31 = vsel %vm9255_vm5, 0, %v9254_v0  ;;  %v2725_v14 = vsel %vm2640_vm3, %v2724_v16, %v12436_v47  ;;  %v2797_v23 = vmul.u32 %v2790_v28, %v2781_v57  ;;  %v16041_v39 = vand.u32 2147483647, %v12415_v1 }
 0x289   : > { %v2710_v2 = vsub.s32 32, %v2709_v31  ;;  %v2711_v58 = vshll.u32 %v12462_v24, %v2709_v31  ;;  %v2714_v5 = vsub.s32 4294967266, %v2709_v31  ;;  %vm2857_vm6 = vcmp.gt.s32.totalorder %v2856_v33, 0 }
 0x28a   : > { %vm2630_vm7 = vcmp.eq.s32.totalorder %v12428_v38, 0  ;;  %vm2633_vm8 = vcmp.eq.s32.totalorder %v12428_v38, 2  ;;  %v2800_v27 = vadd.s32 1, %v12515_v10  ;;  %v2858_v49 = vsel %vm2857_vm6, %v2856_v33, 0 }
 0x28b   : > { %v9836_v12 = vpop.eup %9835  ;;  %v2712_v7 = vshrl.u32 %v2694_v36, %v2710_v2  ;;  %v2715_v63 = vadd.s32 127, %v2714_v5  ;;  %v2727_v47 = vsel %vm12491_vm2, 0, %v2725_v14  ;;  %vm2799_vm9 = vc.u32 %v12519_v51, %v12514_v46 }
 0x28c   : > { %v9838_v24 = vpop.eup %9837  ;;  %v2634_v28 = vxor.u32 2147483648, %v9836_v12  ;;  %v2801_v16 = vsel %vm2799_vm9, %v2800_v27, %v12515_v10  ;;  %v2853_v15 = vand.u32 8388607, %v16041_v39  ;;  %v2860_v6 = vand.u32 31, %v2858_v49 }
 0x28d   : > { %v2631_v42 = vxor.u32 2147483648, %v9838_v24  ;;  %v2713_v0 = vor.u32 %v2712_v7, %v2711_v58  ;;  %v2716_v57 = vshll.u32 %v2715_v63, 23  ;;  %v2802_v62 = vadd.s32 %v2801_v16, %v2797_v23 }
 0x28e   : > { %vm2626_vm11 = vweird.f32 %v12158_v54  ;;  %v2635_v36 = vsel %vm2633_vm8, %v2634_v28, %v9838_v24  ;;  %v12542_v60 = vadd.s32 3, %v2727_v47  ;;  %v2861_v17 = vsub.s32 32, %v2860_v6 }
 0x28f   : > { %v2632_v10 = vsel %vm2630_vm7, %v9836_v12, %v2631_v42  ;;  %v2717_v33 = vor.u32 4788187, %v2716_v57  ;;  %v2720_v31 = vcvt.s32.f32 %v2713_v0  ;;  %v2803_v14 = vadd.s32 536870912, %v2802_v62 }
 0x290   : > { %v2636_v2 = vsel %vm2629_vm4, %v2632_v10, %v2635_v36  ;;  %v2854_v23 = vor.u32 8388608, %v2853_v15  ;;  %v12548_v58 = vshrl.u32 %v2858_v49, 5  ;;  %v206_v54 = vmul.f32 %v12215_v3, %v12537_v4 }
 0x291   : > { %v2637_v5 = vsel %vm2626_vm11, nan, %v2636_v2  ;;  %v2718_v27 = vand.u32 2147483647, %v2717_v33  ;;  %v12552_v7 = vshrl.u32 %v2803_v14, 30  ;;  %v2863_v63 = vshll.u32 %v16177_v37, %v2860_v6 }
 0x292   : > { %v3596_v12 = vsub.f32 %v2637_v5, %v12131_v22  ;;  %v2864_v47 = vshrl.u32 %v16146_v26, %v2861_v17  ;;  %v2866_v24 = vshll.u32 %v16146_v26, %v2860_v6  ;;  %v2867_v38 = vshrl.u32 %v16147_v59, %v2861_v17 }
 0x293   : > { %v2721_v28 = vmul.f32 %v2720_v31, %v2718_v27  ;;  %v2805_v49 = vshll.u32 %v12552_v7, 30  ;;  %v2869_v16 = vshll.u32 %v16147_v59, %v2860_v6  ;;  %v2872_v15 = vshll.u32 %v16166_v13, %v2860_v6 }
 0x294   : > { %v3628_v42 = vmul.f32 %v12446_v50, %v3596_v12  ;;  %v2870_v0 = vshrl.u32 %v16166_v13, %v2861_v17  ;;  %v2873_v57 = vshrl.u32 %v16168_v29, %v2861_v17  ;;  %v2875_v36 = vshll.u32 %v16168_v29, %v2860_v6 }
 0x295   : > { %v2722_v10 = vxor.u32 2147483648, %v2721_v28  ;;  %v12566_v33 = vsub.s32 %v2802_v62, %v2805_v49  ;;  %v2876_v14 = vshrl.u32 %v16160_v61, %v2861_v17  ;;  %v12569_v31 = vshll.u32 %v2854_v23, 8  ;;  %v3681_v62 = vld [vmem:[%s16012_s1 + $0x390] sm:$0xff] }
 0x296   : > { %v12572_v2 = vadd.f32 %v3628_v42, %v12131_v22  ;;  %v2865_v5 = vor.u32 %v2864_v47, %v2863_v63  ;;  %v2868_v27 = vor.u32 %v2867_v38, %v2866_v24  ;;  %v2874_v39 = vor.u32 %v2873_v57, %v2872_v15  ;;  %9477 = vmatprep.subr.mxu0 %v3681_v62 }
 0x297   : > { %v2723_v12 = vsel %vm2640_vm3, %v2722_v10, %v2721_v28  ;;  %v2808_v45 = vsub.s32 0, %v12566_v33  ;;  %v2862_v6 = vshrl.u32 %v16177_v37, %v2861_v17  ;;  %vm2878_vm10 = vcmp.lt.s32.totalorder %v12548_v58, 1  ;;  %v3680_v17 = vld [vmem:[%s16012_s1 + $0x380] sm:$0xff]  ;;  %9478 = vmatpush3.msra.mxu0 %v3681_v62 }
 0x298   : > { %4153 = vmatmul.mubr.f32.gmra.mxu1 %v12572_v2  ;;  %v2726_v22 = vsel %vm12491_vm2, %v12236_v53, %v2723_v12  ;;  %v2871_v23 = vor.u32 %v2870_v0, %v2869_v16  ;;  %v2877_v63 = vor.u32 %v2876_v14, %v2875_v36  ;;  %vm2881_vm12 = vcmp.lt.s32.totalorder %v12548_v58, 4  ;;  %9479 = vmatprep.subr.mxu0 %v3680_v17 }
 0x299   : > { %4158 = vmatprep.mubr.f32.mxu1 %v16162_v44  ;;  %9839 = vcosq.f32 %v2726_v22  ;;  %v9257_v47 = vmin.u32 %v2808_v45, %v12566_v33  ;;  %vm2879_vm13 = vcmp.lt.s32.totalorder %v12548_v58, 2  ;;  %vm2880_vm14 = vcmp.lt.s32.totalorder %v12548_v58, 3  ;;  %9480 = vmatpush3.msra.mxu0 %v3680_v17 }
 0x29a   : > { %9841 = vsinq.f32 %v2726_v22  ;;  %v2883_v11 = vsel %vm2881_vm12, %v2871_v23, 2102212464  ;;  %v2886_v24 = vsel %vm2878_vm10, %v2865_v5, %v2868_v27  ;;  %v2887_v38 = vsel %vm2881_vm12, %v2874_v39, 920167782 }
 0x29b   : > { %v2810_v28 = vclz %v9257_v47  ;;  %v2828_v49 = vsub.s32 4, %v12552_v7  ;;  %v2882_v45 = vsel %vm2878_vm10, %v2862_v6, %v2865_v5  ;;  %v12604_v16 = vadd.f32 %v12233_v41, %v206_v54 }
 0x29c   : > { %v2884_v15 = vsel %vm2880_vm14, %v2868_v27, %v2883_v11  ;;  %v2888_v42 = vsel %vm2880_vm14, %v2871_v23, %v2887_v38  ;;  %v2890_v0 = vsel %vm2878_vm10, %v2868_v27, %v2871_v23  ;;  %v2891_v57 = vsel %vm2881_vm12, %v2877_v63, 1326507024  ;;  %v174_v23 = vld [vmem:[%s10063_s7 + $0xd8] sm:$0xff] }
 0x29d   : > { %vm2744_vm15 = vcmp.lt.s32.totalorder %v12317_v52, 0  ;;  %v9258_v36 = vadd.s32 4294967294, %v2810_v28  ;;  %v2889_v54 = vsel %vm2879_vm13, %v2886_v24, %v2888_v42  ;;  %v2892_v10 = vsel %vm2880_vm14, %v2874_v39, %v2891_v57 }
 0x29e   : > { %v2885_v14 = vsel %vm2879_vm13, %v2882_v45, %v2884_v15  ;;  %v2893_v5 = vsel %vm2879_vm13, %v2890_v0, %v2892_v10  ;;  %v12624_v27 = vmul.u32.u64.low %v12569_v31, %v2889_v54  ;;  %v12625_v12 = vmul.u32.u64.high %v12569_v31, %v2889_v54, %v12624_v27 }
 0x29f   : > { %v2798_v6 = vadd.s32 %v12514_v46, %v12519_v51  ;;  %vm9259_vm0 = vcmp.lt.s32.totalorder %v9258_v36, 0  ;;  %v12630_v62 = vmul.u32.u64.low %v12569_v31, %v2893_v5  ;;  %v12631_v22 = vmul.u32.u64.high %v12569_v31, %v2893_v5, %v12630_v62 }
 0x2a0   : > { %v2732_v39 = vand.u32 3, %v12542_v60  ;;  %v2813_v63 = vsel %vm9259_vm0, 0, %v9258_v36  ;;  %v2829_v58 = vsel %vm2744_vm15, %v2828_v49, %v12552_v7  ;;  %v2953_v17 = vand.u32 2139095040, %v12604_v16 }
 0x2a1   : > { %v2814_v47 = vsub.s32 32, %v2813_v63  ;;  %v2815_v11 = vshll.u32 %v12566_v33, %v2813_v63  ;;  %v2818_v24 = vsub.s32 4294967266, %v2813_v63  ;;  %v2901_v46 = vmul.u32 %v12569_v31, %v2885_v14 }
 0x2a2   : > { %v16186_v51 = vand.u32 2147483647, %v12317_v52  ;;  %v2904_v60 = vadd.s32 1, %v12625_v12  ;;  %v2954_v28 = vshrl.u32 %v2953_v17, 23  ;;  %v207_v45 = vmul.f32 %v12215_v3, %v174_v23 }
 0x2a3   : > { %v2816_v7 = vshrl.u32 %v2798_v6, %v2814_v47  ;;  %v2819_v49 = vadd.s32 127, %v2818_v24  ;;  %vm2903_vm2 = vc.u32 %v12631_v22, %v12624_v27  ;;  %vm2734_vm3 = vcmp.eq.s32.totalorder %v2732_v39, 0 }
 0x2a4   : > { %vm12643_vm1 = vcmp.le.f32.partialorder %v16186_v51, 0.7853982  ;;  %v2905_v33 = vsel %vm2903_vm2, %v2904_v60, %v12625_v12  ;;  %v9264_v31 = vadd.s32 4294967169, %v2954_v28  ;;  %vm2737_vm4 = vcmp.eq.s32.totalorder %v2732_v39, 2 }
 0x2a5   : > { %v2831_v15 = vsel %vm12643_vm1, 0, %v2829_v58  ;;  %v2817_v42 = vor.u32 %v2816_v7, %v2815_v11  ;;  %v2820_v0 = vshll.u32 %v2819_v49, 23  ;;  %v2906_v57 = vadd.s32 %v2905_v33, %v2901_v46 }
 0x2a6   : > { %v9840_v36 = vpop.eup %9839  ;;  %v2835_v54 = vadd.s32 3, %v2831_v15  ;;  %v2950_v10 = vand.u32 2147483647, %v12604_v16  ;;  %v2960_v3 = vadd.s32 1, %v9264_v31  ;;  %v12655_v14 = vadd.f32 %v12233_v41, %v207_v45 }
 0x2a7   : > { %v9842_v5 = vpop.eup %9841  ;;  %v2738_v6 = vxor.u32 2147483648, %v9840_v36  ;;  %v2821_v62 = vor.u32 4788187, %v2820_v0  ;;  %v2824_v23 = vcvt.s32.f32 %v2817_v42  ;;  %v2907_v63 = vadd.s32 536870912, %v2906_v57 }
 0x2a8   : > { %vm2730_vm5 = vweird.f32 %v12236_v53  ;;  %vm2733_vm6 = vcmp.lt.s32.totalorder %v2732_v39, 2  ;;  %v2735_v12 = vxor.u32 2147483648, %v9842_v5  ;;  %vm2961_vm7 = vcmp.gt.s32.totalorder %v2960_v3, 0 }
 0x2a9   : > { %v2739_v58 = vsel %vm2737_vm4, %v2738_v6, %v9842_v5  ;;  %v2822_v17 = vand.u32 2147483647, %v2821_v62  ;;  %v12659_v47 = vshrl.u32 %v2907_v63, 30  ;;  %v2962_v11 = vsel %vm2961_vm7, %v2960_v3, 0 }
 0x2aa   : > { %v2736_v24 = vsel %vm2734_vm3, %v9840_v36, %v2735_v12  ;;  %v2957_v41 = vand.u32 8388607, %v2950_v10  ;;  %v2964_v46 = vand.u32 31, %v2962_v11  ;;  %v3057_v51 = vand.u32 2139095040, %v12655_v14 }
 0x2ab   : > { %v2740_v60 = vsel %vm2733_vm6, %v2736_v24, %v2739_v58  ;;  %v2825_v28 = vmul.f32 %v2824_v23, %v2822_v17  ;;  %v12665_v45 = vand.u32 3, %v2835_v54  ;;  %v2909_v7 = vshll.u32 %v12659_v47, 30 }
 0x2ac   : > { %v2741_v49 = vsel %vm2730_vm5, nan, %v2740_v60  ;;  %v12671_v15 = vadd.s32 %v12624_v27, %v12631_v22  ;;  %v2965_v39 = vsub.s32 32, %v2964_v46  ;;  %v2967_v33 = vshll.u32 %v16177_v37, %v2964_v46 }
 0x2ad   : > { %v3597_v31 = vsub.f32 %v2741_v49, %v12204_v40  ;;  %v2826_v42 = vxor.u32 2147483648, %v2825_v28  ;;  %v12675_v0 = vsub.s32 %v2906_v57, %v2909_v7  ;;  %v2970_v36 = vshll.u32 %v16146_v26, %v2964_v46 }
 0x2ae   : > { %v2958_v54 = vor.u32 8388608, %v2957_v41  ;;  %v2968_v3 = vshrl.u32 %v16146_v26, %v2965_v39  ;;  %v2971_v5 = vshrl.u32 %v16147_v59, %v2965_v39  ;;  %v3058_v53 = vshrl.u32 %v3057_v51, 23 }
 0x2af   : > { %v3629_v6 = vmul.f32 %v12446_v50, %v3597_v31  ;;  %v2827_v27 = vsel %vm2744_vm15, %v2826_v42, %v2825_v28  ;;  %v2912_v22 = vsub.s32 0, %v12675_v0  ;;  %v2963_v62 = vshrl.u32 %v2962_v11, 5 }
 0x2b0   : > { %v2830_v57 = vsel %vm12643_vm1, %v12317_v52, %v2827_v27  ;;  %v2966_v23 = vshrl.u32 %v16177_v37, %v2965_v39  ;;  %v2969_v63 = vor.u32 %v2968_v3, %v2967_v33  ;;  %v2973_v12 = vshll.u32 %v16147_v59, %v2964_v46 }
 0x2b1   : > { %v12690_v58 = vadd.f32 %v3629_v6, %v12204_v40  ;;  %9843 = vcosq.f32 %v2830_v57  ;;  %vm2848_vm8 = vcmp.lt.s32.totalorder %v12415_v1, 0  ;;  %v9261_v17 = vmin.u32 %v2912_v22, %v12675_v0 }
 0x2b2   : > { %v2972_v24 = vor.u32 %v2971_v5, %v2970_v36  ;;  %9845 = vsinq.f32 %v2830_v57  ;;  %v2974_v11 = vshrl.u32 %v16166_v13, %v2965_v39  ;;  %v2976_v38 = vshll.u32 %v16166_v13, %v2964_v46 }
 0x2b3   : > { %v2977_v41 = vshrl.u32 %v16168_v29, %v2965_v39  ;;  %4159 = vmatmul.mubr.f32.gmra.mxu1 %v12690_v58  ;;  %v2914_v51 = vclz %v9261_v17  ;;  %v2932_v60 = vsub.s32 4, %v12659_v47  ;;  %v12699_v40 = vshll.u32 %v2958_v54, 8 }
 0x2b4   : > { %v9268_v28 = vadd.s32 4294967169, %v3058_v53  ;;  %4164 = vmatprep.mubr.f32.mxu1 %v16162_v44  ;;  %v2975_v7 = vor.u32 %v2974_v11, %v2973_v12  ;;  %v2979_v33 = vshll.u32 %v16168_v29, %v2964_v46  ;;  %v2980_v31 = vshrl.u32 %v16160_v61, %v2965_v39  ;;  %v3679_v39 = vld [vmem:[%s16012_s1 + $0x370] sm:$0xff] }
 0x2b5   : > { %v2978_v49 = vor.u32 %v2977_v41, %v2976_v38  ;;  %v16189_v42 = vand.u32 2147483647, %v12415_v1  ;;  %v9262_v3 = vadd.s32 4294967294, %v2914_v51  ;;  %vm2982_vm11 = vcmp.lt.s32.totalorder %v2963_v62, 1  ;;  %9481 = vmatprep.subr.mxu0 %v3679_v39 }
 0x2b6   : > { %vm2983_vm10 = vcmp.lt.s32.totalorder %v2963_v62, 2  ;;  %vm2984_vm12 = vcmp.lt.s32.totalorder %v2963_v62, 3  ;;  %v2981_v54 = vor.u32 %v2980_v31, %v2979_v33  ;;  %vm2985_vm13 = vcmp.lt.s32.totalorder %v2963_v62, 4  ;;  %9482 = vmatpush3.msra.mxu0 %v3679_v39 }
 0x2b7   : > { %vm12706_vm9 = vcmp.le.f32.partialorder %v16189_v42, 0.7853982  ;;  %v2986_v5 = vsel %vm2982_vm11, %v2966_v23, %v2969_v63  ;;  %v2990_v53 = vsel %vm2982_vm11, %v2969_v63, %v2972_v24  ;;  %vm9263_vm14 = vcmp.lt.s32.totalorder %v9262_v3, 0  ;;  %v3678_v23 = vld [vmem:[%s16012_s1 + $0x360] sm:$0xff] }
 0x2b8   : > { %v2987_v6 = vsel %vm2985_vm13, %v2975_v7, 2102212464  ;;  %v2991_v27 = vsel %vm2985_vm13, %v2978_v49, 920167782  ;;  %v2994_v46 = vsel %vm2982_vm11, %v2972_v24, %v2975_v7  ;;  %vm2837_vm15 = vcmp.lt.s32.totalorder %v12665_v45, 2  ;;  %9483 = vmatprep.subr.mxu0 %v3678_v23 }
 0x2b9   : > { %v2917_v22 = vsel %vm9263_vm14, 0, %v9262_v3  ;;  %v2988_v57 = vsel %vm2984_vm12, %v2972_v24, %v2987_v6  ;;  %v2992_v12 = vsel %vm2984_vm12, %v2975_v7, %v2991_v27  ;;  %v2995_v17 = vsel %vm2985_vm13, %v2981_v54, 1326507024  ;;  %9484 = vmatpush3.msra.mxu0 %v3678_v23 }
 0x2ba   : > { %v2918_v63 = vsub.s32 32, %v2917_v22  ;;  %v2919_v11 = vshll.u32 %v12675_v0, %v2917_v22  ;;  %v2922_v38 = vsub.s32 4294967266, %v2917_v22  ;;  %v3054_v41 = vand.u32 2147483647, %v12655_v14 }
 0x2bb   : > { %v2933_v51 = vsel %vm2848_vm8, %v2932_v60, %v12659_v47  ;;  %v2989_v24 = vsel %vm2983_vm10, %v2986_v5, %v2988_v57  ;;  %v2993_v7 = vsel %vm2983_vm10, %v2990_v53, %v2992_v12  ;;  %v2996_v33 = vsel %vm2984_vm12, %v2978_v49, %v2995_v17 }
 0x2bc   : > { %v2920_v31 = vshrl.u32 %v12671_v15, %v2918_v63  ;;  %v2923_v42 = vadd.s32 127, %v2922_v38  ;;  %v2997_v0 = vsel %vm2983_vm10, %v2994_v46, %v2996_v33  ;;  %v3064_v3 = vadd.s32 1, %v9268_v28 }
 0x2bd   : > { %v12730_v54 = vmul.u32.u64.low %v12699_v40, %v2997_v0  ;;  %v12731_v6 = vmul.u32.u64.high %v12699_v40, %v2997_v0, %v12730_v54  ;;  %v12734_v47 = vmul.u32.u64.low %v12699_v40, %v2993_v7  ;;  %v12735_v60 = vmul.u32.u64.high %v12699_v40, %v2993_v7, %v12734_v47 }
 0x2be   : > { %vm2838_vm0 = vcmp.eq.s32.totalorder %v12665_v45, 0  ;;  %v2921_v49 = vor.u32 %v2920_v31, %v2919_v11  ;;  %v2924_v5 = vshll.u32 %v2923_v42, 23  ;;  %vm3065_vm1 = vcmp.gt.s32.totalorder %v3064_v3, 0  ;;  %v9844_v15 = vpop.eup %9843 }
 0x2bf   : > { %vm2841_vm2 = vcmp.eq.s32.totalorder %v12665_v45, 2  ;;  %v2935_v62 = vsel %vm12706_vm9, 0, %v2933_v51  ;;  %v3061_v28 = vand.u32 8388607, %v3054_v41  ;;  %v3066_v53 = vsel %vm3065_vm1, %v3064_v3, 0  ;;  %v9846_v27 = vpop.eup %9845 }
 0x2c0   : > { %v2842_v46 = vxor.u32 2147483648, %v9844_v15  ;;  %v2925_v39 = vor.u32 4788187, %v2924_v5  ;;  %v2928_v22 = vcvt.s32.f32 %v2921_v49  ;;  %v3005_v57 = vmul.u32 %v12699_v40, %v2989_v24 }
 0x2c1   : > { %v2839_v12 = vxor.u32 2147483648, %v9846_v27  ;;  %vm3007_vm3 = vc.u32 %v12731_v6, %v12734_v47  ;;  %v3008_v17 = vadd.s32 1, %v12735_v60  ;;  %v12748_v23 = vshrl.u32 %v3066_v53, 5 }
 0x2c2   : > { %vm2834_vm4 = vweird.f32 %v12317_v52  ;;  %v2843_v63 = vsel %vm2841_vm2, %v2842_v46, %v9846_v27  ;;  %v2926_v11 = vand.u32 2147483647, %v2925_v39  ;;  %v3068_v38 = vand.u32 31, %v3066_v53 }
 0x2c3   : > { %v2840_v51 = vsel %vm2838_vm0, %v9844_v15, %v2839_v12  ;;  %v2939_v7 = vadd.s32 3, %v2935_v62  ;;  %v3009_v40 = vsel %vm3007_vm3, %v3008_v17, %v12735_v60  ;;  %v3062_v24 = vor.u32 8388608, %v3061_v28 }
 0x2c4   : > { %v2844_v33 = vsel %vm2837_vm15, %v2840_v51, %v2843_v63  ;;  %v2929_v31 = vmul.f32 %v2928_v22, %v2926_v11  ;;  %v3010_v42 = vadd.s32 %v3009_v40, %v3005_v57  ;;  %v3069_v0 = vsub.s32 32, %v3068_v38  ;;  %v9976_v63 = vld [vmem:[%s10063_s7 + $0xc0] sm:$0xff] }
 0x2c5   : > { %v2845_v3 = vsel %vm2834_vm4, nan, %v2844_v33  ;;  %v3071_v52 = vshll.u32 %v16177_v37, %v3068_v38  ;;  %v3074_v54 = vshll.u32 %v16146_v26, %v3068_v38  ;;  %vm3086_vm5 = vcmp.lt.s32.totalorder %v12748_v23, 1 }
 0x2c6   : > { %v3598_v49 = vsub.f32 %v2845_v3, %v12281_v18  ;;  %v2930_v5 = vxor.u32 2147483648, %v2929_v31  ;;  %v3011_v15 = vadd.s32 536870912, %v3010_v42  ;;  %v3077_v60 = vshll.u32 %v16147_v59, %v3068_v38 }
 0x2c7   : > { %v3072_v45 = vshrl.u32 %v16146_v26, %v3069_v0  ;;  %v3075_v62 = vshrl.u32 %v16147_v59, %v3069_v0  ;;  %v3078_v28 = vshrl.u32 %v16166_v13, %v3069_v0  ;;  %v3080_v53 = vshll.u32 %v16166_v13, %v3068_v38 }
 0x2c8   : > { %v3630_v27 = vmul.f32 %v12446_v50, %v3598_v49  ;;  %v2931_v46 = vsel %vm2848_vm8, %v2930_v5, %v2929_v31  ;;  %v12770_v18 = vshrl.u32 %v3011_v15, 30  ;;  %v3081_v39 = vshrl.u32 %v16168_v29, %v3069_v0  ;;  %v175_v49 = vld [vmem:[%s10063_s7 + $0xe0] sm:$0xff] }
 0x2c9   : > { %v2934_v22 = vsel %vm12706_vm9, %v12415_v1, %v2931_v46  ;;  %v3070_v57 = vshrl.u32 %v16177_v37, %v3069_v0  ;;  %v3073_v12 = vor.u32 %v3072_v45, %v3071_v52  ;;  %v3076_v17 = vor.u32 %v3075_v62, %v3074_v54  ;;  %v3677_v45 = vld [vmem:[%s16012_s1 + $0x350] sm:$0xff] }
 0x2ca   : > { %v12778_v11 = vadd.f32 %v9976_v63, %v3630_v27  ;;  %9847 = vcosq.f32 %v2934_v22  ;;  %v3013_v51 = vshll.u32 %v12770_v18, 30  ;;  %v3079_v40 = vor.u32 %v3078_v28, %v3077_v60  ;;  %9485 = vmatprep.subr.mxu0 %v3677_v45  ;;  %v3676_v27 = vld [vmem:[%s16012_s1 + $0x340] sm:$0xff] }
 0x2cb   : > { %9849 = vsinq.f32 %v2934_v22  ;;  %v3082_v33 = vor.u32 %v3081_v39, %v3080_v53  ;;  %v3083_v31 = vshll.u32 %v16168_v29, %v3068_v38  ;;  %v3084_v3 = vshrl.u32 %v16160_v61, %v3069_v0  ;;  %9486 = vmatpush3.msra.mxu0 %v3677_v45 }
 0x2cc   : > { %4165 = vmatmul.mubr.f32.gmra.mxu1 %v12778_v11  ;;  %v12785_v36 = vsub.s32 %v3010_v42, %v3013_v51  ;;  %vm3088_vm6 = vcmp.lt.s32.totalorder %v12748_v23, 3  ;;  %vm3089_vm7 = vcmp.lt.s32.totalorder %v12748_v23, 4  ;;  %v12789_v52 = vshll.u32 %v3062_v24, 8  ;;  %v12805_v24 = vld [vmem:[%s16012_s1] ss:$0 sm:$0xff]  ;;  %9487 = vmatprep.subr.mxu0 %v3676_v27 }
 0x2cd   : > { %4170 = vmatprep.mubr.f32.mxu1 %v16162_v44  ;;  %v3085_v54 = vor.u32 %v3084_v3, %v3083_v31  ;;  %vm3087_vm8 = vcmp.lt.s32.totalorder %v12748_v23, 2  ;;  %v3091_v38 = vsel %vm3089_vm7, %v3079_v40, 2102212464  ;;  %v3094_v0 = vsel %vm3086_vm5, %v3073_v12, %v3076_v17  ;;  %v176_v31 = vld [vmem:[%s10063_s7 + $0xe8] sm:$0xff]  ;;  %9488 = vmatpush3.msra.mxu0 %v3676_v27 }
 0x2ce   : > { %v12797_v5 = vand.u32 3, %v2939_v7  ;;  %v3016_v42 = vsub.s32 0, %v12785_v36  ;;  %v3095_v15 = vsel %vm3089_vm7, %v3082_v33, 920167782  ;;  %v208_v60 = vmul.f32 %v12805_v24, %v175_v49 }
 0x2cf   : > { %v3090_v7 = vsel %vm3086_vm5, %v3070_v57, %v3073_v12  ;;  %v3096_v62 = vsel %vm3088_vm6, %v3079_v40, %v3095_v15  ;;  %v3098_v28 = vsel %vm3086_vm5, %v3076_v17, %v3079_v40  ;;  %v3099_v53 = vsel %vm3089_vm7, %v3085_v54, 1326507024  ;;  %v12848_v54 = vld [vmem:[%s16012_s1 + $0x10] ss:$0 sm:$0xff] }
 0x2d0   : > { %v9265_v46 = vmin.u32 %v3016_v42, %v12785_v36  ;;  %v3092_v39 = vsel %vm3088_vm6, %v3076_v17, %v3091_v38  ;;  %v3097_v22 = vsel %vm3087_vm8, %v3094_v0, %v3096_v62  ;;  %v3100_v57 = vsel %vm3088_vm6, %v3082_v33, %v3099_v53  ;;  %v3675_v0 = vld [vmem:[%s16012_s1 + $0x330] sm:$0xff] }
 0x2d1   : > { %v3101_v12 = vsel %vm3087_vm8, %v3098_v28, %v3100_v57  ;;  %v12832_v63 = vmul.u32.u64.low %v12789_v52, %v3097_v22  ;;  %v12833_v51 = vmul.u32.u64.high %v12789_v52, %v3097_v22, %v12832_v63  ;;  %vm2938_vm9 = vweird.f32 %v12415_v1  ;;  %9489 = vmatprep.subr.mxu0 %v3675_v0 }
 0x2d2   : > { %v3018_v40 = vclz %v9265_v46  ;;  %v3036_v17 = vsub.s32 4, %v12770_v18  ;;  %v3093_v33 = vsel %vm3087_vm8, %v3090_v7, %v3092_v39  ;;  %v12851_v38 = vadd.f32 %v12848_v54, %v208_v60  ;;  %9490 = vmatpush3.msra.mxu0 %v3675_v0 }
 0x2d3   : > { %v12842_v3 = vmul.u32.u64.low %v12789_v52, %v3101_v12  ;;  %v12843_v49 = vmul.u32.u64.high %v12789_v52, %v3101_v12, %v12842_v3  ;;  %vm2941_vm11 = vcmp.lt.s32.totalorder %v12797_v5, 2  ;;  %vm12856_vm10 = vcmp.le.f32.partialorder %v2950_v10, 0.7853982 }
 0x2d4   : > { %vm2952_vm12 = vcmp.lt.s32.totalorder %v12604_v16, 0  ;;  %v9266_v23 = vadd.s32 4294967294, %v3018_v40  ;;  %vm2942_vm13 = vcmp.eq.s32.totalorder %v12797_v5, 0  ;;  %v3112_v42 = vadd.s32 1, %v12833_v51 }
 0x2d5   : > { %v3161_v15 = vand.u32 2139095040, %v12851_v38  ;;  %v209_v60 = vmul.f32 %v12805_v24, %v176_v31  ;;  %vm2945_vm14 = vcmp.eq.s32.totalorder %v12797_v5, 2  ;;  %v3006_v45 = vadd.s32 %v12734_v47, %v12731_v6 }
 0x2d6   : > { %vm9267_vm15 = vcmp.lt.s32.totalorder %v9266_v23, 0  ;;  %v3109_v10 = vmul.u32 %v12789_v52, %v3093_v33  ;;  %v3037_v28 = vsel %vm2952_vm12, %v3036_v17, %v12770_v18  ;;  %vm3111_vm0 = vc.u32 %v12843_v49, %v12832_v63 }
 0x2d7   : > { %v9848_v7 = vpop.eup %9847  ;;  %v3021_v62 = vsel %vm9267_vm15, 0, %v9266_v23  ;;  %v16044_v53 = vand.u32 2147483647, %v12851_v38  ;;  %v3113_v52 = vsel %vm3111_vm0, %v3112_v42, %v12833_v51  ;;  %v3162_v57 = vshrl.u32 %v3161_v15, 23 }
 0x2d8   : > { %v9850_v27 = vpop.eup %9849  ;;  %v2946_v46 = vxor.u32 2147483648, %v9848_v7  ;;  %v3022_v39 = vsub.s32 32, %v3021_v62  ;;  %v3023_v22 = vshll.u32 %v12785_v36, %v3021_v62  ;;  %v3026_v6 = vsub.s32 4294967266, %v3021_v62  ;;  %v9979_v62 = vld [vmem:[%s10063_s7 + $0xc8] sm:$0xff] }
 0x2d9   : > { %v2943_v47 = vxor.u32 2147483648, %v9850_v27  ;;  %v12878_v12 = vadd.f32 %v12848_v54, %v209_v60  ;;  %v3114_v31 = vadd.s32 %v3113_v52, %v3109_v10  ;;  %v3039_v36 = vsel %vm12856_vm10, 0, %v3037_v28 }
 0x2da   : > { %v2947_v18 = vsel %vm2945_vm14, %v2946_v46, %v9850_v27  ;;  %v3024_v40 = vshrl.u32 %v3006_v45, %v3022_v39  ;;  %v3027_v17 = vadd.s32 127, %v3026_v6  ;;  %v9272_v3 = vadd.s32 4294967169, %v3162_v57  ;;  %v177_v57 = vld [vmem:[%s10063_s7 + $0xf0] sm:$0xff] }
 0x2db   : > { %v2944_v33 = vsel %vm2942_vm13, %v9848_v7, %v2943_v47  ;;  %v3165_v51 = vand.u32 8388607, %v16044_v53  ;;  %v3115_v60 = vadd.s32 536870912, %v3114_v31  ;;  %v3265_v7 = vand.u32 2139095040, %v12878_v12 }
 0x2dc   : > { %v2948_v23 = vsel %vm2941_vm11, %v2944_v33, %v2947_v18  ;;  %v3025_v42 = vor.u32 %v3024_v40, %v3023_v22  ;;  %v3028_v15 = vshll.u32 %v3027_v17, 23  ;;  %v3168_v10 = vadd.s32 1, %v9272_v3 }
 0x2dd   : > { %v2949_v45 = vsel %vm2938_vm9, nan, %v2948_v23  ;;  %v12894_v39 = vshrl.u32 %v3115_v60, 30  ;;  %v3043_v6 = vadd.s32 3, %v3039_v36  ;;  %v3266_v5 = vshrl.u32 %v3265_v7, 23 }
 0x2de   : > { %v3599_v27 = vsub.f32 %v2949_v45, %v9979_v62  ;;  %v3029_v28 = vor.u32 4788187, %v3028_v15  ;;  %v3032_v46 = vcvt.s32.f32 %v3025_v42  ;;  %vm3169_vm1 = vcmp.gt.s32.totalorder %v3168_v10, 0 }
 0x2df   : > { %v3117_v52 = vshll.u32 %v12894_v39, 30  ;;  %v3166_v1 = vor.u32 8388608, %v3165_v51  ;;  %v3170_v18 = vsel %vm3169_vm1, %v3168_v10, 0  ;;  %v16043_v40 = vand.u32 2147483647, %v12878_v12 }
 0x2e0   : > { %v3631_v22 = vmul.f32 %v12446_v50, %v3599_v27  ;;  %v3030_v47 = vand.u32 2147483647, %v3029_v28  ;;  %v12904_v23 = vand.u32 3, %v3043_v6  ;;  %v3172_v36 = vand.u32 31, %v3170_v18 }
 0x2e1   : > { %v12902_v3 = vsub.s32 %v3114_v31, %v3117_v52  ;;  %v9276_v42 = vadd.s32 4294967169, %v3266_v5  ;;  %v12907_v15 = vmul.f32 %v12805_v24, %v177_v57  ;;  %v3110_v51 = vadd.s32 %v12832_v63, %v12843_v49 }
 0x2e2   : > { %v12900_v17 = vadd.f32 %v9979_v62, %v3631_v22  ;;  %v3033_v33 = vmul.f32 %v3032_v46, %v3030_v47  ;;  %v12913_v45 = vshll.u32 %v3166_v1, 8  ;;  %v3173_v31 = vsub.s32 32, %v3172_v36 }
 0x2e3   : > { %v3120_v60 = vsub.s32 0, %v12902_v3  ;;  %v3175_v10 = vshll.u32 %v16177_v37, %v3172_v36  ;;  %v3178_v7 = vshll.u32 %v16146_v26, %v3172_v36  ;;  %v12920_v62 = vand.u32 8388607, %v16043_v40 }
 0x2e4   : > { %16194 = vst [vmem:[#allocation9_spill] sm:$0xff] %v12900_v17  ;;  %4171 = vmatmul.mubr.f32.gmra.mxu1 %v12900_v17  ;;  %v3034_v50 = vxor.u32 2147483648, %v3033_v33  ;;  %v3140_v49 = vsub.s32 4, %v12894_v39  ;;  %v3171_v28 = vshrl.u32 %v3170_v18, 5  ;;  %vm3056_vm2 = vcmp.lt.s32.totalorder %v12655_v14, 0 }
 0x2e5   : > { %4176 = vmatprep.mubr.f32.mxu1 %v16162_v44  ;;  %v9269_v63 = vmin.u32 %v3120_v60, %v12902_v3  ;;  %v3176_v6 = vshrl.u32 %v16146_v26, %v3173_v31  ;;  %v3179_v5 = vshrl.u32 %v16147_v59, %v3173_v31  ;;  %v3272_v22 = vadd.s32 1, %v9276_v42 }
 0x2e6   : > { %v3035_v27 = vsel %vm2952_vm12, %v3034_v50, %v3033_v33  ;;  %v3181_v52 = vshll.u32 %v16147_v59, %v3172_v36  ;;  %v3184_v1 = vshll.u32 %v16166_v13, %v3172_v36  ;;  %v3174_v57 = vshrl.u32 %v16177_v37, %v3173_v31 }
 0x2e7   : > { %v3038_v46 = vsel %vm12856_vm10, %v12604_v16, %v3035_v27  ;;  %v3122_v47 = vclz %v9269_v63  ;;  %v3177_v18 = vor.u32 %v3176_v6, %v3175_v10  ;;  %v3180_v33 = vor.u32 %v3179_v5, %v3178_v7  ;;  %v3674_v63 = vld [vmem:[%s16012_s1 + $0x320] sm:$0xff] }
 0x2e8   : > { %9851 = vcosq.f32 %v3038_v46  ;;  %v3182_v60 = vshrl.u32 %v16166_v13, %v3173_v31  ;;  %v3185_v42 = vshrl.u32 %v16168_v29, %v3173_v31  ;;  %v3187_v27 = vshll.u32 %v16168_v29, %v3172_v36  ;;  %9491 = vmatprep.subr.mxu0 %v3674_v63 }
 0x2e9   : > { %9853 = vsinq.f32 %v3038_v46  ;;  %v9270_v50 = vadd.s32 4294967294, %v3122_v47  ;;  %v3188_v46 = vshrl.u32 %v16160_v61, %v3173_v31  ;;  %vm3190_vm3 = vcmp.lt.s32.totalorder %v3171_v28, 1  ;;  %9492 = vmatpush3.msra.mxu0 %v3674_v63 }
 0x2ea   : > { %vm3191_vm4 = vcmp.lt.s32.totalorder %v3171_v28, 2  ;;  %vm3192_vm5 = vcmp.lt.s32.totalorder %v3171_v28, 3  ;;  %vm12947_vm6 = vcmp.le.f32.partialorder %v3054_v41, 0.7853982  ;;  %v3183_v7 = vor.u32 %v3182_v60, %v3181_v52 }
 0x2eb   : > { %vm9271_vm7 = vcmp.lt.s32.totalorder %v9270_v50, 0  ;;  %v3186_v36 = vor.u32 %v3185_v42, %v3184_v1  ;;  %vm3193_vm8 = vcmp.lt.s32.totalorder %v3171_v28, 4  ;;  %v3189_v5 = vor.u32 %v3188_v46, %v3187_v27 }
 0x2ec   : > { %v3125_v6 = vsel %vm9271_vm7, 0, %v9270_v50  ;;  %v3194_v47 = vsel %vm3190_vm3, %v3174_v57, %v3177_v18  ;;  %v3198_v31 = vsel %vm3190_vm3, %v3177_v18, %v3180_v33  ;;  %v3195_v41 = vsel %vm3193_vm8, %v3183_v7, 2102212464 }
 0x2ed   : > { %v3126_v40 = vsub.s32 32, %v3125_v6  ;;  %v3127_v0 = vshll.u32 %v12902_v3, %v3125_v6  ;;  %v3130_v53 = vsub.s32 4294967266, %v3125_v6  ;;  %vm3045_vm9 = vcmp.lt.s32.totalorder %v12904_v23, 2 }
 0x2ee   : > { %v3196_v17 = vsel %vm3192_vm5, %v3180_v33, %v3195_v41  ;;  %v3199_v52 = vsel %vm3193_vm8, %v3186_v36, 920167782  ;;  %v3202_v1 = vsel %vm3190_vm3, %v3180_v33, %v3183_v7  ;;  %v3203_v60 = vsel %vm3193_vm8, %v3189_v5, 1326507024 }
 0x2ef   : > { %vm3042_vm11 = vweird.f32 %v12604_v16  ;;  %v3128_v50 = vshrl.u32 %v3110_v51, %v3126_v40  ;;  %v3131_v57 = vadd.s32 127, %v3130_v53  ;;  %v3141_v18 = vsel %vm3056_vm2, %v3140_v49, %v12894_v39 }
 0x2f0   : > { %v3200_v3 = vsel %vm3192_vm5, %v3183_v7, %v3199_v52  ;;  %v3197_v42 = vsel %vm3191_vm4, %v3194_v47, %v3196_v17  ;;  %v3204_v63 = vsel %vm3192_vm5, %v3186_v36, %v3203_v60  ;;  %vm3273_vm10 = vcmp.gt.s32.totalorder %v3272_v22, 0 }
 0x2f1   : > { %v3201_v27 = vsel %vm3191_vm4, %v3198_v31, %v3200_v3  ;;  %v3129_v46 = vor.u32 %v3128_v50, %v3127_v0  ;;  %v3132_v33 = vshll.u32 %v3131_v57, 23  ;;  %v3205_v6 = vsel %vm3191_vm4, %v3202_v1, %v3204_v63 }
 0x2f2   : > { %v3274_v5 = vsel %vm3273_vm10, %v3272_v22, 0  ;;  %v12967_v53 = vmul.u32.u64.low %v12913_v45, %v3205_v6  ;;  %v12968_v40 = vmul.u32.u64.high %v12913_v45, %v3205_v6, %v12967_v53  ;;  %vm3046_vm12 = vcmp.eq.s32.totalorder %v12904_v23, 0 }
 0x2f3   : > { %v12971_v39 = vmul.u32.u64.low %v12913_v45, %v3201_v27  ;;  %v12972_v51 = vmul.u32.u64.high %v12913_v45, %v3201_v27, %v12971_v39  ;;  %v3133_v17 = vor.u32 4788187, %v3132_v33  ;;  %v3136_v49 = vcvt.s32.f32 %v3129_v46 }
 0x2f4   : > { %v3276_v7 = vand.u32 31, %v3274_v5  ;;  %vm3049_vm13 = vcmp.eq.s32.totalorder %v12904_v23, 2  ;;  %v3143_v28 = vsel %vm12947_vm6, 0, %v3141_v18  ;;  %v3270_v22 = vor.u32 8388608, %v12920_v62 }
 0x2f5   : > { %v9852_v36 = vpop.eup %9851  ;;  %v12982_v47 = vadd.f32 %v12848_v54, %v12907_v15  ;;  %v3134_v41 = vand.u32 2147483647, %v3133_v17  ;;  %v3213_v52 = vmul.u32 %v12913_v45, %v3197_v42  ;;  %vm3215_vm14 = vc.u32 %v12968_v40, %v12971_v39 }
 0x2f6   : > { %v9854_v31 = vpop.eup %9853  ;;  %v3050_v0 = vxor.u32 2147483648, %v9852_v36  ;;  %v3277_v1 = vsub.s32 32, %v3276_v7  ;;  %v3216_v50 = vadd.s32 1, %v12972_v51  ;;  %v3279_v57 = vshll.u32 %v16177_v37, %v3276_v7 }
 0x2f7   : > { %v3047_v60 = vxor.u32 2147483648, %v9854_v31  ;;  %v3137_v62 = vmul.f32 %v3136_v49, %v3134_v41  ;;  %v3147_v3 = vadd.s32 3, %v3143_v28  ;;  %v3282_v45 = vshll.u32 %v16146_v26, %v3276_v7 }
 0x2f8   : > { %v3051_v18 = vsel %vm3049_vm13, %v3050_v0, %v9854_v31  ;;  %v3280_v15 = vshrl.u32 %v16146_v26, %v3277_v1  ;;  %v3217_v63 = vsel %vm3215_vm14, %v3216_v50, %v12972_v51  ;;  %v3283_v42 = vshrl.u32 %v16147_v59, %v3277_v1 }
 0x2f9   : > { %v3048_v27 = vsel %vm3046_vm12, %v9852_v36, %v3047_v60  ;;  %v3138_v33 = vxor.u32 2147483648, %v3137_v62  ;;  %v3218_v6 = vadd.s32 %v3217_v63, %v3213_v52  ;;  %v12997_v53 = vshrl.u32 %v3274_v5, 5  ;;  %v13015_v60 = vld [vmem:[%s16012_s1 + $0x20] ss:$0 sm:$0xff]  ;;  %v3673_v63 = vld [vmem:[%s16012_s1 + $0x310] sm:$0xff] }
 0x2fa   : > { %v3052_v46 = vsel %vm3045_vm9, %v3048_v27, %v3051_v18  ;;  %v3281_v49 = vor.u32 %v3280_v15, %v3279_v57  ;;  %v3285_v28 = vshll.u32 %v16147_v59, %v3276_v7  ;;  %v3286_v36 = vshrl.u32 %v16166_v13, %v3277_v1  ;;  %9493 = vmatprep.subr.mxu0 %v3673_v63 }
 0x2fb   : > { %v3053_v17 = vsel %vm3042_vm11, nan, %v3052_v46  ;;  %v3139_v31 = vsel %vm3056_vm2, %v3138_v33, %v3137_v62  ;;  %v3219_v0 = vadd.s32 536870912, %v3218_v6  ;;  %v3288_v23 = vshll.u32 %v16166_v13, %v3276_v7  ;;  %9494 = vmatpush3.msra.mxu0 %v3673_v63 }
 0x2fc   : > { %v3600_v51 = vsub.f32 %v3053_v17, %v12537_v4  ;;  %v3142_v5 = vsel %vm12947_vm6, %v12655_v14, %v3139_v31  ;;  %v3284_v41 = vor.u32 %v3283_v42, %v3282_v45  ;;  %v3289_v16 = vshrl.u32 %v16168_v29, %v3277_v1  ;;  %v3672_v45 = vld [vmem:[%s16012_s1 + $0x300] sm:$0xff]  ;;  %v3671_v17 = vld [vmem:[%s16012_s1 + $0x2f0] sm:$0xff] }
 0x2fd   : > { %v3291_v52 = vshll.u32 %v16168_v29, %v3276_v7  ;;  %9855 = vcosq.f32 %v3142_v5  ;;  %v3220_v57 = vshrl.u32 %v3219_v0, 30  ;;  %v3292_v18 = vshrl.u32 %v16160_v61, %v3277_v1  ;;  %9495 = vmatprep.subr.mxu0 %v3672_v45 }
 0x2fe   : > { %v3632_v50 = vmul.f32 %v13015_v60, %v3600_v51  ;;  %9857 = vsinq.f32 %v3142_v5  ;;  %v3287_v62 = vor.u32 %v3286_v36, %v3285_v28  ;;  %v3290_v10 = vor.u32 %v3289_v16, %v3288_v23  ;;  %9496 = vmatpush3.msra.mxu0 %v3672_v45  ;;  %v3670_v23 = vld [vmem:[%s16012_s1 + $0x2e0] sm:$0xff]  ;;  %v4308_v45 = vld [vmem:[%s16012_s1 + $0x238] sm:$0xff] }
 0x2ff   : > { %vm3294_vm15 = vcmp.lt.s32.totalorder %v12997_v53, 1  ;;  %v3221_v7 = vshll.u32 %v3220_v57, 30  ;;  %vm3295_vm0 = vcmp.lt.s32.totalorder %v12997_v53, 2  ;;  %v13024_v27 = vshll.u32 %v3270_v22, 8  ;;  %9497 = vmatprep.subr.mxu0 %v3671_v17 }
 0x300   : > { %v13021_v15 = vadd.f32 %v3632_v50, %v12537_v4  ;;  %v3293_v42 = vor.u32 %v3292_v18, %v3291_v52  ;;  %vm3296_vm1 = vcmp.lt.s32.totalorder %v12997_v53, 3  ;;  %vm3297_vm2 = vcmp.lt.s32.totalorder %v12997_v53, 4  ;;  %v13069_v18 = vld [vmem:[%s10063_s7 + $0xf8] sm:$0xff]  ;;  %9498 = vmatpush3.msra.mxu0 %v3671_v17 }
 0x301   : > { %v3302_v4 = vsel %vm3294_vm15, %v3281_v49, %v3284_v41  ;;  %v13037_v22 = vsub.s32 %v3218_v6, %v3221_v7  ;;  %v3278_v46 = vshrl.u32 %v16177_v37, %v3277_v1  ;;  %v3303_v33 = vsel %vm3297_vm2, %v3290_v10, 920167782  ;;  %9499 = vmatprep.subr.mxu0 %v3670_v23 }
 0x302   : > { %4177 = vmatmul.mubr.f32.gmra.mxu1 %v13021_v15  ;;  %v3299_v28 = vsel %vm3297_vm2, %v3287_v62, 2102212464  ;;  %v3304_v6 = vsel %vm3296_vm1, %v3287_v62, %v3303_v33  ;;  %v3369_v36 = vand.u32 2139095040, %v12982_v47  ;;  %v3244_v51 = vsub.s32 4, %v3220_v57  ;;  %9500 = vmatpush3.msra.mxu0 %v3670_v23 }
 0x303   : > { %4182 = vmatprep.mubr.f32.mxu1 %v16162_v44  ;;  %v3224_v1 = vsub.s32 0, %v13037_v22  ;;  %v3305_v31 = vsel %vm3295_vm0, %v3302_v4, %v3304_v6  ;;  %v3306_v0 = vsel %vm3294_vm15, %v3284_v41, %v3287_v62  ;;  %v13059_v5 = vand.u32 3, %v3147_v3  ;;  %v4306_v6 = vld [vmem:[%s16012_s1 + $0x228] sm:$0xff]  ;;  %9502 = vmatmul.mubr.f32.vlgmr.msra.gmra.mxu0 %v10546_v35 }
 0x304   : > { %v3307_v16 = vsel %vm3297_vm2, %v3293_v42, 1326507024  ;;  %v13064_v52 = vmul.u32.u64.low %v13024_v27, %v3305_v31  ;;  %v13065_v50 = vmul.u32.u64.high %v13024_v27, %v3305_v31, %v13064_v52  ;;  %v3298_v7 = vsel %vm3294_vm15, %v3278_v46, %v3281_v49  ;;  %v13081_v42 = vpop.f32.mrf.mxu1  ;;  %4437 = vmatprep.subr.mxu0 %v4308_v45  ;;  %9504 = vmatprep.mubr.f32.mxu0 %v10627_v43  ;;  %v4303_v43 = vld [vmem:[%s16012_s1 + $0x210] sm:$0xff]  ;;  %v4286_v46 = vld [vmem:[%s16012_s1 + $0x188] sm:$0xff] }
 0x305   : > { %v9273_v62 = vmin.u32 %v3224_v1, %v13037_v22  ;;  %v3300_v3 = vsel %vm3296_vm1, %v3284_v41, %v3299_v28  ;;  %v3308_v63 = vsel %vm3296_vm1, %v3290_v10, %v3307_v16  ;;  %vm3146_vm3 = vweird.f32 %v12655_v14  ;;  %v4307_v41 = vld [vmem:[%s16012_s1 + $0x230] sm:$0xff]  ;;  %v4296_v14 = vld [vmem:[%s16012_s1 + $0x1d8] sm:$0xff] }
 0x306   : > { %vm3160_vm4 = vcmp.lt.s32.totalorder %v12851_v38, 0  ;;  %v3309_v49 = vsel %vm3295_vm0, %v3306_v0, %v3308_v63  ;;  %v3370_v4 = vshrl.u32 %v3369_v36, 23  ;;  %v16197_v10 = vand.u32 2147483647, %v12851_v38  ;;  %4438 = vmatpush1.msra.mxu0 %v4307_v41  ;;  %v13120_v35 = vpop.f32.mrf.mxu1 }
 0x307   : > { %v3226_v33 = vclz %v9273_v62  ;;  %v3245_v17 = vsel %vm3160_vm4, %v3244_v51, %v3220_v57  ;;  %v211_v28 = vmul.f32 %v12805_v24, %v13069_v18  ;;  %v3301_v36 = vsel %vm3295_vm0, %v3298_v7, %v3300_v3  ;;  %v4305_v24 = vld [vmem:[%s16012_s1 + $0x220] sm:$0xff]  ;;  %v4304_v57 = vld [vmem:[%s16012_s1 + $0x218] sm:$0xff]  ;;  %4439 = vmatprep.subr.mxu0 %v4306_v6  ;;  %9505 = vmatmul.mubr.f32.gmra.mxu0 %v10703_v55 }
 0x308   : > { %vm13092_vm5 = vcmp.le.f32.partialorder %v16197_v10, 0.7853982  ;;  %v13106_v1 = vmul.u32.u64.low %v13024_v27, %v3309_v49  ;;  %v13107_v31 = vmul.u32.u64.high %v13024_v27, %v3309_v49, %v13106_v1  ;;  %v9280_v0 = vadd.s32 4294967169, %v3370_v4  ;;  %4440 = vmatpush1.msra.mxu0 %v4305_v24  ;;  %9507 = vmatprep.mubr.f32.mxu0 %v10810_v20  ;;  %v13151_v55 = vpop.f32.mrf.mxu1  ;;  %v4299_v20 = vld [vmem:[%s16012_s1 + $0x1f0] sm:$0xff] }
 0x309   : > { %vm3149_vm6 = vcmp.lt.s32.totalorder %v13059_v5, 2  ;;  %vm3150_vm7 = vcmp.eq.s32.totalorder %v13059_v5, 0  ;;  %vm3153_vm8 = vcmp.eq.s32.totalorder %v13059_v5, 2  ;;  %v9274_v53 = vadd.s32 4294967294, %v3226_v33  ;;  %4441 = vmatprep.subr.mxu0 %v4304_v57  ;;  %v4298_v57 = vld [vmem:[%s16012_s1 + $0x1e8] sm:$0xff]  ;;  %v4297_v5 = vld [vmem:[%s16012_s1 + $0x1e0] sm:$0xff] }
 0x30a   : > { %v9856_v51 = vpop.eup %9855  ;;  %v3214_v23 = vadd.s32 %v12971_v39, %v12968_v40  ;;  %v3320_v16 = vadd.s32 1, %v13065_v50  ;;  %v16046_v62 = vand.u32 2147483647, %v12982_v47  ;;  %v3376_v7 = vadd.s32 1, %v9280_v0  ;;  %v4302_v40 = vld [vmem:[%s16012_s1 + $0x208] sm:$0xff]  ;;  %4442 = vmatpush1.msra.mxu0 %v4303_v43 }
 0x30b   : > { %v9858_v3 = vpop.eup %9857  ;;  %v3154_v63 = vxor.u32 2147483648, %v9856_v51  ;;  %vm9275_vm9 = vcmp.lt.s32.totalorder %v9274_v53, 0  ;;  %v3247_v45 = vsel %vm13092_vm5, 0, %v3245_v17  ;;  %v3317_v49 = vmul.u32 %v13024_v27, %v3301_v36  ;;  %v4301_v27 = vld [vmem:[%s16012_s1 + $0x200] sm:$0xff]  ;;  %4443 = vmatprep.subr.mxu0 %v4302_v40  ;;  %9508 = vmatmul.mubr.f32.gmra.mxu0 %v10885_v48  ;;  %v4295_v40 = vld [vmem:[%s16012_s1 + $0x1d0] sm:$0xff] }
 0x30c   : > { %v3151_v39 = vxor.u32 2147483648, %v9858_v3  ;;  %v3229_v4 = vsel %vm9275_vm9, 0, %v9274_v53  ;;  %vm3319_vm11 = vc.u32 %v13107_v31, %v13064_v52  ;;  %v13138_v41 = vadd.f32 %v12848_v54, %v211_v28  ;;  %v4300_v54 = vld [vmem:[%s16012_s1 + $0x1f8] sm:$0xff]  ;;  %4444 = vmatpush1.msra.mxu0 %v4301_v27  ;;  %9510 = vmatprep.mubr.f32.mxu0 %v10970_v25  ;;  %v4294_v25 = vld [vmem:[%s16012_s1 + $0x1c8] sm:$0xff] }
 0x30d   : > { %v3155_v10 = vsel %vm3153_vm8, %v3154_v63, %v9858_v3  ;;  %v3230_v33 = vsub.s32 32, %v3229_v4  ;;  %v3231_v17 = vshll.u32 %v13037_v22, %v3229_v4  ;;  %v3234_v6 = vsub.s32 4294967266, %v3229_v4  ;;  %4445 = vmatprep.subr.mxu0 %v4300_v54 }
 0x30e   : > { %v3152_v28 = vsel %vm3150_vm7, %v9856_v51, %v3151_v39  ;;  %v3251_v36 = vadd.s32 3, %v3247_v45  ;;  %v3321_v1 = vsel %vm3319_vm11, %v3320_v16, %v13065_v50  ;;  %vm3377_vm10 = vcmp.gt.s32.totalorder %v3376_v7, 0  ;;  %4446 = vmatpush1.msra.mxu0 %v4299_v20 }
 0x30f   : > { %v3156_v22 = vsel %vm3149_vm6, %v3152_v28, %v3155_v10  ;;  %v3232_v0 = vshrl.u32 %v3214_v23, %v3230_v33  ;;  %v3235_v24 = vadd.s32 127, %v3234_v6  ;;  %v3322_v53 = vadd.s32 %v3321_v1, %v3317_v49  ;;  %v9981_v23 = vld [vmem:[%s10063_s7 + $0xd8] sm:$0xff]  ;;  %4447 = vmatprep.subr.mxu0 %v4298_v57  ;;  %9511 = vmatmul.mubr.f32.gmra.mxu0 %v11065_v21 }
 0x310   : > { %v3157_v50 = vsel %vm3146_vm3, nan, %v3156_v22  ;;  %v3373_v51 = vand.u32 8388607, %v16046_v62  ;;  %v3378_v16 = vsel %vm3377_vm10, %v3376_v7, 0  ;;  %v3473_v43 = vand.u32 2139095040, %v13138_v41  ;;  %v13178_v7 = vpop.f32.mrf.mxu1  ;;  %4448 = vmatpush1.msra.mxu0 %v4297_v5  ;;  %9513 = vmatprep.mubr.f32.mxu0 %v11151_v19 }
 0x311   : > { %v3601_v3 = vsub.f32 %v3157_v50, %v9981_v23  ;;  %v3233_v63 = vor.u32 %v3232_v0, %v3231_v17  ;;  %v3236_v45 = vshll.u32 %v3235_v24, 23  ;;  %v3323_v49 = vadd.s32 536870912, %v3322_v53  ;;  %4449 = vmatprep.subr.mxu0 %v4296_v14  ;;  %v4293_v50 = vld [vmem:[%s16012_s1 + $0x1c0] sm:$0xff] }
 0x312   : > { %v3380_v48 = vand.u32 31, %v3378_v16  ;;  %v13189_v33 = vand.u32 3, %v3251_v36  ;;  %v3374_v17 = vor.u32 8388608, %v3373_v51  ;;  %v3474_v54 = vshrl.u32 %v3473_v43, 23  ;;  %4450 = vmatpush1.msra.mxu0 %v4295_v40  ;;  %v13197_v0 = vpop.f32.mrf.mxu1 }
 0x313   : > { %v3633_v39 = vmul.f32 %v13015_v60, %v3601_v3  ;;  %v3237_v4 = vor.u32 4788187, %v3236_v45  ;;  %v3240_v27 = vcvt.s32.f32 %v3233_v63  ;;  %v13184_v10 = vshrl.u32 %v3323_v49, 30  ;;  %4451 = vmatprep.subr.mxu0 %v4294_v25  ;;  %9514 = vmatmul.mubr.f32.gmra.mxu0 %v11277_v30 }
 0x314   : > { %v3381_v6 = vsub.s32 32, %v3380_v48  ;;  %v3383_v22 = vshll.u32 %v16177_v37, %v3380_v48  ;;  %v3386_v24 = vshll.u32 %v16146_v26, %v3380_v48  ;;  %v3389_v21 = vshll.u32 %v16147_v59, %v3380_v48  ;;  %9516 = vmatprep.mubr.f32.mxu0 %v11383_v9  ;;  %4452 = vmatpush1.msra.mxu0 %v4293_v50 }
 0x315   : > { %v13192_v28 = vadd.f32 %v9981_v23, %v3633_v39  ;;  %v3238_v1 = vand.u32 2147483647, %v3237_v4  ;;  %v3325_v20 = vshll.u32 %v13184_v10, 30  ;;  %v3392_v5 = vshll.u32 %v16166_v13, %v3380_v48  ;;  %v4292_v23 = vld [vmem:[%s16012_s1 + $0x1b8] sm:$0xff] }
 0x316   : > { %v3384_v36 = vshrl.u32 %v16146_v26, %v3381_v6  ;;  %v3387_v57 = vshrl.u32 %v16147_v59, %v3381_v6  ;;  %v3390_v43 = vshrl.u32 %v16166_v13, %v3381_v6  ;;  %v13215_v3 = vshrl.u32 %v3378_v16, 5  ;;  %v4290_v16 = vld [vmem:[%s16012_s1 + $0x1a8] sm:$0xff]  ;;  %4453 = vmatprep.subr.mxu0 %v4292_v23 }
 0x317   : > { %4183 = vmatmul.mubr.f32.gmra.mxu1 %v13192_v28  ;;  %v3241_v51 = vmul.f32 %v3240_v27, %v3238_v1  ;;  %v13207_v19 = vsub.s32 %v3322_v53, %v3325_v20  ;;  %v13217_v63 = vshll.u32 %v3374_v17, 8  ;;  %v3470_v45 = vand.u32 2147483647, %v13138_v41  ;;  %v4291_v53 = vld [vmem:[%s16012_s1 + $0x1b0] sm:$0xff]  ;;  %v13231_v27 = vpop.f32.mrf.mxu1  ;;  %v4289_v1 = vld [vmem:[%s16012_s1 + $0x1a0] sm:$0xff]  ;;  %9517 = vmatmul.mubr.f32.gmra.mxu0 %v11474_v56 }
 0x318   : > { %4188 = vmatprep.mubr.f32.mxu1 %v16162_v44  ;;  %v9284_v49 = vadd.s32 4294967169, %v3474_v54  ;;  %v3382_v39 = vshrl.u32 %v16177_v37, %v3381_v6  ;;  %v3393_v4 = vshrl.u32 %v16168_v29, %v3381_v6  ;;  %v3385_v30 = vor.u32 %v3384_v36, %v3383_v22  ;;  %4454 = vmatpush1.msra.mxu0 %v4291_v53  ;;  %v4288_v22 = vld [vmem:[%s16012_s1 + $0x198] sm:$0xff]  ;;  %v4287_v36 = vld [vmem:[%s16012_s1 + $0x190] sm:$0xff] }
 0x319   : > { %v3242_v14 = vxor.u32 2147483648, %v3241_v51  ;;  %v3328_v40 = vsub.s32 0, %v13207_v19  ;;  %v3388_v25 = vor.u32 %v3387_v57, %v3386_v24  ;;  %v3395_v17 = vshll.u32 %v16168_v29, %v3380_v48  ;;  %4455 = vmatprep.subr.mxu0 %v4290_v16  ;;  %9519 = vmatprep.mubr.f32.mxu0 %v11594_v8  ;;  %v4285_v8 = vld [vmem:[%s16012_s1 + $0x180] sm:$0xff]  ;;  %v4284_v53 = vld [vmem:[%s16012_s1 + $0x178] sm:$0xff]  ;;  %v4283_v16 = vld [vmem:[%s16012_s1 + $0x170] sm:$0xff] }
 0x31a   : > { %v3396_v54 = vshrl.u32 %v16160_v61, %v3381_v6  ;;  %v3391_v50 = vor.u32 %v3390_v43, %v3389_v21  ;;  %v3394_v62 = vor.u32 %v3393_v4, %v3392_v5  ;;  %vm3398_vm12 = vcmp.lt.s32.totalorder %v13215_v3, 1  ;;  %4456 = vmatpush1.msra.mxu0 %v4289_v1  ;;  %v13258_v21 = vpop.f32.mrf.mxu1 }
 0x31b   : > { %v3243_v9 = vsel %vm3160_vm4, %v3242_v14, %v3241_v51  ;;  %v9277_v20 = vmin.u32 %v3328_v40, %v13207_v19  ;;  %vm3401_vm13 = vcmp.lt.s32.totalorder %v13215_v3, 4  ;;  %vm3400_vm14 = vcmp.lt.s32.totalorder %v13215_v3, 3  ;;  %4457 = vmatprep.subr.mxu0 %v4288_v22  ;;  %9520 = vmatmul.mubr.f32.gmra.mxu0 %v11681_v32  ;;  %v4282_v32 = vld [vmem:[%s16012_s1 + $0x168] sm:$0xff] }
 0x31c   : > { %v3246_v48 = vsel %vm13092_vm5, %v12851_v38, %v3243_v9  ;;  %v3397_v6 = vor.u32 %v3396_v54, %v3395_v17  ;;  %v3480_v57 = vadd.s32 1, %v9284_v49  ;;  %vm3399_vm15 = vcmp.lt.s32.totalorder %v13215_v3, 2  ;;  %4458 = vmatpush1.msra.mxu0 %v4287_v36  ;;  %9522 = vmatprep.mubr.f32.mxu0 %v11791_v34  ;;  %v4281_v34 = vld [vmem:[%s16012_s1 + $0x160] sm:$0xff]  ;;  %v4280_v3 = vld [vmem:[%s16012_s1 + $0x158] sm:$0xff] }
 0x31d   : > { %9859 = vcosq.f32 %v3246_v48  ;;  %v3330_v24 = vclz %v9277_v20  ;;  %v3402_v56 = vsel %vm3398_vm12, %v3382_v39, %v3385_v30  ;;  %v3403_v51 = vsel %vm3401_vm13, %v3391_v50, 2102212464  ;;  %4459 = vmatprep.subr.mxu0 %v4286_v46 }
 0x31e   : > { %9861 = vsinq.f32 %v3246_v48  ;;  %v3404_v5 = vsel %vm3400_vm14, %v3388_v25, %v3403_v51  ;;  %v3406_v23 = vsel %vm3398_vm12, %v3385_v30, %v3388_v25  ;;  %v3407_v49 = vsel %vm3401_vm13, %v3394_v62, 920167782  ;;  %4460 = vmatpush1.msra.mxu0 %v4285_v8 }
 0x31f   : > { %v9278_v43 = vadd.s32 4294967294, %v3330_v24  ;;  %v3318_v14 = vadd.s32 %v13064_v52, %v13107_v31  ;;  %v3408_v40 = vsel %vm3400_vm14, %v3391_v50, %v3407_v49  ;;  %v3410_v39 = vsel %vm3398_vm12, %v3388_v25, %v3391_v50  ;;  %v13299_v25 = vpop.f32.mrf.mxu1  ;;  %4461 = vmatprep.subr.mxu0 %v4284_v53  ;;  %v16200_v24 = vld [vmem:[#allocation2_spill] sm:$0xff]  ;;  %v4278_v49 = vld [vmem:[%s16012_s1 + $0x148] sm:$0xff] }
 0x320   : > { %v3411_v4 = vsel %vm3401_vm13, %v3397_v6, 1326507024  ;;  %v3405_v52 = vsel %vm3399_vm15, %v3402_v56, %v3404_v5  ;;  %v3409_v31 = vsel %vm3399_vm15, %v3406_v23, %v3408_v40  ;;  %vm3481_vm1 = vcmp.gt.s32.totalorder %v3480_v57, 0  ;;  %4462 = vmatpush1.msra.mxu0 %v4283_v16 }
 0x321   : > { %vm9279_vm0 = vcmp.lt.s32.totalorder %v9278_v43, 0  ;;  %v3412_v30 = vsel %vm3400_vm14, %v3394_v62, %v3411_v4  ;;  %v13304_v1 = vmul.u32.u64.low %v13217_v63, %v3409_v31  ;;  %v13305_v9 = vmul.u32.u64.high %v13217_v63, %v3409_v31, %v13304_v1  ;;  %9523 = vmatmul.mubr.f32.gmra.mxu0 %v16200_v24  ;;  %4463 = vmatprep.subr.mxu0 %v4282_v32  ;;  %v13331_v5 = vpop.f32.mrf.mxu1  ;;  %v4326_v31 = vld [vmem:[%s16012_s1 + $0x2c8] sm:$0xff] }
 0x322   : > { %v3333_v17 = vsel %vm9279_vm0, 0, %v9278_v43  ;;  %v3413_v54 = vsel %vm3399_vm15, %v3410_v39, %v3412_v30  ;;  %v13321_v6 = vand.u32 8388607, %v3470_v45  ;;  %v3482_v36 = vsel %vm3481_vm1, %v3480_v57, 0  ;;  %v16201_v43 = vld [vmem:[#allocation3_spill] sm:$0xff]  ;;  %4464 = vmatpush1.msra.mxu0 %v4281_v34  ;;  %v16206_v34 = vld [vmem:[#allocation5_spill] sm:$0xff] }
 0x323   : > { %v3334_v62 = vsub.s32 32, %v3333_v17  ;;  %v3335_v20 = vshll.u32 %v13207_v19, %v3333_v17  ;;  %v3338_v50 = vsub.s32 4294967266, %v3333_v17  ;;  %v4279_v19 = vld [vmem:[%s16012_s1 + $0x150] sm:$0xff]  ;;  %v3348_v51 = vsub.s32 4, %v13184_v10  ;;  %9525 = vmatprep.mubr.f32.mxu0 %v16201_v43  ;;  %4465 = vmatprep.subr.mxu0 %v4280_v3 }
 0x324   : > { %v13316_v22 = vmul.u32.u64.low %v13217_v63, %v3413_v54  ;;  %v13317_v48 = vmul.u32.u64.high %v13217_v63, %v3413_v54, %v13316_v22  ;;  %v13328_v8 = vand.u32 31, %v3482_v36  ;;  %vm3250_vm2 = vweird.f32 %v12851_v38  ;;  %4466 = vmatpush1.msra.mxu0 %v4279_v19 }
 0x325   : > { %v3336_v46 = vshrl.u32 %v3318_v14, %v3334_v62  ;;  %v3339_v56 = vadd.s32 127, %v3338_v50  ;;  %vm3264_vm3 = vcmp.lt.s32.totalorder %v12878_v12, 0  ;;  %v3421_v57 = vmul.u32 %v13217_v63, %v3405_v52  ;;  %v4277_v63 = vld [vmem:[%s16012_s1 + $0x140] sm:$0xff]  ;;  %v16205_v52 = vld [vmem:[#allocation4_spill] sm:$0xff]  ;;  %4467 = vmatprep.subr.mxu0 %v4278_v49  ;;  %v13367_v62 = vpop.f32.mrf.mxu1  ;;  %v4318_v14 = vld [vmem:[%s16012_s1 + $0x288] sm:$0xff] }
 0x326   : > { %v3424_v23 = vadd.s32 1, %v13305_v9  ;;  %vm3253_vm4 = vcmp.lt.s32.totalorder %v13189_v33, 2  ;;  %v16202_v53 = vand.u32 2147483647, %v12878_v12  ;;  %v3485_v4 = vsub.s32 32, %v13328_v8  ;;  %9526 = vmatmul.mubr.f32.gmra.mxu0 %v16205_v52  ;;  %v16207_v49 = vld [vmem:[#allocation6_spill] sm:$0xff] }
 0x327   : > { %v3337_v40 = vor.u32 %v3336_v46, %v3335_v20  ;;  %v3340_v39 = vshll.u32 %v3339_v56, 23  ;;  %vm3254_vm6 = vcmp.eq.s32.totalorder %v13189_v33, 0  ;;  %vm3257_vm7 = vcmp.eq.s32.totalorder %v13189_v33, 2  ;;  %9528 = vmatprep.mubr.f32.mxu0 %v16206_v34  ;;  %4468 = vmatpush1.msra.mxu0 %v4277_v63  ;;  %v16208_v52 = vld [vmem:[#allocation7_spill] sm:$0xff]  ;;  %v16209_v33 = vld [vmem:[#allocation8_spill] sm:$0xff] }
 0x328   : > { %vm13343_vm5 = vcmp.le.f32.partialorder %v16202_v53, 0.7853982  ;;  %vm3423_vm8 = vc.u32 %v13317_v48, %v13304_v1  ;;  %v3478_v16 = vor.u32 8388608, %v13321_v6  ;;  %v13363_v17 = vsel %vm3264_vm3, %v3348_v51, %v13184_v10  ;;  %4483 = vmatprep.subr.mxu0 %v4326_v31  ;;  %v4316_v6 = vld [vmem:[%s16012_s1 + $0x278] sm:$0xff] }
 0x329   : > { %v3341_v30 = vor.u32 4788187, %v3340_v39  ;;  %v3344_v32 = vcvt.s32.f32 %v3337_v40  ;;  %v3425_v54 = vsel %vm3423_vm8, %v3424_v23, %v13305_v9  ;;  %v13369_v3 = vshrl.u32 %v3482_v36, 5  ;;  %v4325_v36 = vld [vmem:[%s16012_s1 + $0x2c0] sm:$0xff] }
 0x32a   : > { %v9860_v20 = vpop.eup %9859  ;;  %v3426_v50 = vadd.s32 %v3425_v54, %v3421_v57  ;;  %v3487_v22 = vshll.u32 %v16177_v37, %v13328_v8  ;;  %v3488_v24 = vshrl.u32 %v16146_v26, %v3485_v4  ;;  %v3490_v9 = vshll.u32 %v16146_v26, %v13328_v8  ;;  %9529 = vmatmul.mubr.f32.gmra.mxu0 %v16207_v49  ;;  %v4324_v26 = vld [vmem:[%s16012_s1 + $0x2b8] sm:$0xff] }
 0x32b   : > { %v9862_v19 = vpop.eup %9861  ;;  %v3258_v10 = vxor.u32 2147483648, %v9860_v20  ;;  %v3342_v46 = vand.u32 2147483647, %v3341_v30  ;;  %v3493_v56 = vshll.u32 %v16147_v59, %v13328_v8  ;;  %v3491_v57 = vshrl.u32 %v16147_v59, %v3485_v4  ;;  %9531 = vmatprep.mubr.f32.mxu0 %v16208_v52  ;;  %v13393_v59 = vpop.f32.mrf.mxu1  ;;  %4484 = vmatpush2.msra.mxu0 %v4325_v36 }
 0x32c   : > { %v3255_v51 = vxor.u32 2147483648, %v9862_v19  ;;  %v3427_v43 = vadd.s32 536870912, %v3426_v50  ;;  %v3494_v23 = vshrl.u32 %v16166_v13, %v3485_v4  ;;  %v3496_v39 = vshll.u32 %v16166_v13, %v13328_v8  ;;  %v4323_v13 = vld [vmem:[%s16012_s1 + $0x2b0] sm:$0xff]  ;;  %4485 = vmatprep.subr.mxu0 %v4324_v26  ;;  %v4317_v26 = vld [vmem:[%s16012_s1 + $0x280] sm:$0xff] }
 0x32d   : > { %v3259_v53 = vsel %vm3257_vm7, %v3258_v10, %v9862_v19  ;;  %v3345_v40 = vmul.f32 %v3344_v32, %v3342_v46  ;;  %v3497_v63 = vshrl.u32 %v16168_v29, %v3485_v4  ;;  %v3486_v54 = vshrl.u32 %v16177_v37, %v3485_v4  ;;  %v4322_v37 = vld [vmem:[%s16012_s1 + $0x2a8] sm:$0xff]  ;;  %4486 = vmatpush2.msra.mxu0 %v4323_v13 }
 0x32e   : > { %v3256_v31 = vsel %vm3254_vm6, %v9860_v20, %v3255_v51  ;;  %v13397_v30 = vshrl.u32 %v3427_v43, 30  ;;  %v3489_v34 = vor.u32 %v3488_v24, %v3487_v22  ;;  %v3499_v10 = vshll.u32 %v16168_v29, %v13328_v8  ;;  %9532 = vmatmul.mubr.f32.gmra.mxu0 %v16209_v33  ;;  %v4321_v29 = vld [vmem:[%s16012_s1 + $0x2a0] sm:$0xff]  ;;  %4487 = vmatprep.subr.mxu0 %v4322_v37  ;;  %v4314_v37 = vld [vmem:[%s16012_s1 + $0x268] sm:$0xff] }
 0x32f   : > { %v3260_v32 = vsel %vm3253_vm4, %v3256_v31, %v3259_v53  ;;  %v3346_v19 = vxor.u32 2147483648, %v3345_v40  ;;  %v3500_v20 = vshrl.u32 %v16160_v61, %v3485_v4  ;;  %v3492_v46 = vor.u32 %v3491_v57, %v3490_v9  ;;  %v9982_v8 = vld [vmem:[%s10063_s7 + $0xe0] sm:$0xff]  ;;  %9534 = vmatprep.mubr.f32.mxu0 %v12572_v2  ;;  %v4320_v9 = vld [vmem:[%s16012_s1 + $0x298] sm:$0xff]  ;;  %v4319_v2 = vld [vmem:[%s16012_s1 + $0x290] sm:$0xff]  ;;  %4488 = vmatpush2.msra.mxu0 %v4321_v29 }
 0x330   : > { %v3261_v22 = vsel %vm3250_vm2, nan, %v3260_v32  ;;  %v3429_v24 = vshll.u32 %v13397_v30, 30  ;;  %v3495_v36 = vor.u32 %v3494_v23, %v3493_v56  ;;  %v3351_v38 = vsel %vm13343_vm5, 0, %v13363_v17  ;;  %v13428_v56 = vpop.f32.mrf.mxu1  ;;  %4489 = vmatprep.subr.mxu0 %v4320_v9 }
 0x331   : > { %v3602_v61 = vsub.f32 %v3261_v22, %v9982_v8  ;;  %v3347_v4 = vsel %vm3264_vm3, %v3346_v19, %v3345_v40  ;;  %v3498_v51 = vor.u32 %v3497_v63, %v3496_v39  ;;  %vm3502_vm9 = vcmp.lt.s32.totalorder %v13369_v3, 1  ;;  %4490 = vmatpush2.msra.mxu0 %v4319_v2 }
 0x332   : > { %v3350_v43 = vsel %vm13343_vm5, %v12878_v12, %v3347_v4  ;;  %v13433_v57 = vsub.s32 %v3426_v50, %v3429_v24  ;;  %vm3505_vm11 = vcmp.lt.s32.totalorder %v13369_v3, 4  ;;  %v3501_v23 = vor.u32 %v3500_v20, %v3499_v10  ;;  %9535 = vmatmul.mubr.f32.gmra.mxu0 %v12690_v58  ;;  %v13462_v58 = vpop.f32.mrf.mxu1  ;;  %4491 = vmatprep.subr.mxu0 %v4318_v14  ;;  %v16210_v20 = vld [vmem:[#allocation9_spill] sm:$0xff] }
 0x333   : > { %v3634_v17 = vmul.f32 %v13015_v60, %v3602_v61  ;;  %9863 = vcosq.f32 %v3350_v43  ;;  %vm3504_vm10 = vcmp.lt.s32.totalorder %v13369_v3, 3  ;;  %vm3503_vm12 = vcmp.lt.s32.totalorder %v13369_v3, 2  ;;  %9537 = vmatprep.mubr.f32.mxu0 %v12778_v11  ;;  %4492 = vmatpush2.msra.mxu0 %v4317_v26  ;;  %v4313_v61 = vld [vmem:[%s16012_s1 + $0x260] sm:$0xff]  ;;  %v4311_v3 = vld [vmem:[%s16012_s1 + $0x250] sm:$0xff] }
 0x334   : > { %9865 = vsinq.f32 %v3350_v43  ;;  %v3432_v50 = vsub.s32 0, %v13433_v57  ;;  %v3507_v49 = vsel %vm3505_vm11, %v3495_v36, 2102212464  ;;  %v3510_v40 = vsel %vm3502_vm9, %v3489_v34, %v3492_v46  ;;  %4493 = vmatprep.subr.mxu0 %v4316_v6 }
 0x335   : > { %v3666_v53 = vadd.f32 %v9982_v8, %v3634_v17  ;;  %v3511_v39 = vsel %vm3505_vm11, %v3498_v51, 920167782  ;;  %v13459_v63 = vshll.u32 %v3478_v16, 8  ;;  %v3506_v31 = vsel %vm3502_vm9, %v3486_v54, %v3489_v34  ;;  %v4315_v34 = vld [vmem:[%s16012_s1 + $0x270] sm:$0xff] }
 0x336   : > { %v9281_v52 = vmin.u32 %v3432_v50, %v13433_v57  ;;  %v3512_v13 = vsel %vm3504_vm10, %v3495_v36, %v3511_v39  ;;  %v3508_v11 = vsel %vm3504_vm10, %v3492_v46, %v3507_v49  ;;  %v3514_v32 = vsel %vm3502_vm9, %v3492_v46, %v3495_v36  ;;  %9538 = vmatmul.mubr.f32.gmra.mxu0 %v16210_v20  ;;  %v13496_v36 = vpop.f32.mrf.mxu1  ;;  %v4309_v50 = vld [vmem:[%s16012_s1 + $0x240] sm:$0xff] }
 0x337   : > { %4189 = vmatmul.mubr.f32.gmra.mxu1 %v3666_v53  ;;  %v3513_v16 = vsel %vm3503_vm12, %v3510_v40, %v3512_v13  ;;  %v3515_v54 = vsel %vm3505_vm11, %v3501_v23, 1326507024  ;;  %v3355_v19 = vadd.s32 3, %v3351_v38  ;;  %9540 = vmatprep.mubr.f32.mxu0 %v13021_v15  ;;  %v3509_v29 = vsel %vm3503_vm12, %v3506_v31, %v3508_v11  ;;  %v4312_v15 = vld [vmem:[%s16012_s1 + $0x258] sm:$0xff]  ;;  %v4310_v23 = vld [vmem:[%s16012_s1 + $0x248] sm:$0xff] }
 0x338   : > { %4194 = vmatprep.mubr.f32.mxu1 %v16162_v44  ;;  %v3434_v10 = vclz %v9281_v52  ;;  %v3516_v22 = vsel %vm3504_vm10, %v3498_v51, %v3515_v54  ;;  %v13491_v24 = vmul.u32.u64.low %v13459_v63, %v3513_v16  ;;  %v13492_v46 = vmul.u32.u64.high %v13459_v63, %v3513_v16, %v13491_v24  ;;  %4494 = vmatpush2.msra.mxu0 %v4315_v34  ;;  %v13523_v14 = vpop.f32.mrf.mxu1 }
 0x339   : > { %v3517_v8 = vsel %vm3503_vm12, %v3514_v32, %v3516_v22  ;;  %4495 = vmatprep.subr.mxu0 %v4314_v37  ;;  %v3356_v51 = vand.u32 3, %v3355_v19  ;;  %v3422_v9 = vadd.s32 %v13304_v1, %v13317_v48  ;;  %v3525_v2 = vmul.u32 %v13459_v63, %v3509_v29 }
 0x33a   : > { %v9282_v33 = vadd.s32 4294967294, %v3434_v10  ;;  %v13506_v4 = vmul.u32.u64.low %v13459_v63, %v3517_v8  ;;  %v13507_v38 = vmul.u32.u64.high %v13459_v63, %v3517_v8, %v13506_v4  ;;  %9541 = vmatmul.mubr.f32.gmra.mxu0 %v13192_v28  ;;  %v3528_v17 = vadd.s32 1, %v13492_v46  ;;  %v13532_v52 = vpop.f32.mrf.mxu1 }
 0x33b   : > { %9543 = vmatprep.mubr.f32.mxu0 %v3666_v53  ;;  %4496 = vmatpush2.msra.mxu0 %v4313_v61  ;;  %vm3361_vm15 = vcmp.eq.s32.totalorder %v3356_v51, 2  ;;  %vm3358_vm0 = vcmp.eq.s32.totalorder %v3356_v51, 0  ;;  %vm3357_vm1 = vcmp.lt.s32.totalorder %v3356_v51, 2  ;;  %vm3354_vm2 = vweird.f32 %v12878_v12 }
 0x33c   : > { %vm9283_vm13 = vcmp.lt.s32.totalorder %v9282_v33, 0  ;;  %4497 = vmatprep.subr.mxu0 %v4312_v15  ;;  %vm3527_vm14 = vc.u32 %v13507_v38, %v13491_v24  ;;  %v13539_v20 = vpop.f32.mrf.mxu1  ;;  %vm3368_vm3 = vcmp.lt.s32.totalorder %v12982_v47, 0  ;;  %v3452_v61 = vsub.s32 4, %v13397_v30 }
 0x33d   : > { %v3437_v43 = vsel %vm9283_vm13, 0, %v9282_v33  ;;  %4498 = vmatpush2.msra.mxu0 %v4311_v3  ;;  %v3529_v40 = vsel %vm3527_vm14, %v3528_v17, %v13492_v46  ;;  %v9983_v46 = vld [vmem:[%s10063_s7 + $0xe8] sm:$0xff]  ;;  %v16211_v51 = vand.u32 2147483647, %v12982_v47  ;;  %vm3458_vm9 = vweird.f32 %v12982_v47 }
 0x33e   : > { %v3438_v1 = vsub.s32 32, %v3437_v43  ;;  %v3439_v28 = vshll.u32 %v13433_v57, %v3437_v43  ;;  %v3442_v48 = vsub.s32 4294967266, %v3437_v43  ;;  %4499 = vmatprep.subr.mxu0 %v4310_v23  ;;  %v3530_v63 = vadd.s32 %v3529_v40, %v3525_v2  ;;  %v13546_v15 = vpop.f32.mrf.mxu1 }
 0x33f   : > { %4500 = vmatpush2.msra.mxu0 %v4309_v50  ;;  %vm13550_vm4 = vcmp.le.f32.partialorder %v16211_v51, 0.7853982  ;;  %v3453_v23 = vsel %vm3368_vm3, %v3452_v61, %v13397_v30  ;;  %v3526_v40 = vadd.s32 %v13491_v24, %v13507_v38  ;;  %vm3472_vm11 = vcmp.lt.s32.totalorder %v13138_v41, 0 }
 0x340   : > { %v9864_v49 = vpop.eup %9863  ;;  %v3440_v26 = vshrl.u32 %v3422_v9, %v3438_v1  ;;  %v3443_v53 = vadd.s32 127, %v3442_v48  ;;  %5882 = vmatprep.subr.mxu0 %v16162_v44  ;;  %v3531_v16 = vadd.s32 536870912, %v3530_v63  ;;  %v13558_v48 = vpop.f32.mrf.mxu1  ;;  %vm13578_vm10 = vcmp.le.f32.partialorder %v3470_v45, 0.7853982 }
 0x341   : > { %v9866_v39 = vpop.eup %9865  ;;  %v3362_v57 = vxor.u32 2147483648, %v9864_v49 }
 0x342   : > { %v3359_v31 = vxor.u32 2147483648, %v9866_v39  ;;  %v3441_v13 = vor.u32 %v3440_v26, %v3439_v28  ;;  %v3444_v6 = vshll.u32 %v3443_v53, 23  ;;  %v13537_v10 = vshrl.u32 %v3531_v16, 30  ;;  %v13563_v53 = vpop.f32.mrf.mxu1 }
 0x343   : > { %v3363_v11 = vsel %vm3361_vm15, %v3362_v57, %v9866_v39  ;;  %vm3562_vm15 = vweird.f32 %v13138_v41 }
 0x344   : > { %v3360_v32 = vsel %vm3358_vm0, %v9864_v49, %v3359_v31  ;;  %v3445_v54 = vor.u32 4788187, %v3444_v6  ;;  %v3448_v34 = vcvt.s32.f32 %v3441_v13  ;;  %v3533_v29 = vshll.u32 %v13537_v10, 30  ;;  %v13567_v13 = vpop.f32.mrf.mxu1 }
 0x345   : > { %v3364_v19 = vsel %vm3357_vm1, %v3360_v32, %v3363_v11  ;;  %v3455_v49 = vsel %vm13550_vm4, 0, %v3453_v23  ;;  %v3556_v51 = vsub.s32 4, %v13537_v10  ;;  %vm4340_vm0 = vcmask 588800  }
 0x346   : > { %v3365_v37 = vsel %vm3354_vm2, nan, %v3364_v19  ;;  %v3446_v22 = vand.u32 2147483647, %v3445_v54  ;;  %v3534_v4 = vsub.s32 %v3530_v63, %v3533_v29  ;;  %v3459_v30 = vadd.s32 3, %v3455_v49 }
 0x347   : > { %v3603_v33 = vsub.f32 %v3365_v37, %v9983_v46 }
 0x348   : > { %v3449_v8 = vmul.f32 %v3448_v34, %v3446_v22  ;;  %v3536_v2 = vsub.s32 0, %v3534_v4  ;;  %v3460_v6 = vand.u32 3, %v3459_v30  ;;  %v13569_v34 = vpop.f32.mrf.mxu1 }
 0x349   : > { %v3635_v12 = vmul.f32 %v13015_v60, %v3603_v33 }
 0x34a   : > { %v3450_v3 = vxor.u32 2147483648, %v3449_v8  ;;  %v9285_v28 = vmin.u32 %v3536_v2, %v3534_v4  ;;  %vm3465_vm6 = vcmp.eq.s32.totalorder %v3460_v6, 2  ;;  %vm3462_vm7 = vcmp.eq.s32.totalorder %v3460_v6, 0  ;;  %v13571_v29 = vpop.f32.mrf.mxu1 }
 0x34b   : > { %v3667_v43 = vadd.f32 %v9983_v46, %v3635_v12  ;;  %vm3461_vm8 = vcmp.lt.s32.totalorder %v3460_v6, 2 }
 0x34c   : > { %v3451_v17 = vsel %vm3368_vm3, %v3450_v3, %v3449_v8  ;;  %v3538_v50 = vclz %v9285_v28  ;;  %v13582_v2 = vpop.f32.mrf.mxu1  ;;  %v3557_v28 = vsel %vm3472_vm11, %v3556_v51, %v13537_v10  ;;  %v3946_v10 = vlaneseq }
 0x34d   : > { %4195 = vmatmul.mubr.f32.gmra.mxu1 %v3667_v43  ;;  %v3454_v1 = vsel %vm13550_vm4, %v12982_v47, %v3451_v17  ;;  %9544 = vmatmul.mubr.f32.gmra.mxu0 %v3667_v43  ;;  %v9984_v17 = vld [vmem:[%s10063_s7 + $0xf0] sm:$0xff] }
 0x34e   : > { %4200 = vmatprep.mubr.f32.mxu1 %v16162_v44  ;;  %9867 = vcosq.f32 %v3454_v1  ;;  %v9286_v26 = vadd.s32 4294967294, %v3538_v50  ;;  %v13590_v49 = vpop.f32.mrf.mxu1 }
 0x34f   : > { %9869 = vsinq.f32 %v3454_v1 }
 0x350   : > { %vm9287_vm5 = vcmp.lt.s32.totalorder %v9286_v26, 0  ;;  %v13595_v30 = vpop.f32.mrf.mxu1 }
 0x351   : > { %v3541_v39 = vsel %vm9287_vm5, 0, %v9286_v26  ;;  %v3559_v26 = vsel %vm13578_vm10, 0, %v3557_v28 }
 0x352   : > { %v3542_v57 = vsub.s32 32, %v3541_v39  ;;  %v3543_v63 = vshll.u32 %v3534_v4, %v3541_v39  ;;  %v3546_v31 = vsub.s32 4294967266, %v3541_v39 }
 0x354   : > { %v3544_v11 = vshrl.u32 %v3526_v40, %v3542_v57  ;;  %v3547_v16 = vadd.s32 127, %v3546_v31  ;;  %v13597_v40 = vpop.f32.mrf.mxu1  ;;  %v13599_v57 = vshrl.u32 %v3946_v10, 7 }
 0x356   : > { %v3545_v32 = vor.u32 %v3544_v11, %v3543_v63  ;;  %v3548_v54 = vshll.u32 %v3547_v16, 23  ;;  %16216 = vst [vmem:[#allocation2_spill] sm:$0xff] %v13599_v57  ;;  %v3952_v63 = vsub.s32 1, %v13599_v57  ;;  %v13602_v31 = vpop.f32.mrf.mxu1 }
 0x358   : > { %v3549_v37 = vor.u32 4788187, %v3548_v54  ;;  %v3552_v22 = vcvt.s32.f32 %v3545_v32  ;;  %v9288_v32 = vld [vmem:[%s16012_s1 + $0x130] ss:$8 sm:$0x3] }
 0x35a   : > { %v3550_v33 = vand.u32 2147483647, %v3549_v37 }
 0x35b   : > { %v9868_v19 = vpop.eup %9867 }
 0x35c   : > { %v9870_v46 = vpop.eup %9869  ;;  %v3466_v24 = vxor.u32 2147483648, %v9868_v19  ;;  %v3553_v61 = vmul.f32 %v3552_v22, %v3550_v33  ;;  %v13613_v22 = vsub.s32 0, %v13599_v57 }
 0x35d   : > { %v3463_v38 = vxor.u32 2147483648, %v9870_v46 }
 0x35e   : > { %v3467_v8 = vsel %vm3465_vm6, %v3466_v24, %v9870_v46  ;;  %v3554_v43 = vxor.u32 2147483648, %v3553_v61  ;;  %16217 = vst [vmem:[#allocation3_spill] sm:$0xff] %v13613_v22  ;;  %v13615_v46 = vpop.f32.mrf.mxu1  ;;  %vm5807_vm6 = vcmask 1041409  }
 0x35f   : > { %v3464_v12 = vsel %vm3462_vm7, %v9868_v19, %v3463_v38  ;;  %v13609_v19 = vrot.slane %v9288_v32, %v3952_v63 }
 0x360   : > { %v3468_v4 = vsel %vm3461_vm8, %v3464_v12, %v3467_v8  ;;  %v3555_v23 = vsel %vm3472_vm11, %v3554_v43, %v3553_v61  ;;  %v13621_v61 = vrot.slane %v9288_v32, %v13613_v22  ;;  %vm5809_vm8 = vcmask 1042434  }
 0x361   : > { %v3469_v9 = vsel %vm3458_vm9, nan, %v3468_v4  ;;  %v3558_v50 = vsel %vm13578_vm10, %v13138_v41, %v3555_v23  ;;  %v4025_v8 = vadd.f32 %v13120_v35, %v13609_v19  ;;  %v13623_v4 = vpop.f32.mrf.mxu1  ;;  %v9985_v41 = vld [vmem:[%s16012_s1 + $0x20] ss:$0 sm:$0xff]  ;;  %v4031_v3 = vadd.f32 %v13178_v7, %v13609_v19 }
 0x362   : > { %v3604_v47 = vsub.f32 %v3469_v9, %v9984_v17  ;;  %9871 = vcosq.f32 %v3558_v50  ;;  %v4023_v35 = vadd.f32 %v13081_v42, %v13621_v61  ;;  %v4037_v23 = vadd.f32 %v13231_v27, %v13609_v19 }
 0x363   : > { %9873 = vsinq.f32 %v3558_v50  ;;  %v4214_v9 = vmax.f32 %v4025_v8, 0.0  ;;  %v4029_v7 = vadd.f32 %v13151_v55, %v13621_v61  ;;  %v4043_v42 = vadd.f32 %v13299_v25, %v13609_v19 }
 0x364   : > { %v3636_v1 = vmul.f32 %v13015_v60, %v3604_v47  ;;  %v3563_v60 = vadd.s32 3, %v3559_v26  ;;  %v4216_v47 = vmax.f32 %v4031_v3, 0.0  ;;  %v4049_v55 = vadd.f32 %v13367_v62, %v13609_v19 }
 0x365   : > { %v4215_v50 = vmax.f32 %v4029_v7, 0.0  ;;  %v4220_v27 = vmax.f32 %v4043_v42, 0.0  ;;  %v4041_v10 = vadd.f32 %v13258_v21, %v13621_v61  ;;  %v4061_v21 = vadd.f32 %v13496_v36, %v13609_v19 }
 0x366   : > { %v3668_v45 = vadd.f32 %v9984_v17, %v3636_v1  ;;  %v3564_v39 = vand.u32 3, %v3563_v60  ;;  %v13633_v17 = vpop.f32.mrf.mxu1  ;;  %v4213_v1 = vmax.f32 %v4023_v35, 0.0  ;;  %v4222_v25 = vmax.f32 %v4049_v55, 0.0 }
 0x367   : > { %v4077_v35 = vadd.f32 %v13558_v48, %v13621_v61  ;;  %v4097_v48 = vadd.f32 %v13595_v30, %v13609_v19  ;;  %v4089_v42 = vadd.f32 %v13571_v29, %v13621_v61  ;;  %v4109_v29 = vadd.f32 %v13623_v4, %v13609_v19 }
 0x368   : > { %4201 = vmatmul.mubr.f32.gmra.mxu1 %v3668_v45  ;;  %9546 = vmatprep.mubr.f32.mxu0 %v3668_v45  ;;  %vm3569_vm12 = vcmp.eq.s32.totalorder %v3564_v39, 2  ;;  %vm3566_vm13 = vcmp.eq.s32.totalorder %v3564_v39, 0  ;;  %vm3565_vm14 = vcmp.lt.s32.totalorder %v3564_v39, 2  ;;  %v13640_v28 = vpop.f32.mrf.mxu1  ;;  %v4035_v45 = vadd.f32 %v13197_v0, %v13621_v61 }
 0x369   : > { %4206 = vmatprep.mubr.f32.mxu1 %v16162_v44  ;;  %v4055_v0 = vadd.f32 %v13428_v56, %v13609_v19  ;;  %v4226_v56 = vmax.f32 %v4061_v21, 0.0  ;;  %v4113_v21 = vadd.f32 %v13633_v17, %v13621_v61  ;;  %vm5811_vm10 = vcmask 1043459  }
 0x36a   : > { %v13647_v26 = vpop.f32.mrf.mxu1  ;;  %v4217_v60 = vmax.f32 %v4035_v45, 0.0  ;;  %v4235_v45 = vmax.f32 %v4089_v42, 0.0 }
 0x36b   : > { %v4224_v62 = vmax.f32 %v4055_v0, 0.0 }
 0x36c   : > { %v13654_v39 = vpop.f32.mrf.mxu1 }
 0x36f   : > { %v9872_v6 = vpop.eup %9871 }
 0x370   : > { %v9874_v11 = vpop.eup %9873  ;;  %v3570_v16 = vxor.u32 2147483648, %v9872_v6 }
 0x371   : > { %v3567_v54 = vxor.u32 2147483648, %v9874_v11 }
 0x372   : > { %v3571_v37 = vsel %vm3569_vm12, %v3570_v16, %v9874_v11  ;;  %v4047_v11 = vadd.f32 %v13331_v5, %v13621_v61  ;;  %v13661_v16 = vpop.f32.mrf.mxu1  ;;  %v4067_v5 = vadd.f32 %v13532_v52, %v13609_v19 }
 0x373   : > { %v3568_v24 = vsel %vm3566_vm13, %v9872_v6, %v3567_v54  ;;  %v4219_v6 = vmax.f32 %v4041_v10, 0.0  ;;  %v4053_v54 = vadd.f32 %v13393_v59, %v13621_v61  ;;  %v4073_v59 = vadd.f32 %v13546_v15, %v13609_v19 }
 0x374   : > { %v3572_v38 = vsel %vm3565_vm14, %v3568_v24, %v3571_v37  ;;  %v4221_v32 = vmax.f32 %v4047_v11, 0.0  ;;  %v13668_v37 = vpop.f32.mrf.mxu1  ;;  %v4228_v36 = vmax.f32 %v4067_v5, 0.0  ;;  %v4101_v10 = vadd.f32 %v13597_v40, %v13621_v61 }
 0x375   : > { %v3573_v33 = vsel %vm3562_vm15, nan, %v3572_v38  ;;  %v4223_v24 = vmax.f32 %v4053_v54, 0.0  ;;  %v4059_v38 = vadd.f32 %v13462_v58, %v13621_v61  ;;  %v4230_v52 = vmax.f32 %v4073_v59, 0.0 }
 0x376   : > { %v3605_v12 = vsub.f32 %v3573_v33, %v13069_v18  ;;  %v13675_v33 = vpop.f32.mrf.mxu1  ;;  %v4079_v58 = vadd.f32 %v13563_v53, %v13609_v19  ;;  %v4239_v0 = vmax.f32 %v4101_v10, 0.0  ;;  %v4121_v40 = vadd.f32 %v13654_v39, %v13609_v19 }
 0x377   : > { %v4225_v8 = vmax.f32 %v4059_v38, 0.0  ;;  %v4125_v39 = vadd.f32 %v13661_v16, %v13621_v61 }
 0x378   : > { %v3637_v51 = vmul.f32 %v9985_v41, %v3605_v12  ;;  %v4065_v12 = vadd.f32 %v13523_v14, %v13621_v61  ;;  %v13682_v41 = vpop.f32.mrf.mxu1  ;;  %v4232_v15 = vmax.f32 %v4079_v58, 0.0  ;;  %v4085_v14 = vadd.f32 %v13569_v34, %v13609_v19 }
 0x379   : > { %v4246_v54 = vmax.f32 %v4121_v40, 0.0  ;;  %v5724_v40 = vld [vmem:[%s16012_s1 + $0x440] sm:$0xff] }
 0x37a   : > { %v3669_v43 = vadd.f32 %v3637_v51, %v13069_v18  ;;  %v4218_v18 = vmax.f32 %v4037_v23, 0.0  ;;  %v4227_v51 = vmax.f32 %v4065_v12, 0.0  ;;  %v13689_v3 = vpop.f32.mrf.mxu1  ;;  %v4234_v53 = vmax.f32 %v4085_v14, 0.0 }
 0x37b   : > { %v4231_v23 = vmax.f32 %v4077_v35, 0.0 }
 0x37c   : > { %4207 = vmatmul.mubr.f32.gmra.mxu1 %v3669_v43  ;;  %9547 = vmatmul.mubr.f32.gmra.mxu0 %v3669_v43 }
 0x37d   : > { %9290 = vmatprep.mubr.msk.f32.mxu0 %vm4340_vm0, %v4214_v9  ;;  %v4071_v9 = vadd.f32 %v13539_v20, %v13621_v61  ;;  %v4091_v20 = vadd.f32 %v13582_v2, %v13609_v19  ;;  %v4238_v2 = vmax.f32 %v4097_v48, 0.0 }
 0x37f   : > { %v4229_v43 = vmax.f32 %v4071_v9, 0.0  ;;  %v4236_v34 = vmax.f32 %v4091_v20, 0.0 }
 0x380   : > { %4502 = vmatmul.mubr.f32.vlgmr.msra.gmra.mxu0 %v4213_v1  ;;  %v4083_v1 = vadd.f32 %v13567_v13, %v13621_v61  ;;  %v4103_v13 = vadd.f32 %v13602_v31, %v13609_v19  ;;  %v4242_v31 = vmax.f32 %v4109_v29, 0.0 }
 0x381   : > { %9291 = vmatprep.mubr.msk.f32.mxu0 %vm4340_vm0, %v4216_v47  ;;  %v4138_v47 = vpop.f32.mrf.mxu1 }
 0x382   : > { %v4240_v30 = vmax.f32 %v4103_v13, 0.0  ;;  %v5727_v13 = vld [vmem:[%s16012_s1 + $0x470] sm:$0xff] }
 0x383   : > { %v13701_v7 = vpop.f32.mrf.mxu1 }
 0x384   : > { %4508 = vmatmul.mubr.f32.gmra.mxu0 %v4215_v50 }
 0x385   : > { %9292 = vmatprep.mubr.msk.f32.mxu0 %vm4340_vm0, %v4218_v18  ;;  %v4233_v18 = vmax.f32 %v4083_v1, 0.0  ;;  %v4144_v50 = vpop.f32.mrf.mxu1  ;;  %v5729_v1 = vld [vmem:[%s16012_s1 + $0x490] sm:$0xff] }
 0x387   : > { %v13713_v55 = vpop.f32.mrf.mxu1 }
 0x388   : > { %4514 = vmatmul.mubr.f32.gmra.mxu0 %v4217_v60 }
 0x389   : > { %9293 = vmatprep.mubr.msk.f32.mxu0 %vm4340_vm0, %v4220_v27  ;;  %v4095_v27 = vadd.f32 %v13590_v49, %v13621_v61  ;;  %v4115_v49 = vadd.f32 %v13640_v28, %v13609_v19  ;;  %v4119_v28 = vadd.f32 %v13647_v26, %v13621_v61  ;;  %v4133_v26 = vadd.f32 %v13682_v41, %v13609_v19  ;;  %v5733_v41 = vld [vmem:[%s16012_s1 + $0x4d0] sm:$0xff] }
 0x38a   : > { %6100 = vmatpush1.msra.mxu1 %v5733_v41  ;;  %5883 = vmatpush1.msra.mxu0 %v5733_v41 }
 0x38b   : > { %v4237_v60 = vmax.f32 %v4095_v27, 0.0  ;;  %v4244_v4 = vmax.f32 %v4115_v49, 0.0  ;;  %v4250_v59 = vmax.f32 %v4133_v26, 0.0  ;;  %6101 = vmatprep.subr.mxu1 %v16162_v44  ;;  %5884 = vmatprep.subr.mxu0 %v16162_v44 }
 0x38c   : > { %4520 = vmatmul.mubr.f32.gmra.mxu0 %v4219_v6  ;;  %v4107_v6 = vadd.f32 %v13615_v46, %v13621_v61  ;;  %v4127_v46 = vadd.f32 %v13668_v37, %v13609_v19  ;;  %v4131_v37 = vadd.f32 %v13675_v33, %v13621_v61  ;;  %v5732_v33 = vld [vmem:[%s16012_s1 + $0x4c0] sm:$0xff] }
 0x38d   : > { %9294 = vmatprep.mubr.msk.f32.mxu0 %vm4340_vm0, %v4222_v25  ;;  %v4150_v25 = vpop.f32.mrf.mxu1  ;;  %6102 = vmatpush1.msra.mxu1 %v5732_v33 }
 0x38e   : > { %v4248_v17 = vmax.f32 %v4127_v46, 0.0  ;;  %v4249_v12 = vmax.f32 %v4131_v37, 0.0  ;;  %6103 = vmatprep.subr.mxu1 %v16162_v44  ;;  %v4151_v20 = vadd.f32 %v4150_v25, %v13609_v19  ;;  %5885 = vmatpush1.msra.mxu0 %v5732_v33  ;;  %v5723_v46 = vld [vmem:[%s16012_s1 + $0x430] sm:$0xff] }
 0x38f   : > { %v13725_v11 = vpop.f32.mrf.mxu1  ;;  %5886 = vmatprep.subr.mxu0 %v16162_v44 }
 0x390   : > { %4526 = vmatmul.mubr.f32.gmra.mxu0 %v4221_v32  ;;  %v4256_v42 = vmax.f32 %v4151_v20, 0.0  ;;  %v4155_v27 = vadd.f32 %v13725_v11, %v13621_v61 }
 0x391   : > { %9295 = vmatprep.mubr.msk.f32.mxu0 %vm4340_vm0, %v4224_v62  ;;  %v4241_v62 = vmax.f32 %v4107_v6, 0.0  ;;  %v4156_v32 = vpop.f32.mrf.mxu1 }
 0x392   : > { %v4257_v25 = vmax.f32 %v4155_v27, 0.0  ;;  %v5718_v27 = vld [vmem:[%s16012_s1 + $0x3e0] sm:$0xff] }
 0x393   : > { %v13737_v5 = vpop.f32.mrf.mxu1 }
 0x394   : > { %4532 = vmatmul.mubr.f32.gmra.mxu0 %v4223_v24  ;;  %v4245_v24 = vmax.f32 %v4119_v28, 0.0 }
 0x395   : > { %9296 = vmatprep.mubr.msk.f32.mxu0 %vm4340_vm0, %v4226_v56  ;;  %v4243_v56 = vmax.f32 %v4113_v21, 0.0  ;;  %v13744_v38 = vpop.f32.mrf.mxu1 }
 0x396   : > { %v4163_v29 = vadd.f32 %v13744_v38, %v13609_v19  ;;  %v5722_v38 = vld [vmem:[%s16012_s1 + $0x420] sm:$0xff] }
 0x397   : > { %v13750_v16 = vpop.f32.mrf.mxu1 }
 0x398   : > { %4538 = vmatmul.mubr.f32.gmra.mxu0 %v4225_v8  ;;  %v4139_v8 = vadd.f32 %v4138_v47, %v13609_v19  ;;  %v5730_v47 = vld [vmem:[%s16012_s1 + $0x4a0] sm:$0xff]  ;;  %v4260_v6 = vmax.f32 %v4163_v29, 0.0  ;;  %v4167_v21 = vadd.f32 %v13750_v16, %v13621_v61 }
 0x399   : > { %9297 = vmatprep.mubr.msk.f32.mxu0 %vm4340_vm0, %v4228_v36  ;;  %v4247_v36 = vmax.f32 %v4125_v39, 0.0 }
 0x39a   : > { %v4252_v58 = vmax.f32 %v4139_v8, 0.0 }
 0x39c   : > { %4544 = vmatmul.mubr.f32.gmra.mxu0 %v4227_v51  ;;  %v4145_v51 = vadd.f32 %v4144_v50, %v13609_v19  ;;  %v4157_v50 = vadd.f32 %v4156_v32, %v13609_v19 }
 0x39d   : > { %9298 = vmatprep.mubr.msk.f32.mxu0 %vm4340_vm0, %v4230_v52  ;;  %v4137_v52 = vadd.f32 %v13689_v3, %v13621_v61  ;;  %v5731_v3 = vld [vmem:[%s16012_s1 + $0x4b0] sm:$0xff] }
 0x39e   : > { %6104 = vmatpush1.msra.mxu1 %v5731_v3  ;;  %5887 = vmatpush1.msra.mxu0 %v5731_v3  ;;  %v5721_v3 = vld [vmem:[%s16012_s1 + $0x410] sm:$0xff] }
 0x39f   : > { %v4251_v14 = vmax.f32 %v4137_v52, 0.0  ;;  %6105 = vmatprep.subr.mxu1 %v16162_v44  ;;  %5888 = vmatprep.subr.mxu0 %v16162_v44 }
 0x3a0   : > { %4550 = vmatmul.mubr.f32.gmra.mxu0 %v4229_v43  ;;  %v4143_v43 = vadd.f32 %v13701_v7, %v13621_v61  ;;  %6106 = vmatpush1.msra.mxu1 %v5730_v47 }
 0x3a1   : > { %9299 = vmatprep.mubr.msk.f32.mxu0 %vm4340_vm0, %v4232_v15  ;;  %v4168_v15 = vpop.f32.mrf.mxu1  ;;  %6107 = vmatprep.subr.mxu1 %v16162_v44 }
 0x3a2   : > { %v4253_v7 = vmax.f32 %v4143_v43, 0.0  ;;  %6108 = vmatpush1.msra.mxu1 %v5729_v1  ;;  %5889 = vmatpush1.msra.mxu0 %v5730_v47  ;;  %v4169_v11 = vadd.f32 %v4168_v15, %v13609_v19  ;;  %v5720_v47 = vld [vmem:[%s16012_s1 + $0x400] sm:$0xff] }
 0x3a3   : > { %6109 = vmatprep.subr.mxu1 %v16162_v44  ;;  %5890 = vmatprep.subr.mxu0 %v16162_v44 }
 0x3a4   : > { %4556 = vmatmul.mubr.f32.gmra.mxu0 %v4231_v23  ;;  %v13779_v23 = vpop.f32.mrf.mxu1  ;;  %v4262_v28 = vmax.f32 %v4169_v11, 0.0 }
 0x3a5   : > { %9300 = vmatprep.mubr.msk.f32.mxu0 %vm4340_vm0, %v4234_v53  ;;  %v4254_v53 = vmax.f32 %v4145_v51, 0.0  ;;  %5891 = vmatpush1.msra.mxu0 %v5729_v1 }
 0x3a6   : > { %5892 = vmatprep.subr.mxu0 %v16162_v44 }
 0x3a8   : > { %4562 = vmatmul.mubr.f32.gmra.mxu0 %v4233_v18  ;;  %v5728_v18 = vld [vmem:[%s16012_s1 + $0x480] sm:$0xff] }
 0x3a9   : > { %9301 = vmatprep.mubr.msk.f32.mxu0 %vm4340_vm0, %v4236_v34  ;;  %v4149_v34 = vadd.f32 %v13713_v55, %v13621_v61  ;;  %6110 = vmatpush1.msra.mxu1 %v5728_v18 }
 0x3aa   : > { %6111 = vmatprep.subr.mxu1 %v16162_v44  ;;  %5893 = vmatpush1.msra.mxu0 %v5728_v18 }
 0x3ab   : > { %6112 = vmatpush1.msra.mxu1 %v5727_v13  ;;  %5894 = vmatprep.subr.mxu0 %v16162_v44 }
 0x3ac   : > { %4568 = vmatmul.mubr.f32.gmra.mxu0 %v4235_v45  ;;  %v4255_v45 = vmax.f32 %v4149_v34, 0.0  ;;  %6113 = vmatprep.subr.mxu1 %v16162_v44 }
 0x3ad   : > { %9302 = vmatprep.mubr.msk.f32.mxu0 %vm4340_vm0, %v4238_v2  ;;  %v4174_v2 = vpop.f32.mrf.mxu1  ;;  %5895 = vmatpush1.msra.mxu0 %v5727_v13 }
 0x3ae   : > { %5896 = vmatprep.subr.mxu0 %v16162_v44 }
 0x3b0   : > { %4574 = vmatmul.mubr.f32.gmra.mxu0 %v4237_v60  ;;  %v5726_v60 = vld [vmem:[%s16012_s1 + $0x460] sm:$0xff] }
 0x3b1   : > { %9303 = vmatprep.mubr.msk.f32.mxu0 %vm4340_vm0, %v4240_v30  ;;  %v4258_v30 = vmax.f32 %v4157_v50, 0.0  ;;  %6114 = vmatpush1.msra.mxu1 %v5726_v60 }
 0x3b2   : > { %6115 = vmatprep.subr.mxu1 %v16162_v44  ;;  %5897 = vmatpush1.msra.mxu0 %v5726_v60 }
 0x3b3   : > { %5898 = vmatprep.subr.mxu0 %v16162_v44 }
 0x3b4   : > { %4580 = vmatmul.mubr.f32.gmra.mxu0 %v4239_v0  ;;  %v5725_v0 = vld [vmem:[%s16012_s1 + $0x450] sm:$0xff] }
 0x3b5   : > { %9304 = vmatprep.mubr.msk.f32.mxu0 %vm4340_vm0, %v4242_v31  ;;  %v4161_v31 = vadd.f32 %v13737_v5, %v13621_v61  ;;  %6116 = vmatpush1.msra.mxu1 %v5725_v0  ;;  %v4261_v5 = vmax.f32 %v4167_v21, 0.0 }
 0x3b6   : > { %6117 = vmatprep.subr.mxu1 %v16162_v44  ;;  %5899 = vmatpush1.msra.mxu0 %v5725_v0 }
 0x3b7   : > { %6118 = vmatpush1.msra.mxu1 %v5724_v40  ;;  %5900 = vmatprep.subr.mxu0 %v16162_v44 }
 0x3b8   : > { %4586 = vmatmul.mubr.f32.gmra.mxu0 %v4241_v62  ;;  %v4259_v62 = vmax.f32 %v4161_v31, 0.0  ;;  %6119 = vmatprep.subr.mxu1 %v16162_v44 }
 0x3b9   : > { %9305 = vmatprep.mubr.msk.f32.mxu0 %vm4340_vm0, %v4244_v4  ;;  %6120 = vmatpush1.msra.mxu1 %v5723_v46 }
 0x3ba   : > { %6121 = vmatprep.subr.mxu1 %v16162_v44  ;;  %5901 = vmatpush1.msra.mxu0 %v5724_v40 }
 0x3bb   : > { %6122 = vmatpush1.msra.mxu1 %v5722_v38  ;;  %5902 = vmatprep.subr.mxu0 %v16162_v44 }
 0x3bc   : > { %4592 = vmatmul.mubr.f32.gmra.mxu0 %v4243_v56  ;;  %6123 = vmatprep.subr.mxu1 %v16162_v44 }
 0x3bd   : > { %9306 = vmatprep.mubr.msk.f32.mxu0 %vm4340_vm0, %v4246_v54  ;;  %v4175_v54 = vadd.f32 %v4174_v2, %v13609_v19  ;;  %5903 = vmatpush1.msra.mxu0 %v5723_v46  ;;  %v5719_v2 = vld [vmem:[%s16012_s1 + $0x3f0] sm:$0xff] }
 0x3be   : > { %5904 = vmatprep.subr.mxu0 %v16162_v44  ;;  %6124 = vmatpush1.msra.mxu1 %v5721_v3 }
 0x3bf   : > { %5905 = vmatpush1.msra.mxu0 %v5722_v38  ;;  %6125 = vmatprep.subr.mxu1 %v16162_v44 }
 0x3c0   : > { %4598 = vmatmul.mubr.f32.gmra.mxu0 %v4245_v24  ;;  %v4173_v24 = vadd.f32 %v13779_v23, %v13621_v61  ;;  %5906 = vmatprep.subr.mxu0 %v16162_v44 }
 0x3c1   : > { %9307 = vmatprep.mubr.msk.f32.mxu0 %vm4340_vm0, %v4248_v17  ;;  %v4264_v17 = vmax.f32 %v4175_v54, 0.0  ;;  %5907 = vmatpush1.msra.mxu0 %v5721_v3 }
 0x3c2   : > { %v4178_v10 = vpop.f32.mrf.mxu1  ;;  %v4263_v37 = vmax.f32 %v4173_v24, 0.0  ;;  %5908 = vmatprep.subr.mxu0 %v16162_v44  ;;  %6126 = vmatpush1.msra.mxu1 %v5720_v47 }
 0x3c3   : > { %v13762_v9 = vpop.f32.mrf.mxu0  ;;  %5909 = vmatpush1.msra.mxu0 %v5720_v47  ;;  %6127 = vmatprep.subr.mxu1 %v16162_v44  ;;  %v5734_v47 = vld [vmem:[%s16012_s1 + $0x4e0] sm:$0xff] }
 0x3c4   : > { %4604 = vmatmul.mubr.f32.gmra.mxu0 %v4247_v36  ;;  %16218 = vst [vmem:[#allocation4_spill] sm:$0xff] %v13762_v9  ;;  %v4180_v4 = vpop.f32.mrf.mxu1  ;;  %5910 = vmatprep.subr.mxu0 %v16162_v44 }
 0x3c5   : > { %9308 = vmatprep.mubr.msk.f32.mxu0 %vm4340_vm0, %v4250_v59  ;;  %v13771_v35 = vpop.f32.mrf.mxu0  ;;  %v4181_v26 = vadd.f32 %v4180_v4, %v13609_v19  ;;  %v4179_v59 = vadd.f32 %v4178_v10, %v13621_v61  ;;  %6128 = vmatpush1.msra.mxu1 %v5719_v2  ;;  %v5742_v4 = vld [vmem:[%s16012_s1 + $0x560] sm:$0xff] }
 0x3c6   : > { %16219 = vst [vmem:[#allocation5_spill] sm:$0xff] %v13771_v35  ;;  %5911 = vmatpush1.msra.mxu0 %v5719_v2  ;;  %6129 = vmatprep.subr.mxu1 %v16162_v44 }
 0x3c7   : > { %v13788_v48 = vpop.f32.mrf.mxu0  ;;  %v4266_v16 = vmax.f32 %v4181_v26, 0.0  ;;  %v4265_v52 = vmax.f32 %v4179_v59, 0.0  ;;  %5912 = vmatprep.subr.mxu0 %v16162_v44  ;;  %6130 = vmatpush1.msra.mxu1 %v5718_v27 }
 0x3c8   : > { %4610 = vmatmul.mubr.f32.gmra.mxu0 %v4249_v12  ;;  %16220 = vst [vmem:[#allocation6_spill] sm:$0xff] %v13788_v48  ;;  %6145 = vmatprep.subr.mxu1 %v16162_v44 }
 0x3c9   : > { %9309 = vmatprep.mubr.msk.f32.mxu0 %vm4340_vm0, %v4252_v58  ;;  %v13803_v55 = vpop.f32.mrf.mxu0  ;;  %5913 = vmatpush1.msra.mxu0 %v5718_v27 }
 0x3ca   : > { %16221 = vst [vmem:[#allocation7_spill] sm:$0xff] %v13803_v55  ;;  %5928 = vmatprep.subr.mxu0 %v16162_v44  ;;  %6146 = vmatpush2.msra.mxu1 %v5742_v4 }
 0x3cb   : > { %v13816_v49 = vpop.f32.mrf.mxu0  ;;  %5929 = vmatpush2.msra.mxu0 %v5742_v4  ;;  %6147 = vmatprep.subr.mxu1 %v16162_v44 }
 0x3cc   : > { %4616 = vmatmul.mubr.f32.gmra.mxu0 %v4251_v14  ;;  %16222 = vst [vmem:[#allocation8_spill] sm:$0xff] %v13816_v49  ;;  %5930 = vmatprep.subr.mxu0 %v16162_v44 }
 0x3cd   : > { %9310 = vmatprep.mubr.msk.f32.mxu0 %vm4340_vm0, %v4254_v53  ;;  %v13831_v32 = vpop.f32.mrf.mxu0 }
 0x3ce   : > { %16223 = vst [vmem:[#allocation9_spill] sm:$0xff] %v13831_v32 }
 0x3cf   : > { %v13843_v39 = vpop.f32.mrf.mxu0 }
 0x3d0   : > { %4622 = vmatmul.mubr.f32.gmra.mxu0 %v4253_v7  ;;  %16224 = vst [vmem:[#allocation10_spill] sm:$0xff] %v13843_v39 }
 0x3d1   : > { %9311 = vmatprep.mubr.msk.f32.mxu0 %vm4340_vm0, %v4256_v42  ;;  %v13854_v8 = vpop.f32.mrf.mxu0 }
 0x3d2   : > { %16225 = vst [vmem:[#allocation11_spill] sm:$0xff] %v13854_v8 }
 0x3d3   : > { %v13861_v33 = vpop.f32.mrf.mxu0 }
 0x3d4   : > { %4628 = vmatmul.mubr.f32.gmra.mxu0 %v4255_v45  ;;  %16226 = vst [vmem:[#allocation12_spill] sm:$0xff] %v13861_v33 }
 0x3d5   : > { %9312 = vmatprep.mubr.msk.f32.mxu0 %vm4340_vm0, %v4258_v30  ;;  %v13866_v15 = vpop.f32.mrf.mxu0 }
 0x3d6   : > { %16227 = vst [vmem:[#allocation13_spill] sm:$0xff] %v13866_v15 }
 0x3d7   : > { %v4184_v56 = vpop.f32.mrf.mxu1  ;;  %v13872_v14 = vpop.f32.mrf.mxu0 }
 0x3d8   : > { %4634 = vmatmul.mubr.f32.gmra.mxu0 %v4257_v25  ;;  %v4185_v41 = vadd.f32 %v4184_v56, %v13621_v61  ;;  %16228 = vst [vmem:[#allocation14_spill] sm:$0xff] %v13872_v14  ;;  %v5739_v56 = vld [vmem:[%s16012_s1 + $0x530] sm:$0xff] }
 0x3d9   : > { %9313 = vmatprep.mubr.msk.f32.mxu0 %vm4340_vm0, %v4260_v6  ;;  %v4186_v36 = vpop.f32.mrf.mxu1  ;;  %v13876_v43 = vpop.f32.mrf.mxu0 }
 0x3da   : > { %v4187_v12 = vadd.f32 %v4186_v36, %v13609_v19  ;;  %v4267_v51 = vmax.f32 %v4185_v41, 0.0  ;;  %16229 = vst [vmem:[#allocation15_spill] sm:$0xff] %v13876_v43 }
 0x3db   : > { %v13883_v20 = vpop.f32.mrf.mxu0 }
 0x3dc   : > { %4640 = vmatmul.mubr.f32.gmra.mxu0 %v4259_v62  ;;  %v4268_v58 = vmax.f32 %v4187_v12, 0.0  ;;  %16230 = vst [vmem:[#allocation16_spill] sm:$0xff] %v13883_v20  ;;  %v5741_v62 = vld [vmem:[%s16012_s1 + $0x550] sm:$0xff] }
 0x3dd   : > { %9314 = vmatprep.mubr.msk.f32.mxu0 %vm4340_vm0, %v4262_v28  ;;  %v13887_v18 = vpop.f32.mrf.mxu0  ;;  %5931 = vmatpush2.msra.mxu0 %v5741_v62  ;;  %v5740_v28 = vld [vmem:[%s16012_s1 + $0x540] sm:$0xff]  ;;  %v5737_v12 = vld [vmem:[%s16012_s1 + $0x510] sm:$0xff] }
 0x3de   : > { %16231 = vst [vmem:[#allocation17_spill] sm:$0xff] %v13887_v18  ;;  %6148 = vmatpush2.msra.mxu1 %v5741_v62  ;;  %5932 = vmatprep.subr.mxu0 %v16162_v44 }
 0x3df   : > { %6149 = vmatprep.subr.mxu1 %v16162_v44  ;;  %5933 = vmatpush2.msra.mxu0 %v5740_v28 }
 0x3e0   : > { %4646 = vmatmul.mubr.f32.gmra.mxu0 %v4261_v5  ;;  %6150 = vmatpush2.msra.mxu1 %v5740_v28  ;;  %v5738_v5 = vld [vmem:[%s16012_s1 + $0x520] sm:$0xff] }
 0x3e1   : > { %9315 = vmatprep.mubr.msk.f32.mxu0 %vm4340_vm0, %v4264_v17  ;;  %v13890_v50 = vpop.f32.mrf.mxu0  ;;  %5934 = vmatprep.subr.mxu0 %v16162_v44 }
 0x3e2   : > { %16232 = vst [vmem:[#allocation18_spill] sm:$0xff] %v13890_v50  ;;  %6151 = vmatprep.subr.mxu1 %v16162_v44  ;;  %5935 = vmatpush2.msra.mxu0 %v5739_v56 }
 0x3e3   : > { %v13895_v13 = vpop.f32.mrf.mxu0  ;;  %6152 = vmatpush2.msra.mxu1 %v5739_v56  ;;  %5936 = vmatprep.subr.mxu0 %v16162_v44 }
 0x3e4   : > { %4652 = vmatmul.mubr.f32.gmra.mxu0 %v4263_v37  ;;  %16233 = vst [vmem:[#allocation19_spill] sm:$0xff] %v13895_v13  ;;  %6153 = vmatprep.subr.mxu1 %v16162_v44 }
 0x3e5   : > { %9316 = vmatprep.mubr.msk.f32.mxu0 %vm4340_vm0, %v4266_v16  ;;  %5937 = vmatpush2.msra.mxu0 %v5738_v5 }
 0x3e6   : > { %v13899_v45 = vpop.f32.mrf.mxu0  ;;  %6154 = vmatpush2.msra.mxu1 %v5738_v5  ;;  %5938 = vmatprep.subr.mxu0 %v16162_v44 }
 0x3e7   : > { %16234 = vst [vmem:[#allocation20_spill] sm:$0xff] %v13899_v45  ;;  %6155 = vmatprep.subr.mxu1 %v16162_v44  ;;  %5939 = vmatpush2.msra.mxu0 %v5737_v12 }
 0x3e8   : > { %4658 = vmatmul.mubr.f32.gmra.mxu0 %v4265_v52  ;;  %v13906_v30 = vpop.f32.mrf.mxu0  ;;  %6156 = vmatpush2.msra.mxu1 %v5737_v12  ;;  %v5736_v52 = vld [vmem:[%s16012_s1 + $0x500] sm:$0xff] }
 0x3e9   : > { %9317 = vmatprep.mubr.msk.f32.mxu0 %vm4340_vm0, %v4268_v58  ;;  %16235 = vst [vmem:[#allocation21_spill] sm:$0xff] %v13906_v30  ;;  %5940 = vmatprep.subr.mxu0 %v16162_v44 }
 0x3ea   : > { %v13909_v25 = vpop.f32.mrf.mxu0  ;;  %6157 = vmatprep.subr.mxu1 %v16162_v44  ;;  %5941 = vmatpush2.msra.mxu0 %v5736_v52 }
 0x3eb   : > { %16236 = vst [vmem:[#allocation22_spill] sm:$0xff] %v13909_v25  ;;  %6158 = vmatpush2.msra.mxu1 %v5736_v52  ;;  %5942 = vmatprep.subr.mxu0 %v16162_v44 }
 0x3ec   : > { %4664 = vmatmul.mubr.f32.gmra.mxu0 %v4267_v51  ;;  %v13912_v11 = vpop.f32.mrf.mxu0  ;;  %6159 = vmatprep.subr.mxu1 %v16162_v44  ;;  %v5735_v51 = vld [vmem:[%s16012_s1 + $0x4f0] sm:$0xff] }
 0x3ed   : > { %16237 = vst [vmem:[#allocation23_spill] sm:$0xff] %v13912_v11  ;;  %5943 = vmatpush2.msra.mxu0 %v5735_v51  ;;  %6160 = vmatpush2.msra.mxu1 %v5735_v51 }
 0x3ee   : > { %v13918_v40 = vpop.f32.mrf.mxu0  ;;  %5944 = vmatprep.subr.mxu0 %v16162_v44  ;;  %6161 = vmatprep.subr.mxu1 %v16162_v44 }
 0x3ef   : > { %16238 = vst [vmem:[#allocation24_spill] sm:$0xff] %v13918_v40  ;;  %5945 = vmatpush2.msra.mxu0 %v5734_v47  ;;  %6162 = vmatpush2.msra.mxu1 %v5734_v47 }
 0x3f0   : > { %v13925_v21 = vpop.f32.mrf.mxu0 }
 0x3f1   : > { %16239 = vst [vmem:[#allocation25_spill] sm:$0xff] %v13925_v21 }
 0x3f2   : > { %v13932_v54 = vpop.f32.mrf.mxu0 }
 0x3f3   : > { %16240 = vst [vmem:[#allocation26_spill] sm:$0xff] %v13932_v54 }
 0x3f4   : > { %v13936_v46 = vpop.f32.mrf.mxu0 }
 0x3f5   : > { %16241 = vst [vmem:[#allocation27_spill] sm:$0xff] %v13936_v46 }
 0x3f6   : > { %v13946_v24 = vpop.f32.mrf.mxu0 }
 0x3f7   : > { %v4190_v53 = vpop.f32.mrf.mxu1  ;;  %16242 = vst [vmem:[#allocation28_spill] sm:$0xff] %v13946_v24 }
 0x3f8   : > { %v4191_v23 = vadd.f32 %v4190_v53, %v13621_v61  ;;  %v13952_v37 = vpop.f32.mrf.mxu0 }
 0x3f9   : > { %v4192_v1 = vpop.f32.mrf.mxu1  ;;  %16243 = vst [vmem:[#allocation29_spill] sm:$0xff] %v13952_v37 }
 0x3fa   : > { %v4193_v7 = vadd.f32 %v4192_v1, %v13609_v19  ;;  %v4269_v34 = vmax.f32 %v4191_v23, 0.0  ;;  %v13961_v41 = vpop.f32.mrf.mxu0  ;;  %v9289_v23 = vld [vmem:[%s16012_s1 + $0x2d0] ss:$8 sm:$0x3] }
 0x3fb   : > { %16244 = vst [vmem:[#allocation30_spill] sm:$0xff] %v13961_v41 }
 0x3fc   : > { %v4270_v42 = vmax.f32 %v4193_v7, 0.0  ;;  %v13967_v58 = vpop.f32.mrf.mxu0 }
 0x3fd   : > { %16245 = vst [vmem:[#allocation31_spill] sm:$0xff] %v13967_v58 }
 0x3fe   : > { %9318 = vmatprep.mubr.msk.f32.mxu0 %vm4340_vm0, %v4270_v42  ;;  %v13988_v42 = vrot.slane %v9289_v23, %v13613_v22 }
 0x3ff   : > { %4670 = vmatmul.mubr.f32.gmra.mxu0 %v4269_v34 }
 0x40d   : > { %v4196_v29 = vpop.f32.mrf.mxu1  ;;  %v13972_v3 = vpop.f32.mrf.mxu0 }
 0x40e   : > { %v4197_v60 = vadd.f32 %v4196_v29, %v13621_v61  ;;  %16246 = vst [vmem:[#allocation32_spill] sm:$0xff] %v13972_v3 }
 0x40f   : > { %v4198_v10 = vpop.f32.mrf.mxu1  ;;  %v13979_v53 = vpop.f32.mrf.mxu0 }
 0x410   : > { %v4199_v31 = vadd.f32 %v4198_v10, %v13609_v19  ;;  %v4271_v0 = vmax.f32 %v4197_v60, 0.0  ;;  %16247 = vst [vmem:[#allocation33_spill] sm:$0xff] %v13979_v53  ;;  %v13995_v60 = vrot.slane %v9289_v23, %v3952_v63  ;;  %v16050_v63 = vmov 1.0  }
 0x412   : > { %v4272_v6 = vmax.f32 %v4199_v31, 0.0 }
 0x414   : > { %9319 = vmatprep.mubr.msk.f32.mxu0 %vm4340_vm0, %v4272_v6 }
 0x415   : > { %4676 = vmatmul.mubr.f32.gmra.mxu0 %v4271_v0 }
 0x428   : > { %v4202_v17 = vpop.f32.mrf.mxu1 }
 0x429   : > { %v4203_v26 = vadd.f32 %v4202_v17, %v13621_v61 }
 0x42a   : > { %v4204_v38 = vpop.f32.mrf.mxu1 }
 0x42b   : > { %v4205_v36 = vadd.f32 %v4204_v38, %v13609_v19  ;;  %v4273_v59 = vmax.f32 %v4203_v26, 0.0 }
 0x42d   : > { %v4274_v16 = vmax.f32 %v4205_v36, 0.0 }
 0x42f   : > { %9320 = vmatprep.mubr.msk.f32.mxu0 %vm4340_vm0, %v4274_v16 }
 0x430   : > { %4682 = vmatmul.mubr.f32.gmra.mxu0 %v4273_v59 }
 0x43c   : > { %v4208_v1 = vpop.f32.mrf.mxu1  ;;  %v13984_v7 = vpop.f32.mrf.mxu0 }
 0x43d   : > { %16248 = vst [vmem:[#allocation34_spill] sm:$0xff] %v13984_v7  ;;  %v4209_v34 = vadd.f32 %v4208_v1, %v13621_v61 }
 0x43e   : > { %v4210_v2 = vpop.f32.mrf.mxu1  ;;  %v13990_v27 = vpop.f32.mrf.mxu0 }
 0x43f   : > { %16249 = vst [vmem:[#allocation35_spill] sm:$0xff] %v13990_v27  ;;  %v4211_v29 = vadd.f32 %v4210_v2, %v13609_v19  ;;  %v4275_v10 = vmax.f32 %v4209_v34, 0.0 }
 0x440   : > { %v4503_v31 = vpop.f32.mrf.mxu0 }
 0x441   : > { %v4276_v0 = vmax.f32 %v4211_v29, 0.0  ;;  %v13998_v6 = vadd.f32 %v4503_v31, %v13988_v42 }
 0x442   : > { %v4505_v4 = vpop.f32.mrf.mxu0 }
 0x443   : > { %16250 = vst [vmem:[#allocation36_spill] sm:$0xff] %v13998_v6  ;;  %9321 = vmatprep.mubr.msk.f32.mxu0 %vm4340_vm0, %v4276_v0  ;;  %vm4694_vm1 = vcmp.ne.f32.partialorder %v13998_v6, %v13998_v6  ;;  %v14004_v61 = vadd.f32 %v4505_v4, %v13995_v60 }
 0x444   : > { %4688 = vmatmul.mubr.f32.gmra.mxu0 %v4275_v10  ;;  %v4758_v19 = vsel %vm4694_vm1, 0.0, %v13998_v6  ;;  %v5238_v62 = vsel %vm4694_vm1, 0.0, %v16050_v63  ;;  %v4509_v28 = vpop.f32.mrf.mxu0 }
 0x445   : > { %16251 = vst [vmem:[#allocation37_spill] sm:$0xff] %v14004_v61  ;;  %v4822_v56 = vrot.slane %v4758_v19, 4  ;;  %v5302_v5 = vrot.slane %v5238_v62, 4  ;;  %vm4695_vm2 = vcmp.ne.f32.partialorder %v14004_v61, %v14004_v61  ;;  %v14011_v17 = vadd.f32 %v4509_v28, %v13988_v42 }
 0x446   : > { %v4759_v26 = vsel %vm4695_vm2, 0.0, %v14004_v61  ;;  %v5239_v38 = vsel %vm4695_vm2, 0.0, %v16050_v63  ;;  %v4511_v36 = vpop.f32.mrf.mxu0 }
 0x447   : > { %16252 = vst [vmem:[#allocation38_spill] sm:$0xff] %v14011_v17  ;;  %v4823_v59 = vadd.f32 %v4822_v56, %v4758_v19  ;;  %v5303_v16 = vadd.f32 %v5302_v5, %v5238_v62  ;;  %v4828_v12 = vsel %vm4340_vm0, %v4759_v26, 0.0  ;;  %v5308_v52 = vsel %vm4340_vm0, %v5239_v38, 0.0 }
 0x448   : > { %v4829_v51 = vrot.slane %v4828_v12, 4  ;;  %v5309_v47 = vrot.slane %v5308_v52, 4  ;;  %vm4696_vm3 = vcmp.ne.f32.partialorder %v14011_v17, %v14011_v17  ;;  %v14020_v23 = vadd.f32 %v4511_v36, %v13995_v60  ;;  %v4515_v19 = vpop.f32.mrf.mxu0 }
 0x449   : > { %v4824_v1 = vrot.slane %v4823_v59, 2  ;;  %v5304_v34 = vrot.slane %v5303_v16, 2  ;;  %v4760_v2 = vsel %vm4696_vm3, 0.0, %v14011_v17  ;;  %v5240_v29 = vsel %vm4696_vm3, 0.0, %v16050_v63 }
 0x44a   : > { %16253 = vst [vmem:[#allocation39_spill] sm:$0xff] %v14020_v23  ;;  %v4830_v10 = vadd.f32 %v4829_v51, %v4828_v12  ;;  %v5310_v31 = vadd.f32 %v5309_v47, %v5308_v52  ;;  %v4835_v0 = vrot.slane %v4760_v2, 4  ;;  %v5315_v4 = vrot.slane %v5240_v29, 4 }
 0x44b   : > { %v4825_v62 = vadd.f32 %v4824_v1, %v4823_v59  ;;  %v5305_v28 = vadd.f32 %v5304_v34, %v5303_v16  ;;  %vm4697_vm4 = vcmp.ne.f32.partialorder %v14020_v23, %v14020_v23  ;;  %v14029_v61 = vadd.f32 %v4515_v19, %v13988_v42  ;;  %v4517_v59 = vpop.f32.mrf.mxu0 }
 0x44c   : > { %v4831_v56 = vrot.slane %v4830_v10, 2  ;;  %v5311_v5 = vrot.slane %v5310_v31, 2  ;;  %v4836_v26 = vadd.f32 %v4835_v0, %v4760_v2  ;;  %v5316_v38 = vadd.f32 %v5315_v4, %v5240_v29 }
 0x44d   : > { %v4761_v36 = vsel %vm4697_vm4, 0.0, %v14020_v23  ;;  %v5241_v17 = vsel %vm4697_vm4, 0.0, %v16050_v63  ;;  %16254 = vst [vmem:[#allocation40_spill] sm:$0xff] %v14029_v61  ;;  %v4826_v12 = vrot.slane %v4825_v62, 1  ;;  %v5306_v52 = vrot.slane %v5305_v28, 1 }
 0x44e   : > { %v4837_v51 = vrot.slane %v4836_v26, 2  ;;  %v5317_v47 = vrot.slane %v5316_v38, 2  ;;  %v4841_v16 = vsel %vm4340_vm0, %v4761_v36, 0.0  ;;  %v5321_v1 = vsel %vm4340_vm0, %v5241_v17, 0.0 }
 0x44f   : > { %v4832_v34 = vadd.f32 %v4831_v56, %v4830_v10  ;;  %v5312_v6 = vadd.f32 %v5311_v5, %v5310_v31  ;;  %v4842_v0 = vrot.slane %v4841_v16, 4  ;;  %v5322_v4 = vrot.slane %v5321_v1, 4  ;;  %v4521_v56 = vpop.f32.mrf.mxu0 }
 0x450   : > { %v4838_v2 = vadd.f32 %v4837_v51, %v4836_v26  ;;  %v5318_v29 = vadd.f32 %v5317_v47, %v5316_v38  ;;  %vm4698_vm5 = vcmp.ne.f32.partialorder %v14029_v61, %v14029_v61  ;;  %v14036_v19 = vadd.f32 %v4517_v59, %v13995_v60 }
 0x451   : > { %v4827_v63 = vadd.f32 %v4826_v12, %v4825_v62  ;;  %v5307_v23 = vadd.f32 %v5306_v52, %v5305_v28  ;;  %v4843_v7 = vadd.f32 %v4842_v0, %v4841_v16  ;;  %v5323_v36 = vadd.f32 %v5322_v4, %v5321_v1  ;;  %v4523_v40 = vpop.f32.mrf.mxu0 }
 0x452   : > { %16255 = vst [vmem:[#allocation41_spill] sm:$0xff] %v14036_v19  ;;  %v4839_v27 = vrot.slane %v4838_v2, 1  ;;  %v4762_v17 = vsel %vm4698_vm5, 0.0, %v14029_v61  ;;  %v16256_v10 = vmov 1.0   ;;  %v4833_v5 = vrot.slane %v4832_v34, 1 }
 0x453   : > { %v5242_v31 = vsel %vm4698_vm5, 0.0, %v16256_v10  ;;  %v5313_v26 = vrot.slane %v5312_v6, 1  ;;  %v4848_v38 = vrot.slane %v4762_v17, 4  ;;  %v5319_v47 = vrot.slane %v5318_v29, 1  ;;  %v4527_v53 = vpop.f32.mrf.mxu0 }
 0x454   : > { %v5328_v51 = vrot.slane %v5242_v31, 4  ;;  %v4844_v3 = vrot.slane %v4843_v7, 2  ;;  %v5324_v41 = vrot.slane %v5323_v36, 2  ;;  %vm4699_vm7 = vcmp.ne.f32.partialorder %v14036_v19, %v14036_v19 }
 0x455   : > { %v4840_v62 = vadd.f32 %v4839_v27, %v4838_v2  ;;  %v4849_v28 = vadd.f32 %v4848_v38, %v4762_v17  ;;  %v14043_v52 = vadd.f32 %v4521_v56, %v13988_v42  ;;  %v4763_v1 = vsel %vm4699_vm7, 0.0, %v14036_v19 }
 0x456   : > { %v5329_v12 = vadd.f32 %v5328_v51, %v5242_v31  ;;  %v4845_v59 = vadd.f32 %v4844_v3, %v4843_v7  ;;  %v5325_v16 = vadd.f32 %v5324_v41, %v5323_v36  ;;  %v5243_v0 = vsel %vm4699_vm7, 0.0, %v16256_v10 }
 0x457   : > { %16257 = vst [vmem:[#allocation42_spill] sm:$0xff] %v14043_v52  ;;  %v4850_v4 = vrot.slane %v4849_v28, 2  ;;  %v4854_v24 = vsel %vm4340_vm0, %v4763_v1, 0.0  ;;  %v5334_v54 = vsel %vm4340_vm0, %v5243_v0, 0.0  ;;  %v5320_v56 = vadd.f32 %v5319_v47, %v5318_v29 }
 0x458   : > { %v5330_v61 = vrot.slane %v5329_v12, 2  ;;  %v4846_v27 = vrot.slane %v4845_v59, 1  ;;  %v5326_v2 = vrot.slane %v5325_v16, 1  ;;  %v4855_v17 = vrot.slane %v4854_v24, 4 }
 0x459   : > { %v5335_v31 = vrot.slane %v5334_v54, 4  ;;  %v4851_v38 = vadd.f32 %v4850_v4, %v4849_v28  ;;  %vm4700_vm9 = vcmp.ne.f32.partialorder %v14043_v52, %v14043_v52  ;;  %v14052_v51 = vadd.f32 %v4523_v40, %v13995_v60 }
 0x45a   : > { %v5331_v3 = vadd.f32 %v5330_v61, %v5329_v12  ;;  %v4847_v41 = vadd.f32 %v4846_v27, %v4845_v59  ;;  %v4856_v7 = vadd.f32 %v4855_v17, %v4854_v24  ;;  %v5327_v1 = vadd.f32 %v5326_v2, %v5325_v16 }
 0x45b   : > { %v5336_v36 = vadd.f32 %v5335_v31, %v5334_v54  ;;  %16258 = vst [vmem:[#allocation43_spill] sm:$0xff] %v14052_v51  ;;  %v4852_v19 = vrot.slane %v4851_v38, 1  ;;  %v4764_v0 = vsel %vm4700_vm9, 0.0, %v14043_v52  ;;  %v5244_v21 = vsel %vm4700_vm9, 0.0, %v16256_v10 }
 0x45c   : > { %v4834_v25 = vadd.f32 %v4833_v5, %v4832_v34  ;;  %v5314_v29 = vadd.f32 %v5313_v26, %v5312_v6  ;;  %v5332_v47 = vrot.slane %v5331_v3, 1  ;;  %v4857_v61 = vrot.slane %v4856_v7, 2 }
 0x45d   : > { %v5808_v28 = vsel %vm5807_vm6, %v4840_v62, %v4827_v63  ;;  %v6031_v12 = vsel %vm5807_vm6, %v5320_v56, %v5307_v23  ;;  %v4861_v24 = vrot.slane %v4764_v0, 4  ;;  %v5341_v54 = vrot.slane %v5244_v21, 4  ;;  %v4529_v63 = vpop.f32.mrf.mxu0 }
 0x45e   : > { %v14059_v40 = vsel %vm5807_vm6, %v4847_v41, %v4834_v25  ;;  %v4853_v59 = vadd.f32 %v4852_v19, %v4851_v38  ;;  %v5337_v16 = vrot.slane %v5336_v36, 2  ;;  %vm4701_vm11 = vcmp.ne.f32.partialorder %v14052_v51, %v14052_v51 }
 0x45f   : > { %v14064_v4 = vsel %vm5807_vm6, %v5327_v1, %v5314_v29  ;;  %v4862_v6 = vadd.f32 %v4861_v24, %v4764_v0  ;;  %v5342_v34 = vadd.f32 %v5341_v54, %v5244_v21  ;;  %v14067_v5 = vadd.f32 %v4527_v53, %v13988_v42 }
 0x460   : > { %v5333_v23 = vadd.f32 %v5332_v47, %v5331_v3  ;;  %v4858_v26 = vadd.f32 %v4857_v61, %v4856_v7  ;;  %v4765_v62 = vsel %vm4701_vm11, 0.0, %v14052_v51  ;;  %v5245_v25 = vsel %vm4701_vm11, 0.0, %v16256_v10  ;;  %v4533_v7 = vpop.f32.mrf.mxu0 }
 0x461   : > { %16259 = vst [vmem:[#allocation44_spill] sm:$0xff] %v14067_v5  ;;  %v4863_v19 = vrot.slane %v4862_v6, 2  ;;  %v5343_v27 = vrot.slane %v5342_v34, 2  ;;  %v4867_v2 = vsel %vm4340_vm0, %v4765_v62, 0.0  ;;  %v5347_v17 = vsel %vm4340_vm0, %v5245_v25, 0.0 }
 0x462   : > { %v5810_v31 = vsel %vm5809_vm8, %v4853_v59, %v5808_v28  ;;  %v5338_v56 = vadd.f32 %v5337_v16, %v5336_v36  ;;  %v4868_v21 = vrot.slane %v4867_v2, 4  ;;  %v5348_v53 = vrot.slane %v5347_v17, 4  ;;  %v4535_v25 = vpop.f32.mrf.mxu0 }
 0x463   : > { %v4864_v38 = vadd.f32 %v4863_v19, %v4862_v6  ;;  %v5344_v41 = vadd.f32 %v5343_v27, %v5342_v34  ;;  %vm4702_vm12 = vcmp.ne.f32.partialorder %v14067_v5, %v14067_v5  ;;  %v14077_v3 = vadd.f32 %v4529_v63, %v13995_v60 }
 0x464   : > { %v4869_v1 = vadd.f32 %v4868_v21, %v4867_v2  ;;  %v5349_v0 = vadd.f32 %v5348_v53, %v5347_v17  ;;  %v4766_v29 = vsel %vm4702_vm12, 0.0, %v14067_v5  ;;  %v5246_v47 = vsel %vm4702_vm12, 0.0, %v16256_v10 }
 0x465   : > { %16260 = vst [vmem:[#allocation45_spill] sm:$0xff] %v14077_v3  ;;  %v14082_v36 = vsel %vm5809_vm8, %v5333_v23, %v6031_v12  ;;  %v4865_v61 = vrot.slane %v4864_v38, 1  ;;  %v4874_v28 = vrot.slane %v4766_v29, 4  ;;  %v5354_v24 = vrot.slane %v5246_v47, 4 }
 0x466   : > { %v4859_v54 = vrot.slane %v4858_v26, 1  ;;  %v4870_v59 = vrot.slane %v4869_v1, 2  ;;  %v5350_v16 = vrot.slane %v5349_v0, 2  ;;  %vm4703_vm13 = vcmp.ne.f32.partialorder %v14077_v3, %v14077_v3 }
 0x467   : > { %v5339_v6 = vrot.slane %v5338_v56, 1  ;;  %v4875_v34 = vadd.f32 %v4874_v28, %v4766_v29  ;;  %v5355_v63 = vadd.f32 %v5354_v24, %v5246_v47  ;;  %v14087_v62 = vadd.f32 %v4533_v7, %v13988_v42 }
 0x468   : > { %v5345_v19 = vrot.slane %v5344_v41, 1  ;;  %v4871_v27 = vadd.f32 %v4870_v59, %v4869_v1  ;;  %v4767_v12 = vsel %vm4703_vm13, 0.0, %v14077_v3  ;;  %v5247_v23 = vsel %vm4703_vm13, 0.0, %v16256_v10  ;;  %v4539_v1 = vpop.f32.mrf.mxu0 }
 0x469   : > { %16261 = vst [vmem:[#allocation46_spill] sm:$0xff] %v14087_v62  ;;  %v4866_v2 = vadd.f32 %v4865_v61, %v4864_v38  ;;  %v4876_v17 = vrot.slane %v4875_v34, 2  ;;  %v5356_v21 = vrot.slane %v5355_v63, 2  ;;  %v4880_v53 = vsel %vm4340_vm0, %v4767_v12, 0.0 }
 0x46a   : > { %v14092_v5 = vadd.f32 %v4859_v54, %v4858_v26  ;;  %v5351_v52 = vadd.f32 %v5350_v16, %v5349_v0  ;;  %v4881_v29 = vrot.slane %v4880_v53, 4  ;;  %v5360_v47 = vsel %vm4340_vm0, %v5247_v23, 0.0 }
 0x46b   : > { %v14095_v7 = vadd.f32 %v5339_v6, %v5338_v56  ;;  %v4872_v28 = vrot.slane %v4871_v27, 1  ;;  %v5361_v24 = vrot.slane %v5360_v47, 4  ;;  %vm4704_vm14 = vcmp.ne.f32.partialorder %v14087_v62, %v14087_v62 }
 0x46c   : > { %v4877_v59 = vadd.f32 %v4876_v17, %v4875_v34  ;;  %v5357_v38 = vadd.f32 %v5356_v21, %v5355_v63  ;;  %v4882_v61 = vadd.f32 %v4881_v29, %v4880_v53  ;;  %v4768_v3 = vsel %vm4704_vm14, 0.0, %v14087_v62 }
 0x46d   : > { %v14100_v12 = vadd.f32 %v5345_v19, %v5344_v41  ;;  %v14103_v26 = vsel %vm5811_vm10, %v4866_v2, %v5810_v31  ;;  %v5362_v0 = vadd.f32 %v5361_v24, %v5360_v47  ;;  %v4887_v54 = vrot.slane %v4768_v3, 4  ;;  %v4541_v19 = vpop.f32.mrf.mxu0 }
 0x46e   : > { %v5352_v56 = vrot.slane %v5351_v52, 1  ;;  %v5248_v16 = vsel %vm4704_vm14, 0.0, %v16256_v10  ;;  %v14107_v6 = vadd.f32 %v4535_v25, %v13995_v60  ;;  %v14110_v23 = vadd.f32 %v4539_v1, %v13988_v42 }
 0x46f   : > { %v14112_v34 = vadd.f32 %v4872_v28, %v4871_v27  ;;  %v4883_v63 = vrot.slane %v4882_v61, 2  ;;  %v5363_v17 = vrot.slane %v5362_v0, 2  ;;  %v4888_v41 = vadd.f32 %v4887_v54, %v4768_v3  ;;  %v4545_v51 = vpop.f32.mrf.mxu0 }
 0x470   : > { %16262 = vst [vmem:[#allocation47_spill] sm:$0xff] %v14107_v6  ;;  %16263 = vst [vmem:[#allocation48_spill] sm:$0xff] %v14110_v23  ;;  %v4878_v21 = vrot.slane %v4877_v59, 1  ;;  %v5358_v31 = vrot.slane %v5357_v38, 1  ;;  %v5367_v2 = vrot.slane %v5248_v16, 4  ;;  %vm4705_vm15 = vcmp.ne.f32.partialorder %v14107_v6, %v14107_v6 }
 0x471   : > { %v4889_v53 = vrot.slane %v4888_v41, 2  ;;  %v4769_v29 = vsel %vm4705_vm15, 0.0, %v14107_v6  ;;  %v5249_v25 = vsel %vm4705_vm15, 0.0, %v16256_v10  ;;  %vm4706_vm1 = vcmp.ne.f32.partialorder %v14110_v23, %v14110_v23 }
 0x472   : > { %v14120_v27 = vadd.f32 %v5352_v56, %v5351_v52  ;;  %v5368_v47 = vadd.f32 %v5367_v2, %v5248_v16  ;;  %v4893_v3 = vsel %vm4340_vm0, %v4769_v29, 0.0  ;;  %v5373_v28 = vsel %vm4340_vm0, %v5249_v25, 0.0 }
 0x473   : > { %v4884_v24 = vadd.f32 %v4883_v63, %v4882_v61  ;;  %v5364_v1 = vadd.f32 %v5363_v17, %v5362_v0  ;;  %v4894_v54 = vrot.slane %v4893_v3, 4  ;;  %v5374_v62 = vrot.slane %v5373_v28, 4 }
 0x474   : > { %v14124_v58 = vadd.f32 %v4878_v21, %v4877_v59  ;;  %v5369_v6 = vrot.slane %v5368_v47, 2  ;;  %v4770_v46 = vsel %vm4706_vm1, 0.0, %v14110_v23  ;;  %v5250_v11 = vsel %vm4706_vm1, 0.0, %v16256_v10  ;;  %v4547_v21 = vpop.f32.mrf.mxu0 }
 0x475   : > { %v14128_v37 = vadd.f32 %v5358_v31, %v5357_v38  ;;  %v4890_v52 = vadd.f32 %v4889_v53, %v4888_v41  ;;  %v4895_v56 = vadd.f32 %v4894_v54, %v4893_v3  ;;  %v5375_v16 = vadd.f32 %v5374_v62, %v5373_v28 }
 0x476   : > { %v5370_v2 = vadd.f32 %v5369_v6, %v5368_v47  ;;  %v4900_v29 = vrot.slane %v4770_v46, 4  ;;  %v5380_v25 = vrot.slane %v5250_v11, 4  ;;  %v14131_v61 = vadd.f32 %v4541_v19, %v13995_v60 }
 0x477   : > { %v4885_v0 = vrot.slane %v4884_v24, 1  ;;  %v5365_v63 = vrot.slane %v5364_v1, 1  ;;  %v4896_v59 = vrot.slane %v4895_v56, 2  ;;  %v5376_v17 = vrot.slane %v5375_v16, 2 }
 0x478   : > { %16264 = vst [vmem:[#allocation49_spill] sm:$0xff] %v14131_v61  ;;  %v4901_v45 = vadd.f32 %v4900_v29, %v4770_v46  ;;  %v5381_v23 = vadd.f32 %v5380_v25, %v5250_v11  ;;  %vm4707_vm2 = vcmp.ne.f32.partialorder %v14131_v61, %v14131_v61  ;;  %v14136_v38 = vadd.f32 %v4545_v51, %v13988_v42  ;;  %v4551_v51 = vpop.f32.mrf.mxu0 }
 0x479   : > { %v4891_v62 = vrot.slane %v4890_v52, 1  ;;  %v4897_v6 = vadd.f32 %v4896_v59, %v4895_v56  ;;  %v4771_v41 = vsel %vm4707_vm2, 0.0, %v14131_v61  ;;  %v5251_v19 = vsel %vm4707_vm2, 0.0, %v16256_v10 }
 0x47a   : > { %16265 = vst [vmem:[#allocation50_spill] sm:$0xff] %v14136_v38  ;;  %v5371_v31 = vrot.slane %v5370_v2, 1  ;;  %v4902_v53 = vrot.slane %v4901_v45, 2  ;;  %v5382_v47 = vrot.slane %v5381_v23, 2  ;;  %v4906_v3 = vsel %vm4340_vm0, %v4771_v41, 0.0 }
 0x47b   : > { %v14141_v28 = vadd.f32 %v4885_v0, %v4884_v24  ;;  %v14143_v11 = vadd.f32 %v5365_v63, %v5364_v1  ;;  %v4907_v46 = vrot.slane %v4906_v3, 4  ;;  %v5386_v54 = vsel %vm4340_vm0, %v5251_v19, 0.0 }
 0x47c   : > { %v4898_v29 = vrot.slane %v4897_v6, 1  ;;  %v5377_v25 = vadd.f32 %v5376_v17, %v5375_v16  ;;  %v5387_v56 = vrot.slane %v5386_v54, 4  ;;  %vm4708_vm3 = vcmp.ne.f32.partialorder %v14136_v38, %v14136_v38 }
 0x47d   : > { %v4903_v59 = vadd.f32 %v4902_v53, %v4901_v45  ;;  %v5383_v61 = vadd.f32 %v5382_v47, %v5381_v23  ;;  %v4908_v30 = vadd.f32 %v4907_v46, %v4906_v3  ;;  %v4772_v50 = vsel %vm4708_vm3, 0.0, %v14136_v38  ;;  %v4553_v45 = vpop.f32.mrf.mxu0 }
 0x47e   : > { %v14149_v41 = vadd.f32 %v4891_v62, %v4890_v52  ;;  %v14151_v24 = vadd.f32 %v5371_v31, %v5370_v2  ;;  %v5388_v1 = vadd.f32 %v5387_v56, %v5386_v54  ;;  %v4913_v0 = vrot.slane %v4772_v50, 4 }
 0x47f   : > { %v4909_v63 = vrot.slane %v4908_v30, 2  ;;  %v5252_v19 = vsel %vm4708_vm3, 0.0, %v16256_v10  ;;  %v14155_v16 = vadd.f32 %v4547_v21, %v13995_v60  ;;  %v14158_v17 = vadd.f32 %v4551_v51, %v13988_v42 }
 0x480   : > { %v14160_v23 = vadd.f32 %v4898_v29, %v4897_v6  ;;  %v5378_v53 = vrot.slane %v5377_v25, 1  ;;  %v5389_v47 = vrot.slane %v5388_v1, 2  ;;  %v4914_v52 = vadd.f32 %v4913_v0, %v4772_v50  ;;  %v4557_v29 = vpop.f32.mrf.mxu0 }
 0x481   : > { %16266 = vst [vmem:[#allocation51_spill] sm:$0xff] %v14155_v16  ;;  %16267 = vst [vmem:[#allocation52_spill] sm:$0xff] %v14158_v17  ;;  %v4904_v62 = vrot.slane %v4903_v59, 1  ;;  %v5384_v2 = vrot.slane %v5383_v61, 1  ;;  %v5393_v31 = vrot.slane %v5252_v19, 4  ;;  %vm4709_vm4 = vcmp.ne.f32.partialorder %v14155_v16, %v14155_v16 }
 0x482   : > { %v4915_v3 = vrot.slane %v4914_v52, 2  ;;  %v4773_v46 = vsel %vm4709_vm4, 0.0, %v14155_v16  ;;  %v5253_v21 = vsel %vm4709_vm4, 0.0, %v16256_v10  ;;  %vm4710_vm5 = vcmp.ne.f32.partialorder %v14158_v17, %v14158_v17 }
 0x483   : > { %v14168_v54 = vadd.f32 %v4909_v63, %v4908_v30  ;;  %v5394_v6 = vadd.f32 %v5393_v31, %v5252_v19  ;;  %v4919_v51 = vsel %vm4340_vm0, %v4773_v46, 0.0  ;;  %v5399_v50 = vsel %vm4340_vm0, %v5253_v21, 0.0 }
 0x484   : > { %v14172_v56 = vadd.f32 %v5378_v53, %v5377_v25  ;;  %v14174_v0 = vadd.f32 %v5389_v47, %v5388_v1  ;;  %v4916_v38 = vadd.f32 %v4915_v3, %v4914_v52  ;;  %v4920_v20 = vrot.slane %v4919_v51, 4  ;;  %v4559_v47 = vpop.f32.mrf.mxu0 }
 0x485   : > { %v5400_v16 = vrot.slane %v5399_v50, 4  ;;  %v4774_v13 = vsel %vm4710_vm5, 0.0, %v14158_v17  ;;  %v5254_v39 = vsel %vm4710_vm5, 0.0, %v16256_v10  ;;  %v14179_v30 = vadd.f32 %v4553_v45, %v13995_v60 }
 0x486   : > { %v14181_v63 = vadd.f32 %v4904_v62, %v4903_v59  ;;  %v14183_v19 = vadd.f32 %v5384_v2, %v5383_v61  ;;  %v5395_v31 = vrot.slane %v5394_v6, 2  ;;  %v4926_v46 = vrot.slane %v4774_v13, 4 }
 0x487   : > { %16268 = vst [vmem:[#allocation53_spill] sm:$0xff] %v14179_v30  ;;  %v5406_v1 = vrot.slane %v5254_v39, 4  ;;  %vm4711_vm7 = vcmp.ne.f32.partialorder %v14179_v30, %v14179_v30  ;;  %v14189_v53 = vadd.f32 %v4557_v29, %v13988_v42  ;;  %v4917_v45 = vrot.slane %v4916_v38, 1 }
 0x488   : > { %16269 = vst [vmem:[#allocation54_spill] sm:$0xff] %v14183_v19  ;;  %v4921_v3 = vadd.f32 %v4920_v20, %v4919_v51  ;;  %v4927_v59 = vadd.f32 %v4926_v46, %v4774_v13  ;;  %v14192_v62 = vadd.f32 %v5400_v16, %v5399_v50  ;;  %v4775_v2 = vsel %vm4711_vm7, 0.0, %v14179_v30  ;;  %v4563_v20 = vpop.f32.mrf.mxu0 }
 0x489   : > { %16270 = vst [vmem:[#allocation55_spill] sm:$0xff] %v14189_v53  ;;  %v5407_v61 = vadd.f32 %v5406_v1, %v5254_v39  ;;  %v5255_v21 = vsel %vm4711_vm7, 0.0, %v16256_v10  ;;  %v14196_v25 = vadd.f32 %v5395_v31, %v5394_v6  ;;  %v4932_v49 = vsel %vm4340_vm0, %v4775_v2, 0.0 }
 0x48a   : > { %v4928_v17 = vrot.slane %v4927_v59, 2  ;;  %v5412_v29 = vsel %vm4340_vm0, %v5255_v21, 0.0  ;;  %v4933_v32 = vrot.slane %v4932_v49, 4  ;;  %vm4712_vm9 = vcmp.ne.f32.partialorder %v14189_v53, %v14189_v53 }
 0x48b   : > { %v5408_v14 = vrot.slane %v5407_v61, 2  ;;  %v5413_v52 = vrot.slane %v5412_v29, 4  ;;  %v4776_v39 = vsel %vm4712_vm9, 0.0, %v14189_v53  ;;  %v5256_v16 = vsel %vm4712_vm9, 0.0, %v16256_v10 }
 0x48c   : > { %v4929_v13 = vadd.f32 %v4928_v17, %v4927_v59  ;;  %v14205_v6 = vadd.f32 %v4559_v47, %v13995_v60  ;;  %v4934_v50 = vadd.f32 %v4933_v32, %v4932_v49  ;;  %v4939_v46 = vrot.slane %v4776_v39, 4 }
 0x48d   : > { %v5409_v51 = vadd.f32 %v5408_v14, %v5407_v61  ;;  %v5414_v31 = vadd.f32 %v5413_v52, %v5412_v29  ;;  %v14207_v1 = vadd.f32 %v4917_v45, %v4916_v38  ;;  %v5419_v2 = vrot.slane %v5256_v16, 4  ;;  %v4565_v14 = vpop.f32.mrf.mxu0 }
 0x48e   : > { %16271 = vst [vmem:[#allocation56_spill] sm:$0xff] %v14205_v6  ;;  %vm4713_vm11 = vcmp.ne.f32.partialorder %v14205_v6, %v14205_v6  ;;  %v14212_v21 = vadd.f32 %v4563_v20, %v13988_v42  ;;  %v4922_v17 = vrot.slane %v4921_v3, 2  ;;  %v4935_v59 = vrot.slane %v4934_v50, 2 }
 0x48f   : > { %v5415_v53 = vrot.slane %v5414_v31, 2  ;;  %v4940_v30 = vadd.f32 %v4939_v46, %v4776_v39  ;;  %v5420_v8 = vadd.f32 %v5419_v2, %v5256_v16  ;;  %v4777_v49 = vsel %vm4713_vm11, 0.0, %v14205_v6 }
 0x490   : > { %16272 = vst [vmem:[#allocation57_spill] sm:$0xff] %v14212_v21  ;;  %v5257_v32 = vsel %vm4713_vm11, 0.0, %v16256_v10  ;;  %v4930_v38 = vrot.slane %v4929_v13, 1  ;;  %v5410_v52 = vrot.slane %v5409_v51, 1  ;;  %v4936_v45 = vadd.f32 %v4935_v59, %v4934_v50  ;;  %v4569_v59 = vpop.f32.mrf.mxu0 }
 0x491   : > { %v4941_v61 = vrot.slane %v4940_v30, 2  ;;  %v5421_v29 = vrot.slane %v5420_v8, 2  ;;  %v4945_v20 = vsel %vm4340_vm0, %v4777_v49, 0.0  ;;  %v5425_v55 = vsel %vm4340_vm0, %v5257_v32, 0.0 }
 0x492   : > { %vm4714_vm12 = vcmp.ne.f32.partialorder %v14212_v21, %v14212_v21  ;;  %v14222_v16 = vadd.f32 %v4922_v17, %v4921_v3  ;;  %v5416_v46 = vadd.f32 %v5415_v53, %v5414_v31  ;;  %v4946_v2 = vrot.slane %v4945_v20, 4 }
 0x493   : > { %v4942_v47 = vadd.f32 %v4941_v61, %v4940_v30  ;;  %v5426_v6 = vrot.slane %v5425_v55, 4  ;;  %v4778_v48 = vsel %vm4714_vm12, 0.0, %v14212_v21  ;;  %v5258_v50 = vsel %vm4714_vm12, 0.0, %v16256_v10 }
 0x494   : > { %v4931_v9 = vadd.f32 %v4930_v38, %v4929_v13  ;;  %v14226_v49 = vadd.f32 %v5410_v52, %v5409_v51  ;;  %v5422_v32 = vadd.f32 %v5421_v29, %v5420_v8  ;;  %v4947_v18 = vadd.f32 %v4946_v2, %v4945_v20 }
 0x495   : > { %v4937_v33 = vrot.slane %v4936_v45, 1  ;;  %v5427_v43 = vadd.f32 %v5426_v6, %v5425_v55  ;;  %v4952_v35 = vrot.slane %v4778_v48, 4  ;;  %v5432_v39 = vrot.slane %v5258_v50, 4 }
 0x496   : > { %16273 = vst [vmem:[#allocation58_spill] sm:$0xff] %v14226_v49  ;;  %v5417_v3 = vrot.slane %v5416_v46, 1  ;;  %v4948_v17 = vrot.slane %v4947_v18, 2  ;;  %v14229_v53 = vadd.f32 %v4565_v14, %v13995_v60  ;;  %v14232_v30 = vadd.f32 %v4569_v59, %v13988_v42 }
 0x497   : > { %v4943_v31 = vrot.slane %v4942_v47, 1  ;;  %v5428_v61 = vrot.slane %v5427_v43, 2  ;;  %v4953_v21 = vadd.f32 %v4952_v35, %v4778_v48  ;;  %v5433_v13 = vadd.f32 %v5432_v39, %v5258_v50  ;;  %v4571_v48 = vpop.f32.mrf.mxu0 }
 0x498   : > { %16274 = vst [vmem:[#allocation59_spill] sm:$0xff] %v14229_v53  ;;  %16275 = vst [vmem:[#allocation60_spill] sm:$0xff] %v14232_v30  ;;  %v5423_v51 = vrot.slane %v5422_v32, 1  ;;  %v4949_v38 = vadd.f32 %v4948_v17, %v4947_v18  ;;  %vm4715_vm13 = vcmp.ne.f32.partialorder %v14229_v53, %v14229_v53  ;;  %vm4716_vm14 = vcmp.ne.f32.partialorder %v14232_v30, %v14232_v30 }
 0x499   : > { %v5429_v55 = vadd.f32 %v5428_v61, %v5427_v43  ;;  %v4954_v8 = vrot.slane %v4953_v21, 2  ;;  %v5434_v6 = vrot.slane %v5433_v13, 2  ;;  %v4779_v14 = vsel %vm4715_vm13, 0.0, %v14229_v53 }
 0x49a   : > { %v4950_v52 = vrot.slane %v4949_v38, 1  ;;  %v4958_v29 = vsel %vm4340_vm0, %v4779_v14, 0.0  ;;  %v5259_v20 = vsel %vm4715_vm13, 0.0, %v16256_v10  ;;  %v4780_v35 = vsel %vm4716_vm14, 0.0, %v14232_v30 }
 0x49b   : > { %v4944_v18 = vadd.f32 %v4943_v31, %v4942_v47  ;;  %v5430_v39 = vrot.slane %v5429_v55, 1  ;;  %v4955_v2 = vadd.f32 %v4954_v8, %v4953_v21  ;;  %v4959_v50 = vrot.slane %v4958_v29, 4  ;;  %v4575_v31 = vpop.f32.mrf.mxu0 }
 0x49c   : > { %v4938_v43 = vadd.f32 %v4937_v33, %v4936_v45  ;;  %v5438_v59 = vsel %vm4340_vm0, %v5259_v20, 0.0  ;;  %v4965_v17 = vrot.slane %v4780_v35, 4  ;;  %v5260_v61 = vsel %vm4716_vm14, 0.0, %v16256_v10 }
 0x49d   : > { %v5418_v14 = vadd.f32 %v5417_v3, %v5416_v46  ;;  %v4951_v53 = vadd.f32 %v4950_v52, %v4949_v38  ;;  %v5435_v15 = vadd.f32 %v5434_v6, %v5433_v13  ;;  %v4960_v22 = vadd.f32 %v4959_v50, %v4958_v29 }
 0x49e   : > { %v5431_v57 = vadd.f32 %v5430_v39, %v5429_v55  ;;  %v5439_v44 = vrot.slane %v5438_v59, 4  ;;  %v4966_v49 = vadd.f32 %v4965_v17, %v4780_v35  ;;  %v5445_v47 = vrot.slane %v5260_v61, 4 }
 0x49f   : > { %v14250_v21 = vadd.f32 %v5423_v51, %v5422_v32  ;;  %v14253_v33 = vsel %vm5807_vm6, %v4944_v18, %v4931_v9  ;;  %v4956_v45 = vrot.slane %v4955_v2, 1  ;;  %v4961_v8 = vrot.slane %v4960_v22, 2  ;;  %v4577_v18 = vpop.f32.mrf.mxu0 }
 0x4a0   : > { %v5440_v20 = vadd.f32 %v5439_v44, %v5438_v59  ;;  %v4967_v19 = vrot.slane %v4966_v49, 2  ;;  %v5446_v30 = vadd.f32 %v5445_v47, %v5260_v61  ;;  %v14256_v46 = vadd.f32 %v4571_v48, %v13995_v60 }
 0x4a1   : > { %16276 = vst [vmem:[#allocation61_spill] sm:$0xff] %v14250_v21  ;;  %v14259_v3 = vsel %vm5807_vm6, %v4951_v53, %v4938_v43  ;;  %v5436_v13 = vrot.slane %v5435_v15, 1  ;;  %v4962_v38 = vadd.f32 %v4961_v8, %v4960_v22  ;;  %v14262_v55 = vadd.f32 %v4575_v31, %v13988_v42 }
 0x4a2   : > { %16277 = vst [vmem:[#allocation62_spill] sm:$0xff] %v14256_v46  ;;  %v14265_v32 = vsel %vm5807_vm6, %v5431_v57, %v5418_v14  ;;  %v5441_v9 = vrot.slane %v5440_v20, 2  ;;  %v4968_v51 = vadd.f32 %v4967_v19, %v4966_v49  ;;  %vm4717_vm15 = vcmp.ne.f32.partialorder %v14256_v46, %v14256_v46 }
 0x4a3   : > { %16278 = vst [vmem:[#allocation63_spill] sm:$0xff] %v14262_v55  ;;  %vm5813_vm1 = vcmask 1044484   ;;  %v5447_v44 = vrot.slane %v5446_v30, 2  ;;  %v4781_v6 = vsel %vm4717_vm15, 0.0, %v14256_v46  ;;  %v5261_v53 = vsel %vm4717_vm15, 0.0, %v16256_v10 }
 0x4a4   : > { %vm4718_vm2 = vcmp.ne.f32.partialorder %v14262_v55, %v14262_v55  ;;  %vm5815_vm3 = vcmask 1045509   ;;  %v14273_v22 = vadd.f32 %v4956_v45, %v4955_v2  ;;  %v4963_v52 = vrot.slane %v4962_v38, 1 }
 0x4a5   : > { %v5442_v57 = vadd.f32 %v5441_v9, %v5440_v20  ;;  %v4971_v29 = vsel %vm4340_vm0, %v4781_v6, 0.0  ;;  %vm5817_vm4 = vcmask 1046534   ;;  %v5451_v49 = vsel %vm4340_vm0, %v5261_v53, 0.0 }
 0x4a6   : > { %v4972_v19 = vrot.slane %v4971_v29, 4  ;;  %v4782_v35 = vsel %vm4718_vm2, 0.0, %v14262_v55  ;;  %v4924_v48 = vrot.slane %v14222_v16, 1  ;;  %vm5819_vm5 = vcmask 1047559  }
 0x4a7   : > { %v14282_v39 = vadd.f32 %v5436_v13, %v5435_v15  ;;  %v4969_v2 = vrot.slane %v4968_v51, 1  ;;  %v5452_v50 = vrot.slane %v5451_v49, 4  ;;  %v16280_v43 = vrot.slane %v14168_v54, 1 }
 0x4a8   : > { %v5448_v17 = vadd.f32 %v5447_v44, %v5446_v30  ;;  %v4973_v61 = vadd.f32 %v4972_v19, %v4971_v29  ;;  %v4978_v14 = vrot.slane %v4782_v35, 4  ;;  %v5262_v47 = vsel %vm4718_vm2, 0.0, %v16256_v10  ;;  %v4581_v30 = vpop.f32.mrf.mxu0 }
 0x4a9   : > { %16279 = vst [vmem:[#allocation64_spill] sm:$0xff] %v14282_v39  ;;  %v4912_v59 = vadd.f32 %v16280_v43, %v14168_v54  ;;  %v14291_v31 = vadd.f32 %v4963_v52, %v4962_v38  ;;  %v5443_v45 = vrot.slane %v5442_v57, 1  ;;  %v5453_v8 = vadd.f32 %v5452_v50, %v5451_v49 }
 0x4aa   : > { %v5458_v15 = vrot.slane %v5262_v47, 4  ;;  %v4974_v20 = vrot.slane %v4973_v61, 2  ;;  %v4979_v13 = vadd.f32 %v4978_v14, %v4782_v35  ;;  %v4925_v9 = vadd.f32 %v4924_v48, %v14222_v16  ;;  %v4583_v14 = vpop.f32.mrf.mxu0 }
 0x4ab   : > { %v5822_v54 = vsel %vm5809_vm8, %v14092_v5, %v14059_v40  ;;  %v5454_v44 = vrot.slane %v5453_v8, 2  ;;  %v16281_v38 = vrot.slane %v14192_v62, 2  ;;  %v5449_v29 = vrot.slane %v5448_v17, 1 }
 0x4ac   : > { %v5459_v6 = vadd.f32 %v5458_v15, %v5262_v47  ;;  %v5823_v53 = vsel %vm5811_vm10, %v14112_v34, %v5822_v54  ;;  %v4975_v19 = vadd.f32 %v4974_v20, %v4973_v61  ;;  %v4980_v49 = vrot.slane %v4979_v13, 2 }
 0x4ad   : > { %v5403_v52 = vadd.f32 %v16281_v38, %v14192_v62  ;;  %v5824_v16 = vsel %vm5813_vm1, %v14141_v28, %v5823_v53  ;;  %v14304_v35 = vadd.f32 %v5454_v44, %v5453_v8  ;;  %v16282_v43 = vrot.slane %v14174_v0, 1 }
 0x4ae   : > { %v5460_v48 = vrot.slane %v5459_v6, 2  ;;  %v5825_v40 = vsel %vm5815_vm3, %v14160_v23, %v5824_v16  ;;  %v4976_v50 = vrot.slane %v4975_v19, 1  ;;  %v6039_v61 = vsel %vm5809_vm8, %v14095_v7, %v14064_v4 }
 0x4af   : > { %v5404_v5 = vrot.slane %v5403_v52, 1  ;;  %v5826_v34 = vsel %vm5817_vm4, %v4912_v59, %v5825_v40  ;;  %v5392_v62 = vadd.f32 %v16282_v43, %v14174_v0  ;;  %v14315_v28 = vadd.f32 %v4969_v2, %v4968_v51 }
 0x4b0   : > { %v5827_v47 = vsel %vm5819_vm5, %v4925_v9, %v5826_v34  ;;  %v6040_v23 = vsel %vm5811_vm10, %v14120_v27, %v6039_v61  ;;  %v14320_v15 = vadd.f32 %v5443_v45, %v5442_v57  ;;  %v14322_v59 = vadd.f32 %v5449_v29, %v5448_v17 }
 0x4b1   : > { %v5405_v8 = vadd.f32 %v5404_v5, %v5403_v52  ;;  %9322 = vmatprep.mubr.msk.f32.mxu0 %vm4340_vm0, %v5827_v47  ;;  %v6041_v0 = vsel %vm5813_vm1, %v14143_v11, %v6040_v23  ;;  %v14328_v4 = vadd.f32 %v4577_v18, %v13995_v60  ;;  %v5456_v7 = vrot.slane %v14304_v35, 1  ;;  %v4587_v18 = vpop.f32.mrf.mxu0 }
 0x4b2   : > { %16283 = vst [vmem:[#allocation65_spill] sm:$0xff] %v14322_v59  ;;  %v14331_v51 = vadd.f32 %v4980_v49, %v4979_v13  ;;  %v14333_v2 = vadd.f32 %v5460_v48, %v5459_v6  ;;  %v6042_v27 = vsel %vm5815_vm3, %v14172_v56, %v6041_v0  ;;  %v14337_v57 = vadd.f32 %v4976_v50, %v4975_v19 }
 0x4b3   : > { %16284 = vst [vmem:[#allocation66_spill] sm:$0xff] %v14328_v4  ;;  %v6043_v17 = vsel %vm5817_vm4, %v5392_v62, %v6042_v27  ;;  %vm4719_vm7 = vcmp.ne.f32.partialorder %v14328_v4, %v14328_v4  ;;  %v5814_v11 = vsel %vm5813_vm1, %v14124_v58, %v14103_v26  ;;  %v16285_v58 = vrot.slane %v14196_v25, 1  ;;  %v4589_v19 = vpop.f32.mrf.mxu0 }
 0x4b4   : > { %v6044_v45 = vsel %vm5819_vm5, %v5405_v8, %v6043_v17  ;;  %v4783_v20 = vsel %vm4719_vm7, 0.0, %v14328_v4  ;;  %v5263_v13 = vsel %vm4719_vm7, 0.0, %v16256_v10  ;;  %v5816_v56 = vsel %vm5815_vm3, %v14149_v41, %v5814_v11 }
 0x4b5   : > { %9326 = vmatprep.mubr.msk.f32.mxu1 %vm4340_vm0, %v6044_v45  ;;  %v4984_v9 = vsel %vm4340_vm0, %v4783_v20, 0.0  ;;  %v5464_v54 = vsel %vm4340_vm0, %v5263_v13, 0.0  ;;  %v5818_v44 = vsel %vm5817_vm4, %v14181_v63, %v5816_v56  ;;  %v5398_v26 = vadd.f32 %v16285_v58, %v14196_v25  ;;  %v4593_v62 = vpop.f32.mrf.mxu0 }
 0x4b6   : > { %v4985_v6 = vrot.slane %v4984_v9, 4  ;;  %v5465_v53 = vrot.slane %v5464_v54, 4  ;;  %v5820_v38 = vsel %vm5819_vm5, %v14207_v1, %v5818_v44  ;;  %v6033_v41 = vsel %vm5811_vm10, %v14100_v12, %v14082_v36  ;;  %v16289_v12 = vld [vmem:[#allocation54_spill] sm:$0xff] }
 0x4b7   : > { %5947 = vmatmul.mubr.f32.vlgmr.msra.gmra.mxu0 %v5820_v38  ;;  %v6034_v52 = vsel %vm5813_vm1, %v14128_v37, %v6033_v41  ;;  %v14366_v29 = vadd.f32 %v4581_v30, %v13988_v42  ;;  %v14369_v63 = vadd.f32 %v4583_v14, %v13995_v60  ;;  %v14372_v25 = vadd.f32 %v4587_v18, %v13988_v42  ;;  %v4595_v44 = vpop.f32.mrf.mxu0 }
 0x4b8   : > { %v4982_v1 = vrot.slane %v14331_v51, 1  ;;  %v4986_v49 = vadd.f32 %v4985_v6, %v4984_v9  ;;  %v5466_v16 = vadd.f32 %v5465_v53, %v5464_v54  ;;  %v6035_v36 = vsel %vm5815_vm3, %v14151_v24, %v6034_v52 }
 0x4b9   : > { %16286 = vst [vmem:[#allocation67_spill] sm:$0xff] %v14366_v29  ;;  %16287 = vst [vmem:[#allocation68_spill] sm:$0xff] %v14369_v63  ;;  %v6036_v37 = vsel %vm5817_vm4, %v16289_v12, %v6035_v36  ;;  %vm4720_vm9 = vcmp.ne.f32.partialorder %v14366_v29, %v14366_v29  ;;  %vm4721_vm11 = vcmp.ne.f32.partialorder %v14369_v63, %v14369_v63  ;;  %v5462_v11 = vrot.slane %v14333_v2, 1 }
 0x4ba   : > { %16288 = vst [vmem:[#allocation69_spill] sm:$0xff] %v14372_v25  ;;  %vm4722_vm12 = vcmp.ne.f32.partialorder %v14372_v25, %v14372_v25  ;;  %v4987_v30 = vrot.slane %v4986_v49, 2  ;;  %v5467_v48 = vrot.slane %v5466_v16, 2  ;;  %v6037_v40 = vsel %vm5819_vm5, %v5398_v26, %v6036_v37 }
 0x4bb   : > { %v4784_v5 = vsel %vm4720_vm9, 0.0, %v14366_v29  ;;  %6164 = vmatmul.mubr.f32.vlgmr.msra.gmra.mxu1 %v6037_v40  ;;  %v5264_v50 = vsel %vm4720_vm9, 0.0, %v16256_v10  ;;  %v4785_v34 = vsel %vm4721_vm11, 0.0, %v14369_v63  ;;  %v5265_v43 = vsel %vm4721_vm11, 0.0, %v16256_v10  ;;  %v4599_v40 = vpop.f32.mrf.mxu0 }
 0x4bc   : > { %v4991_v24 = vrot.slane %v4784_v5, 4  ;;  %v4988_v61 = vadd.f32 %v4987_v30, %v4986_v49  ;;  %v5468_v14 = vadd.f32 %v5467_v48, %v5466_v16  ;;  %v5471_v47 = vrot.slane %v5264_v50, 4 }
 0x4bd   : > { %v4997_v8 = vsel %vm4340_vm0, %v4785_v34, 0.0  ;;  %v5477_v27 = vsel %vm4340_vm0, %v5265_v43, 0.0  ;;  %v4786_v17 = vsel %vm4722_vm12, 0.0, %v14372_v25  ;;  %v14398_v20 = vadd.f32 %v4589_v19, %v13995_v60 }
 0x4be   : > { %v4992_v23 = vadd.f32 %v4991_v24, %v4784_v5  ;;  %v4998_v0 = vrot.slane %v4997_v8, 4  ;;  %v5472_v18 = vadd.f32 %v5471_v47, %v5264_v50  ;;  %v5478_v45 = vrot.slane %v5477_v27, 4 }
 0x4bf   : > { %16290 = vst [vmem:[#allocation54_spill] sm:$0xff] %v14398_v20  ;;  %v5004_v9 = vrot.slane %v4786_v17, 4  ;;  %v5266_v54 = vsel %vm4722_vm12, 0.0, %v16256_v10  ;;  %v4989_v58 = vrot.slane %v4988_v61, 1  ;;  %v5469_v26 = vrot.slane %v5468_v14, 1 }
 0x4c0   : > { %v4993_v13 = vrot.slane %v4992_v23, 2  ;;  %v4999_v56 = vadd.f32 %v4998_v0, %v4997_v8  ;;  %v5473_v6 = vrot.slane %v5472_v18, 2  ;;  %v5479_v53 = vadd.f32 %v5478_v45, %v5477_v27 }
 0x4c1   : > { %v5005_v52 = vadd.f32 %v5004_v9, %v4786_v17  ;;  %v5484_v49 = vrot.slane %v5266_v54, 4  ;;  %v14407_v19 = vadd.f32 %v5456_v7, %v14304_v35  ;;  %vm4723_vm13 = vcmp.ne.f32.partialorder %v14398_v20, %v14398_v20 }
 0x4c2   : > { %v4994_v38 = vadd.f32 %v4993_v13, %v4992_v23  ;;  %v5000_v41 = vrot.slane %v4999_v56, 2  ;;  %v5480_v16 = vrot.slane %v5479_v53, 2  ;;  %v14412_v36 = vadd.f32 %v4593_v62, %v13988_v42 }
 0x4c3   : > { %v14414_v37 = vadd.f32 %v5473_v6, %v5472_v18  ;;  %v5006_v48 = vrot.slane %v5005_v52, 2  ;;  %v14417_v5 = vadd.f32 %v4982_v1, %v14331_v51  ;;  %v5485_v24 = vadd.f32 %v5484_v49, %v5266_v54 }
 0x4c4   : > { %16291 = vst [vmem:[#allocation70_spill] sm:$0xff] %v14412_v36  ;;  %v4995_v12 = vrot.slane %v4994_v38, 1  ;;  %v5001_v30 = vadd.f32 %v5000_v41, %v4999_v56  ;;  %v4787_v35 = vsel %vm4723_vm13, 0.0, %v14398_v20  ;;  %v5267_v7 = vsel %vm4723_vm13, 0.0, %v16256_v10 }
 0x4c5   : > { %16292 = vst [vmem:[#allocation71_spill] sm:$0xff] %v14414_v37  ;;  %v14422_v50 = vadd.f32 %v5462_v11, %v14333_v2  ;;  %v14424_v34 = vadd.f32 %v4989_v58, %v4988_v61  ;;  %v14426_v43 = vadd.f32 %v5469_v26, %v5468_v14  ;;  %v5481_v62 = vadd.f32 %v5480_v16, %v5479_v53  ;;  %v4601_v61 = vpop.f32.mrf.mxu0 }
 0x4c6   : > { %v5002_v47 = vrot.slane %v5001_v30, 1  ;;  %v5010_v8 = vsel %vm4340_vm0, %v4787_v35, 0.0  ;;  %v5490_v23 = vsel %vm4340_vm0, %v5267_v7, 0.0  ;;  %vm4724_vm14 = vcmp.ne.f32.partialorder %v14412_v36, %v14412_v36 }
 0x4c7   : > { %16293 = vst [vmem:[#allocation72_spill] sm:$0xff] %v14422_v50  ;;  %v14432_v51 = vadd.f32 %v4995_v12, %v4994_v38  ;;  %v14435_v0 = vadd.f32 %v5006_v48, %v5005_v52  ;;  %v5011_v2 = vrot.slane %v5010_v8, 4  ;;  %v5486_v27 = vrot.slane %v5485_v24, 2  ;;  %v4605_v41 = vpop.f32.mrf.mxu0 }
 0x4c8   : > { %v5491_v14 = vrot.slane %v5490_v23, 4  ;;  %v4788_v17 = vsel %vm4724_vm14, 0.0, %v14412_v36  ;;  %v5268_v11 = vsel %vm4724_vm14, 0.0, %v16256_v10  ;;  %v14440_v56 = vadd.f32 %v4595_v44, %v13995_v60 }
 0x4c9   : > { %16294 = vst [vmem:[#allocation73_spill] sm:$0xff] %v14432_v51  ;;  %v5012_v18 = vadd.f32 %v5011_v2, %v5010_v8  ;;  %v5017_v45 = vrot.slane %v4788_v17, 4  ;;  %v5497_v13 = vrot.slane %v5268_v11, 4  ;;  %v14442_v9 = vadd.f32 %v5002_v47, %v5001_v30 }
 0x4ca   : > { %16295 = vst [vmem:[#allocation74_spill] sm:$0xff] %v14440_v56  ;;  %v5482_v54 = vrot.slane %v5481_v62, 1  ;;  %v5492_v58 = vadd.f32 %v5491_v14, %v5490_v23  ;;  %v14445_v26 = vadd.f32 %v4599_v40, %v13988_v42  ;;  %vm4725_vm15 = vcmp.ne.f32.partialorder %v14440_v56, %v14440_v56  ;;  %v4607_v14 = vpop.f32.mrf.mxu0 }
 0x4cb   : > { %v5013_v6 = vrot.slane %v5012_v18, 2  ;;  %v5018_v53 = vadd.f32 %v5017_v45, %v4788_v17  ;;  %v14447_v38 = vadd.f32 %v5497_v13, %v5268_v11  ;;  %v4789_v49 = vsel %vm4725_vm15, 0.0, %v14440_v56 }
 0x4cc   : > { %16296 = vst [vmem:[#allocation75_spill] sm:$0xff] %v14445_v26  ;;  %v5493_v52 = vrot.slane %v5492_v58, 2  ;;  %vm4726_vm2 = vcmp.ne.f32.partialorder %v14445_v26, %v14445_v26  ;;  %v14455_v44 = vadd.f32 %v4601_v61, %v13995_v60  ;;  %v5023_v30 = vsel %vm4340_vm0, %v4789_v49, 0.0 }
 0x4cd   : > { %v14458_v12 = vadd.f32 %v5013_v6, %v5012_v18  ;;  %v5269_v48 = vsel %vm4725_vm15, 0.0, %v16256_v10  ;;  %v14462_v40 = vadd.f32 %v5486_v27, %v5485_v24  ;;  %v5019_v35 = vrot.slane %v5018_v53, 2 }
 0x4ce   : > { %16297 = vst [vmem:[#allocation76_spill] sm:$0xff] %v14455_v44  ;;  %v4790_v7 = vsel %vm4726_vm2, 0.0, %v14445_v26  ;;  %v14469_v47 = vadd.f32 %v4605_v41, %v13988_v42  ;;  %v14471_v8 = vadd.f32 %v5482_v54, %v5481_v62  ;;  %v14473_v23 = vadd.f32 %v5493_v52, %v5492_v58 }
 0x4cf   : > { %v5030_v61 = vrot.slane %v4790_v7, 4  ;;  %v5024_v17 = vrot.slane %v5023_v30, 4  ;;  %v5503_v24 = vsel %vm4340_vm0, %v5269_v48, 0.0  ;;  %v5270_v27 = vsel %vm4726_vm2, 0.0, %v16256_v10  ;;  %v4611_v48 = vpop.f32.mrf.mxu0 }
 0x4d0   : > { %16298 = vst [vmem:[#allocation77_spill] sm:$0xff] %v14469_v47  ;;  %vm4727_vm7 = vcmp.ne.f32.partialorder %v14455_v44, %v14455_v44  ;;  %v5510_v18 = vrot.slane %v5270_v27, 4  ;;  %v14485_v13 = vadd.f32 %v5019_v35, %v5018_v53  ;;  %vm4728_vm9 = vcmp.ne.f32.partialorder %v14469_v47, %v14469_v47 }
 0x4d1   : > { %v5031_v11 = vadd.f32 %v5030_v61, %v4790_v7  ;;  %v4791_v45 = vsel %vm4727_vm7, 0.0, %v14455_v44  ;;  %v5271_v58 = vsel %vm4727_vm7, 0.0, %v16256_v10  ;;  %v5504_v6 = vrot.slane %v5503_v24, 4 }
 0x4d2   : > { %v5036_v54 = vsel %vm4340_vm0, %v4791_v45, 0.0  ;;  %v5511_v52 = vadd.f32 %v5510_v18, %v5270_v27  ;;  %v5025_v1 = vadd.f32 %v5024_v17, %v5023_v30  ;;  %v5516_v7 = vsel %vm4340_vm0, %v5271_v58, 0.0 }
 0x4d3   : > { %v5032_v41 = vrot.slane %v5031_v11, 2  ;;  %v5037_v49 = vrot.slane %v5036_v54, 4  ;;  %v4792_v61 = vsel %vm4728_vm9, 0.0, %v14469_v47  ;;  %v5272_v53 = vsel %vm4728_vm9, 0.0, %v16256_v10 }
 0x4d4   : > { %v5512_v2 = vrot.slane %v5511_v52, 2  ;;  %v5517_v16 = vrot.slane %v5516_v7, 4  ;;  %v5043_v62 = vrot.slane %v4792_v61, 4  ;;  %v5523_v44 = vrot.slane %v5272_v53, 4 }
 0x4d5   : > { %v5033_v35 = vadd.f32 %v5032_v41, %v5031_v11  ;;  %v5038_v45 = vadd.f32 %v5037_v49, %v5036_v54  ;;  %v14495_v26 = vadd.f32 %v4607_v14, %v13995_v60  ;;  %v14498_v27 = vadd.f32 %v4611_v48, %v13988_v42 }
 0x4d6   : > { %v14500_v18 = vadd.f32 %v5504_v6, %v5503_v24  ;;  %v5513_v30 = vadd.f32 %v5512_v2, %v5511_v52  ;;  %v5518_v58 = vadd.f32 %v5517_v16, %v5516_v7  ;;  %v5026_v47 = vrot.slane %v5025_v1, 2  ;;  %v4613_v6 = vpop.f32.mrf.mxu0 }
 0x4d7   : > { %16299 = vst [vmem:[#allocation78_spill] sm:$0xff] %v14495_v26  ;;  %16300 = vst [vmem:[#allocation79_spill] sm:$0xff] %v14498_v27  ;;  %v5039_v17 = vrot.slane %v5038_v45, 2  ;;  %v5044_v56 = vadd.f32 %v5043_v62, %v4792_v61  ;;  %v5524_v36 = vadd.f32 %v5523_v44, %v5272_v53  ;;  %vm4729_vm11 = vcmp.ne.f32.partialorder %v14495_v26, %v14495_v26 }
 0x4d8   : > { %v5034_v11 = vrot.slane %v5033_v35, 1  ;;  %v5514_v54 = vrot.slane %v5513_v30, 1  ;;  %v5519_v41 = vrot.slane %v5518_v58, 2  ;;  %vm4730_vm12 = vcmp.ne.f32.partialorder %v14498_v27, %v14498_v27 }
 0x4d9   : > { %v5045_v14 = vrot.slane %v5044_v56, 2  ;;  %v5525_v49 = vrot.slane %v5524_v36, 2  ;;  %v4793_v24 = vsel %vm4729_vm11, 0.0, %v14495_v26  ;;  %v5273_v2 = vsel %vm4729_vm11, 0.0, %v16256_v10 }
 0x4da   : > { %v5040_v62 = vadd.f32 %v5039_v17, %v5038_v45  ;;  %v5049_v52 = vsel %vm4340_vm0, %v4793_v24, 0.0  ;;  %v5520_v48 = vadd.f32 %v5519_v41, %v5518_v58  ;;  %v5529_v53 = vsel %vm4340_vm0, %v5273_v2, 0.0  ;;  %v4617_v24 = vpop.f32.mrf.mxu0 }
 0x4db   : > { %v5046_v7 = vadd.f32 %v5045_v14, %v5044_v56  ;;  %v5050_v61 = vrot.slane %v5049_v52, 4  ;;  %v14512_v25 = vadd.f32 %v5026_v47, %v5025_v1  ;;  %v5035_v29 = vadd.f32 %v5034_v11, %v5033_v35 }
 0x4dc   : > { %v5530_v55 = vrot.slane %v5529_v53, 4  ;;  %v4794_v26 = vsel %vm4730_vm12, 0.0, %v14498_v27  ;;  %v14518_v16 = vadd.f32 %v5514_v54, %v5513_v30  ;;  %v5526_v44 = vadd.f32 %v5525_v49, %v5524_v36 }
 0x4dd   : > { %v5051_v45 = vadd.f32 %v5050_v61, %v5049_v52  ;;  %v5056_v17 = vrot.slane %v4794_v26, 4  ;;  %v5041_v58 = vrot.slane %v5040_v62, 1  ;;  %v5274_v1 = vsel %vm4730_vm12, 0.0, %v16256_v10 }
 0x4de   : > { %16301 = vst [vmem:[#allocation80_spill] sm:$0xff] %v14518_v16  ;;  %v5531_v56 = vadd.f32 %v5530_v55, %v5529_v53  ;;  %v14525_v47 = vadd.f32 %v4613_v6, %v13995_v60  ;;  %v5521_v35 = vrot.slane %v5520_v48, 1  ;;  %v5047_v11 = vrot.slane %v5046_v7, 1 }
 0x4df   : > { %v5052_v41 = vrot.slane %v5051_v45, 2  ;;  %v5057_v14 = vadd.f32 %v5056_v17, %v4794_v26  ;;  %v5536_v54 = vrot.slane %v5274_v1, 4  ;;  %v14530_v36 = vadd.f32 %v4617_v24, %v13988_v42  ;;  %v4619_v26 = vpop.f32.mrf.mxu0 }
 0x4e0   : > { %16302 = vst [vmem:[#allocation81_spill] sm:$0xff] %v14525_v47  ;;  %v5532_v30 = vrot.slane %v5531_v56, 2  ;;  %vm4731_vm13 = vcmp.ne.f32.partialorder %v14525_v47, %v14525_v47  ;;  %v5527_v55 = vrot.slane %v5526_v44, 1  ;;  %v5522_v39 = vadd.f32 %v5521_v35, %v5520_v48 }
 0x4e1   : > { %16303 = vst [vmem:[#allocation82_spill] sm:$0xff] %v14530_v36  ;;  %v5053_v49 = vadd.f32 %v5052_v41, %v5051_v45  ;;  %v5058_v2 = vrot.slane %v5057_v14, 2  ;;  %v4795_v52 = vsel %vm4731_vm13, 0.0, %v14525_v47  ;;  %v5537_v6 = vadd.f32 %v5536_v54, %v5274_v1  ;;  %v4623_v50 = vpop.f32.mrf.mxu0 }
 0x4e2   : > { %v5533_v61 = vadd.f32 %v5532_v30, %v5531_v56  ;;  %v5062_v53 = vsel %vm4340_vm0, %v4795_v52, 0.0  ;;  %v5275_v27 = vsel %vm4731_vm13, 0.0, %v16256_v10  ;;  %vm4732_vm14 = vcmp.ne.f32.partialorder %v14530_v36, %v14530_v36 }
 0x4e3   : > { %v5054_v17 = vrot.slane %v5053_v49, 1  ;;  %v5059_v20 = vadd.f32 %v5058_v2, %v5057_v14  ;;  %v5063_v63 = vrot.slane %v5062_v53, 4  ;;  %v5542_v4 = vsel %vm4340_vm0, %v5275_v27, 0.0 }
 0x4e4   : > { %v5534_v46 = vrot.slane %v5533_v61, 1  ;;  %v5538_v24 = vrot.slane %v5537_v6, 2  ;;  %v5543_v16 = vrot.slane %v5542_v4, 4  ;;  %v5048_v45 = vadd.f32 %v5047_v11, %v5046_v7 }
 0x4e5   : > { %v5055_v41 = vadd.f32 %v5054_v17, %v5053_v49  ;;  %v5064_v56 = vadd.f32 %v5063_v63, %v5062_v53  ;;  %v4796_v1 = vsel %vm4732_vm14, 0.0, %v14530_v36  ;;  %v5060_v30 = vrot.slane %v5059_v20, 1 }
 0x4e6   : > { %v5539_v54 = vadd.f32 %v5538_v24, %v5537_v6  ;;  %v5544_v52 = vadd.f32 %v5543_v16, %v5542_v4  ;;  %v5069_v47 = vrot.slane %v4796_v1, 4  ;;  %v5042_v14 = vadd.f32 %v5041_v58, %v5040_v62 }
 0x4e7   : > { %v5535_v2 = vadd.f32 %v5534_v46, %v5533_v61  ;;  %v5065_v59 = vrot.slane %v5064_v56, 2  ;;  %v5276_v27 = vsel %vm4732_vm14, 0.0, %v16256_v10  ;;  %v14540_v51 = vadd.f32 %v5527_v55, %v5526_v44 }
 0x4e8   : > { %v5540_v21 = vrot.slane %v5539_v54, 1  ;;  %v5070_v37 = vadd.f32 %v5069_v47, %v4796_v1  ;;  %v5545_v7 = vrot.slane %v5544_v52, 2  ;;  %v5549_v11 = vrot.slane %v5276_v27, 4 }
 0x4e9   : > { %16304 = vst [vmem:[#allocation83_spill] sm:$0xff] %v14540_v51  ;;  %v14543_v63 = vadd.f32 %v4619_v26, %v13995_v60  ;;  %v14546_v49 = vadd.f32 %v4623_v50, %v13988_v42  ;;  %v14549_v4 = vsel %vm5807_vm6, %v5048_v45, %v5035_v29  ;;  %v14552_v46 = vsel %vm5807_vm6, %v5055_v41, %v5042_v14 }
 0x4ea   : > { %v14554_v16 = vadd.f32 %v5060_v30, %v5059_v20  ;;  %v5066_v44 = vadd.f32 %v5065_v59, %v5064_v56  ;;  %v14557_v62 = vsel %vm5807_vm6, %v5535_v2, %v5522_v39  ;;  %v5071_v48 = vrot.slane %v5070_v37, 2 }
 0x4eb   : > { %16305 = vst [vmem:[#allocation84_spill] sm:$0xff] %v14543_v63  ;;  %16306 = vst [vmem:[#allocation85_spill] sm:$0xff] %v14546_v49  ;;  %v5550_v58 = vadd.f32 %v5549_v11, %v5276_v27  ;;  %vm4733_vm15 = vcmp.ne.f32.partialorder %v14543_v63, %v14543_v63  ;;  %v14561_v47 = vadd.f32 %v5540_v21, %v5539_v54  ;;  %v16308_v21 = vrot.slane %v14458_v12, 1 }
 0x4ec   : > { %v4797_v50 = vsel %vm4733_vm15, 0.0, %v14543_v63  ;;  %v5277_v29 = vsel %vm4733_vm15, 0.0, %v16256_v10  ;;  %vm4734_vm2 = vcmp.ne.f32.partialorder %v14546_v49, %v14546_v49  ;;  %v5546_v20 = vadd.f32 %v5545_v7, %v5544_v52 }
 0x4ed   : > { %16307 = vst [vmem:[#allocation86_spill] sm:$0xff] %v14561_v47  ;;  %v5551_v35 = vrot.slane %v5550_v58, 2  ;;  %v5075_v59 = vsel %vm4340_vm0, %v4797_v50, 0.0  ;;  %v5555_v39 = vsel %vm4340_vm0, %v5277_v29, 0.0  ;;  %v5067_v55 = vrot.slane %v5066_v44, 1 }
 0x4ee   : > { %v5076_v61 = vrot.slane %v5075_v59, 4  ;;  %v5556_v6 = vrot.slane %v5555_v39, 4  ;;  %v5016_v53 = vadd.f32 %v16308_v21, %v14458_v12  ;;  %v5072_v26 = vadd.f32 %v5071_v48, %v5070_v37  ;;  %v4625_v12 = vpop.f32.mrf.mxu0 }
 0x4ef   : > { %v4798_v17 = vsel %vm4734_vm2, 0.0, %v14546_v49  ;;  %v5278_v24 = vsel %vm4734_vm2, 0.0, %v16256_v10  ;;  %v5028_v45 = vrot.slane %v14512_v25, 1  ;;  %v5552_v41 = vadd.f32 %v5551_v35, %v5550_v58 }
 0x4f0   : > { %v5077_v56 = vadd.f32 %v5076_v61, %v5075_v59  ;;  %v5557_v1 = vadd.f32 %v5556_v6, %v5555_v39  ;;  %v5082_v30 = vrot.slane %v4798_v17, 4  ;;  %v5547_v54 = vrot.slane %v5546_v20, 1 }
 0x4f1   : > { %v5562_v52 = vrot.slane %v5278_v24, 4  ;;  %v5029_v14 = vadd.f32 %v5028_v45, %v14512_v25  ;;  %v5836_v2 = vsel %vm5809_vm8, %v14291_v31, %v14259_v3  ;;  %v14581_v48 = vadd.f32 %v5067_v55, %v5066_v44  ;;  %v4629_v55 = vpop.f32.mrf.mxu0 }
 0x4f2   : > { %v5078_v37 = vrot.slane %v5077_v56, 2  ;;  %v5558_v27 = vrot.slane %v5557_v1, 2  ;;  %v5083_v7 = vadd.f32 %v5082_v30, %v4798_v17  ;;  %v5837_v11 = vsel %vm5811_vm10, %v14337_v57, %v5836_v2 }
 0x4f3   : > { %v5073_v58 = vrot.slane %v5072_v26, 1  ;;  %v5563_v50 = vadd.f32 %v5562_v52, %v5278_v24  ;;  %v5838_v29 = vsel %vm5813_vm1, %v14424_v34, %v5837_v11  ;;  %v5553_v35 = vrot.slane %v5552_v41, 1 }
 0x4f4   : > { %v5079_v25 = vadd.f32 %v5078_v37, %v5077_v56  ;;  %v5559_v59 = vadd.f32 %v5558_v27, %v5557_v1  ;;  %v5839_v3 = vsel %vm5815_vm3, %v14442_v9, %v5838_v29  ;;  %v14587_v31 = vadd.f32 %v5547_v54, %v5546_v20 }
 0x4f5   : > { %v5084_v39 = vrot.slane %v5083_v7, 2  ;;  %v5840_v61 = vsel %vm5817_vm4, %v5016_v53, %v5839_v3  ;;  %v16309_v57 = vrot.slane %v14500_v18, 2  ;;  %v5564_v6 = vrot.slane %v5563_v50, 2 }
 0x4f6   : > { %v5841_v21 = vsel %vm5819_vm5, %v5029_v14, %v5840_v61  ;;  %v16310_v34 = vrot.slane %v14473_v23, 1  ;;  %v6053_v9 = vsel %vm5809_vm8, %v14320_v15, %v14265_v32  ;;  %v5080_v20 = vrot.slane %v5079_v25, 1 }
 0x4f7   : > { %v5507_v44 = vadd.f32 %v16309_v57, %v14500_v18  ;;  %9323 = vmatprep.mubr.msk.f32.mxu0 %vm4340_vm0, %v5841_v21  ;;  %v6054_v24 = vsel %vm5811_vm10, %v14407_v19, %v6053_v9  ;;  %v14604_v18 = vadd.f32 %v4625_v12, %v13995_v60  ;;  %v14606_v45 = vadd.f32 %v5073_v58, %v5072_v26  ;;  %v4631_v19 = vpop.f32.mrf.mxu0  ;;  %v16317_v21 = vld [vmem:[#allocation58_spill] sm:$0xff]  ;;  %v16319_v9 = vld [vmem:[#allocation73_spill] sm:$0xff] }
 0x4f8   : > { %v5496_v17 = vadd.f32 %v16310_v34, %v14473_v23  ;;  %v14608_v56 = vadd.f32 %v5553_v35, %v5552_v41  ;;  %v5560_v1 = vrot.slane %v5559_v59, 1  ;;  %v6055_v23 = vsel %vm5813_vm1, %v14426_v43, %v6054_v24  ;;  %v16318_v34 = vld [vmem:[#allocation61_spill] sm:$0xff] }
 0x4f9   : > { %v5508_v53 = vrot.slane %v5507_v44, 1  ;;  %16311 = vst [vmem:[#allocation87_spill] sm:$0xff] %v14604_v18  ;;  %v14612_v30 = vadd.f32 %v5084_v39, %v5083_v7  ;;  %v6056_v15 = vsel %vm5815_vm3, %v14471_v8, %v6055_v23  ;;  %vm4735_vm7 = vcmp.ne.f32.partialorder %v14604_v18, %v14604_v18 }
 0x4fa   : > { %16312 = vst [vmem:[#allocation88_spill] sm:$0xff] %v14608_v56  ;;  %v14618_v54 = vadd.f32 %v5564_v6, %v5563_v50  ;;  %v6057_v26 = vsel %vm5817_vm4, %v5496_v17, %v6056_v15  ;;  %v4799_v41 = vsel %vm4735_vm7, 0.0, %v14604_v18  ;;  %v5279_v52 = vsel %vm4735_vm7, 0.0, %v16256_v10 }
 0x4fb   : > { %v5509_v32 = vadd.f32 %v5508_v53, %v5507_v44  ;;  %v14623_v14 = vadd.f32 %v5080_v20, %v5079_v25  ;;  %v5088_v2 = vsel %vm4340_vm0, %v4799_v41, 0.0  ;;  %v5568_v8 = vsel %vm4340_vm0, %v5279_v52, 0.0  ;;  %v16315_v44 = vld [vmem:[#allocation71_spill] sm:$0xff]  ;;  %v16320_v53 = vld [vmem:[#allocation64_spill] sm:$0xff] }
 0x4fc   : > { %v14628_v12 = vadd.f32 %v5560_v1, %v5559_v59  ;;  %v5089_v37 = vrot.slane %v5088_v2, 4  ;;  %v5569_v27 = vrot.slane %v5568_v8, 4  ;;  %v5021_v7 = vrot.slane %v14485_v13, 1  ;;  %v4635_v59 = vpop.f32.mrf.mxu0  ;;  %v16321_v1 = vld [vmem:[#allocation65_spill] sm:$0xff] }
 0x4fd   : > { %v6058_v43 = vsel %vm5819_vm5, %v5509_v32, %v6057_v26  ;;  %v16313_v11 = vrot.slane %v14435_v0, 1  ;;  %v5829_v50 = vsel %vm5809_vm8, %v14273_v22, %v14253_v33  ;;  %v5488_v29 = vrot.slane %v14462_v40, 1 }
 0x4fe   : > { %9327 = vmatprep.mubr.msk.f32.mxu1 %vm4340_vm0, %v6058_v43  ;;  %v16314_v35 = vrot.slane %v14447_v38, 2  ;;  %v5090_v3 = vadd.f32 %v5089_v37, %v5088_v2  ;;  %v5570_v39 = vadd.f32 %v5569_v27, %v5568_v8  ;;  %v5022_v61 = vadd.f32 %v5021_v7, %v14485_v13  ;;  %v4637_v15 = vpop.f32.mrf.mxu0  ;;  %v16323_v43 = vld [vmem:[#allocation72_spill] sm:$0xff] }
 0x4ff   : > { %v5009_v58 = vadd.f32 %v16313_v11, %v14435_v0  ;;  %v5830_v57 = vsel %vm5811_vm10, %v14315_v28, %v5829_v50  ;;  %v16316_v33 = vrot.slane %v16315_v44, 1  ;;  %v5489_v13 = vadd.f32 %v5488_v29, %v14462_v40 }
 0x500   : > { %v5500_v25 = vadd.f32 %v16314_v35, %v14447_v38  ;;  %v5831_v0 = vsel %vm5813_vm1, %v14417_v5, %v5830_v57  ;;  %v6045_v38 = vsel %vm5807_vm6, %v16318_v34, %v16317_v21  ;;  %v5091_v17 = vrot.slane %v5090_v3, 2 }
 0x501   : > { %v5476_v22 = vadd.f32 %v16316_v33, %v16315_v44  ;;  %v5832_v20 = vsel %vm5815_vm3, %v16319_v9, %v5831_v0  ;;  %v6046_v28 = vsel %vm5809_vm8, %v16320_v53, %v6045_v38  ;;  %v14662_v32 = vadd.f32 %v4629_v55, %v13988_v42 }
 0x502   : > { %v5501_v6 = vrot.slane %v5500_v25, 1  ;;  %v5833_v5 = vsel %vm5817_vm4, %v5009_v58, %v5832_v20  ;;  %v6047_v23 = vsel %vm5811_vm10, %v16321_v1, %v6046_v28  ;;  %v5092_v26 = vadd.f32 %v5091_v17, %v5090_v3 }
 0x503   : > { %16322 = vst [vmem:[#allocation71_spill] sm:$0xff] %v14662_v32  ;;  %v5571_v41 = vrot.slane %v5570_v39, 2  ;;  %v5834_v52 = vsel %vm5819_vm5, %v5022_v61, %v5833_v5  ;;  %v6048_v40 = vsel %vm5813_vm1, %v16323_v43, %v6047_v23  ;;  %vm4736_vm9 = vcmp.ne.f32.partialorder %v14662_v32, %v14662_v32 }
 0x504   : > { %v5502_v24 = vadd.f32 %v5501_v6, %v5500_v25  ;;  %5952 = vmatmul.mubr.f32.gmra.mxu0 %v5834_v52  ;;  %v6049_v2 = vsel %vm5815_vm3, %v5476_v22, %v6048_v40  ;;  %v14671_v8 = vadd.f32 %v4631_v19, %v13995_v60  ;;  %v14674_v55 = vadd.f32 %v4635_v59, %v13988_v42  ;;  %v4641_v19 = vpop.f32.mrf.mxu0 }
 0x505   : > { %v5086_v37 = vrot.slane %v14612_v30, 1  ;;  %v5566_v27 = vrot.slane %v14618_v54, 1  ;;  %v6050_v7 = vsel %vm5817_vm4, %v5489_v13, %v6049_v2  ;;  %v4800_v11 = vsel %vm4736_vm9, 0.0, %v14662_v32 }
 0x506   : > { %16324 = vst [vmem:[#allocation58_spill] sm:$0xff] %v14671_v8  ;;  %16325 = vst [vmem:[#allocation61_spill] sm:$0xff] %v14674_v55  ;;  %v6051_v58 = vsel %vm5819_vm5, %v5502_v24, %v6050_v7  ;;  %v5095_v50 = vrot.slane %v4800_v11, 4  ;;  %v5280_v29 = vsel %vm4736_vm9, 0.0, %v16256_v10  ;;  %vm4737_vm11 = vcmp.ne.f32.partialorder %v14671_v8, %v14671_v8  ;;  %v4643_v17 = vpop.f32.mrf.mxu0 }
 0x507   : > { %v5093_v35 = vrot.slane %v5092_v26, 1  ;;  %v5572_v25 = vadd.f32 %v5571_v41, %v5570_v39  ;;  %6169 = vmatmul.mubr.f32.gmra.mxu1 %v6051_v58  ;;  %v5575_v59 = vrot.slane %v5280_v29, 4  ;;  %v4801_v3 = vsel %vm4737_vm11, 0.0, %v14671_v8 }
 0x508   : > { %v5096_v61 = vadd.f32 %v5095_v50, %v4800_v11  ;;  %v5101_v57 = vsel %vm4340_vm0, %v4801_v3, 0.0  ;;  %v5281_v0 = vsel %vm4737_vm11, 0.0, %v16256_v10  ;;  %vm4738_vm12 = vcmp.ne.f32.partialorder %v14674_v55, %v14674_v55  ;;  %v4647_v7 = vpop.f32.mrf.mxu0 }
 0x509   : > { %v5576_v44 = vadd.f32 %v5575_v59, %v5280_v29  ;;  %v5102_v33 = vrot.slane %v5101_v57, 4  ;;  %v5581_v22 = vsel %vm4340_vm0, %v5281_v0, 0.0  ;;  %v4802_v6 = vsel %vm4738_vm12, 0.0, %v14674_v55 }
 0x50a   : > { %v5097_v21 = vrot.slane %v5096_v61, 2  ;;  %v5582_v39 = vrot.slane %v5581_v22, 4  ;;  %v5108_v34 = vrot.slane %v4802_v6, 4  ;;  %v5282_v38 = vsel %vm4738_vm12, 0.0, %v16256_v10 }
 0x50b   : > { %v5577_v9 = vrot.slane %v5576_v44, 2  ;;  %v5103_v20 = vadd.f32 %v5102_v33, %v5101_v57  ;;  %v5588_v13 = vrot.slane %v5282_v38, 4  ;;  %v14693_v53 = vadd.f32 %v4637_v15, %v13995_v60 }
 0x50c   : > { %v5573_v28 = vrot.slane %v5572_v25, 1  ;;  %v5098_v5 = vadd.f32 %v5097_v21, %v5096_v61  ;;  %v5583_v24 = vadd.f32 %v5582_v39, %v5581_v22  ;;  %v5109_v1 = vadd.f32 %v5108_v34, %v4802_v6 }
 0x50d   : > { %16326 = vst [vmem:[#allocation73_spill] sm:$0xff] %v14693_v53  ;;  %v14695_v23 = vadd.f32 %v5577_v9, %v5576_v44  ;;  %v5104_v41 = vrot.slane %v5103_v20, 2  ;;  %vm4739_vm13 = vcmp.ne.f32.partialorder %v14693_v53, %v14693_v53  ;;  %v14700_v52 = vadd.f32 %v4641_v19, %v13988_v42 }
 0x50e   : > { %v5584_v43 = vrot.slane %v5583_v24, 2  ;;  %v5110_v40 = vrot.slane %v5109_v1, 2  ;;  %v5589_v2 = vadd.f32 %v5588_v13, %v5282_v38  ;;  %v4803_v15 = vsel %vm4739_vm13, 0.0, %v14693_v53 }
 0x50f   : > { %16327 = vst [vmem:[#allocation64_spill] sm:$0xff] %v14700_v52  ;;  %v14707_v11 = vadd.f32 %v5086_v37, %v14612_v30  ;;  %v14710_v58 = vadd.f32 %v5566_v27, %v14618_v54  ;;  %v5105_v50 = vadd.f32 %v5104_v41, %v5103_v20  ;;  %v5114_v29 = vsel %vm4340_vm0, %v4803_v15, 0.0 }
 0x510   : > { %v14713_v19 = vadd.f32 %v5093_v35, %v5092_v26  ;;  %v14715_v59 = vadd.f32 %v5573_v28, %v5572_v25  ;;  %v5585_v3 = vadd.f32 %v5584_v43, %v5583_v24  ;;  %v5115_v61 = vrot.slane %v5114_v29, 4  ;;  %v4649_v35 = vpop.f32.mrf.mxu0 }
 0x511   : > { %16328 = vst [vmem:[#allocation65_spill] sm:$0xff] %v14710_v58  ;;  %v5099_v57 = vrot.slane %v5098_v5, 1  ;;  %v5283_v30 = vsel %vm4739_vm13, 0.0, %v16256_v10  ;;  %vm4740_vm14 = vcmp.ne.f32.partialorder %v14700_v52, %v14700_v52  ;;  %v14724_v54 = vadd.f32 %v5110_v40, %v5109_v1 }
 0x512   : > { %v5590_v37 = vrot.slane %v5589_v2, 2  ;;  %v5116_v26 = vadd.f32 %v5115_v61, %v5114_v29  ;;  %v5594_v27 = vsel %vm4340_vm0, %v5283_v30, 0.0  ;;  %v5106_v25 = vrot.slane %v5105_v50, 1  ;;  %v4653_v43 = vpop.f32.mrf.mxu0 }
 0x513   : > { %v5595_v44 = vrot.slane %v5594_v27, 4  ;;  %v4804_v33 = vsel %vm4740_vm14, 0.0, %v14700_v52  ;;  %v5284_v22 = vsel %vm4740_vm14, 0.0, %v16256_v10  ;;  %v5586_v6 = vrot.slane %v5585_v3, 1 }
 0x514   : > { %v5117_v21 = vrot.slane %v5116_v26, 2  ;;  %v5121_v39 = vrot.slane %v4804_v33, 4  ;;  %v5601_v34 = vrot.slane %v5284_v22, 4  ;;  %v14729_v38 = vadd.f32 %v5099_v57, %v5098_v5 }
 0x515   : > { %v14732_v9 = vadd.f32 %v4643_v17, %v13995_v60  ;;  %v14735_v20 = vadd.f32 %v4647_v7, %v13988_v42  ;;  %v14738_v13 = vadd.f32 %v4649_v35, %v13995_v60  ;;  %v14741_v24 = vadd.f32 %v5590_v37, %v5589_v2 }
 0x516   : > { %v14743_v1 = vadd.f32 %v5117_v21, %v5116_v26  ;;  %v5596_v41 = vadd.f32 %v5595_v44, %v5594_v27  ;;  %v14745_v40 = vadd.f32 %v5106_v25, %v5105_v50  ;;  %v5122_v5 = vadd.f32 %v5121_v39, %v4804_v33  ;;  %v4655_v21 = vpop.f32.mrf.mxu0 }
 0x517   : > { %16329 = vst [vmem:[#allocation72_spill] sm:$0xff] %v14732_v9  ;;  %16330 = vst [vmem:[#allocation89_spill] sm:$0xff] %v14735_v20  ;;  %vm4741_vm15 = vcmp.ne.f32.partialorder %v14732_v9, %v14732_v9  ;;  %vm4742_vm2 = vcmp.ne.f32.partialorder %v14735_v20, %v14735_v20  ;;  %v14751_v17 = vadd.f32 %v5586_v6, %v5585_v3 }
 0x518   : > { %16331 = vst [vmem:[#allocation90_spill] sm:$0xff] %v14738_v13  ;;  %v14753_v15 = vadd.f32 %v5601_v34, %v5284_v22  ;;  %v4805_v2 = vsel %vm4741_vm15, 0.0, %v14732_v9  ;;  %vm4743_vm7 = vcmp.ne.f32.partialorder %v14738_v13, %v14738_v13  ;;  %v5285_v50 = vsel %vm4741_vm15, 0.0, %v16256_v10  ;;  %v4659_v52 = vpop.f32.mrf.mxu0 }
 0x519   : > { %v5127_v7 = vsel %vm4340_vm0, %v4805_v2, 0.0  ;;  %v4806_v29 = vsel %vm4742_vm2, 0.0, %v14735_v20  ;;  %v14762_v61 = vadd.f32 %v4653_v43, %v13988_v42  ;;  %v5597_v3 = vrot.slane %v5596_v41, 2 }
 0x51a   : > { %v5607_v30 = vsel %vm4340_vm0, %v5285_v50, 0.0  ;;  %v5134_v37 = vrot.slane %v4806_v29, 4  ;;  %v5123_v26 = vrot.slane %v5122_v5, 2  ;;  %v5128_v27 = vrot.slane %v5127_v7, 4 }
 0x51b   : > { %16332 = vst [vmem:[#allocation91_spill] sm:$0xff] %v14762_v61  ;;  %v5286_v35 = vsel %vm4742_vm2, 0.0, %v16256_v10  ;;  %v4807_v25 = vsel %vm4743_vm7, 0.0, %v14738_v13  ;;  %v5608_v44 = vrot.slane %v5607_v30, 4  ;;  %v5287_v43 = vsel %vm4743_vm7, 0.0, %v16256_v10 }
 0x51c   : > { %v5135_v33 = vadd.f32 %v5134_v37, %v4806_v29  ;;  %v5614_v22 = vrot.slane %v5286_v35, 4  ;;  %v5140_v6 = vsel %vm4340_vm0, %v4807_v25, 0.0  ;;  %vm4744_vm9 = vcmp.ne.f32.partialorder %v14762_v61, %v14762_v61 }
 0x51d   : > { %v5141_v34 = vrot.slane %v5140_v6, 4  ;;  %v14779_v2 = vadd.f32 %v5597_v3, %v5596_v41  ;;  %v5620_v29 = vsel %vm4340_vm0, %v5287_v43, 0.0  ;;  %v5129_v37 = vadd.f32 %v5128_v27, %v5127_v7 }
 0x51e   : > { %v5136_v50 = vrot.slane %v5135_v33, 2  ;;  %v5615_v0 = vadd.f32 %v5614_v22, %v5286_v35  ;;  %v5621_v28 = vrot.slane %v5620_v29, 4  ;;  %v4808_v39 = vsel %vm4744_vm9, 0.0, %v14762_v61 }
 0x51f   : > { %v5142_v25 = vadd.f32 %v5141_v34, %v5140_v6  ;;  %v14786_v57 = vadd.f32 %v5608_v44, %v5607_v30  ;;  %v5147_v9 = vrot.slane %v4808_v39, 4  ;;  %v5288_v7 = vsel %vm4744_vm9, 0.0, %v16256_v10 }
 0x520   : > { %v5137_v20 = vadd.f32 %v5136_v50, %v5135_v33  ;;  %v5616_v13 = vrot.slane %v5615_v0, 2  ;;  %v5622_v3 = vadd.f32 %v5621_v28, %v5620_v29  ;;  %v14793_v27 = vadd.f32 %v4655_v21, %v13995_v60  ;;  %v4661_v21 = vpop.f32.mrf.mxu0 }
 0x521   : > { %v5143_v41 = vrot.slane %v5142_v25, 2  ;;  %v14795_v35 = vadd.f32 %v5123_v26, %v5122_v5  ;;  %v5148_v6 = vadd.f32 %v5147_v9, %v4808_v39  ;;  %v5627_v30 = vrot.slane %v5288_v7, 4 }
 0x522   : > { %16333 = vst [vmem:[#allocation92_spill] sm:$0xff] %v14793_v27  ;;  %v5617_v22 = vadd.f32 %v5616_v13, %v5615_v0  ;;  %v5130_v44 = vrot.slane %v5129_v37, 2  ;;  %v5138_v33 = vrot.slane %v5137_v20, 1  ;;  %v5623_v34 = vrot.slane %v5622_v3, 2 }
 0x523   : > { %vm4745_vm11 = vcmp.ne.f32.partialorder %v14793_v27, %v14793_v27  ;;  %v5149_v43 = vrot.slane %v5148_v6, 2  ;;  %v5628_v50 = vadd.f32 %v5627_v30, %v5288_v7  ;;  %v14801_v29 = vadd.f32 %v4659_v52, %v13988_v42 }
 0x524   : > { %v5144_v26 = vadd.f32 %v5143_v41, %v5142_v25  ;;  %v4809_v0 = vsel %vm4745_vm11, 0.0, %v14793_v27  ;;  %v5289_v9 = vsel %vm4745_vm11, 0.0, %v16256_v10  ;;  %v5618_v13 = vrot.slane %v5617_v22, 1  ;;  %v4665_v25 = vpop.f32.mrf.mxu0 }
 0x525   : > { %16334 = vst [vmem:[#allocation93_spill] sm:$0xff] %v14801_v29  ;;  %v5624_v39 = vadd.f32 %v5623_v34, %v5622_v3  ;;  %v5629_v61 = vrot.slane %v5628_v50, 2  ;;  %v5153_v55 = vsel %vm4340_vm0, %v4809_v0, 0.0  ;;  %v14807_v32 = vadd.f32 %v5130_v44, %v5129_v37 }
 0x526   : > { %v5139_v28 = vadd.f32 %v5138_v33, %v5137_v20  ;;  %v5154_v7 = vrot.slane %v5153_v55, 4  ;;  %v5633_v52 = vsel %vm4340_vm0, %v5289_v9, 0.0  ;;  %v5150_v30 = vadd.f32 %v5149_v43, %v5148_v6 }
 0x527   : > { %v5630_v49 = vadd.f32 %v5629_v61, %v5628_v50  ;;  %v5634_v53 = vrot.slane %v5633_v52, 4  ;;  %vm4746_vm12 = vcmp.ne.f32.partialorder %v14801_v29, %v14801_v29  ;;  %v5145_v41 = vrot.slane %v5144_v26, 1 }
 0x528   : > { %v5155_v5 = vadd.f32 %v5154_v7, %v5153_v55  ;;  %v4810_v3 = vsel %vm4746_vm12, 0.0, %v14801_v29  ;;  %v5290_v34 = vsel %vm4746_vm12, 0.0, %v16256_v10  ;;  %v14814_v0 = vadd.f32 %v5618_v13, %v5617_v22 }
 0x529   : > { %v5625_v37 = vrot.slane %v5624_v39, 1  ;;  %v5635_v20 = vadd.f32 %v5634_v53, %v5633_v52  ;;  %v5160_v44 = vrot.slane %v4810_v3, 4  ;;  %v5640_v9 = vrot.slane %v5290_v34, 4 }
 0x52a   : > { %16335 = vst [vmem:[#allocation94_spill] sm:$0xff] %v14814_v0  ;;  %v5156_v33 = vrot.slane %v5155_v5, 2  ;;  %v14817_v61 = vadd.f32 %v4661_v21, %v13995_v60  ;;  %v14820_v6 = vadd.f32 %v4665_v25, %v13988_v42  ;;  %v5151_v43 = vrot.slane %v5150_v30, 1 }
 0x52b   : > { %v5631_v50 = vrot.slane %v5630_v49, 1  ;;  %v5636_v55 = vrot.slane %v5635_v20, 2  ;;  %v5161_v7 = vadd.f32 %v5160_v44, %v4810_v3  ;;  %v5641_v27 = vadd.f32 %v5640_v9, %v5290_v34  ;;  %v4667_v9 = vpop.f32.mrf.mxu0 }
 0x52c   : > { %16336 = vst [vmem:[#allocation95_spill] sm:$0xff] %v14817_v61  ;;  %16337 = vst [vmem:[#allocation96_spill] sm:$0xff] %v14820_v6  ;;  %v5157_v29 = vadd.f32 %v5156_v33, %v5155_v5  ;;  %vm4747_vm13 = vcmp.ne.f32.partialorder %v14817_v61, %v14817_v61  ;;  %vm4748_vm14 = vcmp.ne.f32.partialorder %v14820_v6, %v14820_v6 }
 0x52d   : > { %v5637_v53 = vadd.f32 %v5636_v55, %v5635_v20  ;;  %v5162_v22 = vrot.slane %v5161_v7, 2  ;;  %v4811_v21 = vsel %vm4747_vm13, 0.0, %v14817_v61  ;;  %v5291_v13 = vsel %vm4747_vm13, 0.0, %v16256_v10  ;;  %v4671_v56 = vpop.f32.mrf.mxu0 }
 0x52e   : > { %v5158_v52 = vrot.slane %v5157_v29, 1  ;;  %v5642_v25 = vrot.slane %v5641_v27, 2  ;;  %v5166_v36 = vsel %vm4340_vm0, %v4811_v21, 0.0  ;;  %v5646_v3 = vsel %vm4340_vm0, %v5291_v13, 0.0 }
 0x52f   : > { %v5638_v5 = vrot.slane %v5637_v53, 1  ;;  %v5163_v34 = vadd.f32 %v5162_v22, %v5161_v7  ;;  %v5167_v44 = vrot.slane %v5166_v36, 4  ;;  %v5647_v33 = vrot.slane %v5646_v3, 4 }
 0x530   : > { %v5146_v8 = vadd.f32 %v5145_v41, %v5144_v26  ;;  %v5152_v18 = vadd.f32 %v5151_v43, %v5150_v30  ;;  %v4812_v20 = vsel %vm4748_vm14, 0.0, %v14820_v6  ;;  %v5292_v55 = vsel %vm4748_vm14, 0.0, %v16256_v10 }
 0x531   : > { %v5159_v21 = vadd.f32 %v5158_v52, %v5157_v29  ;;  %v5643_v61 = vadd.f32 %v5642_v25, %v5641_v27  ;;  %v5168_v13 = vadd.f32 %v5167_v44, %v5166_v36  ;;  %v5648_v63 = vadd.f32 %v5647_v33, %v5646_v3 }
 0x532   : > { %v5626_v7 = vadd.f32 %v5625_v37, %v5624_v39  ;;  %v14838_v22 = vadd.f32 %v5631_v50, %v5630_v49  ;;  %v5173_v0 = vrot.slane %v4812_v20, 4  ;;  %v5653_v26 = vrot.slane %v5292_v55, 4 }
 0x533   : > { %v5639_v30 = vadd.f32 %v5638_v5, %v5637_v53  ;;  %v5164_v41 = vrot.slane %v5163_v34, 1  ;;  %v5169_v43 = vrot.slane %v5168_v13, 2  ;;  %v5649_v58 = vrot.slane %v5648_v63, 2 }
 0x534   : > { %v14841_v47 = vsel %vm5807_vm6, %v5152_v18, %v5139_v28  ;;  %v5174_v51 = vadd.f32 %v5173_v0, %v4812_v20  ;;  %v5654_v6 = vadd.f32 %v5653_v26, %v5292_v55  ;;  %v14844_v29 = vadd.f32 %v4667_v9, %v13995_v60 }
 0x535   : > { %v14847_v36 = vsel %vm5807_vm6, %v5159_v21, %v5146_v8  ;;  %v5644_v49 = vrot.slane %v5643_v61, 1  ;;  %v5170_v27 = vadd.f32 %v5169_v43, %v5168_v13  ;;  %v5650_v39 = vadd.f32 %v5649_v58, %v5648_v63 }
 0x536   : > { %v5175_v37 = vrot.slane %v5174_v51, 2  ;;  %v5655_v50 = vrot.slane %v5654_v6, 2  ;;  %vm4749_vm15 = vcmp.ne.f32.partialorder %v14844_v29, %v14844_v29  ;;  %v14852_v53 = vadd.f32 %v4671_v56, %v13988_v42 }
 0x537   : > { %v14855_v18 = vsel %vm5807_vm6, %v5639_v30, %v5626_v7  ;;  %v14857_v28 = vadd.f32 %v5164_v41, %v5163_v34  ;;  %v4813_v0 = vsel %vm4749_vm15, 0.0, %v14844_v29  ;;  %v5293_v8 = vsel %vm4749_vm15, 0.0, %v16256_v10 }
 0x538   : > { %v5171_v52 = vrot.slane %v5170_v27, 1  ;;  %v5176_v25 = vadd.f32 %v5175_v37, %v5174_v51  ;;  %v5179_v63 = vsel %vm4340_vm0, %v4813_v0, 0.0  ;;  %v5659_v58 = vsel %vm4340_vm0, %v5293_v8, 0.0  ;;  %v4673_v8 = vpop.f32.mrf.mxu0 }
 0x539   : > { %v14863_v3 = vadd.f32 %v5644_v49, %v5643_v61  ;;  %v5180_v5 = vrot.slane %v5179_v63, 4  ;;  %v5660_v56 = vrot.slane %v5659_v58, 4  ;;  %v5132_v44 = vrot.slane %v14807_v32, 1 }
 0x53a   : > { %v5651_v33 = vrot.slane %v5650_v39, 1  ;;  %v5656_v9 = vadd.f32 %v5655_v50, %v5654_v6  ;;  %vm4750_vm2 = vcmp.ne.f32.partialorder %v14852_v53, %v14852_v53  ;;  %v16338_v34 = vrot.slane %v14743_v1, 1 }
 0x53b   : > { %v5181_v51 = vadd.f32 %v5180_v5, %v5179_v63  ;;  %v5661_v55 = vadd.f32 %v5660_v56, %v5659_v58  ;;  %v4814_v21 = vsel %vm4750_vm2, 0.0, %v14852_v53  ;;  %v5294_v61 = vsel %vm4750_vm2, 0.0, %v16256_v10 }
 0x53c   : > { %v5120_v20 = vadd.f32 %v16338_v34, %v14743_v1  ;;  %v14873_v13 = vadd.f32 %v5171_v52, %v5170_v27  ;;  %v5177_v7 = vrot.slane %v5176_v25, 1  ;;  %v5186_v26 = vrot.slane %v4814_v21, 4 }
 0x53d   : > { %v5666_v30 = vrot.slane %v5294_v61, 4  ;;  %v5182_v41 = vrot.slane %v5181_v51, 2  ;;  %v5662_v6 = vrot.slane %v5661_v55, 2  ;;  %v5133_v43 = vadd.f32 %v5132_v44, %v14807_v32 }
 0x53e   : > { %v5850_v49 = vsel %vm5809_vm8, %v14581_v48, %v14552_v46  ;;  %v5187_v1 = vadd.f32 %v5186_v26, %v4814_v21  ;;  %v16339_v27 = vrot.slane %v14786_v57, 2  ;;  %v5657_v52 = vrot.slane %v5656_v9, 1 }
 0x53f   : > { %v5667_v37 = vadd.f32 %v5666_v30, %v5294_v61  ;;  %v5851_v50 = vsel %vm5811_vm10, %v14623_v14, %v5850_v49  ;;  %v5183_v63 = vadd.f32 %v5182_v41, %v5181_v51  ;;  %v14884_v58 = vadd.f32 %v5662_v6, %v5661_v55  ;;  %v4677_v61 = vpop.f32.mrf.mxu0 }
 0x540   : > { %v5611_v0 = vadd.f32 %v16339_v27, %v14786_v57  ;;  %v5852_v32 = vsel %vm5813_vm1, %v14713_v19, %v5851_v50  ;;  %v5188_v5 = vrot.slane %v5187_v1, 2  ;;  %v16340_v57 = vrot.slane %v14779_v2, 1 }
 0x541   : > { %v5668_v56 = vrot.slane %v5667_v37, 2  ;;  %v5853_v46 = vsel %vm5815_vm3, %v14745_v40, %v5852_v32  ;;  %v5184_v44 = vrot.slane %v5183_v63, 1  ;;  %v6067_v51 = vsel %vm5809_vm8, %v14587_v31, %v14557_v62 }
 0x542   : > { %v5612_v48 = vrot.slane %v5611_v0, 1  ;;  %v5854_v14 = vsel %vm5817_vm4, %v5120_v20, %v5853_v46  ;;  %v5600_v34 = vadd.f32 %v16340_v57, %v14779_v2  ;;  %v14897_v55 = vadd.f32 %v5651_v33, %v5650_v39  ;;  %v16345_v46 = vld [vmem:[#allocation83_spill] sm:$0xff] }
 0x543   : > { %v5855_v19 = vsel %vm5819_vm5, %v5133_v43, %v5854_v14  ;;  %v6068_v40 = vsel %vm5811_vm10, %v14628_v12, %v6067_v51  ;;  %v14902_v26 = vadd.f32 %v5177_v7, %v5176_v25  ;;  %v14904_v20 = vadd.f32 %v5657_v52, %v5656_v9  ;;  %v4679_v43 = vpop.f32.mrf.mxu0 }
 0x544   : > { %v5613_v21 = vadd.f32 %v5612_v48, %v5611_v0  ;;  %9324 = vmatprep.mubr.msk.f32.mxu0 %vm4340_vm0, %v5855_v19  ;;  %v6069_v2 = vsel %vm5813_vm1, %v14715_v59, %v6068_v40  ;;  %v14910_v62 = vadd.f32 %v4673_v8, %v13995_v60  ;;  %v5664_v31 = vrot.slane %v14884_v58, 1 }
 0x545   : > { %v14913_v39 = vadd.f32 %v5188_v5, %v5187_v1  ;;  %v14915_v33 = vadd.f32 %v5668_v56, %v5667_v37  ;;  %v6070_v12 = vsel %vm5815_vm3, %v14751_v17, %v6069_v2  ;;  %v14919_v25 = vadd.f32 %v5184_v44, %v5183_v63  ;;  %v16344_v56 = vld [vmem:[#allocation80_spill] sm:$0xff] }
 0x546   : > { %v6071_v9 = vsel %vm5817_vm4, %v5600_v34, %v6070_v12  ;;  %vm4751_vm7 = vcmp.ne.f32.partialorder %v14910_v62, %v14910_v62  ;;  %v5125_v59 = vrot.slane %v14795_v35, 1  ;;  %v16341_v41 = vrot.slane %v14724_v54, 1 }
 0x547   : > { %v6072_v7 = vsel %vm5819_vm5, %v5613_v21, %v6071_v9  ;;  %v4815_v30 = vsel %vm4751_vm7, 0.0, %v14910_v62  ;;  %v5843_v17 = vsel %vm5809_vm8, %v14554_v16, %v14549_v4  ;;  %v5295_v1 = vsel %vm4751_vm7, 0.0, %v16256_v10  ;;  %v16350_v9 = vld [vmem:[#allocation65_spill] sm:$0xff] }
 0x548   : > { %v5113_v6 = vadd.f32 %v16341_v41, %v14724_v54  ;;  %9328 = vmatprep.mubr.msk.f32.mxu1 %vm4340_vm0, %v6072_v7  ;;  %v5192_v49 = vsel %vm4340_vm0, %v4815_v30, 0.0  ;;  %v5126_v37 = vadd.f32 %v5125_v59, %v14795_v35  ;;  %v5844_v50 = vsel %vm5811_vm10, %v14606_v45, %v5843_v17 }
 0x549   : > { %v5193_v27 = vrot.slane %v5192_v49, 4  ;;  %v5672_v0 = vsel %vm4340_vm0, %v5295_v1, 0.0  ;;  %v5845_v54 = vsel %vm5813_vm1, %v14707_v11, %v5844_v50  ;;  %v16342_v4 = vrot.slane %v14695_v23, 1 }
 0x54a   : > { %v5673_v8 = vrot.slane %v5672_v0, 4  ;;  %v5846_v52 = vsel %vm5815_vm3, %v14729_v38, %v5845_v54  ;;  %v5592_v63 = vrot.slane %v14741_v24, 1  ;;  %v16343_v35 = vrot.slane %v14753_v15, 2 }
 0x54b   : > { %v5580_v16 = vadd.f32 %v16342_v4, %v14695_v23  ;;  %v5194_v32 = vadd.f32 %v5193_v27, %v5192_v49  ;;  %v5847_v5 = vsel %vm5817_vm4, %v5113_v6, %v5846_v52  ;;  %v6059_v11 = vsel %vm5807_vm6, %v16345_v46, %v16344_v56  ;;  %v4683_v23 = vpop.f32.mrf.mxu0 }
 0x54c   : > { %v5604_v45 = vadd.f32 %v16343_v35, %v14753_v15  ;;  %v14956_v48 = vadd.f32 %v4677_v61, %v13988_v42  ;;  %v5674_v44 = vadd.f32 %v5673_v8, %v5672_v0  ;;  %v5848_v38 = vsel %vm5819_vm5, %v5126_v37, %v5847_v5  ;;  %v16347_v15 = vld [vmem:[#allocation86_spill] sm:$0xff]  ;;  %v16349_v61 = vld [vmem:[#allocation88_spill] sm:$0xff] }
 0x54d   : > { %v5593_v14 = vadd.f32 %v5592_v63, %v14741_v24  ;;  %v5195_v34 = vrot.slane %v5194_v32, 2  ;;  %5957 = vmatmul.mubr.f32.gmra.mxu0 %v5848_v38  ;;  %v6060_v51 = vsel %vm5809_vm8, %v16347_v15, %v6059_v11  ;;  %v14965_v19 = vadd.f32 %v4679_v43, %v13995_v60  ;;  %v4685_v41 = vpop.f32.mrf.mxu0 }
 0x54e   : > { %16346 = vst [vmem:[#allocation80_spill] sm:$0xff] %v14956_v48  ;;  %v5605_v57 = vrot.slane %v5604_v45, 1  ;;  %vm4752_vm9 = vcmp.ne.f32.partialorder %v14956_v48, %v14956_v48  ;;  %v5675_v21 = vrot.slane %v5674_v44, 2  ;;  %v6061_v2 = vsel %vm5811_vm10, %v16349_v61, %v6060_v51 }
 0x54f   : > { %16348 = vst [vmem:[#allocation83_spill] sm:$0xff] %v14965_v19  ;;  %v4816_v12 = vsel %vm4752_vm9, 0.0, %v14956_v48  ;;  %v5196_v24 = vadd.f32 %v5195_v34, %v5194_v32  ;;  %v6062_v59 = vsel %vm5813_vm1, %v16350_v9, %v6061_v2  ;;  %v5296_v30 = vsel %vm4752_vm9, 0.0, %v16256_v10  ;;  %v4689_v35 = vpop.f32.mrf.mxu0 }
 0x550   : > { %v5606_v40 = vadd.f32 %v5605_v57, %v5604_v45  ;;  %v5199_v7 = vrot.slane %v4816_v12, 4  ;;  %v5190_v6 = vrot.slane %v14913_v39, 1  ;;  %v6063_v17 = vsel %vm5815_vm3, %v5580_v16, %v6062_v59 }
 0x551   : > { %v5679_v43 = vrot.slane %v5296_v30, 4  ;;  %vm4753_vm11 = vcmp.ne.f32.partialorder %v14965_v19, %v14965_v19  ;;  %v5670_v49 = vrot.slane %v14915_v33, 1  ;;  %v6064_v1 = vsel %vm5817_vm4, %v5593_v14, %v6063_v17  ;;  %v6192_v14 = vld [vmem:[%s16012_s1 + $0x710] sm:$0xff] }
 0x552   : > { %v5200_v37 = vadd.f32 %v5199_v7, %v4816_v12  ;;  %v4817_v50 = vsel %vm4753_vm11, 0.0, %v14965_v19  ;;  %v5676_v27 = vadd.f32 %v5675_v21, %v5674_v44  ;;  %v6065_v0 = vsel %vm5819_vm5, %v5606_v40, %v6064_v1  ;;  %v4691_v40 = vpop.f32.mrf.mxu0 }
 0x553   : > { %v5680_v54 = vadd.f32 %v5679_v43, %v5296_v30  ;;  %v5205_v4 = vsel %vm4340_vm0, %v4817_v50, 0.0  ;;  %v14983_v8 = vadd.f32 %v5664_v31, %v14884_v58  ;;  %v5197_v16 = vrot.slane %v5196_v24, 1  ;;  %6174 = vmatmul.mubr.f32.gmra.mxu1 %v6065_v0 }
 0x554   : > { %v5206_v52 = vrot.slane %v5205_v4, 4  ;;  %v5297_v63 = vsel %vm4753_vm11, 0.0, %v16256_v10  ;;  %v14987_v45 = vadd.f32 %v5190_v6, %v14913_v39  ;;  %v5201_v32 = vrot.slane %v5200_v37, 2 }
 0x555   : > { %v5685_v5 = vsel %vm4340_vm0, %v5297_v63, 0.0  ;;  %v14991_v56 = vadd.f32 %v4683_v23, %v13988_v42  ;;  %v5681_v46 = vrot.slane %v5680_v54, 2  ;;  %v14994_v58 = vadd.f32 %v4685_v41, %v13995_v60  ;;  %v6193_v23 = vld [vmem:[%s16012_s1 + $0x720] sm:$0xff] }
 0x556   : > { %v5207_v11 = vadd.f32 %v5206_v52, %v5205_v4  ;;  %v5686_v44 = vrot.slane %v5685_v5, 4  ;;  %v14997_v31 = vadd.f32 %v5670_v49, %v14915_v33  ;;  %v5677_v38 = vrot.slane %v5676_v27, 1  ;;  %9549 = vmatprep.subr.mxu1 %v6193_v23 }
 0x557   : > { %16351 = vst [vmem:[#allocation86_spill] sm:$0xff] %v14991_v56  ;;  %16352 = vst [vmem:[#allocation88_spill] sm:$0xff] %v14994_v58  ;;  %vm4754_vm12 = vcmp.ne.f32.partialorder %v14991_v56, %v14991_v56  ;;  %v15002_v39 = vadd.f32 %v4689_v35, %v13988_v42  ;;  %v15010_v57 = vadd.f32 %v5197_v16, %v5196_v24  ;;  %9550 = vmatpush3.msra.mxu1 %v6193_v23  ;;  %vm6195_vm2 = vcmask 130048  }
 0x558   : > { %v5208_v34 = vrot.slane %v5207_v11, 2  ;;  %v5687_v33 = vadd.f32 %v5686_v44, %v5685_v5  ;;  %v4818_v15 = vsel %vm4754_vm12, 0.0, %v14991_v56  ;;  %v5202_v51 = vadd.f32 %v5201_v32, %v5200_v37  ;;  %9551 = vmatprep.subr.mxu1 %v6192_v14 }
 0x559   : > { %16353 = vst [vmem:[#allocation65_spill] sm:$0xff] %v15002_v39  ;;  %v5212_v21 = vrot.slane %v4818_v15, 4  ;;  %v5298_v42 = vsel %vm4754_vm12, 0.0, %v16256_v10  ;;  %vm4755_vm13 = vcmp.ne.f32.partialorder %v14994_v58, %v14994_v58  ;;  %v15016_v61 = vadd.f32 %v5681_v46, %v5680_v54  ;;  %9552 = vmatpush3.msra.mxu1 %v6192_v14 }
 0x55a   : > { %v5209_v2 = vadd.f32 %v5208_v34, %v5207_v11  ;;  %v5688_v12 = vrot.slane %v5687_v33, 2  ;;  %v5692_v24 = vrot.slane %v5298_v42, 4  ;;  %v4819_v59 = vsel %vm4755_vm13, 0.0, %v14994_v58 }
 0x55b   : > { %v5213_v9 = vadd.f32 %v5212_v21, %v4818_v15  ;;  %v5299_v7 = vsel %vm4755_vm13, 0.0, %v16256_v10  ;;  %vm4756_vm14 = vcmp.ne.f32.partialorder %v15002_v39, %v15002_v39  ;;  %v5218_v6 = vsel %vm4340_vm0, %v4819_v59, 0.0 }
 0x55c   : > { %v5689_v30 = vadd.f32 %v5688_v12, %v5687_v33  ;;  %v5693_v41 = vadd.f32 %v5692_v24, %v5298_v42  ;;  %v15024_v17 = vadd.f32 %v4691_v40, %v13995_v60  ;;  %v5219_v49 = vrot.slane %v5218_v6, 4 }
 0x55d   : > { %v5214_v43 = vrot.slane %v5213_v9, 2  ;;  %v5698_v1 = vsel %vm4340_vm0, %v5299_v7, 0.0  ;;  %v4820_v37 = vsel %vm4756_vm14, 0.0, %v15002_v39  ;;  %v5678_v50 = vadd.f32 %v5677_v38, %v5676_v27 }
 0x55e   : > { %16354 = vst [vmem:[#allocation97_spill] sm:$0xff] %v15024_v17  ;;  %v5203_v0 = vrot.slane %v5202_v51, 1  ;;  %v5683_v54 = vrot.slane %v15016_v61, 1  ;;  %v5699_v4 = vrot.slane %v5698_v1, 4  ;;  %v5210_v16 = vrot.slane %v5209_v2, 1 }
 0x55f   : > { %v5220_v52 = vadd.f32 %v5219_v49, %v5218_v6  ;;  %v5225_v63 = vrot.slane %v4820_v37, 4  ;;  %v5300_v60 = vsel %vm4756_vm14, 0.0, %v16256_v10  ;;  %v5690_v35 = vrot.slane %v5689_v30, 1 }
 0x560   : > { %v5694_v32 = vrot.slane %v5693_v41, 2  ;;  %v5700_v5 = vadd.f32 %v5699_v4, %v5698_v1  ;;  %v5705_v46 = vrot.slane %v5300_v60, 4  ;;  %v5215_v11 = vadd.f32 %v5214_v43, %v5213_v9 }
 0x561   : > { %v5221_v44 = vrot.slane %v5220_v52, 2  ;;  %v5226_v23 = vadd.f32 %v5225_v63, %v4820_v37  ;;  %vm4757_vm15 = vcmp.ne.f32.partialorder %v15024_v17, %v15024_v17  ;;  %v5204_v40 = vadd.f32 %v5203_v0, %v5202_v51 }
 0x562   : > { %v5701_v27 = vrot.slane %v5700_v5, 2  ;;  %v5706_v38 = vadd.f32 %v5705_v46, %v5300_v60  ;;  %v4821_v14 = vsel %vm4757_vm15, 0.0, %v15024_v17  ;;  %v5301_v34 = vsel %vm4757_vm15, 0.0, %v16256_v10 }
 0x563   : > { %v5222_v33 = vadd.f32 %v5221_v44, %v5220_v52  ;;  %v5227_v15 = vrot.slane %v5226_v23, 2  ;;  %v5231_v21 = vsel %vm4340_vm0, %v4821_v14, 0.0  ;;  %v5711_v42 = vsel %vm4340_vm0, %v5301_v34, 0.0 }
 0x564   : > { %v5702_v12 = vadd.f32 %v5701_v27, %v5700_v5  ;;  %v5232_v24 = vrot.slane %v5231_v21, 4  ;;  %v5712_v9 = vrot.slane %v5711_v42, 4  ;;  %v5211_v59 = vadd.f32 %v5210_v16, %v5209_v2 }
 0x565   : > { %v5691_v7 = vadd.f32 %v5690_v35, %v5689_v30  ;;  %v5223_v6 = vrot.slane %v5222_v33, 1  ;;  %v5228_v43 = vadd.f32 %v5227_v15, %v5226_v23  ;;  %v5695_v49 = vadd.f32 %v5694_v32, %v5693_v41 }
 0x566   : > { %v5703_v1 = vrot.slane %v5702_v12, 1  ;;  %v5233_v37 = vadd.f32 %v5232_v24, %v5231_v21  ;;  %v5713_v4 = vadd.f32 %v5712_v9, %v5711_v42  ;;  %v5216_v63 = vrot.slane %v5215_v11, 1 }
 0x567   : > { %v5707_v10 = vrot.slane %v5706_v38, 2  ;;  %v5224_v52 = vadd.f32 %v5223_v6, %v5222_v33  ;;  %v5864_v60 = vsel %vm5809_vm8, %v14873_v13, %v14847_v36  ;;  %v6081_v2 = vsel %vm5809_vm8, %v14897_v55, %v14855_v18 }
 0x568   : > { %v5234_v46 = vrot.slane %v5233_v37, 2  ;;  %v5714_v51 = vrot.slane %v5713_v4, 2  ;;  %v5865_v0 = vsel %vm5811_vm10, %v14919_v25, %v5864_v60  ;;  %v5704_v41 = vadd.f32 %v5703_v1, %v5702_v12 }
 0x569   : > { %v5866_v30 = vsel %vm5813_vm1, %v15010_v57, %v5865_v0  ;;  %v6082_v16 = vsel %vm5811_vm10, %v14983_v8, %v6081_v2  ;;  %v5229_v35 = vrot.slane %v5228_v43, 1  ;;  %v5217_v23 = vadd.f32 %v5216_v63, %v5215_v11 }
 0x56a   : > { %v5235_v32 = vadd.f32 %v5234_v46, %v5233_v37  ;;  %v5867_v36 = vsel %vm5815_vm3, %v5211_v59, %v5866_v30  ;;  %v5715_v13 = vadd.f32 %v5714_v51, %v5713_v4  ;;  %v6083_v5 = vsel %vm5813_vm1, %v5678_v50, %v6082_v16 }
 0x56b   : > { %v5868_v25 = vsel %vm5817_vm4, %v5224_v52, %v5867_v36  ;;  %v6084_v44 = vsel %vm5815_vm3, %v5691_v7, %v6083_v5  ;;  %v5857_v18 = vsel %vm5809_vm8, %v14857_v28, %v14841_v47  ;;  %v5696_v27 = vrot.slane %v5695_v49, 1  ;;  %v16355_v47 = vld [vmem:[#allocation94_spill] sm:$0xff] }
 0x56c   : > { %v5236_v55 = vrot.slane %v5235_v32, 1  ;;  %v5716_v57 = vrot.slane %v5715_v13, 1  ;;  %v5858_v8 = vsel %vm5811_vm10, %v14902_v26, %v5857_v18  ;;  %v6085_v14 = vsel %vm5817_vm4, %v5704_v41, %v6084_v44  ;;  %v6297_v41 = vld [vmem:[%s16012_s1 + $0x740] sm:$0xff]  ;;  %v6397_v18 = vld [vmem:[%s16012_s1 + $0x770] sm:$0xff] }
 0x56d   : > { %v5230_v34 = vadd.f32 %v5229_v35, %v5228_v43  ;;  %v5859_v50 = vsel %vm5813_vm1, %v14987_v45, %v5858_v8  ;;  %v5708_v33 = vadd.f32 %v5707_v10, %v5706_v38  ;;  %v5684_v11 = vadd.f32 %v5683_v54, %v15016_v61 }
 0x56e   : > { %v5237_v15 = vadd.f32 %v5236_v55, %v5235_v32  ;;  %v5717_v21 = vadd.f32 %v5716_v57, %v5715_v13  ;;  %v6073_v28 = vsel %vm5807_vm6, %v14838_v22, %v16355_v47  ;;  %v5860_v26 = vsel %vm5815_vm3, %v5204_v40, %v5859_v50  ;;  %v6194_v57 = vld [vmem:[%s16012_s1 + $0x730] ss:$0 sm:$0xff] }
 0x56f   : > { %v5697_v42 = vadd.f32 %v5696_v27, %v5695_v49  ;;  %v5709_v12 = vrot.slane %v5708_v33, 1  ;;  %v6074_v24 = vsel %vm5809_vm8, %v14863_v3, %v6073_v28  ;;  %v5861_v9 = vsel %vm5817_vm4, %v5217_v23, %v5860_v26  ;;  %v6398_v23 = vld [vmem:[%s16012_s1 + $0x780] sm:$0x1] }
 0x570   : > { %v5869_v45 = vsel %vm5819_vm5, %v5237_v15, %v5868_v25  ;;  %v6086_v38 = vsel %vm5819_vm5, %v5717_v21, %v6085_v14  ;;  %v6075_v61 = vsel %vm5811_vm10, %v14904_v20, %v6074_v24  ;;  %v5862_v22 = vsel %vm5819_vm5, %v5230_v34, %v5861_v9 }
 0x571   : > { %9325 = vmatprep.mubr.msk.f32.mxu0 %vm4340_vm0, %v5869_v45  ;;  %9329 = vmatprep.mubr.msk.f32.mxu1 %vm4340_vm0, %v6086_v38  ;;  %v5710_v54 = vadd.f32 %v5709_v12, %v5708_v33  ;;  %v6076_v40 = vsel %vm5813_vm1, %v14997_v31, %v6075_v61  ;;  %v6298_v31 = vld [vmem:[%s16012_s1 + $0x750] sm:$0xff]  ;;  %vm6412_vm7 = vcmask 1040384   ;;  %v16356_v55 = vmov 0.0   ;;  %v6299_v12 = vld [vmem:[%s16012_s1 + $0x760] ss:$0 sm:$0xff] }
 0x572   : > { %5962 = vmatmul.mubr.f32.gmra.mxu0 %v5862_v22  ;;  %v6077_v3 = vsel %vm5815_vm3, %v5684_v11, %v6076_v40  ;;  %9559 = vmatprep.subr.mxu1 %v6298_v31  ;;  %vm6399_vm9 = vcmask 72704   ;;  %v10002_v9 = vmov 0   ;;  %vm7053_vm12 = vcmask 64512  }
 0x573   : > { %v6078_v59 = vsel %vm5817_vm4, %v5697_v42, %v6077_v3  ;;  %9569 = vmatprep.subr.msk.mxu0 %vm6412_vm7, %v6398_v23  ;;  %9745 = vset.pattern.permute.xlu0 %v10002_v9  ;;  %v10003_v3 = vmov 1966171168  }
 0x574   : > { %v6079_v7 = vsel %vm5819_vm5, %v5710_v54, %v6078_v59  ;;  %9570 = vmatpush3.msk.msra.mxu0 %vm6412_vm7, %v6398_v23  ;;  %9746 = vset.pattern.permute.xlu1 %v10002_v9  ;;  %v6507_v59 = vunpack.c.l.s4 %v10003_v3 }
 0x575   : > { %6179 = vmatmul.mubr.f32.gmra.mxu1 %v6079_v7  ;;  %9571 = vmatprep.subr.mxu0 %v6397_v18 }
 0x576   : > { %9572 = vmatpush3.msra.mxu0 %v6397_v18  ;;  %v6508_v7 = vunpack.c.0.s8 %v6507_v59 }
 0x577   : > { %v5948_v6 = vpop.f32.mrf.mxu0  ;;  %8718 = vmatprep.subr.mxu0 %v16356_v55 }
 0x579   : > { %v5950_v20 = vpop.f32.mrf.mxu0 }
 0x57b   : > { %v6165_v43 = vpop.f32.mrf.mxu1 }
 0x57c   : > { %9875 = vrcp.f32 %v6165_v43 }
 0x57d   : > { %v6167_v49 = vpop.f32.mrf.mxu1 }
 0x589   : > { %v9876_v1 = vpop.eup %9875 }
 0x58a   : > { %v6185_v37 = vmul.f32 %v9876_v1, %v5948_v6  ;;  %v16357_v6 = vld [vmem:[#allocation2_spill] sm:$0xff] }
 0x58b   : > { %v15123_v20 = vsub.s32 %v6508_v7, %v16357_v6 }
 0x58c   : > { %9553 = vmatprep.mubr.msk.f32.mxu1 %vm6195_vm2, %v6185_v37 }
 0x5c4   : > { %v5953_v4 = vpop.f32.mrf.mxu0 }
 0x5c6   : > { %v5955_v63 = vpop.f32.mrf.mxu0 }
 0x5c7   : > { %v6170_v10 = vpop.f32.mrf.mxu1 }
 0x5c8   : > { %9877 = vrcp.f32 %v6170_v10 }
 0x5c9   : > { %v6172_v52 = vpop.f32.mrf.mxu1 }
 0x5ca   : > { %v16358_v52 = vld [vmem:[#allocation3_spill] sm:$0xff] }
 0x5d5   : > { %v9878_v60 = vpop.eup %9877 }
 0x5d6   : > { %v6187_v46 = vmul.f32 %v9878_v60, %v5953_v4 }
 0x5d8   : > { %9554 = vmatmul.mubr.msk.f32.vlgmr.msra.gmra.mxu1 %vm6195_vm2, %v6187_v46 }
 0x5d9   : > { %9560 = vmatpush3.msra.mxu1 %v6298_v31 }
 0x5da   : > { %9561 = vmatprep.subr.mxu1 %v6297_v41 }
 0x5db   : > { %9562 = vmatpush3.msra.mxu1 %v6297_v41 }
 0x60d   : > { %v5958_v51 = vpop.f32.mrf.mxu0 }
 0x60f   : > { %v5960_v0 = vpop.f32.mrf.mxu0 }
 0x613   : > { %v6175_v2 = vpop.f32.mrf.mxu1 }
 0x614   : > { %9879 = vrcp.f32 %v6175_v2 }
 0x615   : > { %v6177_v30 = vpop.f32.mrf.mxu1 }
 0x621   : > { %v9880_v16 = vpop.eup %9879 }
 0x622   : > { %v6189_v35 = vmul.f32 %v9880_v16, %v5958_v51 }
 0x624   : > { %9556 = vmatprep.mubr.msk.f32.mxu1 %vm6195_vm2, %v6189_v35 }
 0x632   : > { %v5963_v32 = vpop.f32.mrf.mxu0 }
 0x634   : > { %v5965_v36 = vpop.f32.mrf.mxu0 }
 0x635   : > { %v6180_v13 = vpop.f32.mrf.mxu1 }
 0x636   : > { %9881 = vrcp.f32 %v6180_v13 }
 0x637   : > { %v6182_v5 = vpop.f32.mrf.mxu1 }
 0x643   : > { %v9882_v25 = vpop.eup %9881 }
 0x644   : > { %v6191_v44 = vmul.f32 %v9882_v25, %v5963_v32 }
 0x646   : > { %9557 = vmatmul.mubr.msk.f32.gmra.mxu1 %vm6195_vm2, %v6191_v44 }
 0x698   : > { %v9555_v8 = vpop.f32.mrf.mxu1 }
 0x699   : > { %v6280_v27 = vadd.f32 %v9555_v8, %v6194_v57 }
 0x69a   : > { %v6274_v14 = vpop.f32.mrf.mxu1 }
 0x69b   : > { %v6275_v34 = vadd.f32 %v6274_v14, %v6194_v57  ;;  %v6294_v33 = vmax.f32 %v6280_v27, 0.0 }
 0x69d   : > { %v6293_v50 = vmax.f32 %v6275_v34, 0.0 }
 0x69f   : > { %9563 = vmatprep.mubr.msk.f32.mxu1 %vm6195_vm2, %v6293_v50 }
 0x6a0   : > { %9564 = vmatmul.mubr.msk.f32.vlgmr.msra.gmra.mxu1 %vm6195_vm2, %v6294_v33 }
 0x706   : > { %v9558_v15 = vpop.f32.mrf.mxu1 }
 0x707   : > { %v6290_v21 = vadd.f32 %v9558_v15, %v6194_v57 }
 0x708   : > { %v6284_v11 = vpop.f32.mrf.mxu1 }
 0x709   : > { %v6285_v47 = vadd.f32 %v6284_v11, %v6194_v57  ;;  %v6296_v26 = vmax.f32 %v6290_v21, 0.0 }
 0x70b   : > { %v6295_v28 = vmax.f32 %v6285_v47, 0.0 }
 0x70d   : > { %9566 = vmatprep.mubr.msk.f32.mxu1 %vm6195_vm2, %v6295_v28 }
 0x70e   : > { %9567 = vmatmul.mubr.msk.f32.gmra.mxu1 %vm6195_vm2, %v6296_v26 }
 0x70f   : > { %7888 = vmatprep.mubr.f32.mxu1 %v16356_v55 }
 0x760   : > { %v9565_v42 = vpop.f32.mrf.mxu1 }
 0x761   : > { %v6384_v38 = vadd.f32 %v9565_v42, %v6299_v12 }
 0x762   : > { %v6378_v24 = vpop.f32.mrf.mxu1 }
 0x763   : > { %v6379_v45 = vadd.f32 %v6378_v24, %v6299_v12 }
 0x765   : > { %9573 = vmatprep.mubr.msk.f32.mxu0 %vm6399_vm9, %v6379_v45 }
 0x766   : > { %9574 = vmatmul.mubr.msk.f32.vlgmr.msra.gmra.mxu0 %vm6399_vm9, %v6384_v38 }
 0x7ce   : > { %v9568_v61 = vpop.f32.mrf.mxu1 }
 0x7cf   : > { %v6394_v40 = vadd.f32 %v9568_v61, %v6299_v12 }
 0x7d0   : > { %v6388_v22 = vpop.f32.mrf.mxu1 }
 0x7d1   : > { %v6389_v54 = vadd.f32 %v6388_v22, %v6299_v12 }
 0x7d3   : > { %9576 = vmatprep.mubr.msk.f32.mxu0 %vm6399_vm9, %v6389_v54 }
 0x7d4   : > { %9577 = vmatmul.mubr.msk.f32.gmra.mxu0 %vm6399_vm9, %v6394_v40 }
 0x826   : > { %v9575_v43 = vpop.f32.mrf.mxu0 }
 0x827   : > { %v6561_v49 = vrot.slane %v9575_v43, %v15123_v20  ;;  %v6554_v31 = vcombine.high %v9575_v43, %v9575_v43 }
 0x828   : > { %v6482_v1 = vpop.f32.mrf.mxu0 }
 0x829   : > { %v6569_v37 = vcombine.high %v6561_v49, %v6561_v49  ;;  %v6512_v4 = vrot.slane %v6482_v1, %v15123_v20  ;;  %v6577_v63 = vrot.slane %v6561_v49, %v15123_v20  ;;  %v6568_v51 = vrot.slane %v6554_v31, %v15123_v20 }
 0x82a   : > { %v6505_v16 = vcombine.high %v6482_v1, %v6482_v1 }
 0x82b   : > { %v6528_v10 = vrot.slane %v6512_v4, %v15123_v20  ;;  %v6736_v60 = vrot.slane %v6577_v63, %v16358_v52  ;;  %v6591_v46 = vrot.slane %v6569_v37, %v15123_v20  ;;  %v6599_v30 = vcombine.high %v6577_v63, %v6577_v63 }
 0x82c   : > { %v6570_v35 = vcombine.high %v6568_v51, %v6568_v51  ;;  %v6520_v32 = vcombine.high %v6512_v4, %v6512_v4  ;;  %v6584_v5 = vrot.slane %v6568_v51, %v15123_v20  ;;  %v6519_v44 = vrot.slane %v6505_v16, %v15123_v20 }
 0x82d   : > { %v6550_v0 = vcombine.high %v6528_v10, %v6528_v10  ;;  %6862 = vperm.xlu0 %9745, %v6736_v60   ;;  %v6740_v2 = vrot.slane %v6591_v46, %v16358_v52  ;;  %v6704_v41 = vrot.slane %v6528_v10, %v16358_v52  ;;  %v6601_v36 = vcombine.high %v6591_v46, %v6591_v46 }
 0x82e   : > { %v6744_v25 = vrot.slane %v6599_v30, %v16358_v52  ;;  %v6542_v23 = vrot.slane %v6520_v32, %v15123_v20  ;;  %v6598_v57 = vrot.slane %v6570_v35, %v15123_v20  ;;  %v6752_v8 = vrot.slane %v6584_v5, %v16358_v52 }
 0x82f   : > { %6866 = vperm.xlu1 %9746, %v6740_v2   ;;  %v6712_v13 = vrot.slane %v6550_v0, %v16358_v52  ;;  %v6748_v18 = vrot.slane %v6601_v36, %v16358_v52  ;;  %v6521_v27 = vcombine.high %v6519_v44, %v6519_v44  ;;  %v6535_v50 = vrot.slane %v6519_v44, %v15123_v20 }
 0x830   : > { %v6756_v14 = vrot.slane %v6598_v57, %v16358_v52  ;;  %v6552_v34 = vcombine.high %v6542_v23, %v6542_v23  ;;  %v6708_v33 = vrot.slane %v6542_v23, %v16358_v52  ;;  %v6600_v47 = vcombine.high %v6584_v5, %v6584_v5 }
 0x831   : > { %6830 = vperm.xlu0 %9745, %v6704_v41   ;;  %v6549_v21 = vrot.slane %v6521_v27, %v15123_v20  ;;  %v6720_v11 = vrot.slane %v6535_v50, %v16358_v52  ;;  %v6602_v26 = vcombine.high %v6598_v57, %v6598_v57  ;;  %v6551_v12 = vcombine.high %v6535_v50, %v6535_v50 }
 0x832   : > { %v6716_v15 = vrot.slane %v6552_v34, %v16358_v52  ;;  %v6760_v42 = vrot.slane %v6600_v47, %v16358_v52 }
 0x833   : > { %6838 = vperm.xlu1 %9746, %v6712_v13   ;;  %v6724_v28 = vrot.slane %v6549_v21, %v16358_v52  ;;  %v6764_v24 = vrot.slane %v6602_v26, %v16358_v52  ;;  %v6553_v45 = vcombine.high %v6549_v21, %v6549_v21  ;;  %v6728_v38 = vrot.slane %v6551_v12, %v16358_v52  ;;  %v16359_v12 = vld [vmem:[#allocation13_spill] sm:$0xff] }
 0x835   : > { %6870 = vperm.xlu0 %9745, %v6744_v25   ;;  %v6732_v9 = vrot.slane %v6553_v45, %v16358_v52  ;;  %v16360_v45 = vld [vmem:[#allocation5_spill] sm:$0xff] }
 0x837   : > { %6874 = vperm.xlu1 %9746, %v6748_v18  }
 0x839   : > { %6878 = vperm.xlu0 %9745, %v6752_v8  }
 0x83b   : > { %6882 = vperm.xlu1 %9746, %v6756_v14  }
 0x83d   : > { %6834 = vperm.xlu0 %9745, %v6708_v33  }
 0x83f   : > { %6842 = vperm.xlu1 %9746, %v6716_v15  }
 0x841   : > { %6846 = vperm.xlu0 %9745, %v6720_v11  }
 0x843   : > { %6850 = vperm.xlu1 %9746, %v6724_v28  }
 0x845   : > { %6886 = vperm.xlu0 %9745, %v6760_v42  }
 0x847   : > { %6890 = vperm.xlu1 %9746, %v6764_v24  }
 0x849   : > { %6854 = vperm.xlu0 %9745, %v6728_v38  }
 0x84b   : > { %6858 = vperm.xlu1 %9746, %v6732_v9  }
 0x894   : > { %v9578_v61 = vpop.f32.mrf.mxu0 }
 0x895   : > { %v6659_v22 = vrot.slane %v9578_v61, %v15123_v20  ;;  %v6652_v54 = vcombine.high %v9578_v61, %v9578_v61 }
 0x896   : > { %v6492_v40 = vpop.f32.mrf.mxu0 }
 0x897   : > { %v6675_v3 = vrot.slane %v6659_v22, %v15123_v20  ;;  %v6610_v59 = vrot.slane %v6492_v40, %v15123_v20  ;;  %v6667_v7 = vcombine.high %v6659_v22, %v6659_v22  ;;  %v6666_v6 = vrot.slane %v6652_v54, %v15123_v20  ;;  %v16361_v54 = vld [vmem:[#allocation15_spill] sm:$0xff] }
 0x898   : > { %v6603_v46 = vcombine.high %v6492_v40, %v6492_v40 }
 0x899   : > { %v6697_v43 = vcombine.high %v6675_v3, %v6675_v3  ;;  %v6626_v49 = vrot.slane %v6610_v59, %v15123_v20  ;;  %v6800_v1 = vrot.slane %v6675_v3, %v16358_v52  ;;  %v6689_v37 = vrot.slane %v6667_v7, %v15123_v20  ;;  %v16362_v3 = vld [vmem:[#allocation12_spill] sm:$0xff] }
 0x89a   : > { %v15162_v31 = vrot.slane %v6666_v6, %v15123_v20  ;;  %v6618_v63 = vcombine.high %v6610_v59, %v6610_v59  ;;  %v6668_v60 = vcombine.high %v6666_v6, %v6666_v6  ;;  %v6617_v41 = vrot.slane %v6603_v46, %v15123_v20  ;;  %v16365_v46 = vld [vmem:[#allocation6_spill] sm:$0xff] }
 0x89b   : > { %6926 = vperm.xlu1 %9746, %v6800_v1   ;;  %v6768_v4 = vrot.slane %v6626_v49, %v16358_v52  ;;  %v6808_v10 = vrot.slane %v6697_v43, %v16358_v52  ;;  %v6804_v51 = vrot.slane %v6689_v37, %v16358_v52  ;;  %v6699_v0 = vcombine.high %v6689_v37, %v6689_v37 }
 0x89c   : > { %v6640_v2 = vrot.slane %v6618_v63, %v15123_v20  ;;  %v6816_v30 = vrot.slane %v15162_v31, %v16358_v52  ;;  %v15172_v35 = vrot.slane %v6668_v60, %v15123_v20  ;;  %v6648_v32 = vcombine.high %v6626_v49, %v6626_v49  ;;  %v16363_v49 = vld [vmem:[#allocation17_spill] sm:$0xff]  ;;  %v16364_v63 = vld [vmem:[#allocation4_spill] sm:$0xff] }
 0x89d   : > { %6894 = vperm.xlu0 %9745, %v6768_v4   ;;  %v6812_v16 = vrot.slane %v6699_v0, %v16358_v52  ;;  %v6633_v13 = vrot.slane %v6617_v41, %v15123_v20  ;;  %v6619_v44 = vcombine.high %v6617_v41, %v6617_v41 }
 0x89e   : > { %v6772_v36 = vrot.slane %v6640_v2, %v16358_v52  ;;  %v6820_v5 = vrot.slane %v15172_v35, %v16358_v52  ;;  %v6650_v25 = vcombine.high %v6640_v2, %v6640_v2  ;;  %v6776_v23 = vrot.slane %v6648_v32, %v16358_v52 }
 0x89f   : > { %6934 = vperm.xlu1 %9746, %v6808_v10   ;;  %v6649_v8 = vcombine.high %v6633_v13, %v6633_v13  ;;  %v6784_v27 = vrot.slane %v6633_v13, %v16358_v52  ;;  %v6647_v14 = vrot.slane %v6619_v44, %v15123_v20  ;;  %v16367_v13 = vld [vmem:[#allocation11_spill] sm:$0xff] }
 0x8a0   : > { %v6780_v57 = vrot.slane %v6650_v25, %v16358_v52 }
 0x8a1   : > { %6930 = vperm.xlu0 %9745, %v6804_v51   ;;  %v6792_v34 = vrot.slane %v6649_v8, %v16358_v52  ;;  %v6788_v50 = vrot.slane %v6647_v14, %v16358_v52  ;;  %v6651_v33 = vcombine.high %v6647_v14, %v6647_v14 }
 0x8a3   : > { %6942 = vperm.xlu1 %9746, %v6816_v30   ;;  %v6796_v21 = vrot.slane %v6651_v33, %v16358_v52 }
 0x8a5   : > { %6938 = vperm.xlu0 %9745, %v6812_v16   ;;  %v16366_v16 = vld [vmem:[#allocation7_spill] sm:$0xff] }
 0x8a7   : > { %6898 = vperm.xlu1 %9746, %v6772_v36  }
 0x8a8   : > { %v6863_v18 = vpop.permute.xlu0 %6862 }
 0x8a9   : > { %6946 = vperm.xlu0 %9745, %v6820_v5   ;;  %v6965_v20 = vadd.f32 %v6863_v18, %v16359_v12 }
 0x8aa   : > { %v6867_v47 = vpop.permute.xlu1 %6866 }
 0x8ab   : > { %6902 = vperm.xlu1 %9746, %v6776_v23   ;;  %vm6997_vm11 = vcmp.ne.f32.partialorder %v6965_v20, %v6965_v20  ;;  %v6966_v59 = vadd.f32 %v16362_v3, %v6867_v47 }
 0x8ac   : > { %v6831_v15 = vpop.permute.xlu0 %6830  ;;  %v15187_v61 = vsel %vm6997_vm11, -1e+30, %v6965_v20 }
 0x8ad   : > { %6906 = vperm.xlu0 %9745, %v6780_v57   ;;  %v6957_v38 = vadd.f32 %v6831_v15, %v16360_v45  ;;  %v7078_v7 = vsel %vm7053_vm12, %v15187_v61, -inf  ;;  %vm6998_vm15 = vcmp.ne.f32.partialorder %v6966_v59, %v6966_v59  ;;  %v16368_v57 = vld [vmem:[#allocation9_spill] sm:$0xff]  ;;  %v16369_v15 = vld [vmem:[#allocation14_spill] sm:$0xff] }
 0x8ae   : > { %v6839_v26 = vpop.permute.xlu1 %6838  ;;  %v15206_v0 = vsel %vm6998_vm15, -1e+30, %v6966_v59  ;;  %v16371_v45 = vld [vmem:[#allocation10_spill] sm:$0xff] }
 0x8af   : > { %6910 = vperm.xlu1 %9746, %v6784_v27   ;;  %vm6989_vm13 = vcmp.ne.f32.partialorder %v6957_v38, %v6957_v38  ;;  %v6959_v32 = vadd.f32 %v6839_v26, %v16366_v16  ;;  %v7081_v36 = vsel %vm7053_vm12, %v15206_v0, -inf  ;;  %v16370_v26 = vld [vmem:[#allocation8_spill] sm:$0xff] }
 0x8b0   : > { %v6871_v11 = vpop.permute.xlu0 %6870  ;;  %v15195_v6 = vsel %vm6989_vm13, -1e+30, %v6957_v38 }
 0x8b1   : > { %6918 = vperm.xlu0 %9745, %v6792_v34   ;;  %v6967_v40 = vadd.f32 %v6871_v11, %v16361_v54  ;;  %v7054_v4 = vsel %vm7053_vm12, %v15195_v6, -inf }
 0x8b2   : > { %v6875_v24 = vpop.permute.xlu1 %6874 }
 0x8b3   : > { %6914 = vperm.xlu1 %9746, %v6788_v50   ;;  %vm6999_vm14 = vcmp.ne.f32.partialorder %v6967_v40, %v6967_v40 }
 0x8b4   : > { %v6879_v28 = vpop.permute.xlu0 %6878  ;;  %v15203_v60 = vsel %vm6999_vm14, -1e+30, %v6967_v40  ;;  %vm6991_vm14 = vcmp.ne.f32.partialorder %v6959_v32, %v6959_v32 }
 0x8b5   : > { %v6969_v1 = vadd.f32 %v6879_v28, %v16363_v49  ;;  %v7084_v30 = vsel %vm7053_vm12, %v15203_v60, -inf  ;;  %v15227_v50 = vsel %vm6991_vm14, -1e+30, %v6959_v32 }
 0x8b6   : > { %v15189_v22 = vpop.permute.xlu1 %6882  ;;  %v7060_v11 = vsel %vm7053_vm12, %v15227_v50, -inf }
 0x8b7   : > { %6922 = vperm.xlu1 %9746, %v6796_v21   ;;  %vm7001_vm2 = vcmp.ne.f32.partialorder %v6969_v1, %v6969_v1  ;;  %v6968_v21 = vadd.f32 %v16369_v15, %v6875_v24 }
 0x8b8   : > { %v6835_v42 = vpop.permute.xlu0 %6834  ;;  %v15210_v41 = vsel %vm7001_vm2, -1e+30, %v6969_v1  ;;  %v6698_v1 = vcombine.high %v15162_v31, %v15162_v31 }
 0x8b9   : > { %v6958_v10 = vadd.f32 %v16364_v63, %v6835_v42  ;;  %v7090_v23 = vsel %vm7053_vm12, %v15210_v41, -inf  ;;  %v7726_v63 = vld [vmem:[%s16012_s1 + $0x570] sm:$0xff] }
 0x8ba   : > { %v6843_v37 = vpop.permute.xlu1 %6842 }
 0x8bb   : > { %v6960_v51 = vadd.f32 %v16365_v46, %v6843_v37  ;;  %vm6990_vm11 = vcmp.ne.f32.partialorder %v6958_v10, %v6958_v10  ;;  %v6824_v37 = vrot.slane %v6698_v1, %v16358_v52 }
 0x8bc   : > { %v6847_v9 = vpop.permute.xlu0 %6846  ;;  %v15216_v44 = vsel %vm6990_vm11, -1e+30, %v6958_v10  ;;  %vm7000_vm11 = vcmp.ne.f32.partialorder %v6968_v21, %v6968_v21 }
 0x8bd   : > { %vm6992_vm13 = vcmp.ne.f32.partialorder %v6960_v51, %v6960_v51  ;;  %v6961_v8 = vadd.f32 %v6847_v9, %v16368_v57  ;;  %v7057_v27 = vsel %vm7053_vm12, %v15216_v44, -inf  ;;  %v15241_v24 = vsel %vm7000_vm11, -1e+30, %v6968_v21  ;;  %v16375_v57 = vld [vmem:[#allocation21_spill] sm:$0xff]  ;;  %v16376_v21 = vld [vmem:[#allocation20_spill] sm:$0xff] }
 0x8be   : > { %v6851_v25 = vpop.permute.xlu1 %6850  ;;  %v15220_v18 = vsel %vm6992_vm13, -1e+30, %v6960_v51  ;;  %v7087_v9 = vsel %vm7053_vm12, %v15241_v24, -inf }
 0x8bf   : > { %v7063_v14 = vsel %vm7053_vm12, %v15220_v18, -inf  ;;  %vm6993_vm2 = vcmp.ne.f32.partialorder %v6961_v8, %v6961_v8  ;;  %v6962_v42 = vadd.f32 %v16370_v26, %v6851_v25  ;;  %v16377_v26 = vld [vmem:[#allocation29_spill] sm:$0xff] }
 0x8c0   : > { %v15197_v43 = vpop.permute.xlu0 %6886  ;;  %v15236_v28 = vsel %vm6993_vm2, -1e+30, %v6961_v8 }
 0x8c1   : > { %v7066_v20 = vsel %vm7053_vm12, %v15236_v28, -inf  ;;  %vm6994_vm13 = vcmp.ne.f32.partialorder %v6962_v42, %v6962_v42 }
 0x8c2   : > { %v6891_v34 = vpop.permute.xlu1 %6890  ;;  %v15246_v54 = vsel %vm6994_vm13, -1e+30, %v6962_v42 }
 0x8c3   : > { %v7069_v40 = vsel %vm7053_vm12, %v15246_v54, -inf }
 0x8c4   : > { %v6855_v2 = vpop.permute.xlu0 %6854 }
 0x8c5   : > { %v6963_v5 = vadd.f32 %v6855_v2, %v16367_v13  ;;  %v16374_v13 = vld [vmem:[#allocation18_spill] sm:$0xff] }
 0x8c6   : > { %v6859_v12 = vpop.permute.xlu1 %6858 }
 0x8c7   : > { %vm6995_vm15 = vcmp.ne.f32.partialorder %v6963_v5, %v6963_v5  ;;  %v6964_v38 = vadd.f32 %v16371_v45, %v6859_v12 }
 0x8c8   : > { %v15229_v33 = vsel %vm6995_vm15, -1e+30, %v6963_v5  ;;  %v6972_v5 = vadd.f32 %v16374_v13, %v6891_v34  ;;  %v16383_v13 = vld [vmem:[#allocation25_spill] sm:$0xff] }
 0x8c9   : > { %v7072_v47 = vsel %vm7053_vm12, %v15229_v33, -inf  ;;  %vm6996_vm14 = vcmp.ne.f32.partialorder %v6964_v38, %v6964_v38 }
 0x8ca   : > { %v15250_v3 = vsel %vm6996_vm14, -1e+30, %v6964_v38  ;;  %vm7004_vm11 = vcmp.ne.f32.partialorder %v6972_v5, %v6972_v5 }
 0x8cb   : > { %v7075_v59 = vsel %vm7053_vm12, %v15250_v3, -inf  ;;  %v15286_v15 = vsel %vm7004_vm11, -1e+30, %v6972_v5 }
 0x8d0   : > { %7079 = vmax.xlane.f32.xlu0 %v7078_v7  ;;  %v6700_v7 = vcombine.high %v15172_v35, %v15172_v35  ;;  %v16372_v35 = vld [vmem:[#allocation19_spill] sm:$0xff] }
 0x8d1   : > { %v6971_v10 = vadd.f32 %v15197_v43, %v16372_v35 }
 0x8d2   : > { %v6828_v49 = vrot.slane %v6700_v7, %v16358_v52 }
 0x8d3   : > { %vm7003_vm15 = vcmp.ne.f32.partialorder %v6971_v10, %v6971_v10 }
 0x8d4   : > { %7055 = vmax.xlane.f32.xlu0 %v7054_v4  ;;  %v7727_v4 = vld [vmem:[%s16012_s1 + $0x578] sm:$0xff]  ;;  %v15268_v51 = vsel %vm7003_vm15, -1e+30, %v6971_v10 }
 0x8d5   : > { %7854 = vmatprep.subr.mxu1 %v7727_v4  ;;  %v7096_v52 = vsel %vm7053_vm12, %v15268_v51, -inf  ;;  %v16381_v4 = vld [vmem:[#allocation22_spill] sm:$0xff] }
 0x8d6   : > { %7855 = vmatpush1.msra.mxu1 %v7726_v63 }
 0x8d8   : > { %7085 = vmax.xlane.f32.xlu0 %v7084_v30  ;;  %v16373_v30 = vld [vmem:[#allocation16_spill] sm:$0xff] }
 0x8d9   : > { %v6970_v16 = vadd.f32 %v16373_v30, %v15189_v22 }
 0x8db   : > { %7082 = vmax.xlane.f32.xlu1 %v7081_v36  ;;  %vm7002_vm2 = vcmp.ne.f32.partialorder %v6970_v16, %v6970_v16 }
 0x8dc   : > { %7091 = vmax.xlane.f32.xlu0 %v7090_v23  ;;  %v15279_v23 = vsel %vm7002_vm2, -1e+30, %v6970_v16 }
 0x8df   : > { %7058 = vmax.xlane.f32.xlu1 %v7057_v27 }
 0x8e0   : > { %7064 = vmax.xlane.f32.xlu0 %v7063_v14  ;;  %v7093_v14 = vsel %vm7053_vm12, %v15279_v23, -inf }
 0x8e3   : > { %7061 = vmax.xlane.f32.xlu1 %v7060_v11 }
 0x8e4   : > { %7073 = vmax.xlane.f32.xlu0 %v7072_v47  ;;  %v7099_v47 = vsel %vm7053_vm12, %v15286_v15, -inf }
 0x8e7   : > { %7067 = vmax.xlane.f32.xlu1 %v7066_v20  ;;  %v16378_v20 = vld [vmem:[#allocation23_spill] sm:$0xff] }
 0x8eb   : > { %7088 = vmax.xlane.f32.xlu1 %v7087_v9 }
 0x8ef   : > { %7070 = vmax.xlane.f32.xlu1 %v7069_v40  ;;  %v16379_v40 = vld [vmem:[#allocation27_spill] sm:$0xff] }
 0x8f3   : > { %7076 = vmax.xlane.f32.xlu1 %v7075_v59 }
 0x8fa   : > { %6954 = vperm.xlu0 %9745, %v6828_v49   ;;  %v16380_v49 = vld [vmem:[#allocation31_spill] sm:$0xff] }
 0x904   : > { %6950 = vperm.xlu1 %9746, %v6824_v37  }
 0x916   : > { %v6927_v46 = vpop.permute.xlu1 %6926 }
 0x917   : > { %v6981_v42 = vadd.f32 %v6927_v46, %v16377_v26 }
 0x918   : > { %v6895_v31 = vpop.permute.xlu0 %6894 }
 0x919   : > { %7097 = vmax.xlane.f32.xlu0 %v7096_v52  ;;  %v6973_v8 = vadd.f32 %v6895_v31, %v16375_v57  ;;  %vm7013_vm2 = vcmp.ne.f32.partialorder %v6981_v42, %v6981_v42  ;;  %v16382_v52 = vld [vmem:[#allocation33_spill] sm:$0xff] }
 0x91a   : > { %v6935_v2 = vpop.permute.xlu1 %6934  ;;  %v15306_v46 = vsel %vm7013_vm2, -1e+30, %v6981_v42  ;;  %v16385_v42 = vld [vmem:[#allocation26_spill] sm:$0xff] }
 0x91b   : > { %vm7005_vm13 = vcmp.ne.f32.partialorder %v6973_v8, %v6973_v8  ;;  %v6983_v1 = vadd.f32 %v6935_v2, %v16380_v49 }
 0x91c   : > { %v15274_v32 = vpop.permute.xlu0 %6930  ;;  %v15292_v12 = vsel %vm7005_vm13, -1e+30, %v6973_v8 }
 0x91d   : > { %v7102_v7 = vsel %vm7053_vm12, %v15292_v12, -inf  ;;  %vm7015_vm13 = vcmp.ne.f32.partialorder %v6983_v1, %v6983_v1 }
 0x91e   : > { %v6943_v36 = vpop.permute.xlu1 %6942  ;;  %v15316_v57 = vsel %vm7015_vm13, -1e+30, %v6983_v1  ;;  %v16387_v1 = vld [vmem:[#allocation30_spill] sm:$0xff] }
 0x91f   : > { %v6985_v2 = vadd.f32 %v6943_v36, %v16382_v52 }
 0x920   : > { %v15277_v25 = vpop.permute.xlu0 %6938 }
 0x922   : > { %v6899_v43 = vpop.permute.xlu1 %6898 }
 0x923   : > { %v6974_v34 = vadd.f32 %v16376_v21, %v6899_v43  ;;  %v7126_v43 = vsel %vm7053_vm12, %v15306_v46, -inf }
 0x924   : > { %v15282_v27 = vpop.permute.xlu0 %6946 }
 0x925   : > { %vm7006_vm14 = vcmp.ne.f32.partialorder %v6974_v34, %v6974_v34 }
 0x926   : > { %v6903_v22 = vpop.permute.xlu1 %6902  ;;  %v15299_v37 = vsel %vm7006_vm14, -1e+30, %v6974_v34  ;;  %v7132_v34 = vsel %vm7053_vm12, %v15316_v57, -inf }
 0x927   : > { %v6975_v45 = vadd.f32 %v6903_v22, %v16378_v20  ;;  %v7105_v31 = vsel %vm7053_vm12, %v15299_v37, -inf }
 0x928   : > { %7094 = vmax.xlane.f32.xlu1 %v7093_v14  ;;  %v6907_v11 = vpop.permute.xlu0 %6906  ;;  %v16384_v14 = vld [vmem:[#allocation24_spill] sm:$0xff] }
 0x929   : > { %v6976_v63 = vadd.f32 %v16381_v4, %v6907_v11  ;;  %vm7007_vm11 = vcmp.ne.f32.partialorder %v6975_v45, %v6975_v45  ;;  %v6984_v4 = vadd.f32 %v16387_v1, %v15277_v25 }
 0x92a   : > { %v6911_v9 = vpop.permute.xlu1 %6910  ;;  %v15311_v16 = vsel %vm7007_vm11, -1e+30, %v6975_v45 }
 0x92b   : > { %v6977_v5 = vadd.f32 %v6911_v9, %v16383_v13  ;;  %vm7008_vm14 = vcmp.ne.f32.partialorder %v6976_v63, %v6976_v63  ;;  %v7108_v8 = vsel %vm7053_vm12, %v15311_v16, -inf }
 0x92c   : > { %7100 = vmax.xlane.f32.xlu1 %v7099_v47  ;;  %v6919_v38 = vpop.permute.xlu0 %6918  ;;  %v15320_v36 = vsel %vm7008_vm14, -1e+30, %v6976_v63 }
 0x92d   : > { %v6979_v59 = vadd.f32 %v6919_v38, %v16379_v40  ;;  %vm7009_vm2 = vcmp.ne.f32.partialorder %v6977_v5, %v6977_v5  ;;  %v7111_v47 = vsel %vm7053_vm12, %v15320_v36, -inf  ;;  %v16386_v40 = vld [vmem:[#allocation28_spill] sm:$0xff] }
 0x92e   : > { %v6915_v30 = vpop.permute.xlu1 %6914  ;;  %v15329_v26 = vsel %vm7009_vm2, -1e+30, %v6977_v5 }
 0x92f   : > { %vm7011_vm15 = vcmp.ne.f32.partialorder %v6979_v59, %v6979_v59  ;;  %v6978_v22 = vadd.f32 %v16384_v14, %v6915_v30  ;;  %v7114_v38 = vsel %vm7053_vm12, %v15329_v26, -inf }
 0x930   : > { %7103 = vmax.xlane.f32.xlu1 %v7102_v7  ;;  %v15302_v35 = vsel %vm7011_vm15, -1e+30, %v6979_v59  ;;  %vm7017_vm15 = vcmp.ne.f32.partialorder %v6985_v2, %v6985_v2  ;;  %v6982_v59 = vadd.f32 %v16386_v40, %v15274_v32 }
 0x931   : > { %v7120_v10 = vsel %vm7053_vm12, %v15302_v35, -inf  ;;  %v15325_v11 = vsel %vm7017_vm15, -1e+30, %v6985_v2  ;;  %vm7010_vm11 = vcmp.ne.f32.partialorder %v6978_v22, %v6978_v22  ;;  %vm7016_vm15 = vcmp.ne.f32.partialorder %v6984_v4, %v6984_v4 }
 0x932   : > { %7121 = vmax.xlane.f32.xlu0 %v7120_v10  ;;  %v6923_v21 = vpop.permute.xlu1 %6922  ;;  %v7138_v45 = vsel %vm7053_vm12, %v15325_v11, -inf  ;;  %v15336_v9 = vsel %vm7010_vm11, -1e+30, %v6978_v22  ;;  %vm7014_vm14 = vcmp.ne.f32.partialorder %v6982_v59, %v6982_v59  ;;  %v15354_v2 = vsel %vm7016_vm15, -1e+30, %v6984_v4 }
 0x933   : > { %v6980_v20 = vadd.f32 %v16385_v42, %v6923_v21  ;;  %v7117_v7 = vsel %vm7053_vm12, %v15336_v9, -inf  ;;  %v15348_v10 = vsel %vm7014_vm14, -1e+30, %v6982_v59  ;;  %v7135_v25 = vsel %vm7053_vm12, %v15354_v2, -inf }
 0x934   : > { %7106 = vmax.xlane.f32.xlu1 %v7105_v31  ;;  %v16388_v31 = vld [vmem:[#allocation32_spill] sm:$0xff]  ;;  %v7129_v52 = vsel %vm7053_vm12, %v15348_v10, -inf }
 0x935   : > { %vm7012_vm13 = vcmp.ne.f32.partialorder %v6980_v20, %v6980_v20  ;;  %v6986_v32 = vadd.f32 %v16388_v31, %v15282_v27 }
 0x936   : > { %7127 = vmax.xlane.f32.xlu0 %v7126_v43  ;;  %v15342_v49 = vsel %vm7012_vm13, -1e+30, %v6980_v20 }
 0x937   : > { %v7123_v63 = vsel %vm7053_vm12, %v15342_v49, -inf  ;;  %vm7018_vm2 = vcmp.ne.f32.partialorder %v6986_v32, %v6986_v32 }
 0x938   : > { %7109 = vmax.xlane.f32.xlu1 %v7108_v8  ;;  %v15358_v30 = vsel %vm7018_vm2, -1e+30, %v6986_v32 }
 0x939   : > { %v7141_v13 = vsel %vm7053_vm12, %v15358_v30, -inf }
 0x93a   : > { %7133 = vmax.xlane.f32.xlu0 %v7132_v34 }
 0x93c   : > { %7112 = vmax.xlane.f32.xlu1 %v7111_v47 }
 0x93e   : > { %7139 = vmax.xlane.f32.xlu0 %v7138_v45 }
 0x940   : > { %7115 = vmax.xlane.f32.xlu1 %v7114_v38 }
 0x944   : > { %7118 = vmax.xlane.f32.xlu1 %v7117_v7 }
 0x948   : > { %7124 = vmax.xlane.f32.xlu1 %v7123_v63 }
 0x94c   : > { %7130 = vmax.xlane.f32.xlu1 %v7129_v52 }
 0x950   : > { %7136 = vmax.xlane.f32.xlu1 %v7135_v25 }
 0x954   : > { %7142 = vmax.xlane.f32.xlu1 %v7141_v13 }
 0x959   : > { %v7080_v5 = vpop.xlane.xlu0 %7079 }
 0x95a   : > { %v7198_v27 = vrot.slane %v7080_v5, 4 }
 0x95c   : > { %v7199_v43 = vmax.f32 %v7080_v5, %v7198_v27 }
 0x95d   : > { %v7056_v8 = vpop.xlane.xlu0 %7055 }
 0x95e   : > { %v7200_v14 = vrot.slane %v7199_v43, 2  ;;  %v7150_v22 = vrot.slane %v7056_v8, 4 }
 0x960   : > { %v7201_v21 = vmax.f32 %v7199_v43, %v7200_v14  ;;  %v7151_v34 = vmax.f32 %v7056_v8, %v7150_v22 }
 0x961   : > { %v7086_v47 = vpop.xlane.xlu0 %7085 }
 0x962   : > { %v7202_v42 = vrot.slane %v7201_v21, 1  ;;  %v7152_v20 = vrot.slane %v7151_v34, 2  ;;  %v7210_v45 = vrot.slane %v7086_v47, 4 }
 0x964   : > { %v7083_v38 = vpop.xlane.xlu1 %7082  ;;  %v7153_v59 = vmax.f32 %v7151_v34, %v7152_v20  ;;  %v7211_v7 = vmax.f32 %v7086_v47, %v7210_v45  ;;  %v7203_v1 = vmax.f32 %v7201_v21, %v7202_v42 }
 0x965   : > { %v7204_v40 = vrot.slane %v7083_v38, 4  ;;  %v7092_v4 = vpop.xlane.xlu0 %7091 }
 0x966   : > { %v7154_v31 = vrot.slane %v7153_v59, 1  ;;  %v7212_v32 = vrot.slane %v7211_v7, 2  ;;  %v7222_v52 = vrot.slane %v7092_v4, 4  ;;  %v7350_v27 = vsub.f32 %v15187_v61, %v7203_v1 }
 0x967   : > { %v7205_v63 = vmax.f32 %v7083_v38, %v7204_v40 }
 0x968   : > { %v7059_v25 = vpop.xlane.xlu1 %7058  ;;  %v7155_v5 = vmax.f32 %v7153_v59, %v7154_v31  ;;  %v7223_v43 = vmax.f32 %v7092_v4, %v7222_v52  ;;  %v7213_v39 = vmax.f32 %v7211_v7, %v7212_v32  ;;  %v7390_v40 = vmul.f32 1.442695, %v7350_v27 }
 0x969   : > { %v7206_v13 = vrot.slane %v7205_v63, 2  ;;  %v7156_v8 = vrot.slane %v7059_v25, 4  ;;  %v7065_v14 = vpop.xlane.xlu0 %7064 }
 0x96a   : > { %v7342_v17 = vsub.f32 %v15195_v6, %v7155_v5  ;;  %v7224_v34 = vrot.slane %v7223_v43, 2  ;;  %v7168_v21 = vrot.slane %v7065_v14, 4  ;;  %v7214_v61 = vrot.slane %v7213_v39, 1 }
 0x96b   : > { %v7207_v22 = vmax.f32 %v7205_v63, %v7206_v13  ;;  %v7157_v47 = vmax.f32 %v7059_v25, %v7156_v8 }
 0x96c   : > { %v7062_v42 = vpop.xlane.xlu1 %7061  ;;  %v7374_v45 = vmul.f32 1.442695, %v7342_v17  ;;  %v7169_v56 = vmax.f32 %v7065_v14, %v7168_v21  ;;  %v7225_v1 = vmax.f32 %v7223_v43, %v7224_v34  ;;  %v7215_v8 = vmax.f32 %v7213_v39, %v7214_v61  ;;  %v16389_v39 = vld [vmem:[#allocation34_spill] sm:$0xff] }
 0x96d   : > { %v7208_v20 = vrot.slane %v7207_v22, 1  ;;  %v7162_v38 = vrot.slane %v7062_v42, 4  ;;  %v7158_v58 = vrot.slane %v7157_v47, 2  ;;  %v7074_v59 = vpop.xlane.xlu0 %7073 }
 0x96e   : > { %9883 = vpow2.f32 %v7374_v45  ;;  %v7170_v52 = vrot.slane %v7169_v56, 2  ;;  %v7186_v7 = vrot.slane %v7074_v59, 4  ;;  %v7226_v21 = vrot.slane %v7225_v1, 1 }
 0x96f   : > { %v7163_v4 = vmax.f32 %v7062_v42, %v7162_v38  ;;  %v7209_v31 = vmax.f32 %v7207_v22, %v7208_v20  ;;  %v7159_v63 = vmax.f32 %v7157_v47, %v7158_v58  ;;  %9885 = vpow2.f32 %v7390_v40 }
 0x970   : > { %v7068_v6 = vpop.xlane.xlu1 %7067  ;;  %v7171_v5 = vmax.f32 %v7169_v56, %v7170_v52  ;;  %v7187_v17 = vmax.f32 %v7074_v59, %v7186_v7 }
 0x971   : > { %v7164_v32 = vrot.slane %v7163_v4, 2  ;;  %v7174_v25 = vrot.slane %v7068_v6, 4  ;;  %v7160_v13 = vrot.slane %v7159_v63, 1  ;;  %v7351_v14 = vsub.f32 %v15206_v0, %v7209_v31 }
 0x972   : > { %v7172_v43 = vrot.slane %v7171_v5, 1  ;;  %v7188_v38 = vrot.slane %v7187_v17, 2  ;;  %v7352_v0 = vsub.f32 %v15203_v60, %v7215_v8  ;;  %v7227_v31 = vmax.f32 %v7225_v1, %v7226_v21 }
 0x973   : > { %v7165_v27 = vmax.f32 %v7163_v4, %v7164_v32  ;;  %v7175_v19 = vmax.f32 %v7068_v6, %v7174_v25  ;;  %v7161_v45 = vmax.f32 %v7159_v63, %v7160_v13  ;;  %v7392_v4 = vmul.f32 1.442695, %v7351_v14 }
 0x974   : > { %v7089_v34 = vpop.xlane.xlu1 %7088  ;;  %v7173_v20 = vmax.f32 %v7171_v5, %v7172_v43  ;;  %v7189_v13 = vmax.f32 %v7187_v17, %v7188_v38  ;;  %v7394_v60 = vmul.f32 1.442695, %v7352_v0  ;;  %v7354_v1 = vsub.f32 %v15210_v41, %v7227_v31 }
 0x975   : > { %v7166_v22 = vrot.slane %v7165_v27, 1  ;;  %v7176_v58 = vrot.slane %v7175_v19, 2  ;;  %v7216_v47 = vrot.slane %v7089_v34, 4  ;;  %v7343_v42 = vsub.f32 %v15216_v44, %v7161_v45  ;;  %v6955_v40 = vpop.permute.xlu0 %6954 }
 0x976   : > { %v6988_v61 = vadd.f32 %v16389_v39, %v6955_v40  ;;  %v7345_v44 = vsub.f32 %v15220_v18, %v7173_v20  ;;  %v7190_v17 = vrot.slane %v7189_v13, 1 }
 0x977   : > { %v7167_v48 = vmax.f32 %v7165_v27, %v7166_v22  ;;  %v7177_v56 = vmax.f32 %v7175_v19, %v7176_v58  ;;  %v7217_v59 = vmax.f32 %v7089_v34, %v7216_v47  ;;  %v7376_v63 = vmul.f32 1.442695, %v7343_v42 }
 0x978   : > { %v7071_v52 = vpop.xlane.xlu1 %7070  ;;  %vm7020_vm11 = vcmp.ne.f32.partialorder %v6988_v61, %v6988_v61  ;;  %v7380_v18 = vmul.f32 1.442695, %v7345_v44  ;;  %v7398_v42 = vmul.f32 1.442695, %v7354_v1  ;;  %v7191_v39 = vmax.f32 %v7189_v13, %v7190_v17 }
 0x979   : > { %v7344_v6 = vsub.f32 %v15227_v50, %v7167_v48  ;;  %v7178_v7 = vrot.slane %v7177_v56, 1  ;;  %v7218_v32 = vrot.slane %v7217_v59, 2  ;;  %v7180_v25 = vrot.slane %v7071_v52, 4 }
 0x97a   : > { %9887 = vpow2.f32 %v7376_v63  ;;  %v15371_v21 = vsel %vm7020_vm11, -1e+30, %v6988_v61 }
 0x97b   : > { %v7378_v19 = vmul.f32 1.442695, %v7344_v6  ;;  %v7179_v5 = vmax.f32 %v7177_v56, %v7178_v7  ;;  %v7219_v27 = vmax.f32 %v7217_v59, %v7218_v32  ;;  %v7181_v45 = vmax.f32 %v7071_v52, %v7180_v25  ;;  %v9884_v14 = vpop.eup %9883  ;;  %v16390_v56 = vld [vmem:[#allocation35_spill] sm:$0xff] }
 0x97c   : > { %9889 = vpow2.f32 %v7392_v4  ;;  %v7077_v8 = vpop.xlane.xlu1 %7076  ;;  %9343 = vmatmul.mubr.msk.f32.vlgmr.msra.gmra.mxu1 %vm7053_vm12, %v9884_v14  ;;  %v7147_v22 = vsel %vm7053_vm12, %v15371_v21, -inf  ;;  %v15378_v58 = vpop.eup %9885  ;;  %v7348_v32 = vsub.f32 %v15229_v33, %v7191_v39 }
 0x97d   : > { %9891 = vpow2.f32 %v7378_v19  ;;  %v7346_v48 = vsub.f32 %v15236_v28, %v7179_v5  ;;  %v7220_v50 = vrot.slane %v7219_v27, 1  ;;  %v7182_v43 = vrot.slane %v7181_v45, 2  ;;  %7894 = vmatprep.mubr.f32.mxu1 %v16356_v55  ;;  %7148 = vmax.xlane.f32.xlu1 %v7147_v22 }
 0x97e   : > { %v7192_v34 = vrot.slane %v7077_v8, 4  ;;  %9893 = vpow2.f32 %v7394_v60  ;;  %v7462_v4 = vsel %vm7053_vm12, %v15378_v58, 0.0  ;;  %v7386_v60 = vmul.f32 1.442695, %v7348_v32 }
 0x97f   : > { %v7382_v41 = vmul.f32 1.442695, %v7346_v48  ;;  %v7183_v47 = vmax.f32 %v7181_v45, %v7182_v43  ;;  %v7221_v38 = vmax.f32 %v7219_v27, %v7220_v50 }
 0x980   : > { %v7193_v28 = vmax.f32 %v7077_v8, %v7192_v34  ;;  %v6951_v20 = vpop.permute.xlu1 %6950 }
 0x981   : > { %9895 = vpow2.f32 %v7382_v41  ;;  %v7184_v40 = vrot.slane %v7183_v47, 1  ;;  %v6987_v59 = vadd.f32 %v6951_v20, %v16390_v56  ;;  %7463 = vadd.xlane.f32.xlu1 %v7462_v4  ;;  %v7353_v52 = vsub.f32 %v15241_v24, %v7221_v38 }
 0x982   : > { %9897 = vpow2.f32 %v7380_v18  ;;  %v7194_v61 = vrot.slane %v7193_v28, 2  ;;  %v7438_v24 = vsel %vm7053_vm12, %v9884_v14, 0.0 }
 0x983   : > { %v7185_v0 = vmax.f32 %v7183_v47, %v7184_v40  ;;  %vm7019_vm13 = vcmp.ne.f32.partialorder %v6987_v59, %v6987_v59  ;;  %9899 = vpow2.f32 %v7398_v42  ;;  %v7396_v45 = vmul.f32 1.442695, %v7353_v52 }
 0x984   : > { %v7195_v31 = vmax.f32 %v7193_v28, %v7194_v61  ;;  %v15383_v63 = vsel %vm7019_vm13, -1e+30, %v6987_v59 }
 0x985   : > { %v7347_v6 = vsub.f32 %v15246_v54, %v7185_v0  ;;  %v7144_v7 = vsel %vm7053_vm12, %v15383_v63, -inf }
 0x986   : > { %v7196_v25 = vrot.slane %v7195_v31, 1  ;;  %7145 = vmax.xlane.f32.xlu0 %v7144_v7 }
 0x987   : > { %v9888_v44 = vpop.eup %9887  ;;  %v7384_v13 = vmul.f32 1.442695, %v7347_v6 }
 0x988   : > { %v7197_v19 = vmax.f32 %v7195_v31, %v7196_v25  ;;  %9344 = vmatmul.mubr.msk.f32.gmra.mxu1 %vm7053_vm12, %v9888_v44  ;;  %v7441_v5 = vsel %vm7053_vm12, %v9888_v44, 0.0 }
 0x989   : > { %v9890_v27 = vpop.eup %9889  ;;  %9901 = vpow2.f32 %v7384_v13  ;;  %7900 = vmatprep.mubr.f32.mxu1 %v16356_v55  ;;  %7442 = vadd.xlane.f32.xlu1 %v7441_v5 }
 0x98a   : > { %v9892_v54 = vpop.eup %9891  ;;  %v7349_v33 = vsub.f32 %v15250_v3, %v7197_v19  ;;  %7439 = vadd.xlane.f32.xlu0 %v7438_v24  ;;  %9903 = vpow2.f32 %v7396_v45  ;;  %v7465_v8 = vsel %vm7053_vm12, %v9890_v27, 0.0 }
 0x98b   : > { %v9894_v1 = vpop.eup %9893  ;;  %9905 = vpow2.f32 %v7386_v60  ;;  %v7444_v22 = vsel %vm7053_vm12, %v9892_v54, 0.0 }
 0x98c   : > { %9345 = vmatmul.mubr.msk.f32.gmra.mxu1 %vm7053_vm12, %v9892_v54  ;;  %v7388_v50 = vmul.f32 1.442695, %v7349_v33  ;;  %v7468_v3 = vsel %vm7053_vm12, %v9894_v1, 0.0 }
 0x98d   : > { %7906 = vmatprep.mubr.f32.mxu1 %v16356_v55 }
 0x98e   : > { %v9896_v48 = vpop.eup %9895  ;;  %7466 = vadd.xlane.f32.xlu0 %v7465_v8  ;;  %9907 = vpow2.f32 %v7388_v50 }
 0x98f   : > { %v15398_v43 = vpop.eup %9897  ;;  %v7450_v14 = vsel %vm7053_vm12, %v9896_v48, 0.0 }
 0x990   : > { %9346 = vmatmul.mubr.msk.f32.gmra.mxu1 %vm7053_vm12, %v15398_v43  ;;  %7451 = vadd.xlane.f32.xlu1 %v7450_v14  ;;  %v9900_v18 = vpop.eup %9899 }
 0x991   : > { %7912 = vmatprep.mubr.f32.mxu1 %v16356_v55  ;;  %v7474_v17 = vsel %vm7053_vm12, %v9900_v18, 0.0 }
 0x992   : > { %7469 = vadd.xlane.f32.xlu0 %v7468_v3 }
 0x994   : > { %9347 = vmatmul.mubr.msk.f32.gmra.mxu1 %vm7053_vm12, %v9896_v48 }
 0x995   : > { %7918 = vmatprep.mubr.f32.mxu1 %v16356_v55 }
 0x996   : > { %v15408_v34 = vpop.eup %9901  ;;  %7475 = vadd.xlane.f32.xlu0 %v7474_v17 }
 0x997   : > { %v9904_v41 = vpop.eup %9903 }
 0x998   : > { %9348 = vmatmul.mubr.msk.f32.gmra.mxu1 %vm7053_vm12, %v15408_v34  ;;  %v15414_v47 = vpop.eup %9905  ;;  %v7471_v42 = vsel %vm7053_vm12, %v9904_v41, 0.0 }
 0x999   : > { %7924 = vmatprep.mubr.f32.mxu1 %v16356_v55 }
 0x99a   : > { %7445 = vadd.xlane.f32.xlu0 %v7444_v22 }
 0x99b   : > { %v15420_v28 = vpop.eup %9907 }
 0x99c   : > { %9349 = vmatmul.mubr.msk.f32.gmra.mxu1 %vm7053_vm12, %v15414_v47 }
 0x99d   : > { %7930 = vmatprep.mubr.f32.mxu1 %v16356_v55 }
 0x99e   : > { %7472 = vadd.xlane.f32.xlu0 %v7471_v42 }
 0x9a0   : > { %9350 = vmatmul.mubr.msk.f32.gmra.mxu1 %vm7053_vm12, %v15420_v28 }
 0x9a1   : > { %7936 = vmatprep.mubr.f32.mxu1 %v16356_v55 }
 0x9a2   : > { %v7098_v20 = vpop.xlane.xlu0 %7097 }
 0x9a3   : > { %v7234_v38 = vrot.slane %v7098_v20, 4 }
 0x9a4   : > { %9351 = vmatmul.mubr.msk.f32.gmra.mxu1 %vm7053_vm12, %v15378_v58 }
 0x9a5   : > { %7942 = vmatprep.mubr.f32.mxu1 %v16356_v55  ;;  %v7235_v40 = vmax.f32 %v7098_v20, %v7234_v38 }
 0x9a7   : > { %v7236_v56 = vrot.slane %v7235_v40, 2 }
 0x9a8   : > { %9352 = vmatmul.mubr.msk.f32.gmra.mxu1 %vm7053_vm12, %v9890_v27 }
 0x9a9   : > { %7948 = vmatprep.mubr.f32.mxu1 %v16356_v55  ;;  %v7237_v59 = vmax.f32 %v7235_v40, %v7236_v56 }
 0x9ab   : > { %v7238_v39 = vrot.slane %v7237_v59, 1 }
 0x9ac   : > { %9353 = vmatmul.mubr.msk.f32.gmra.mxu1 %vm7053_vm12, %v9894_v1 }
 0x9ad   : > { %7954 = vmatprep.mubr.f32.mxu1 %v16356_v55  ;;  %v7239_v61 = vmax.f32 %v7237_v59, %v7238_v39 }
 0x9af   : > { %v7356_v4 = vsub.f32 %v15268_v51, %v7239_v61 }
 0x9b0   : > { %9354 = vmatmul.mubr.msk.f32.gmra.mxu1 %vm7053_vm12, %v9904_v41 }
 0x9b1   : > { %v7095_v58 = vpop.xlane.xlu1 %7094  ;;  %7960 = vmatprep.mubr.f32.mxu1 %v16356_v55  ;;  %v7402_v0 = vmul.f32 1.442695, %v7356_v4 }
 0x9b2   : > { %v7228_v31 = vrot.slane %v7095_v58, 4 }
 0x9b3   : > { %9909 = vpow2.f32 %v7402_v0 }
 0x9b4   : > { %v7229_v52 = vmax.f32 %v7095_v58, %v7228_v31  ;;  %9355 = vmatmul.mubr.msk.f32.gmra.mxu1 %vm7053_vm12, %v9900_v18 }
 0x9b5   : > { %v7101_v6 = vpop.xlane.xlu1 %7100  ;;  %7966 = vmatprep.mubr.f32.mxu1 %v16356_v55 }
 0x9b6   : > { %v7230_v7 = vrot.slane %v7229_v52, 2  ;;  %v7240_v32 = vrot.slane %v7101_v6, 4 }
 0x9b8   : > { %v7231_v25 = vmax.f32 %v7229_v52, %v7230_v7  ;;  %v7241_v44 = vmax.f32 %v7101_v6, %v7240_v32 }
 0x9b9   : > { %v7104_v13 = vpop.xlane.xlu1 %7103 }
 0x9ba   : > { %v7232_v51 = vrot.slane %v7231_v25, 1  ;;  %v7242_v19 = vrot.slane %v7241_v44, 2  ;;  %v7246_v5 = vrot.slane %v7104_v13, 4 }
 0x9bb   : > { %v7122_v27 = vpop.xlane.xlu0 %7121 }
 0x9bc   : > { %v7233_v45 = vmax.f32 %v7231_v25, %v7232_v51  ;;  %v7243_v24 = vmax.f32 %v7241_v44, %v7242_v19  ;;  %v7247_v54 = vmax.f32 %v7104_v13, %v7246_v5  ;;  %v7282_v0 = vrot.slane %v7122_v27, 4 }
 0x9bd   : > { %v7107_v60 = vpop.xlane.xlu1 %7106  ;;  %v7447_v51 = vsel %vm7053_vm12, %v15398_v43, 0.0  ;;  %v7453_v43 = vsel %vm7053_vm12, %v15408_v34, 0.0 }
 0x9be   : > { %v7355_v33 = vsub.f32 %v15279_v23, %v7233_v45  ;;  %v7244_v1 = vrot.slane %v7243_v24, 1  ;;  %v7248_v8 = vrot.slane %v7247_v54, 2  ;;  %v7252_v48 = vrot.slane %v7107_v60, 4 }
 0x9bf   : > { %v7128_v14 = vpop.xlane.xlu0 %7127 }
 0x9c0   : > { %v7400_v50 = vmul.f32 1.442695, %v7355_v33  ;;  %v7245_v3 = vmax.f32 %v7243_v24, %v7244_v1  ;;  %v7249_v18 = vmax.f32 %v7247_v54, %v7248_v8  ;;  %v7253_v17 = vmax.f32 %v7107_v60, %v7252_v48  ;;  %v15438_v22 = vpop.eup %9909 }
 0x9c1   : > { %v7294_v41 = vrot.slane %v7128_v14, 4  ;;  %v7110_v42 = vpop.xlane.xlu1 %7109  ;;  %v7480_v23 = vsel %vm7053_vm12, %v15438_v22, 0.0  ;;  %v7283_v54 = vmax.f32 %v7122_v27, %v7282_v0 }
 0x9c2   : > { %9911 = vpow2.f32 %v7400_v50  ;;  %v7357_v20 = vsub.f32 %v15286_v15, %v7245_v3  ;;  %v7250_v38 = vrot.slane %v7249_v18, 1  ;;  %v7254_v40 = vrot.slane %v7253_v17, 2  ;;  %7481 = vadd.xlane.f32.xlu1 %v7480_v23 }
 0x9c3   : > { %v7295_v56 = vmax.f32 %v7128_v14, %v7294_v41  ;;  %v7258_v59 = vrot.slane %v7110_v42, 4  ;;  %v7134_v61 = vpop.xlane.xlu0 %7133  ;;  %v7284_v27 = vrot.slane %v7283_v54, 2 }
 0x9c4   : > { %v7404_v39 = vmul.f32 1.442695, %v7357_v20  ;;  %v7251_v4 = vmax.f32 %v7249_v18, %v7250_v38  ;;  %v7255_v58 = vmax.f32 %v7253_v17, %v7254_v40  ;;  %v7306_v52 = vrot.slane %v7134_v61, 4 }
 0x9c5   : > { %v7296_v31 = vrot.slane %v7295_v56, 2  ;;  %v7259_v6 = vmax.f32 %v7110_v42, %v7258_v59  ;;  %v7113_v7 = vpop.xlane.xlu1 %7112 }
 0x9c6   : > { %9913 = vpow2.f32 %v7404_v39  ;;  %v7358_v15 = vsub.f32 %v15292_v12, %v7251_v4  ;;  %v7256_v32 = vrot.slane %v7255_v58, 1  ;;  %v7264_v25 = vrot.slane %v7113_v7, 4  ;;  %7448 = vadd.xlane.f32.xlu1 %v7447_v51 }
 0x9c7   : > { %v7297_v44 = vmax.f32 %v7295_v56, %v7296_v31  ;;  %v7260_v13 = vrot.slane %v7259_v6, 2  ;;  %v7140_v5 = vpop.xlane.xlu0 %7139  ;;  %v7307_v33 = vmax.f32 %v7134_v61, %v7306_v52  ;;  %v8576_v56 = vld [vmem:[%s16012_s1 + $0x670] sm:$0xff] }
 0x9c8   : > { %v7406_v19 = vmul.f32 1.442695, %v7358_v15  ;;  %v7257_v45 = vmax.f32 %v7255_v58, %v7256_v32  ;;  %v7265_v24 = vmax.f32 %v7113_v7, %v7264_v25  ;;  %v7318_v1 = vrot.slane %v7140_v5, 4  ;;  %8719 = vmatpush1.msra.mxu0 %v8576_v56 }
 0x9c9   : > { %v7298_v60 = vrot.slane %v7297_v44, 1  ;;  %v7116_v8 = vpop.xlane.xlu1 %7115  ;;  %v7261_v48 = vmax.f32 %v7259_v6, %v7260_v13  ;;  %v7308_v59 = vrot.slane %v7307_v33, 2  ;;  %8720 = vmatprep.subr.mxu0 %v16356_v55  ;;  %v7285_v7 = vmax.f32 %v7283_v54, %v7284_v27 }
 0x9ca   : > { %9915 = vpow2.f32 %v7406_v19  ;;  %v7359_v12 = vsub.f32 %v15299_v37, %v7257_v45  ;;  %v7266_v50 = vrot.slane %v7265_v24, 2  ;;  %v7319_v3 = vmax.f32 %v7140_v5, %v7318_v1  ;;  %7454 = vadd.xlane.f32.xlu1 %v7453_v43 }
 0x9cb   : > { %v7299_v14 = vmax.f32 %v7297_v44, %v7298_v60  ;;  %v7262_v17 = vrot.slane %v7261_v48, 1  ;;  %v7270_v42 = vrot.slane %v7116_v8, 4  ;;  %v7456_v37 = vsel %vm7053_vm12, %v15414_v47, 0.0  ;;  %v8574_v44 = vld [vmem:[%s16012_s1 + $0x650] sm:$0xff] }
 0x9cc   : > { %v7408_v18 = vmul.f32 1.442695, %v7359_v12  ;;  %v7267_v41 = vmax.f32 %v7265_v24, %v7266_v50  ;;  %v7320_v38 = vrot.slane %v7319_v3, 2  ;;  %v7309_v45 = vmax.f32 %v7307_v33, %v7308_v59 }
 0x9cd   : > { %v7366_v20 = vsub.f32 %v15306_v46, %v7299_v14  ;;  %v7119_v40 = vpop.xlane.xlu1 %7118  ;;  %v7263_v23 = vmax.f32 %v7261_v48, %v7262_v17  ;;  %v7271_v39 = vmax.f32 %v7116_v8, %v7270_v42  ;;  %v8575_v46 = vld [vmem:[%s16012_s1 + $0x660] sm:$0xff]  ;;  %v7286_v12 = vrot.slane %v7285_v7, 1 }
 0x9ce   : > { %v7268_v34 = vrot.slane %v7267_v41, 1  ;;  %v7321_v58 = vmax.f32 %v7319_v3, %v7320_v38  ;;  %9917 = vpow2.f32 %v7408_v18  ;;  %v7276_v0 = vrot.slane %v7119_v40, 4  ;;  %7457 = vadd.xlane.f32.xlu1 %v7456_v37  ;;  %8721 = vmatpush1.msra.mxu0 %v8575_v46 }
 0x9cf   : > { %v9912_v61 = vpop.eup %9911  ;;  %v7422_v4 = vmul.f32 1.442695, %v7366_v20  ;;  %v7360_v47 = vsub.f32 %v15311_v16, %v7263_v23  ;;  %v7272_v52 = vrot.slane %v7271_v39, 2  ;;  %8722 = vmatprep.subr.mxu0 %v16356_v55  ;;  %v7310_v17 = vrot.slane %v7309_v45, 1 }
 0x9d0   : > { %v7269_v31 = vmax.f32 %v7267_v41, %v7268_v34  ;;  %9356 = vmatmul.mubr.msk.f32.gmra.mxu1 %vm7053_vm12, %v9912_v61  ;;  %v7477_v6 = vsel %vm7053_vm12, %v9912_v61, 0.0  ;;  %v7322_v15 = vrot.slane %v7321_v58, 1  ;;  %v7277_v32 = vmax.f32 %v7119_v40, %v7276_v0  ;;  %8723 = vmatpush1.msra.mxu0 %v8574_v44  ;;  %v8572_v61 = vld [vmem:[%s16012_s1 + $0x630] sm:$0xff] }
 0x9d1   : > { %9919 = vpow2.f32 %v7422_v4  ;;  %7478 = vadd.xlane.f32.xlu0 %v7477_v6  ;;  %v7125_v25 = vpop.xlane.xlu1 %7124  ;;  %7972 = vmatprep.mubr.f32.mxu1 %v16356_v55  ;;  %v7410_v16 = vmul.f32 1.442695, %v7360_v47  ;;  %v7273_v51 = vmax.f32 %v7271_v39, %v7272_v52  ;;  %v7287_v40 = vmax.f32 %v7285_v7, %v7286_v12  ;;  %v8570_v44 = vld [vmem:[%s16012_s1 + $0x610] sm:$0xff] }
 0x9d2   : > { %v7361_v13 = vsub.f32 %v15320_v36, %v7269_v31  ;;  %v7288_v19 = vrot.slane %v7125_v25, 4  ;;  %v7323_v24 = vmax.f32 %v7321_v58, %v7322_v15  ;;  %v7278_v54 = vrot.slane %v7277_v32, 2  ;;  %8724 = vmatprep.subr.mxu0 %v16356_v55 }
 0x9d3   : > { %v9914_v5 = vpop.eup %9913  ;;  %v7274_v1 = vrot.slane %v7273_v51, 1  ;;  %9921 = vpow2.f32 %v7410_v16  ;;  %v7459_v56 = vsel %vm7053_vm12, %v15420_v28, 0.0  ;;  %v7311_v4 = vmax.f32 %v7309_v45, %v7310_v17  ;;  %v8571_v28 = vld [vmem:[%s16012_s1 + $0x620] sm:$0xff] }
 0x9d4   : > { %v7412_v60 = vmul.f32 1.442695, %v7361_v13  ;;  %v7289_v8 = vmax.f32 %v7125_v25, %v7288_v19  ;;  %9357 = vmatmul.mubr.msk.f32.gmra.mxu1 %vm7053_vm12, %v15438_v22  ;;  %v7370_v48 = vsub.f32 %v15325_v11, %v7323_v24  ;;  %v7279_v36 = vmax.f32 %v7277_v32, %v7278_v54  ;;  %v8573_v11 = vld [vmem:[%s16012_s1 + $0x640] sm:$0xff] }
 0x9d5   : > { %v7483_v50 = vsel %vm7053_vm12, %v9914_v5, 0.0  ;;  %v7131_v14 = vpop.xlane.xlu1 %7130  ;;  %7978 = vmatprep.mubr.f32.mxu1 %v16356_v55  ;;  %v7275_v33 = vmax.f32 %v7273_v51, %v7274_v1  ;;  %8725 = vmatpush1.msra.mxu0 %v8573_v11  ;;  %v7364_v31 = vsub.f32 %v15302_v35, %v7287_v40  ;;  %v7368_v35 = vsub.f32 %v15316_v57, %v7311_v4  ;;  %v8569_v13 = vld [vmem:[%s16012_s1 + $0x600] sm:$0xff]  ;;  %v8568_v1 = vld [vmem:[%s16012_s1 + $0x5f0] sm:$0xff] }
 0x9d6   : > { %v7290_v3 = vrot.slane %v7289_v8, 2  ;;  %7484 = vadd.xlane.f32.xlu0 %v7483_v50  ;;  %v7300_v43 = vrot.slane %v7131_v14, 4  ;;  %v7430_v22 = vmul.f32 1.442695, %v7370_v48  ;;  %9923 = vpow2.f32 %v7412_v60  ;;  %8726 = vmatprep.subr.mxu0 %v16356_v55  ;;  %v8563_v40 = vld [vmem:[%s16012_s1 + $0x5a0] sm:$0xff] }
 0x9d7   : > { %v9916_v18 = vpop.eup %9915  ;;  %v7280_v41 = vrot.slane %v7279_v36, 1  ;;  %v7362_v42 = vsub.f32 %v15329_v26, %v7275_v33  ;;  %8727 = vmatpush1.msra.mxu0 %v8572_v61  ;;  %v7418_v45 = vmul.f32 1.442695, %v7364_v31  ;;  %v8561_v61 = vld [vmem:[%s16012_s1 + $0x580] sm:$0xff]  ;;  %v8584_v31 = vld [vmem:[%s16012_s1 + $0x6f0] sm:$0xff] }
 0x9d8   : > { %v7291_v27 = vmax.f32 %v7289_v8, %v7290_v3  ;;  %v7301_v20 = vmax.f32 %v7131_v14, %v7300_v43  ;;  %9358 = vmatmul.mubr.msk.f32.gmra.mxu1 %vm7053_vm12, %v9914_v5  ;;  %v7486_v38 = vsel %vm7053_vm12, %v9916_v18, 0.0  ;;  %9925 = vpow2.f32 %v7430_v22  ;;  %8728 = vmatprep.subr.mxu0 %v16356_v55  ;;  %v8567_v14 = vld [vmem:[%s16012_s1 + $0x5e0] sm:$0xff] }
 0x9d9   : > { %v7281_v37 = vmax.f32 %v7279_v36, %v7280_v41  ;;  %7487 = vadd.xlane.f32.xlu1 %v7486_v38  ;;  %v7137_v59 = vpop.xlane.xlu1 %7136  ;;  %7984 = vmatprep.mubr.f32.mxu1 %v16356_v55  ;;  %v7414_v23 = vmul.f32 1.442695, %v7362_v42 }
 0x9da   : > { %v7292_v34 = vrot.slane %v7291_v27, 1  ;;  %v7302_v26 = vrot.slane %v7301_v20, 2  ;;  %7460 = vadd.xlane.f32.xlu0 %v7459_v56  ;;  %v7312_v39 = vrot.slane %v7137_v59, 4  ;;  %8729 = vmatpush1.msra.mxu0 %v8571_v28  ;;  %v8562_v56 = vld [vmem:[%s16012_s1 + $0x590] sm:$0xff]  ;;  %v8585_v28 = vld [vmem:[%s16012_s1 + $0x700] sm:$0xff] }
 0x9db   : > { %v7363_v58 = vsub.f32 %v15336_v9, %v7281_v37  ;;  %v15491_v0 = vpop.eup %9917  ;;  %9927 = vpow2.f32 %v7414_v23  ;;  %8730 = vmatprep.subr.mxu0 %v16356_v55 }
 0x9dc   : > { %v7303_v46 = vmax.f32 %v7301_v20, %v7302_v26  ;;  %v7313_v47 = vmax.f32 %v7137_v59, %v7312_v39  ;;  %9359 = vmatmul.mubr.msk.f32.gmra.mxu1 %vm7053_vm12, %v9916_v18  ;;  %v7293_v52 = vmax.f32 %v7291_v27, %v7292_v34  ;;  %8731 = vmatpush1.msra.mxu0 %v8570_v44  ;;  %v8566_v18 = vld [vmem:[%s16012_s1 + $0x5d0] sm:$0xff]  ;;  %v7489_v27 = vsel %vm7053_vm12, %v15491_v0, 0.0  ;;  %v8581_v44 = vld [vmem:[%s16012_s1 + $0x6c0] sm:$0xff] }
 0x9dd   : > { %v7143_v6 = vpop.xlane.xlu1 %7142  ;;  %7990 = vmatprep.mubr.f32.mxu1 %v16356_v55  ;;  %v7416_v7 = vmul.f32 1.442695, %v7363_v58  ;;  %8732 = vmatprep.subr.mxu0 %v16356_v55  ;;  %v8564_v20 = vld [vmem:[%s16012_s1 + $0x5b0] sm:$0xff] }
 0x9de   : > { %v15497_v9 = vpop.eup %9919  ;;  %v7304_v15 = vrot.slane %v7303_v46, 1  ;;  %v7314_v32 = vrot.slane %v7313_v47, 2  ;;  %v7324_v25 = vrot.slane %v7143_v6, 4  ;;  %v7365_v24 = vsub.f32 %v15342_v49, %v7293_v52  ;;  %8733 = vmatpush1.msra.mxu0 %v8569_v13 }
 0x9df   : > { %v7510_v16 = vsel %vm7053_vm12, %v15497_v9, 0.0  ;;  %9929 = vpow2.f32 %v7416_v7  ;;  %8734 = vmatprep.subr.mxu0 %v16356_v55  ;;  %v7426_v49 = vmul.f32 1.442695, %v7368_v35 }
 0x9e0   : > { %v7305_v51 = vmax.f32 %v7303_v46, %v7304_v15  ;;  %v7315_v19 = vmax.f32 %v7313_v47, %v7314_v32  ;;  %7511 = vadd.xlane.f32.xlu0 %v7510_v16  ;;  %v7325_v5 = vmax.f32 %v7143_v6, %v7324_v25  ;;  %9360 = vmatmul.mubr.msk.f32.gmra.mxu1 %vm7053_vm12, %v15491_v0  ;;  %v15518_v8 = vpop.eup %9921  ;;  %9931 = vpow2.f32 %v7418_v45  ;;  %v8582_v15 = vld [vmem:[%s16012_s1 + $0x6d0] sm:$0xff] }
 0x9e1   : > { %7996 = vmatprep.mubr.f32.mxu1 %v16356_v55  ;;  %8735 = vmatpush1.msra.mxu0 %v8568_v1  ;;  %v7492_v46 = vsel %vm7053_vm12, %v15518_v8, 0.0 }
 0x9e2   : > { %v7367_v57 = vsub.f32 %v15348_v10, %v7305_v51  ;;  %v7316_v54 = vrot.slane %v7315_v19, 1  ;;  %v7326_v60 = vrot.slane %v7325_v5, 2  ;;  %v7420_v10 = vmul.f32 1.442695, %v7365_v24  ;;  %8736 = vmatprep.subr.mxu0 %v16356_v55  ;;  %v8579_v24 = vld [vmem:[%s16012_s1 + $0x6a0] sm:$0xff] }
 0x9e3   : > { %v15521_v12 = vpop.eup %9923  ;;  %8737 = vmatpush1.msra.mxu0 %v8567_v14 }
 0x9e4   : > { %v7424_v48 = vmul.f32 1.442695, %v7367_v57  ;;  %v7317_v36 = vmax.f32 %v7315_v19, %v7316_v54  ;;  %v7327_v50 = vmax.f32 %v7325_v5, %v7326_v60  ;;  %9361 = vmatmul.mubr.msk.f32.gmra.mxu1 %vm7053_vm12, %v15518_v8  ;;  %8738 = vmatprep.subr.mxu0 %v16356_v55  ;;  %v7495_v6 = vsel %vm7053_vm12, %v15521_v12, 0.0  ;;  %v8580_v19 = vld [vmem:[%s16012_s1 + $0x6b0] sm:$0xff] }
 0x9e5   : > { %8002 = vmatprep.mubr.f32.mxu1 %v16356_v55  ;;  %v15530_v33 = vpop.eup %9925  ;;  %8739 = vmatpush1.msra.mxu0 %v8566_v18  ;;  %v8578_v60 = vld [vmem:[%s16012_s1 + $0x690] sm:$0xff] }
 0x9e6   : > { %9933 = vpow2.f32 %v7424_v48  ;;  %v7369_v3 = vsub.f32 %v15354_v2, %v7317_v36  ;;  %v7328_v43 = vrot.slane %v7327_v50, 1  ;;  %v7522_v17 = vsel %vm7053_vm12, %v15530_v33, 0.0  ;;  %v8565_v2 = vld [vmem:[%s16012_s1 + $0x5c0] sm:$0xff]  ;;  %8740 = vmatprep.subr.mxu0 %v16356_v55 }
 0x9e7   : > { %9935 = vpow2.f32 %v7426_v49  ;;  %7523 = vadd.xlane.f32.xlu0 %v7522_v17  ;;  %8741 = vmatpush1.msra.mxu0 %v8565_v2  ;;  %v8577_v48 = vld [vmem:[%s16012_s1 + $0x680] sm:$0xff] }
 0x9e8   : > { %v7428_v22 = vmul.f32 1.442695, %v7369_v3  ;;  %v7329_v41 = vmax.f32 %v7327_v50, %v7328_v43  ;;  %9362 = vmatmul.mubr.msk.f32.gmra.mxu1 %vm7053_vm12, %v15521_v12  ;;  %9937 = vpow2.f32 %v7420_v10  ;;  %v9928_v11 = vpop.eup %9927  ;;  %8742 = vmatprep.subr.mxu0 %v16356_v55 }
 0x9e9   : > { %8008 = vmatprep.mubr.f32.mxu1 %v16356_v55  ;;  %8743 = vmatpush1.msra.mxu0 %v8564_v20  ;;  %v7498_v52 = vsel %vm7053_vm12, %v9928_v11, 0.0 }
 0x9ea   : > { %9939 = vpow2.f32 %v7428_v22  ;;  %v7371_v42 = vsub.f32 %v15358_v30, %v7329_v41  ;;  %8744 = vmatprep.subr.mxu0 %v16356_v55 }
 0x9eb   : > { %7490 = vadd.xlane.f32.xlu0 %v7489_v27  ;;  %8745 = vmatpush1.msra.mxu0 %v8563_v40 }
 0x9ec   : > { %v7432_v38 = vmul.f32 1.442695, %v7371_v42  ;;  %9363 = vmatmul.mubr.msk.f32.gmra.mxu1 %vm7053_vm12, %v9928_v11  ;;  %v9930_v30 = vpop.eup %9929  ;;  %8746 = vmatprep.subr.mxu0 %v16356_v55 }
 0x9ed   : > { %8014 = vmatprep.mubr.f32.mxu1 %v16356_v55  ;;  %v9932_v37 = vpop.eup %9931  ;;  %8747 = vmatpush1.msra.mxu0 %v8562_v56  ;;  %v7501_v7 = vsel %vm7053_vm12, %v9930_v30, 0.0 }
 0x9ee   : > { %9941 = vpow2.f32 %v7432_v38  ;;  %8748 = vmatprep.subr.mxu0 %v16356_v55  ;;  %v7504_v32 = vsel %vm7053_vm12, %v9932_v37, 0.0 }
 0x9ef   : > { %8749 = vmatpush1.msra.mxu0 %v8561_v61 }
 0x9f0   : > { %9364 = vmatmul.mubr.msk.f32.gmra.mxu1 %vm7053_vm12, %v9930_v30  ;;  %8764 = vmatprep.subr.mxu0 %v16356_v55 }
 0x9f1   : > { %8020 = vmatprep.mubr.f32.mxu1 %v16356_v55  ;;  %8765 = vmatpush2.msra.mxu0 %v8585_v28 }
 0x9f2   : > { %8766 = vmatprep.subr.mxu0 %v16356_v55 }
 0x9f3   : > { %v9934_v59 = vpop.eup %9933  ;;  %8767 = vmatpush2.msra.mxu0 %v8584_v31 }
 0x9f4   : > { %9365 = vmatmul.mubr.msk.f32.gmra.mxu1 %vm7053_vm12, %v9932_v37  ;;  %v7513_v23 = vsel %vm7053_vm12, %v9934_v59, 0.0  ;;  %v9936_v34 = vpop.eup %9935  ;;  %8768 = vmatprep.subr.mxu0 %v16356_v55 }
 0x9f5   : > { %7514 = vadd.xlane.f32.xlu1 %v7513_v23  ;;  %8026 = vmatprep.mubr.f32.mxu1 %v16356_v55  ;;  %v9938_v26 = vpop.eup %9937  ;;  %v7516_v4 = vsel %vm7053_vm12, %v9936_v34, 0.0 }
 0x9f6   : > { %v7507_v13 = vsel %vm7053_vm12, %v9938_v26, 0.0 }
 0x9f7   : > { %v9940_v39 = vpop.eup %9939 }
 0x9f8   : > { %9366 = vmatmul.mubr.msk.f32.gmra.mxu1 %vm7053_vm12, %v9938_v26  ;;  %v7519_v58 = vsel %vm7053_vm12, %v9940_v39, 0.0 }
 0x9f9   : > { %7517 = vadd.xlane.f32.xlu1 %v7516_v4  ;;  %7520 = vadd.xlane.f32.xlu0 %v7519_v58 }
 0x9fa   : > { %8032 = vmatprep.mubr.f32.mxu1 %v16356_v55 }
 0x9fb   : > { %v9942_v0 = vpop.eup %9941 }
 0x9fc   : > { %9367 = vmatmul.mubr.msk.f32.gmra.mxu1 %vm7053_vm12, %v15497_v9  ;;  %v7525_v47 = vsel %vm7053_vm12, %v9942_v0, 0.0  ;;  %v8583_v9 = vld [vmem:[%s16012_s1 + $0x6e0] sm:$0xff] }
 0x9fd   : > { %7493 = vadd.xlane.f32.xlu1 %v7492_v46  ;;  %7526 = vadd.xlane.f32.xlu0 %v7525_v47 }
 0x9fe   : > { %8038 = vmatprep.mubr.f32.mxu1 %v16356_v55  ;;  %8769 = vmatpush2.msra.mxu0 %v8583_v9 }
 0x9ff   : > { %8770 = vmatprep.subr.mxu0 %v16356_v55 }
 0xa00   : > { %9368 = vmatmul.mubr.msk.f32.gmra.mxu1 %vm7053_vm12, %v9934_v59  ;;  %8771 = vmatpush2.msra.mxu0 %v8582_v15 }
 0xa01   : > { %7499 = vadd.xlane.f32.xlu1 %v7498_v52  ;;  %7496 = vadd.xlane.f32.xlu0 %v7495_v6 }
 0xa02   : > { %8044 = vmatprep.mubr.f32.mxu1 %v16356_v55  ;;  %8772 = vmatprep.subr.mxu0 %v16356_v55 }
 0xa03   : > { %8773 = vmatpush2.msra.mxu0 %v8581_v44 }
 0xa04   : > { %9369 = vmatmul.mubr.msk.f32.gmra.mxu1 %vm7053_vm12, %v9936_v34  ;;  %8774 = vmatprep.subr.mxu0 %v16356_v55 }
 0xa05   : > { %7502 = vadd.xlane.f32.xlu1 %v7501_v7  ;;  %8050 = vmatprep.mubr.f32.mxu1 %v16356_v55 }
 0xa06   : > { %v7149_v25 = vpop.xlane.xlu1 %7148  ;;  %8775 = vmatpush2.msra.mxu0 %v8580_v19 }
 0xa07   : > { %v7336_v35 = vrot.slane %v7149_v25, 4  ;;  %8776 = vmatprep.subr.mxu0 %v16356_v55 }
 0xa08   : > { %9370 = vmatmul.mubr.msk.f32.gmra.mxu1 %vm7053_vm12, %v9940_v39  ;;  %8777 = vmatpush2.msra.mxu0 %v8579_v24 }
 0xa09   : > { %7505 = vadd.xlane.f32.xlu1 %v7504_v32  ;;  %8056 = vmatprep.mubr.f32.mxu1 %v16356_v55  ;;  %v7337_v16 = vmax.f32 %v7149_v25, %v7336_v35 }
 0xa0a   : > { %v7464_v51 = vpop.xlane.xlu1 %7463  ;;  %8778 = vmatprep.subr.mxu0 %v16356_v55 }
 0xa0b   : > { %v7338_v5 = vrot.slane %v7337_v16, 2  ;;  %v7582_v45 = vrot.slane %v7464_v51, 4  ;;  %8779 = vmatpush2.msra.mxu0 %v8578_v60 }
 0xa0c   : > { %9371 = vmatmul.mubr.msk.f32.gmra.mxu1 %vm7053_vm12, %v15530_v33  ;;  %8780 = vmatprep.subr.mxu0 %v16356_v55 }
 0xa0d   : > { %7508 = vadd.xlane.f32.xlu1 %v7507_v13  ;;  %8062 = vmatprep.mubr.f32.mxu1 %v16356_v55  ;;  %v7339_v57 = vmax.f32 %v7337_v16, %v7338_v5  ;;  %v7583_v49 = vadd.f32 %v7582_v45, %v7464_v51 }
 0xa0e   : > { %8781 = vmatpush2.msra.mxu0 %v8577_v48 }
 0xa0f   : > { %v7146_v54 = vpop.xlane.xlu0 %7145  ;;  %v7340_v8 = vrot.slane %v7339_v57, 1  ;;  %v7584_v3 = vrot.slane %v7583_v49, 2 }
 0xa10   : > { %v7330_v1 = vrot.slane %v7146_v54, 4  ;;  %9372 = vmatmul.mubr.msk.f32.gmra.mxu1 %vm7053_vm12, %v9942_v0 }
 0xa11   : > { %8068 = vmatprep.mubr.f32.mxu1 %v16356_v55  ;;  %v7341_v36 = vmax.f32 %v7339_v57, %v7340_v8  ;;  %v7585_v2 = vadd.f32 %v7584_v3, %v7583_v49 }
 0xa12   : > { %v7331_v12 = vmax.f32 %v7146_v54, %v7330_v1  ;;  %v15650_v8 = vpop.xlane.xlu1 %7442 }
 0xa13   : > { %v15634_v50 = vpop.xlane.xlu0 %7439  ;;  %v7373_v14 = vsub.f32 %v15371_v21, %v7341_v36  ;;  %v7586_v40 = vrot.slane %v7585_v2, 1 }
 0xa14   : > { %v7332_v10 = vrot.slane %v7331_v12, 2 }
 0xa15   : > { %v7436_v43 = vmul.f32 1.442695, %v7373_v14  ;;  %v7587_v26 = vadd.f32 %v7586_v40, %v7585_v2 }
 0xa16   : > { %v7333_v33 = vmax.f32 %v7331_v12, %v7332_v10 }
 0xa17   : > { %v7467_v18 = vpop.xlane.xlu0 %7466  ;;  %9943 = vpow2.f32 %v7436_v43 }
 0xa18   : > { %v7334_v17 = vrot.slane %v7333_v33, 1  ;;  %v7588_v22 = vrot.slane %v7467_v18, 4 }
 0xa19   : > { %v15652_v48 = vpop.xlane.xlu1 %7451 }
 0xa1a   : > { %v7335_v41 = vmax.f32 %v7333_v33, %v7334_v17  ;;  %v7589_v11 = vadd.f32 %v7588_v22, %v7467_v18 }
 0xa1b   : > { %v7470_v42 = vpop.xlane.xlu0 %7469 }
 0xa1c   : > { %v7372_v27 = vsub.f32 %v15383_v63, %v7335_v41  ;;  %v7590_v20 = vrot.slane %v7589_v11, 2  ;;  %v7594_v38 = vrot.slane %v7470_v42, 4 }
 0xa1e   : > { %v7434_v30 = vmul.f32 1.442695, %v7372_v27  ;;  %v7591_v37 = vadd.f32 %v7590_v20, %v7589_v11  ;;  %v7595_v56 = vadd.f32 %v7594_v38, %v7470_v42 }
 0xa1f   : > { %v7476_v21 = vpop.xlane.xlu0 %7475 }
 0xa20   : > { %9945 = vpow2.f32 %v7434_v30  ;;  %v7592_v59 = vrot.slane %v7591_v37, 1  ;;  %v7596_v23 = vrot.slane %v7595_v56, 2  ;;  %v7606_v34 = vrot.slane %v7476_v21, 4  ;;  %v16391_v30 = vld [vmem:[#allocation36_spill] sm:$0xff] }
 0xa22   : > { %v7593_v39 = vadd.f32 %v7592_v59, %v7591_v37  ;;  %v7597_v61 = vadd.f32 %v7596_v23, %v7595_v56  ;;  %v7607_v4 = vadd.f32 %v7606_v34, %v7476_v21  ;;  %v16392_v37 = vld [vmem:[#allocation39_spill] sm:$0xff]  ;;  %v16393_v59 = vld [vmem:[#allocation37_spill] sm:$0xff] }
 0xa23   : > { %v15639_v58 = vpop.xlane.xlu0 %7445  ;;  %v16394_v34 = vld [vmem:[#allocation41_spill] sm:$0xff] }
 0xa24   : > { %v8842_v28 = vsel %vm5807_vm6, %v7593_v39, %v7587_v26  ;;  %v7598_v63 = vrot.slane %v7597_v61, 1  ;;  %v9944_v0 = vpop.eup %9943  ;;  %v7608_v47 = vrot.slane %v7607_v4, 2 }
 0xa25   : > { %v7531_v52 = vsel %vm7053_vm12, %v9944_v0, 0.0 }
 0xa26   : > { %v7599_v46 = vadd.f32 %v7598_v63, %v7597_v61  ;;  %7532 = vadd.xlane.f32.xlu1 %v7531_v52  ;;  %v7609_v15 = vadd.f32 %v7608_v47, %v7607_v4  ;;  %v16395_v61 = vld [vmem:[#allocation43_spill] sm:$0xff]  ;;  %v16396_v63 = vld [vmem:[#allocation45_spill] sm:$0xff] }
 0xa27   : > { %v7473_v31 = vpop.xlane.xlu0 %7472  ;;  %v16397_v52 = vld [vmem:[#allocation47_spill] sm:$0xff] }
 0xa28   : > { %v7600_v6 = vrot.slane %v7473_v31, 4  ;;  %v8843_v9 = vsel %vm5809_vm8, %v7599_v46, %v8842_v28  ;;  %v7610_v16 = vrot.slane %v7609_v15, 1 }
 0xa2a   : > { %v7601_v7 = vadd.f32 %v7600_v6, %v7473_v31  ;;  %v7611_v19 = vadd.f32 %v7610_v16, %v7609_v15 }
 0xa2c   : > { %v7602_v32 = vrot.slane %v7601_v7, 2 }
 0xa2d   : > { %v9946_v25 = vpop.eup %9945 }
 0xa2e   : > { %v7603_v44 = vadd.f32 %v7602_v32, %v7601_v7  ;;  %9373 = vmatmul.mubr.msk.f32.gmra.mxu1 %vm7053_vm12, %v9946_v25  ;;  %v7528_v35 = vsel %vm7053_vm12, %v9946_v25, 0.0  ;;  %v16398_v25 = vld [vmem:[#allocation49_spill] sm:$0xff] }
 0xa2f   : > { %7529 = vadd.xlane.f32.xlu0 %v7528_v35  ;;  %8074 = vmatprep.mubr.f32.mxu1 %v16356_v55  ;;  %v16399_v35 = vld [vmem:[#allocation38_spill] sm:$0xff] }
 0xa30   : > { %v7604_v13 = vrot.slane %v7603_v44, 1 }
 0xa32   : > { %v7605_v51 = vadd.f32 %v7604_v13, %v7603_v44  ;;  %9374 = vmatmul.mubr.msk.f32.gmra.mxu1 %vm7053_vm12, %v9944_v0 }
 0xa34   : > { %v8844_v5 = vsel %vm5811_vm10, %v7605_v51, %v8843_v9 }
 0xa35   : > { %v8845_v45 = vsel %vm5813_vm1, %v7611_v19, %v8844_v5  ;;  %v16400_v19 = vld [vmem:[#allocation51_spill] sm:$0xff] }
 0xa3c   : > { %v7890_v24 = vpop.f32.mrf.mxu1 }
 0xa3d   : > { %v8081_v40 = vmul.f32 %v7890_v24, %v16391_v30 }
 0xa3e   : > { %v7892_v57 = vpop.f32.mrf.mxu1 }
 0xa3f   : > { %v8082_v23 = vmul.f32 %v7892_v57, %v16393_v59  ;;  %v8145_v47 = vrot.slane %v8081_v40, 4  ;;  %v16401_v57 = vld [vmem:[#allocation40_spill] sm:$0xff] }
 0xa41   : > { %v8151_v7 = vsel %vm4340_vm0, %v8082_v23, 0.0 }
 0xa48   : > { %v7896_v54 = vpop.f32.mrf.mxu1 }
 0xa49   : > { %v8083_v16 = vmul.f32 %v7896_v54, %v16399_v35 }
 0xa4a   : > { %v7898_v60 = vpop.f32.mrf.mxu1 }
 0xa4b   : > { %v7482_v10 = vpop.xlane.xlu1 %7481  ;;  %v8084_v56 = vmul.f32 %v7898_v60, %v16392_v37 }
 0xa4c   : > { %v7902_v1 = vpop.f32.mrf.mxu1  ;;  %v7618_v33 = vrot.slane %v7482_v10, 4 }
 0xa4d   : > { %v8164_v31 = vsel %vm4340_vm0, %v8084_v56, 0.0  ;;  %v8085_v60 = vmul.f32 %v7902_v1, %v16401_v57 }
 0xa4e   : > { %v7904_v12 = vpop.f32.mrf.mxu1  ;;  %v7619_v18 = vadd.f32 %v7618_v33, %v7482_v10  ;;  %v8165_v24 = vrot.slane %v8164_v31, 4 }
 0xa4f   : > { %v8086_v26 = vmul.f32 %v7904_v12, %v16394_v34  ;;  %v8171_v37 = vrot.slane %v8085_v60, 4 }
 0xa50   : > { %v7908_v49 = vpop.f32.mrf.mxu1  ;;  %v7620_v2 = vrot.slane %v7619_v18, 2 }
 0xa51   : > { %v8177_v15 = vsel %vm4340_vm0, %v8086_v26, 0.0 }
 0xa52   : > { %v7910_v55 = vpop.f32.mrf.mxu1  ;;  %v7621_v20 = vadd.f32 %v7620_v2, %v7619_v18  ;;  %v8178_v10 = vrot.slane %v8177_v15, 4  ;;  %v16403_v2 = vld [vmem:[#allocation44_spill] sm:$0xff] }
 0xa53   : > { %v8088_v4 = vmul.f32 %v7910_v55, %v16395_v61 }
 0xa54   : > { %v7914_v36 = vpop.f32.mrf.mxu1  ;;  %v7622_v28 = vrot.slane %v7621_v20, 1  ;;  %v8179_v23 = vadd.f32 %v8178_v10, %v8177_v15 }
 0xa55   : > { %v8190_v13 = vsel %vm4340_vm0, %v8088_v4, 0.0 }
 0xa56   : > { %v7916_v14 = vpop.f32.mrf.mxu1  ;;  %v7623_v51 = vadd.f32 %v7622_v28, %v7621_v20 }
 0xa57   : > { %v8090_v0 = vmul.f32 %v7916_v14, %v16396_v63  ;;  %v16402_v14 = vld [vmem:[#allocation42_spill] sm:$0xff] }
 0xa58   : > { %v7920_v3 = vpop.f32.mrf.mxu1  ;;  %v8087_v33 = vmul.f32 %v7908_v49, %v16402_v14  ;;  %v8166_v49 = vadd.f32 %v8165_v24, %v8164_v31 }
 0xa59   : > { %v8203_v12 = vsel %vm4340_vm0, %v8090_v0, 0.0 }
 0xa5a   : > { %v7922_v43 = vpop.f32.mrf.mxu1  ;;  %v7479_v22 = vpop.xlane.xlu0 %7478  ;;  %v8204_v20 = vrot.slane %v8203_v12, 4  ;;  %v8184_v34 = vrot.slane %v8087_v33, 4  ;;  %v8167_v31 = vrot.slane %v8166_v49, 2 }
 0xa5b   : > { %v7612_v11 = vrot.slane %v7479_v22, 4  ;;  %v8092_v6 = vmul.f32 %v7922_v43, %v16397_v52 }
 0xa5c   : > { %v7926_v17 = vpop.f32.mrf.mxu1  ;;  %v8205_v52 = vadd.f32 %v8204_v20, %v8203_v12  ;;  %v8185_v15 = vadd.f32 %v8184_v34, %v8087_v33 }
 0xa5d   : > { %v7613_v27 = vadd.f32 %v7612_v11, %v7479_v22  ;;  %v8216_v43 = vsel %vm4340_vm0, %v8092_v6, 0.0  ;;  %v8152_v22 = vrot.slane %v8151_v7, 4  ;;  %v8089_v11 = vmul.f32 %v7914_v36, %v16403_v2 }
 0xa5e   : > { %v7928_v41 = vpop.f32.mrf.mxu1  ;;  %v8217_v56 = vrot.slane %v8216_v43, 4  ;;  %v8186_v14 = vrot.slane %v8185_v15, 2 }
 0xa5f   : > { %v7614_v38 = vrot.slane %v7613_v27, 2  ;;  %v8094_v44 = vmul.f32 %v7928_v41, %v16398_v25  ;;  %v8191_v41 = vrot.slane %v8190_v13, 4  ;;  %v8153_v36 = vadd.f32 %v8152_v22, %v8151_v7 }
 0xa60   : > { %v7932_v42 = vpop.f32.mrf.mxu1  ;;  %v8197_v63 = vrot.slane %v8089_v11, 4  ;;  %v8218_v25 = vadd.f32 %v8217_v56, %v8216_v43 }
 0xa61   : > { %v7615_v39 = vadd.f32 %v7614_v38, %v7613_v27  ;;  %v8229_v1 = vsel %vm4340_vm0, %v8094_v44, 0.0  ;;  %v8158_v27 = vrot.slane %v8083_v16, 4  ;;  %v16404_v38 = vld [vmem:[#allocation46_spill] sm:$0xff]  ;;  %v8192_v28 = vadd.f32 %v8191_v41, %v8190_v13 }
 0xa62   : > { %v7934_v21 = vpop.f32.mrf.mxu1  ;;  %v8230_v26 = vrot.slane %v8229_v1, 4  ;;  %v8198_v7 = vadd.f32 %v8197_v63, %v8089_v11 }
 0xa63   : > { %v7616_v46 = vrot.slane %v7615_v39, 1  ;;  %v8096_v5 = vmul.f32 %v7934_v21, %v16400_v19  ;;  %v16405_v21 = vld [vmem:[#allocation48_spill] sm:$0xff] }
 0xa64   : > { %v15662_v9 = vpop.f32.mrf.mxu1  ;;  %v8093_v59 = vmul.f32 %v7926_v17, %v16405_v21  ;;  %v8180_v17 = vrot.slane %v8179_v23, 2  ;;  %v8231_v35 = vadd.f32 %v8230_v26, %v8229_v1  ;;  %v8199_v1 = vrot.slane %v8198_v7, 2 }
 0xa65   : > { %v7617_v32 = vadd.f32 %v7616_v46, %v7615_v39  ;;  %v8242_v30 = vsel %vm4340_vm0, %v8096_v5, 0.0  ;;  %v16406_v39 = vld [vmem:[#allocation50_spill] sm:$0xff]  ;;  %v8146_v46 = vadd.f32 %v8145_v47, %v8081_v40  ;;  %v8193_v5 = vrot.slane %v8192_v28, 2 }
 0xa66   : > { %v15678_v54 = vpop.f32.mrf.mxu1  ;;  %v8095_v61 = vmul.f32 %v7932_v42, %v16406_v39  ;;  %v8243_v0 = vrot.slane %v8242_v30, 4  ;;  %v8223_v44 = vrot.slane %v8093_v59, 4  ;;  %v8154_v42 = vrot.slane %v8153_v36, 2 }
 0xa67   : > { %v8846_v55 = vsel %vm5815_vm3, %v7617_v32, %v8845_v45  ;;  %v8091_v45 = vmul.f32 %v7920_v3, %v16404_v38  ;;  %v8159_v3 = vadd.f32 %v8158_v27, %v8083_v16  ;;  %v8172_v32 = vadd.f32 %v8171_v37, %v8085_v60 }
 0xa68   : > { %v15676_v18 = vsel %vm5817_vm4, %v7623_v51, %v8846_v55  ;;  %v15686_v4 = vpop.f32.mrf.mxu1  ;;  %v8236_v51 = vrot.slane %v8095_v61, 4  ;;  %v8244_v13 = vadd.f32 %v8243_v0, %v8242_v30  ;;  %v8147_v24 = vrot.slane %v8146_v46, 2 }
 0xa69   : > { %v8210_v6 = vrot.slane %v8091_v45, 4  ;;  %v8160_v57 = vrot.slane %v8159_v3, 2  ;;  %v8206_v40 = vrot.slane %v8205_v52, 2  ;;  %v8168_v16 = vadd.f32 %v8167_v31, %v8166_v49 }
 0xa6a   : > { %v15688_v19 = vpop.f32.mrf.mxu1  ;;  %v8173_v12 = vrot.slane %v8172_v32, 2  ;;  %v8219_v55 = vrot.slane %v8218_v25, 2  ;;  %v8224_v60 = vadd.f32 %v8223_v44, %v8093_v59  ;;  %v8181_v10 = vadd.f32 %v8180_v17, %v8179_v23 }
 0xa6b   : > { %v8211_v47 = vadd.f32 %v8210_v6, %v8091_v45  ;;  %v8232_v43 = vrot.slane %v8231_v35, 2  ;;  %v8237_v33 = vadd.f32 %v8236_v51, %v8095_v61  ;;  %v8155_v41 = vadd.f32 %v8154_v42, %v8153_v36 }
 0xa6c   : > { %v15690_v22 = vpop.f32.mrf.mxu1  ;;  %v8194_v2 = vadd.f32 %v8193_v5, %v8192_v28  ;;  %v8245_v27 = vrot.slane %v8244_v13, 2  ;;  %v8148_v11 = vadd.f32 %v8147_v24, %v8146_v46  ;;  %v8161_v20 = vadd.f32 %v8160_v57, %v8159_v3 }
 0xa6d   : > { %v8207_v38 = vadd.f32 %v8206_v40, %v8205_v52  ;;  %v8212_v30 = vrot.slane %v8211_v47, 2  ;;  %v8169_v37 = vrot.slane %v8168_v16, 1  ;;  %v8174_v45 = vadd.f32 %v8173_v12, %v8172_v32 }
 0xa6e   : > { %v8220_v49 = vadd.f32 %v8219_v55, %v8218_v25  ;;  %v8225_v56 = vrot.slane %v8224_v60, 2  ;;  %v8182_v21 = vrot.slane %v8181_v10, 1  ;;  %v8187_v59 = vadd.f32 %v8186_v14, %v8185_v15  ;;  %v15692_v26 = vpop.f32.mrf.mxu1 }
 0xa6f   : > { %v8233_v23 = vadd.f32 %v8232_v43, %v8231_v35  ;;  %v8238_v34 = vrot.slane %v8237_v33, 2  ;;  %v8156_v39 = vrot.slane %v8155_v41, 1  ;;  %v8195_v61 = vrot.slane %v8194_v2, 1 }
 0xa70   : > { %v8200_v36 = vadd.f32 %v8199_v1, %v8198_v7  ;;  %v8246_v28 = vadd.f32 %v8245_v27, %v8244_v13  ;;  %v8149_v63 = vrot.slane %v8148_v11, 1  ;;  %v8162_v0 = vrot.slane %v8161_v20, 1  ;;  %v15694_v35 = vpop.f32.mrf.mxu1 }
 0xa71   : > { %v8208_v46 = vrot.slane %v8207_v38, 1  ;;  %v8213_v3 = vadd.f32 %v8212_v30, %v8211_v47  ;;  %v8170_v52 = vadd.f32 %v8169_v37, %v8168_v16  ;;  %v8175_v6 = vrot.slane %v8174_v45, 1 }
 0xa72   : > { %v8221_v31 = vrot.slane %v8220_v49, 1  ;;  %v8226_v32 = vadd.f32 %v8225_v56, %v8224_v60  ;;  %v8183_v25 = vadd.f32 %v8182_v21, %v8181_v10  ;;  %v8188_v44 = vrot.slane %v8187_v59, 1 }
 0xa73   : > { %v8234_v17 = vrot.slane %v8233_v23, 1  ;;  %v8239_v15 = vadd.f32 %v8238_v34, %v8237_v33  ;;  %v8157_v51 = vadd.f32 %v8156_v39, %v8155_v41  ;;  %v8196_v42 = vadd.f32 %v8195_v61, %v8194_v2  ;;  %v7958_v33 = vpop.f32.mrf.mxu1 }
 0xa74   : > { %v8201_v5 = vrot.slane %v8200_v36, 1  ;;  %v8247_v24 = vrot.slane %v8246_v28, 1  ;;  %v8150_v7 = vadd.f32 %v8149_v63, %v8148_v11  ;;  %v8163_v13 = vadd.f32 %v8162_v0, %v8161_v20 }
 0xa75   : > { %v8209_v57 = vadd.f32 %v8208_v46, %v8207_v38  ;;  %v8214_v40 = vrot.slane %v8213_v3, 1  ;;  %v8657_v47 = vsel %vm5807_vm6, %v8170_v52, %v8157_v51  ;;  %v8176_v16 = vadd.f32 %v8175_v6, %v8174_v45  ;;  %v7962_v21 = vpop.f32.mrf.mxu1  ;;  %v16408_v6 = vld [vmem:[#allocation53_spill] sm:$0xff] }
 0xa76   : > { %v8222_v12 = vadd.f32 %v8221_v31, %v8220_v49  ;;  %v8227_v55 = vrot.slane %v8226_v32, 1  ;;  %v8658_v60 = vsel %vm5809_vm8, %v8183_v25, %v8657_v47  ;;  %v8189_v10 = vadd.f32 %v8188_v44, %v8187_v59  ;;  %v16410_v44 = vld [vmem:[#allocation55_spill] sm:$0xff] }
 0xa77   : > { %v8235_v14 = vadd.f32 %v8234_v17, %v8233_v23  ;;  %v8240_v43 = vrot.slane %v8239_v15, 1  ;;  %v8659_v41 = vsel %vm5811_vm10, %v8196_v42, %v8658_v60  ;;  %v8202_v2 = vadd.f32 %v8201_v5, %v8200_v36  ;;  %v7964_v36 = vpop.f32.mrf.mxu1  ;;  %v16411_v42 = vld [vmem:[#allocation59_spill] sm:$0xff] }
 0xa78   : > { %v8248_v1 = vadd.f32 %v8247_v24, %v8246_v28  ;;  %v8650_v27 = vsel %vm5807_vm6, %v8163_v13, %v8150_v7  ;;  %v8215_v11 = vadd.f32 %v8214_v40, %v8213_v3  ;;  %v8660_v20 = vsel %vm5813_vm1, %v8209_v57, %v8659_v41  ;;  %v16407_v28 = vld [vmem:[#allocation52_spill] sm:$0xff]  ;;  %v16412_v57 = vld [vmem:[#allocation62_spill] sm:$0xff] }
 0xa79   : > { %v8651_v38 = vsel %vm5809_vm8, %v8176_v16, %v8650_v27  ;;  %v8228_v30 = vadd.f32 %v8227_v55, %v8226_v32  ;;  %v8661_v37 = vsel %vm5815_vm3, %v8222_v12, %v8660_v20  ;;  %v8241_v49 = vadd.f32 %v8240_v43, %v8239_v15  ;;  %v16409_v32 = vld [vmem:[#allocation56_spill] sm:$0xff]  ;;  %v16413_v16 = vld [vmem:[#allocation66_spill] sm:$0xff] }
 0xa7a   : > { %v8652_v45 = vsel %vm5811_vm10, %v8189_v10, %v8651_v38  ;;  %v8662_v56 = vsel %vm5817_vm4, %v8235_v14, %v8661_v37  ;;  %v8097_v63 = vmul.f32 %v15662_v9, %v16407_v28  ;;  %v8098_v31 = vmul.f32 %v15678_v54, %v16408_v6  ;;  %v16414_v10 = vld [vmem:[#allocation57_spill] sm:$0xff]  ;;  %v16415_v14 = vld [vmem:[#allocation68_spill] sm:$0xff] }
 0xa7b   : > { %v8653_v59 = vsel %vm5813_vm1, %v8202_v2, %v8652_v45  ;;  %v8663_v23 = vsel %vm5819_vm5, %v8248_v1, %v8662_v56  ;;  %v8100_v25 = vmul.f32 %v15688_v19, %v16409_v32  ;;  %v8099_v17 = vmul.f32 %v15686_v4, %v16410_v44 }
 0xa7c   : > { %9375 = vmatprep.mubr.msk.f32.mxu0 %vm4340_vm0, %v8663_v23  ;;  %v8654_v34 = vsel %vm5815_vm3, %v8215_v11, %v8653_v59  ;;  %v8249_v3 = vrot.slane %v8097_v63, 4  ;;  %v8102_v5 = vmul.f32 %v15692_v26, %v16411_v42  ;;  %v8255_v24 = vsel %vm4340_vm0, %v8098_v31, 0.0  ;;  %v16417_v23 = vld [vmem:[#allocation60_spill] sm:$0xff]  ;;  %v16418_v31 = vld [vmem:[#allocation63_spill] sm:$0xff] }
 0xa7d   : > { %v8655_v39 = vsel %vm5817_vm4, %v8228_v30, %v8654_v34  ;;  %v8268_v7 = vsel %vm4340_vm0, %v8100_v25, 0.0  ;;  %v8262_v13 = vrot.slane %v8099_v17, 4  ;;  %v8104_v40 = vmul.f32 %v7958_v33, %v16412_v57 }
 0xa7e   : > { %v8656_v61 = vsel %vm5819_vm5, %v8241_v49, %v8655_v39  ;;  %v8250_v51 = vadd.f32 %v8249_v3, %v8097_v63  ;;  %v8106_v19 = vmul.f32 %v7964_v36, %v16413_v16  ;;  %v8256_v12 = vrot.slane %v8255_v24, 4 }
 0xa7f   : > { %8783 = vmatmul.mubr.f32.vlgmr.msra.gmra.mxu0 %v8656_v61  ;;  %v8269_v55 = vrot.slane %v8268_v7, 4  ;;  %v8281_v4 = vsel %vm4340_vm0, %v8102_v5, 0.0  ;;  %v8101_v26 = vmul.f32 %v15690_v22, %v16414_v10  ;;  %v8263_v41 = vadd.f32 %v8262_v13, %v8099_v17  ;;  %v16416_v22 = vld [vmem:[#allocation54_spill] sm:$0xff] }
 0xa80   : > { %v8251_v47 = vrot.slane %v8250_v51, 2  ;;  %v8294_v2 = vsel %vm4340_vm0, %v8104_v40, 0.0  ;;  %v8282_v27 = vrot.slane %v8281_v4, 4  ;;  %v8307_v11 = vsel %vm4340_vm0, %v8106_v19, 0.0  ;;  %v16421_v19 = vld [vmem:[#allocation70_spill] sm:$0xff] }
 0xa81   : > { %v8257_v20 = vadd.f32 %v8256_v12, %v8255_v24  ;;  %v8270_v38 = vadd.f32 %v8269_v55, %v8268_v7  ;;  %v8275_v45 = vrot.slane %v8101_v26, 4  ;;  %v8295_v49 = vrot.slane %v8294_v2, 4  ;;  %v16420_v7 = vld [vmem:[#allocation69_spill] sm:$0xff] }
 0xa82   : > { %v8252_v33 = vadd.f32 %v8251_v47, %v8250_v51  ;;  %v8264_v59 = vrot.slane %v8263_v41, 2  ;;  %v8103_v34 = vmul.f32 %v15694_v35, %v16417_v23  ;;  %v8308_v39 = vrot.slane %v8307_v11, 4 }
 0xa83   : > { %v8283_v28 = vadd.f32 %v8282_v27, %v8281_v4  ;;  %v8258_v3 = vrot.slane %v8257_v20, 2  ;;  %v8271_v6 = vrot.slane %v8270_v38, 2  ;;  %v8105_v32 = vmul.f32 %v7962_v21, %v16418_v31 }
 0xa84   : > { %v8253_v36 = vrot.slane %v8252_v33, 1  ;;  %v8276_v44 = vadd.f32 %v8275_v45, %v8101_v26  ;;  %v8296_v17 = vadd.f32 %v8295_v49, %v8294_v2  ;;  %v8265_v35 = vadd.f32 %v8264_v59, %v8263_v41  ;;  %v16422_v41 = vld [vmem:[#allocation74_spill] sm:$0xff] }
 0xa85   : > { %v8288_v5 = vrot.slane %v8103_v34, 4  ;;  %v8309_v24 = vadd.f32 %v8308_v39, %v8307_v11  ;;  %v8284_v47 = vrot.slane %v8283_v28, 2  ;;  %v8259_v21 = vadd.f32 %v8258_v3, %v8257_v20 }
 0xa86   : > { %v8254_v40 = vadd.f32 %v8253_v36, %v8252_v33  ;;  %v8272_v55 = vadd.f32 %v8271_v6, %v8270_v38  ;;  %v8301_v4 = vrot.slane %v8105_v32, 4  ;;  %v8266_v27 = vrot.slane %v8265_v35, 1 }
 0xa87   : > { %v8310_v11 = vrot.slane %v8309_v24, 2  ;;  %v8260_v39 = vrot.slane %v8259_v21, 1 }
 0xa88   : > { %v8273_v38 = vrot.slane %v8272_v55, 1 }
 0xa90   : > { %v7968_v0 = vpop.f32.mrf.mxu1 }
 0xa92   : > { %v7970_v46 = vpop.f32.mrf.mxu1 }
 0xa93   : > { %v8108_v43 = vmul.f32 %v7970_v46, %v16415_v14  ;;  %v8297_v14 = vrot.slane %v8296_v17, 2 }
 0xa94   : > { %v7974_v52 = vpop.f32.mrf.mxu1 }
 0xa95   : > { %v8320_v30 = vsel %vm4340_vm0, %v8108_v43, 0.0  ;;  %v8109_v13 = vmul.f32 %v7974_v52, %v16420_v7  ;;  %v8289_v52 = vadd.f32 %v8288_v5, %v8103_v34  ;;  %v8274_v7 = vadd.f32 %v8273_v38, %v8272_v55 }
 0xa96   : > { %v7976_v15 = vpop.f32.mrf.mxu1  ;;  %v8321_v63 = vrot.slane %v8320_v30, 4 }
 0xa97   : > { %v8110_v56 = vmul.f32 %v7976_v15, %v16416_v22  ;;  %v16419_v15 = vld [vmem:[#allocation67_spill] sm:$0xff]  ;;  %v8327_v45 = vrot.slane %v8109_v13, 4  ;;  %v8302_v22 = vadd.f32 %v8301_v4, %v8105_v32  ;;  %v8290_v34 = vrot.slane %v8289_v52, 2 }
 0xa98   : > { %v7980_v9 = vpop.f32.mrf.mxu1  ;;  %v8107_v51 = vmul.f32 %v7968_v0, %v16419_v15  ;;  %v8322_v16 = vadd.f32 %v8321_v63, %v8320_v30  ;;  %v8277_v0 = vrot.slane %v8276_v44, 2  ;;  %v8285_v30 = vadd.f32 %v8284_v47, %v8283_v28 }
 0xa99   : > { %v8333_v46 = vsel %vm4340_vm0, %v8110_v56, 0.0  ;;  %v8111_v12 = vmul.f32 %v7980_v9, %v16421_v19  ;;  %v8328_v3 = vadd.f32 %v8327_v45, %v8109_v13  ;;  %v8267_v28 = vadd.f32 %v8266_v27, %v8265_v35 }
 0xa9a   : > { %v7982_v54 = vpop.f32.mrf.mxu1  ;;  %v8334_v42 = vrot.slane %v8333_v46, 4  ;;  %v8314_v43 = vrot.slane %v8107_v51, 4  ;;  %v8323_v49 = vrot.slane %v8322_v16, 2  ;;  %v8278_v36 = vadd.f32 %v8277_v0, %v8276_v44 }
 0xa9b   : > { %v8112_v2 = vmul.f32 %v7982_v54, %v16422_v41  ;;  %v8340_v9 = vrot.slane %v8111_v12, 4  ;;  %v8298_v54 = vadd.f32 %v8297_v14, %v8296_v17  ;;  %v8286_v15 = vrot.slane %v8285_v30, 1 }
 0xa9c   : > { %v15726_v60 = vpop.f32.mrf.mxu1  ;;  %v8335_v10 = vadd.f32 %v8334_v42, %v8333_v46  ;;  %v8315_v63 = vadd.f32 %v8314_v43, %v8107_v51  ;;  %v8311_v46 = vadd.f32 %v8310_v11, %v8309_v24  ;;  %v8324_v42 = vadd.f32 %v8323_v49, %v8322_v16 }
 0xa9d   : > { %v8346_v20 = vsel %vm4340_vm0, %v8112_v2, 0.0  ;;  %v8341_v5 = vadd.f32 %v8340_v9, %v8111_v12  ;;  %v8303_v32 = vrot.slane %v8302_v22, 2  ;;  %v8261_v41 = vadd.f32 %v8260_v39, %v8259_v21 }
 0xa9e   : > { %v15732_v1 = vpop.f32.mrf.mxu1  ;;  %v8336_v56 = vrot.slane %v8335_v10, 2  ;;  %v8347_v59 = vrot.slane %v8346_v20, 4  ;;  %v8279_v44 = vrot.slane %v8278_v36, 1  ;;  %v8299_v17 = vrot.slane %v8298_v54, 1 }
 0xa9f   : > { %v8316_v51 = vrot.slane %v8315_v63, 2  ;;  %v8291_v0 = vadd.f32 %v8290_v34, %v8289_v52  ;;  %v8312_v24 = vrot.slane %v8311_v46, 1  ;;  %v8329_v13 = vrot.slane %v8328_v3, 2  ;;  %v16423_v52 = vld [vmem:[#allocation75_spill] sm:$0xff] }
 0xaa0   : > { %v15736_v37 = vpop.f32.mrf.mxu1  ;;  %v8348_v6 = vadd.f32 %v8347_v59, %v8346_v20  ;;  %v8337_v47 = vadd.f32 %v8336_v56, %v8335_v10  ;;  %v8287_v35 = vadd.f32 %v8286_v15, %v8285_v30  ;;  %v8325_v2 = vrot.slane %v8324_v42, 1 }
 0xaa1   : > { %v8342_v16 = vrot.slane %v8341_v5, 2  ;;  %v8664_v12 = vsel %vm5807_vm6, %v8267_v28, %v8254_v40  ;;  %v8671_v55 = vsel %vm5807_vm6, %v8274_v7, %v8261_v41  ;;  %v8304_v10 = vadd.f32 %v8303_v32, %v8302_v22  ;;  %v16426_v7 = vld [vmem:[#allocation78_spill] sm:$0xff] }
 0xaa2   : > { %v15741_v61 = vpop.f32.mrf.mxu1  ;;  %v8349_v19 = vrot.slane %v8348_v6, 2  ;;  %v8338_v27 = vrot.slane %v8337_v47, 1  ;;  %v8300_v21 = vadd.f32 %v8299_v17, %v8298_v54  ;;  %v8317_v45 = vadd.f32 %v8316_v51, %v8315_v63  ;;  %v16425_v54 = vld [vmem:[#allocation77_spill] sm:$0xff] }
 0xaa3   : > { %v8113_v9 = vmul.f32 %v15726_v60, %v16423_v52  ;;  %v8280_v20 = vadd.f32 %v8279_v44, %v8278_v36  ;;  %v8292_v38 = vrot.slane %v8291_v0, 1  ;;  %v8313_v56 = vadd.f32 %v8312_v24, %v8311_v46 }
 0xaa4   : > { %v15745_v25 = vpop.f32.mrf.mxu1  ;;  %v8350_v14 = vadd.f32 %v8349_v19, %v8348_v6  ;;  %v8330_v30 = vadd.f32 %v8329_v13, %v8328_v3  ;;  %v8672_v39 = vsel %vm5809_vm8, %v8287_v35, %v8671_v55  ;;  %v8326_v40 = vadd.f32 %v8325_v2, %v8324_v42  ;;  %v16424_v6 = vld [vmem:[#allocation76_spill] sm:$0xff] }
 0xaa5   : > { %v8343_v34 = vadd.f32 %v8342_v16, %v8341_v5  ;;  %v8114_v22 = vmul.f32 %v15732_v1, %v16424_v6  ;;  %v8305_v28 = vrot.slane %v8304_v10, 1  ;;  %v8339_v15 = vadd.f32 %v8338_v27, %v8337_v47  ;;  %v16427_v16 = vld [vmem:[#allocation81_spill] sm:$0xff] }
 0xaa6   : > { %v15749_v57 = vpop.f32.mrf.mxu1  ;;  %v8351_v49 = vrot.slane %v8350_v14, 1  ;;  %v8115_v63 = vmul.f32 %v15736_v37, %v16425_v54  ;;  %v8116_v60 = vmul.f32 %v15741_v61, %v16426_v7  ;;  %v8673_v46 = vsel %vm5811_vm10, %v8300_v21, %v8672_v39  ;;  %v16428_v21 = vld [vmem:[#allocation79_spill] sm:$0xff]  ;;  %v16431_v7 = vld [vmem:[#allocation58_spill] sm:$0xff] }
 0xaa7   : > { %v8318_v3 = vrot.slane %v8317_v45, 1  ;;  %v8353_v19 = vrot.slane %v8113_v9, 4  ;;  %v8665_v42 = vsel %vm5809_vm8, %v8280_v20, %v8664_v12  ;;  %v8331_v5 = vrot.slane %v8330_v30, 1 }
 0xaa8   : > { %v15752_v26 = vpop.f32.mrf.mxu1  ;;  %v8352_v32 = vadd.f32 %v8351_v49, %v8350_v14  ;;  %v8674_v1 = vsel %vm5813_vm1, %v8313_v56, %v8673_v46  ;;  %v8293_v47 = vadd.f32 %v8292_v38, %v8291_v0  ;;  %v8344_v44 = vrot.slane %v8343_v34, 1 }
 0xaa9   : > { %v8359_v37 = vsel %vm4340_vm0, %v8114_v22, 0.0  ;;  %v8675_v61 = vsel %vm5815_vm3, %v8326_v40, %v8674_v1  ;;  %v8306_v17 = vadd.f32 %v8305_v28, %v8304_v10  ;;  %v8366_v51 = vrot.slane %v8115_v63, 4  ;;  %v16429_v10 = vld [vmem:[#allocation84_spill] sm:$0xff]  ;;  %v16433_v1 = vld [vmem:[#allocation73_spill] sm:$0xff] }
 0xaaa   : > { %v15755_v33 = vpop.f32.mrf.mxu1  ;;  %v8372_v24 = vsel %vm4340_vm0, %v8116_v60, 0.0  ;;  %v8676_v13 = vsel %vm5817_vm4, %v8339_v15, %v8675_v61  ;;  %v8319_v35 = vadd.f32 %v8318_v3, %v8317_v45  ;;  %v8354_v2 = vadd.f32 %v8353_v19, %v8113_v9 }
 0xaab   : > { %v8118_v12 = vmul.f32 %v15749_v57, %v16427_v16  ;;  %v8677_v0 = vsel %vm5819_vm5, %v8352_v32, %v8676_v13  ;;  %v8332_v55 = vadd.f32 %v8331_v5, %v8330_v30  ;;  %v8360_v27 = vrot.slane %v8359_v37, 4  ;;  %v16432_v32 = vld [vmem:[#allocation82_spill] sm:$0xff] }
 0xaac   : > { %v15758_v23 = vpop.f32.mrf.mxu1  ;;  %v8117_v49 = vmul.f32 %v15745_v25, %v16428_v21  ;;  %v8120_v52 = vmul.f32 %v15755_v33, %v16429_v10  ;;  %9376 = vmatprep.mubr.msk.f32.mxu0 %vm4340_vm0, %v8677_v0  ;;  %v8373_v38 = vrot.slane %v8372_v24, 4  ;;  %v8345_v45 = vadd.f32 %v8344_v44, %v8343_v34  ;;  %v16430_v25 = vld [vmem:[#allocation87_spill] sm:$0xff]  ;;  %v16436_v10 = vld [vmem:[#allocation61_spill] sm:$0xff] }
 0xaad   : > { %v8666_v9 = vsel %vm5811_vm10, %v8293_v47, %v8665_v42  ;;  %v8367_v56 = vadd.f32 %v8366_v51, %v8115_v63  ;;  %v8355_v39 = vrot.slane %v8354_v2, 2  ;;  %v8385_v30 = vsel %vm4340_vm0, %v8118_v12, 0.0 }
 0xaae   : > { %v15760_v31 = vpop.f32.mrf.mxu1  ;;  %v8667_v57 = vsel %vm5813_vm1, %v8306_v17, %v8666_v9  ;;  %v8361_v33 = vadd.f32 %v8360_v27, %v8359_v37  ;;  %v8379_v22 = vrot.slane %v8117_v49, 4  ;;  %v8398_v28 = vsel %vm4340_vm0, %v8120_v52, 0.0 }
 0xaaf   : > { %v8668_v40 = vsel %vm5815_vm3, %v8319_v35, %v8667_v57  ;;  %v8122_v6 = vmul.f32 %v15760_v31, %v16430_v25  ;;  %v8374_v54 = vadd.f32 %v8373_v38, %v8372_v24  ;;  %v8368_v46 = vrot.slane %v8367_v56, 2 }
 0xab0   : > { %v15762_v4 = vpop.f32.mrf.mxu1  ;;  %v8669_v15 = vsel %vm5817_vm4, %v8332_v55, %v8668_v40  ;;  %v8386_v3 = vrot.slane %v8385_v30, 4  ;;  %v8119_v19 = vmul.f32 %v15752_v26, %v16432_v32  ;;  %v8356_v31 = vadd.f32 %v8355_v39, %v8354_v2  ;;  %v16435_v55 = vld [vmem:[#allocation71_spill] sm:$0xff] }
 0xab1   : > { %v8670_v63 = vsel %vm5819_vm5, %v8345_v45, %v8669_v15  ;;  %v8399_v42 = vrot.slane %v8398_v28, 4  ;;  %v8411_v5 = vsel %vm4340_vm0, %v8122_v6, 0.0  ;;  %v8362_v44 = vrot.slane %v8361_v33, 2 }
 0xab2   : > { %v15764_v43 = vpop.f32.mrf.mxu1  ;;  %8788 = vmatmul.mubr.f32.gmra.mxu0 %v8670_v63  ;;  %v8380_v37 = vadd.f32 %v8379_v22, %v8117_v49  ;;  %v8375_v51 = vrot.slane %v8374_v54, 2  ;;  %v8369_v26 = vadd.f32 %v8368_v46, %v8367_v56  ;;  %v8387_v35 = vadd.f32 %v8386_v3, %v8385_v30  ;;  %v16437_v56 = vld [vmem:[#allocation64_spill] sm:$0xff] }
 0xab3   : > { %v8124_v60 = vmul.f32 %v15764_v43, %v16431_v7  ;;  %v16434_v43 = vld [vmem:[#allocation85_spill] sm:$0xff]  ;;  %v8392_v2 = vrot.slane %v8119_v19, 4  ;;  %v8412_v16 = vrot.slane %v8411_v5, 4  ;;  %v8357_v12 = vrot.slane %v8356_v31, 1  ;;  %v16438_v3 = vld [vmem:[#allocation72_spill] sm:$0xff] }
 0xab4   : > { %v15768_v11 = vpop.f32.mrf.mxu1  ;;  %v8121_v24 = vmul.f32 %v15758_v23, %v16434_v43  ;;  %v8400_v0 = vadd.f32 %v8399_v42, %v8398_v28  ;;  %v8363_v21 = vadd.f32 %v8362_v44, %v8361_v33  ;;  %v8381_v49 = vrot.slane %v8380_v37, 2 }
 0xab5   : > { %v8424_v61 = vsel %vm4340_vm0, %v8124_v60, 0.0  ;;  %v8125_v52 = vmul.f32 %v15768_v11, %v16436_v10  ;;  %v8376_v23 = vadd.f32 %v8375_v51, %v8374_v54  ;;  %v8370_v39 = vrot.slane %v8369_v26, 1 }
 0xab6   : > { %v8024_v59 = vpop.f32.mrf.mxu1  ;;  %v8425_v27 = vrot.slane %v8424_v61, 4  ;;  %v8405_v9 = vrot.slane %v8121_v24, 4  ;;  %v8388_v30 = vrot.slane %v8387_v35, 2  ;;  %v8393_v40 = vadd.f32 %v8392_v2, %v8119_v19 }
 0xab7   : > { %v8126_v47 = vmul.f32 %v8024_v59, %v16433_v1  ;;  %v8123_v59 = vmul.f32 %v15762_v4, %v16435_v55  ;;  %v8413_v25 = vadd.f32 %v8412_v16, %v8411_v5  ;;  %v8358_v6 = vadd.f32 %v8357_v12, %v8356_v31 }
 0xab8   : > { %v15779_v36 = vpop.f32.mrf.mxu1  ;;  %v8401_v4 = vrot.slane %v8400_v0, 2  ;;  %v8426_v33 = vadd.f32 %v8425_v27, %v8424_v61  ;;  %v8364_v28 = vrot.slane %v8363_v21, 1  ;;  %v8382_v15 = vadd.f32 %v8381_v49, %v8380_v37 }
 0xab9   : > { %v8437_v13 = vsel %vm4340_vm0, %v8126_v47, 0.0  ;;  %v8127_v57 = vmul.f32 %v15779_v36, %v16437_v56  ;;  %v8418_v22 = vrot.slane %v8123_v59, 4  ;;  %v8431_v63 = vrot.slane %v8125_v52, 4 }
 0xaba   : > { %v15784_v41 = vpop.f32.mrf.mxu1  ;;  %v8438_v38 = vrot.slane %v8437_v13, 4  ;;  %v8377_v60 = vrot.slane %v8376_v23, 1  ;;  %v8406_v54 = vadd.f32 %v8405_v9, %v8121_v24  ;;  %v8371_v32 = vadd.f32 %v8370_v39, %v8369_v26 }
 0xabb   : > { %v8444_v46 = vrot.slane %v8127_v57, 4  ;;  %v8128_v36 = vmul.f32 %v15784_v41, %v16438_v3  ;;  %v8389_v42 = vadd.f32 %v8388_v30, %v8387_v35  ;;  %v8394_v19 = vrot.slane %v8393_v40, 2  ;;  %v16441_v3 = vld [vmem:[#allocation91_spill] sm:$0xff] }
 0xabc   : > { %v15790_v14 = vpop.f32.mrf.mxu1  ;;  %v8439_v11 = vadd.f32 %v8438_v38, %v8437_v13  ;;  %v8414_v5 = vrot.slane %v8413_v25, 2  ;;  %v8402_v31 = vadd.f32 %v8401_v4, %v8400_v0  ;;  %v8419_v1 = vadd.f32 %v8418_v22, %v8123_v59  ;;  %v16439_v38 = vld [vmem:[#allocation90_spill] sm:$0xff]  ;;  %v16440_v4 = vld [vmem:[#allocation89_spill] sm:$0xff] }
 0xabd   : > { %v8427_v47 = vrot.slane %v8426_v33, 2  ;;  %v8450_v44 = vsel %vm4340_vm0, %v8128_v36, 0.0  ;;  %v8365_v37 = vadd.f32 %v8364_v28, %v8363_v21  ;;  %v8432_v61 = vadd.f32 %v8431_v63, %v8125_v52 }
 0xabe   : > { %v15800_v20 = vpop.f32.mrf.mxu1  ;;  %v8440_v51 = vrot.slane %v8439_v11, 2  ;;  %v8451_v43 = vrot.slane %v8450_v44, 4  ;;  %v8378_v24 = vadd.f32 %v8377_v60, %v8376_v23  ;;  %v8383_v2 = vrot.slane %v8382_v15, 1 }
 0xabf   : > { %v8407_v16 = vrot.slane %v8406_v54, 2  ;;  %v8445_v12 = vadd.f32 %v8444_v46, %v8127_v57  ;;  %v8678_v41 = vsel %vm5807_vm6, %v8371_v32, %v8358_v6  ;;  %v8395_v26 = vadd.f32 %v8394_v19, %v8393_v40 }
 0xac0   : > { %v15810_v34 = vpop.f32.mrf.mxu1  ;;  %v8415_v35 = vadd.f32 %v8414_v5, %v8413_v25  ;;  %v8452_v55 = vadd.f32 %v8451_v43, %v8450_v44  ;;  %v8390_v0 = vrot.slane %v8389_v42, 1  ;;  %v8403_v59 = vrot.slane %v8402_v31, 1 }
 0xac1   : > { %v8420_v27 = vrot.slane %v8419_v1, 2  ;;  %v8428_v49 = vadd.f32 %v8427_v47, %v8426_v33  ;;  %v8433_v10 = vrot.slane %v8432_v61, 2  ;;  %v8441_v21 = vadd.f32 %v8440_v51, %v8439_v11 }
 0xac2   : > { %v15820_v17 = vpop.f32.mrf.mxu1  ;;  %v8453_v52 = vrot.slane %v8452_v55, 2  ;;  %v8130_v9 = vmul.f32 %v15800_v20, %v16439_v38  ;;  %v8685_v23 = vsel %vm5807_vm6, %v8378_v24, %v8365_v37  ;;  %v8384_v39 = vadd.f32 %v8383_v2, %v8382_v15 }
 0xac3   : > { %v8408_v57 = vadd.f32 %v8407_v16, %v8406_v54  ;;  %v8446_v30 = vrot.slane %v8445_v12, 2  ;;  %v8396_v6 = vrot.slane %v8395_v26, 1  ;;  %v8416_v40 = vrot.slane %v8415_v35, 1 }
 0xac4   : > { %v15829_v45 = vpop.f32.mrf.mxu1  ;;  %v8454_v25 = vadd.f32 %v8453_v52, %v8452_v55  ;;  %v8129_v22 = vmul.f32 %v15790_v14, %v16440_v4  ;;  %v8391_v28 = vadd.f32 %v8390_v0, %v8389_v42  ;;  %v8404_v33 = vadd.f32 %v8403_v59, %v8402_v31  ;;  %v16442_v42 = vld [vmem:[#allocation92_spill] sm:$0xff]  ;;  %v16444_v59 = vld [vmem:[#allocation93_spill] sm:$0xff] }
 0xac5   : > { %v8421_v63 = vadd.f32 %v8420_v27, %v8419_v1  ;;  %v8429_v11 = vrot.slane %v8428_v49, 1  ;;  %v8434_v60 = vadd.f32 %v8433_v10, %v8432_v61  ;;  %v8442_v46 = vrot.slane %v8441_v21, 1 }
 0xac6   : > { %v15833_v7 = vpop.f32.mrf.mxu1  ;;  %v8463_v20 = vsel %vm4340_vm0, %v8130_v9, 0.0  ;;  %v8131_v36 = vmul.f32 %v15810_v34, %v16441_v3  ;;  %v8679_v54 = vsel %vm5809_vm8, %v8384_v39, %v8678_v41  ;;  %v8409_v32 = vrot.slane %v8408_v57, 1 }
 0xac7   : > { %v8447_v19 = vadd.f32 %v8446_v30, %v8445_v12  ;;  %v8455_v5 = vrot.slane %v8454_v25, 1  ;;  %v8397_v47 = vadd.f32 %v8396_v6, %v8395_v26  ;;  %v8417_v44 = vadd.f32 %v8416_v40, %v8415_v35  ;;  %v16443_v26 = vld [vmem:[#allocation95_spill] sm:$0xff] }
 0xac8   : > { %v15838_v13 = vpop.f32.mrf.mxu1  ;;  %v8457_v14 = vrot.slane %v8129_v22, 4  ;;  %v8132_v31 = vmul.f32 %v15820_v17, %v16442_v42  ;;  %v8686_v1 = vsel %vm5809_vm8, %v8391_v28, %v8685_v23  ;;  %v8422_v37 = vrot.slane %v8421_v63, 1 }
 0xac9   : > { %v8430_v61 = vadd.f32 %v8429_v11, %v8428_v49  ;;  %v8464_v51 = vrot.slane %v8463_v20, 4  ;;  %v8687_v43 = vsel %vm5811_vm10, %v8404_v33, %v8686_v1  ;;  %v8435_v34 = vrot.slane %v8434_v60, 1 }
 0xaca   : > { %v8054_v56 = vpop.f32.mrf.mxu1  ;;  %v8443_v24 = vadd.f32 %v8442_v46, %v8441_v21  ;;  %v8470_v2 = vrot.slane %v8131_v36, 4  ;;  %v8410_v41 = vadd.f32 %v8409_v32, %v8408_v57  ;;  %v8448_v12 = vrot.slane %v8447_v19, 1 }
 0xacb   : > { %v8456_v55 = vadd.f32 %v8455_v5, %v8454_v25  ;;  %v8134_v35 = vmul.f32 %v15833_v7, %v16443_v26  ;;  %v8458_v0 = vadd.f32 %v8457_v14, %v8129_v22  ;;  %v8476_v17 = vsel %vm4340_vm0, %v8132_v31, 0.0  ;;  %v16445_v22 = vld [vmem:[#allocation96_spill] sm:$0xff]  ;;  %v16447_v31 = vld [vmem:[#allocation83_spill] sm:$0xff] }
 0xacc   : > { %v8058_v15 = vpop.f32.mrf.mxu1  ;;  %v8133_v27 = vmul.f32 %v15829_v45, %v16444_v59  ;;  %v8688_v49 = vsel %vm5813_vm1, %v8417_v44, %v8687_v43  ;;  %v8423_v10 = vadd.f32 %v8422_v37, %v8421_v63  ;;  %v8465_v52 = vadd.f32 %v8464_v51, %v8463_v20 }
 0xacd   : > { %v8136_v21 = vmul.f32 %v8054_v56, %v14844_v29  ;;  %v8689_v38 = vsel %vm5815_vm3, %v8430_v61, %v8688_v49  ;;  %v8680_v9 = vsel %vm5811_vm10, %v8397_v47, %v8679_v54  ;;  %v8436_v23 = vadd.f32 %v8435_v34, %v8434_v60 }
 0xace   : > { %v8060_v16 = vpop.f32.mrf.mxu1  ;;  %v8471_v39 = vadd.f32 %v8470_v2, %v8131_v36  ;;  %v8690_v7 = vsel %vm5817_vm4, %v8443_v24, %v8689_v38  ;;  %v8449_v30 = vadd.f32 %v8448_v12, %v8447_v19  ;;  %v8477_v6 = vrot.slane %v8476_v17, 4  ;;  %v16446_v19 = vld [vmem:[#allocation80_spill] sm:$0xff] }
 0xacf   : > { %v8489_v40 = vsel %vm4340_vm0, %v8134_v35, 0.0  ;;  %v8691_v45 = vsel %vm5819_vm5, %v8456_v55, %v8690_v7  ;;  %v8459_v25 = vrot.slane %v8458_v0, 2  ;;  %v8483_v4 = vrot.slane %v8133_v27, 4 }
 0xad0   : > { %v8064_v57 = vpop.f32.mrf.mxu1  ;;  %v8135_v29 = vmul.f32 %v15838_v13, %v16445_v22  ;;  %9377 = vmatprep.mubr.msk.f32.mxu0 %vm4340_vm0, %v8691_v45  ;;  %v8681_v56 = vsel %vm5813_vm1, %v8410_v41, %v8680_v9  ;;  %v8466_v28 = vrot.slane %v8465_v52, 2  ;;  %v8502_v33 = vsel %vm4340_vm0, %v8136_v21, 0.0 }
 0xad1   : > { %v8682_v63 = vsel %vm5815_vm3, %v8423_v10, %v8681_v56  ;;  %v8138_v11 = vmul.f32 %v8060_v16, %v14910_v62  ;;  %v8472_v60 = vrot.slane %v8471_v39, 2  ;;  %v8490_v46 = vrot.slane %v8489_v40, 4 }
 0xad2   : > { %v8137_v20 = vmul.f32 %v8058_v15, %v14852_v53  ;;  %v8683_v3 = vsel %vm5817_vm4, %v8436_v23, %v8682_v63  ;;  %v8066_v36 = vpop.f32.mrf.mxu1  ;;  %v8478_v54 = vadd.f32 %v8477_v6, %v8476_v17  ;;  %v8139_v5 = vmul.f32 %v8064_v57, %v16446_v19  ;;  %v16449_v6 = vld [vmem:[#allocation88_spill] sm:$0xff]  ;;  %v16450_v63 = vld [vmem:[#allocation65_spill] sm:$0xff] }
 0xad3   : > { %v8684_v13 = vsel %vm5819_vm5, %v8449_v30, %v8683_v3  ;;  %v8515_v32 = vsel %vm4340_vm0, %v8138_v11, 0.0  ;;  %v8484_v47 = vadd.f32 %v8483_v4, %v8133_v27  ;;  %v8496_v44 = vrot.slane %v8135_v29, 4  ;;  %v16451_v19 = vld [vmem:[#allocation97_spill] sm:$0xff] }
 0xad4   : > { %v8503_v14 = vrot.slane %v8502_v33, 4  ;;  %8793 = vmatmul.mubr.f32.gmra.mxu0 %v8684_v13  ;;  %v8467_v42 = vadd.f32 %v8466_v28, %v8465_v52  ;;  %v8516_v62 = vrot.slane %v8515_v32, 4  ;;  %v8140_v1 = vmul.f32 %v8066_v36, %v16447_v31 }
 0xad5   : > { %v8473_v37 = vadd.f32 %v8472_v60, %v8471_v39  ;;  %v8491_v53 = vadd.f32 %v8490_v46, %v8489_v40  ;;  %v8509_v15 = vrot.slane %v8137_v20, 4  ;;  %v15879_v61 = vadd.f32 %v8459_v25, %v8458_v0  ;;  %v16448_v0 = vld [vmem:[#allocation86_spill] sm:$0xff] }
 0xad6   : > { %v8479_v51 = vrot.slane %v8478_v54, 2  ;;  %v8522_v43 = vrot.slane %v8139_v5, 4  ;;  %v8528_v34 = vsel %vm4340_vm0, %v8140_v1, 0.0  ;;  %v8485_v24 = vrot.slane %v8484_v47, 2 }
 0xad7   : > { %v8497_v2 = vadd.f32 %v8496_v44, %v8135_v29  ;;  %v8504_v16 = vadd.f32 %v8503_v14, %v8502_v33  ;;  %v8529_v41 = vrot.slane %v8528_v34, 4  ;;  %v8468_v12 = vrot.slane %v8467_v42, 1 }
 0xad8   : > { %v8517_v55 = vadd.f32 %v8516_v62, %v8515_v32  ;;  %v8474_v26 = vrot.slane %v8473_v37, 1  ;;  %v8492_v35 = vrot.slane %v8491_v53, 2  ;;  %v8510_v17 = vadd.f32 %v8509_v15, %v8137_v20 }
 0xad9   : > { %v8530_v59 = vadd.f32 %v8529_v41, %v8528_v34  ;;  %v8461_v49 = vrot.slane %v15879_v61, 1  ;;  %v8523_v10 = vadd.f32 %v8522_v43, %v8139_v5  ;;  %v8480_v21 = vadd.f32 %v8479_v51, %v8478_v54 }
 0xada   : > { %v8486_v38 = vadd.f32 %v8485_v24, %v8484_v47  ;;  %v8498_v9 = vrot.slane %v8497_v2, 2  ;;  %v8505_v23 = vrot.slane %v8504_v16, 2  ;;  %v8469_v7 = vadd.f32 %v8468_v12, %v8467_v42 }
 0xadb   : > { %v8518_v57 = vrot.slane %v8517_v55, 2  ;;  %v8475_v45 = vadd.f32 %v8474_v26, %v8473_v37  ;;  %v8493_v25 = vadd.f32 %v8492_v35, %v8491_v53  ;;  %v8511_v4 = vrot.slane %v8510_v17, 2 }
 0xadc   : > { %v8531_v22 = vrot.slane %v8530_v59, 2  ;;  %v8524_v56 = vrot.slane %v8523_v10, 2  ;;  %v8481_v60 = vrot.slane %v8480_v21, 1  ;;  %v8499_v46 = vadd.f32 %v8498_v9, %v8497_v2 }
 0xadd   : > { %v8506_v20 = vadd.f32 %v8505_v23, %v8504_v16  ;;  %v8519_v54 = vadd.f32 %v8518_v57, %v8517_v55  ;;  %v8487_v47 = vrot.slane %v8486_v38, 1  ;;  %v8512_v44 = vadd.f32 %v8511_v4, %v8510_v17 }
 0xade   : > { %v8532_v14 = vadd.f32 %v8531_v22, %v8530_v59  ;;  %v8494_v62 = vrot.slane %v8493_v25, 1  ;;  %v8525_v31 = vadd.f32 %v8524_v56, %v8523_v10  ;;  %v8482_v34 = vadd.f32 %v8481_v60, %v8480_v21 }
 0xadf   : > { %v8507_v53 = vrot.slane %v8506_v20, 1  ;;  %v8500_v24 = vrot.slane %v8499_v46, 1  ;;  %v8520_v2 = vrot.slane %v8519_v54, 1  ;;  %v8513_v41 = vrot.slane %v8512_v44, 1 }
 0xae0   : > { %v8533_v12 = vrot.slane %v8532_v14, 1  ;;  %v8488_v35 = vadd.f32 %v8487_v47, %v8486_v38  ;;  %v8495_v17 = vadd.f32 %v8494_v62, %v8493_v25  ;;  %v8526_v59 = vrot.slane %v8525_v31, 1  ;;  %v15913_v47 = vpop.xlane.xlu0 %7484 }
 0xae1   : > { %v8508_v10 = vadd.f32 %v8507_v53, %v8506_v20  ;;  %v8462_v23 = vadd.f32 %v8461_v49, %v15879_v61  ;;  %v8521_v57 = vadd.f32 %v8520_v2, %v8519_v54 }
 0xae2   : > { %v8527_v25 = vadd.f32 %v8526_v59, %v8525_v31 }
 0xae3   : > { %v8692_v22 = vsel %vm5807_vm6, %v8475_v45, %v8462_v23 }
 0xae4   : > { %v8693_v56 = vsel %vm5809_vm8, %v8488_v35, %v8692_v22 }
 0xaee   : > { %v8070_v27 = vpop.f32.mrf.mxu1 }
 0xaef   : > { %v8141_v52 = vmul.f32 %v8070_v27, %v16448_v0 }
 0xaf0   : > { %v8072_v39 = vpop.f32.mrf.mxu1 }
 0xaf1   : > { %v8535_v30 = vrot.slane %v8141_v52, 4  ;;  %v8142_v40 = vmul.f32 %v8072_v39, %v16449_v6  ;;  %v8501_v39 = vadd.f32 %v8500_v24, %v8499_v46  ;;  %v8514_v6 = vadd.f32 %v8513_v41, %v8512_v44 }
 0xaf2   : > { %v8076_v29 = vpop.f32.mrf.mxu1  ;;  %v7534_v44 = vrot.slane %v15634_v50, 4 }
 0xaf3   : > { %v8536_v28 = vadd.f32 %v8535_v30, %v8141_v52  ;;  %v8541_v33 = vsel %vm4340_vm0, %v8142_v40, 0.0  ;;  %v8143_v11 = vmul.f32 %v8076_v29, %v16450_v63  ;;  %v8699_v30 = vsel %vm5807_vm6, %v8482_v34, %v8469_v7 }
 0xaf4   : > { %v8542_v3 = vrot.slane %v8541_v33, 4  ;;  %v8078_v36 = vpop.f32.mrf.mxu1  ;;  %v8534_v40 = vadd.f32 %v8533_v12, %v8532_v14  ;;  %v8700_v38 = vsel %vm5809_vm8, %v8495_v17, %v8699_v30  ;;  %v8694_v49 = vsel %vm5811_vm10, %v8501_v39, %v8693_v56 }
 0xaf5   : > { %v8537_v13 = vrot.slane %v8536_v28, 2  ;;  %v8548_v32 = vrot.slane %v8143_v11, 4  ;;  %v8144_v5 = vmul.f32 %v8078_v36, %v16451_v19  ;;  %v8695_v45 = vsel %vm5813_vm1, %v8514_v6, %v8694_v49  ;;  %v7449_v19 = vpop.xlane.xlu1 %7448 }
 0xaf6   : > { %v8543_v42 = vadd.f32 %v8542_v3, %v8541_v33  ;;  %v8696_v20 = vsel %vm5815_vm3, %v8527_v25, %v8695_v45  ;;  %v7540_v14 = vrot.slane %v15650_v8, 4  ;;  %v7552_v62 = vrot.slane %v7449_v19, 4 }
 0xaf7   : > { %v8549_v1 = vadd.f32 %v8548_v32, %v8143_v11  ;;  %v8554_v37 = vsel %vm4340_vm0, %v8144_v5, 0.0  ;;  %v8538_v15 = vadd.f32 %v8537_v13, %v8536_v28  ;;  %v8701_v28 = vsel %vm5811_vm10, %v8508_v10, %v8700_v38  ;;  %v8881_v13 = vld [vmem:[%s16012_s1 + $0x7b0] sm:$0x1]  ;;  %v8880_v32 = vld [vmem:[%s16012_s1 + $0x7a0] sm:$0xff] }
 0xaf8   : > { %v8544_v51 = vrot.slane %v8543_v42, 2  ;;  %v8555_v43 = vrot.slane %v8554_v37, 4  ;;  %v8702_v7 = vsel %vm5813_vm1, %v8521_v57, %v8701_v28  ;;  %9579 = vmatprep.subr.msk.mxu0 %vm6412_vm7, %v8881_v13  ;;  %v7535_v31 = vadd.f32 %v7534_v44, %v15634_v50 }
 0xaf9   : > { %v8550_v16 = vrot.slane %v8549_v1, 2  ;;  %v8539_v0 = vrot.slane %v8538_v15, 1  ;;  %v8703_v60 = vsel %vm5815_vm3, %v8534_v40, %v8702_v7  ;;  %9580 = vmatpush3.msk.msra.mxu0 %vm6412_vm7, %v8881_v13  ;;  %v7455_v5 = vpop.xlane.xlu1 %7454  ;;  %v7558_v34 = vrot.slane %v15652_v48, 4 }
 0xafa   : > { %v8545_v55 = vadd.f32 %v8544_v51, %v8543_v42  ;;  %v8556_v26 = vadd.f32 %v8555_v43, %v8554_v37  ;;  %9581 = vmatprep.subr.mxu0 %v8880_v32  ;;  %v7546_v42 = vrot.slane %v15639_v58, 4  ;;  %v7553_v51 = vadd.f32 %v7552_v62, %v7449_v19 }
 0xafb   : > { %v8551_v27 = vadd.f32 %v8550_v16, %v8549_v1  ;;  %v8540_v33 = vadd.f32 %v8539_v0, %v8538_v15  ;;  %9582 = vmatpush3.msra.mxu0 %v8880_v32  ;;  %v7541_v1 = vadd.f32 %v7540_v14, %v15650_v8  ;;  %v7461_v15 = vpop.xlane.xlu0 %7460  ;;  %v7564_v43 = vrot.slane %v7455_v5, 4  ;;  %v15933_v32 = vld [vmem:[%s16012_s1 + $0x790] ss:$0 sm:$0xff] }
 0xafc   : > { %v8546_v52 = vrot.slane %v8545_v55, 1  ;;  %v8557_v9 = vrot.slane %v8556_v26, 2  ;;  %v7547_v53 = vadd.f32 %v7546_v42, %v15639_v58  ;;  %v7536_v2 = vrot.slane %v7535_v31, 2 }
 0xafd   : > { %v8552_v21 = vrot.slane %v8551_v27, 1  ;;  %v8697_v36 = vsel %vm5817_vm4, %v8540_v33, %v8696_v20  ;;  %v7458_v37 = vpop.xlane.xlu1 %7457  ;;  %v7542_v16 = vrot.slane %v7541_v1, 2  ;;  %v7576_v41 = vrot.slane %v7461_v15, 4 }
 0xafe   : > { %v8558_v4 = vadd.f32 %v8557_v9, %v8556_v26  ;;  %v8547_v29 = vadd.f32 %v8546_v52, %v8545_v55  ;;  %v7570_v24 = vrot.slane %v7458_v37, 4  ;;  %v7548_v12 = vrot.slane %v7547_v53, 2 }
 0xaff   : > { %v8553_v63 = vadd.f32 %v8552_v21, %v8551_v27  ;;  %v7554_v55 = vrot.slane %v7553_v51, 2  ;;  %v7565_v26 = vadd.f32 %v7564_v43, %v7455_v5  ;;  %v7559_v35 = vadd.f32 %v7558_v34, %v15652_v48  ;;  %v15939_v62 = vpop.xlane.xlu0 %7511 }
 0xb00   : > { %v8559_v61 = vrot.slane %v8558_v4, 1  ;;  %v8704_v46 = vsel %vm5817_vm4, %v8547_v29, %v8703_v60  ;;  %v7571_v50 = vadd.f32 %v7570_v24, %v7458_v37  ;;  %v7537_v17 = vadd.f32 %v7536_v2, %v7535_v31 }
 0xb01   : > { %v8698_v54 = vsel %vm5819_vm5, %v8553_v63, %v8697_v36  ;;  %v7543_v8 = vadd.f32 %v7542_v16, %v7541_v1  ;;  %v7577_v59 = vadd.f32 %v7576_v41, %v7461_v15  ;;  %v7549_v27 = vadd.f32 %v7548_v12, %v7547_v53  ;;  %v7488_v14 = vpop.xlane.xlu1 %7487 }
 0xb02   : > { %v8560_v11 = vadd.f32 %v8559_v61, %v8558_v4  ;;  %v7555_v58 = vadd.f32 %v7554_v55, %v7553_v51  ;;  %v7566_v10 = vrot.slane %v7565_v26, 2  ;;  %v7560_v0 = vrot.slane %v7559_v35, 2 }
 0xb03   : > { %v7572_v52 = vrot.slane %v7571_v50, 2  ;;  %v7538_v9 = vrot.slane %v7537_v17, 1  ;;  %v7544_v23 = vrot.slane %v7543_v8, 1  ;;  %v7578_v39 = vrot.slane %v7577_v59, 2  ;;  %v15945_v53 = vpop.xlane.xlu0 %7523 }
 0xb04   : > { %v8705_v3 = vsel %vm5819_vm5, %v8560_v11, %v8704_v46  ;;  %v7550_v57 = vrot.slane %v7549_v27, 1  ;;  %v7556_v21 = vrot.slane %v7555_v58, 1  ;;  %v7567_v30 = vadd.f32 %v7566_v10, %v7565_v26 }
 0xb05   : > { %9378 = vmatprep.mubr.msk.f32.mxu0 %vm4340_vm0, %v8705_v3  ;;  %v7561_v6 = vadd.f32 %v7560_v0, %v7559_v35  ;;  %v7573_v40 = vadd.f32 %v7572_v52, %v7571_v50  ;;  %v7539_v4 = vadd.f32 %v7538_v9, %v7537_v17  ;;  %v7545_v22 = vadd.f32 %v7544_v23, %v7543_v8  ;;  %v15937_v42 = vpop.xlane.xlu1 %7514 }
 0xb06   : > { %8798 = vmatmul.mubr.f32.gmra.mxu0 %v8698_v54  ;;  %v7579_v48 = vadd.f32 %v7578_v39, %v7577_v59  ;;  %v7551_v38 = vadd.f32 %v7550_v57, %v7549_v27  ;;  %v7557_v25 = vadd.f32 %v7556_v21, %v7555_v58  ;;  %v7568_v29 = vrot.slane %v7567_v30, 1 }
 0xb07   : > { %v7562_v56 = vrot.slane %v7561_v6, 1  ;;  %v7574_v28 = vrot.slane %v7573_v40, 1  ;;  %v8835_v33 = vsel %vm5807_vm6, %v7545_v22, %v7539_v4  ;;  %v7624_v31 = vrot.slane %v15913_v47, 4  ;;  %v7491_v43 = vpop.xlane.xlu0 %7490 }
 0xb08   : > { %v7580_v61 = vrot.slane %v7579_v48, 1  ;;  %v8836_v49 = vsel %vm5809_vm8, %v7551_v38, %v8835_v33  ;;  %v7569_v7 = vadd.f32 %v7568_v29, %v7567_v30  ;;  %v7636_v50 = vrot.slane %v7491_v43, 4 }
 0xb09   : > { %v8837_v63 = vsel %vm5811_vm10, %v7557_v25, %v8836_v49  ;;  %v7563_v11 = vadd.f32 %v7562_v56, %v7561_v6  ;;  %v7575_v60 = vadd.f32 %v7574_v28, %v7573_v40  ;;  %v15942_v1 = vpop.xlane.xlu1 %7517  ;;  %v7625_v37 = vadd.f32 %v7624_v31, %v15913_v47 }
 0xb0a   : > { %v7581_v45 = vadd.f32 %v7580_v61, %v7579_v48  ;;  %v7630_v8 = vrot.slane %v7488_v14, 4  ;;  %v7637_v27 = vadd.f32 %v7636_v50, %v7491_v43  ;;  %vm9090_vm0 = vcmask 31744  }
 0xb0b   : > { %v8838_v46 = vsel %vm5813_vm1, %v7563_v11, %v8837_v63  ;;  %v7626_v15 = vrot.slane %v7625_v37, 2  ;;  %v15947_v24 = vpop.xlane.xlu0 %7520 }
 0xb0c   : > { %v8839_v20 = vsel %vm5815_vm3, %v7569_v7, %v8838_v46  ;;  %v7631_v52 = vadd.f32 %v7630_v8, %v7488_v14  ;;  %v7638_v57 = vrot.slane %v7637_v27, 2 }
 0xb0d   : > { %v8840_v3 = vsel %vm5817_vm4, %v7575_v60, %v8839_v20  ;;  %v7494_v51 = vpop.xlane.xlu1 %7493  ;;  %v7627_v34 = vadd.f32 %v7626_v15, %v7625_v37 }
 0xb0e   : > { %v8841_v36 = vsel %vm5819_vm5, %v7581_v45, %v8840_v3  ;;  %v7642_v17 = vrot.slane %v7494_v51, 4  ;;  %v7639_v38 = vadd.f32 %v7638_v57, %v7637_v27 }
 0xb0f   : > { %9947 = vrcp.f32 %v8841_v36  ;;  %v7628_v16 = vrot.slane %v7627_v34, 1  ;;  %v15949_v12 = vpop.xlane.xlu0 %7526 }
 0xb10   : > { %v7643_v58 = vadd.f32 %v7642_v17, %v7494_v51  ;;  %v7640_v45 = vrot.slane %v7639_v38, 1 }
 0xb11   : > { %v7500_v2 = vpop.xlane.xlu1 %7499  ;;  %v7629_v41 = vadd.f32 %v7628_v16, %v7627_v34 }
 0xb12   : > { %v7654_v10 = vrot.slane %v7500_v2, 4  ;;  %v7644_v30 = vrot.slane %v7643_v58, 2 }
 0xb13   : > { %v8848_v26 = vsel %vm5819_vm5, %v7629_v41, %v15676_v18  ;;  %v7497_v35 = vpop.xlane.xlu0 %7496  ;;  %v7632_v18 = vrot.slane %v7631_v52, 2  ;;  %v7690_v41 = vrot.slane %v15942_v1, 4 }
 0xb14   : > { %9949 = vrcp.f32 %v8848_v26  ;;  %v7648_v59 = vrot.slane %v7497_v35, 4  ;;  %v7655_v6 = vadd.f32 %v7654_v10, %v7500_v2  ;;  %v7645_v56 = vadd.f32 %v7644_v30, %v7643_v58 }
 0xb15   : > { %v7503_v55 = vpop.xlane.xlu1 %7502  ;;  %v7633_v61 = vadd.f32 %v7632_v18, %v7631_v52  ;;  %v7684_v2 = vrot.slane %v15937_v42, 4  ;;  %v7691_v58 = vadd.f32 %v7690_v41, %v15942_v1  ;;  %v7708_v1 = vrot.slane %v15949_v12, 4 }
 0xb16   : > { %v7649_v9 = vadd.f32 %v7648_v59, %v7497_v35  ;;  %v7660_v23 = vrot.slane %v7503_v55, 4  ;;  %v7656_v28 = vrot.slane %v7655_v6, 2  ;;  %v7646_v20 = vrot.slane %v7645_v56, 1 }
 0xb17   : > { %v7634_v36 = vrot.slane %v7633_v61, 1  ;;  %v7678_v35 = vrot.slane %v15939_v62, 4  ;;  %v7685_v8 = vadd.f32 %v7684_v2, %v15937_v42  ;;  %v7696_v59 = vrot.slane %v15947_v24, 4 }
 0xb18   : > { %v7650_v40 = vrot.slane %v7649_v9, 2  ;;  %v7661_v4 = vadd.f32 %v7660_v23, %v7503_v55  ;;  %v7657_v3 = vadd.f32 %v7656_v28, %v7655_v6  ;;  %v7647_v14 = vadd.f32 %v7646_v20, %v7645_v56 }
 0xb19   : > { %v7506_v47 = vpop.xlane.xlu1 %7505  ;;  %v7635_v37 = vadd.f32 %v7634_v36, %v7633_v61  ;;  %v7686_v23 = vrot.slane %v7685_v8, 2  ;;  %v7702_v42 = vrot.slane %v15945_v53, 4  ;;  %v7692_v30 = vrot.slane %v7691_v58, 2 }
 0xb1a   : > { %v7666_v39 = vrot.slane %v7506_v47, 4  ;;  %v7651_v49 = vadd.f32 %v7650_v40, %v7649_v9  ;;  %v7662_v63 = vrot.slane %v7661_v4, 2  ;;  %v7658_v31 = vrot.slane %v7657_v3, 1 }
 0xb1b   : > { %v7687_v40 = vadd.f32 %v7686_v23, %v7685_v8 }
 0xb1c   : > { %v9948_v54 = vpop.eup %9947  ;;  %v7667_v22 = vadd.f32 %v7666_v39, %v7506_v47  ;;  %v7659_v26 = vadd.f32 %v7658_v31, %v7657_v3  ;;  %v7697_v39 = vadd.f32 %v7696_v59, %v15947_v24  ;;  %v7709_v24 = vadd.f32 %v7708_v1, %v15949_v12 }
 0xb1d   : > { %v7509_v0 = vpop.xlane.xlu1 %7508 }
 0xb1e   : > { %v7672_v21 = vrot.slane %v7509_v0, 4  ;;  %v7668_v11 = vrot.slane %v7667_v22, 2 }
 0xb20   : > { %v7673_v25 = vadd.f32 %v7672_v21, %v7509_v0  ;;  %v7679_v0 = vadd.f32 %v7678_v35, %v15939_v62  ;;  %v7530_v21 = vpop.xlane.xlu0 %7529  ;;  %v7698_v62 = vrot.slane %v7697_v39, 2 }
 0xb21   : > { %v9950_v48 = vpop.eup %9949  ;;  %v7714_v18 = vrot.slane %v7530_v21, 4 }
 0xb22   : > { %v7674_v46 = vrot.slane %v7673_v25, 2  ;;  %v7680_v6 = vrot.slane %v7679_v0, 2  ;;  %v7699_v56 = vadd.f32 %v7698_v62, %v7697_v39 }
 0xb3f   : > { %v8784_v13 = vpop.f32.mrf.mxu0 }
 0xb40   : > { %v8868_v19 = vmul.f32 %v9948_v54, %v8784_v13  ;;  %v7652_v54 = vrot.slane %v7651_v49, 1  ;;  %v7663_v13 = vadd.f32 %v7662_v63, %v7661_v4  ;;  %v7703_v4 = vadd.f32 %v7702_v42, %v15945_v53 }
 0xb41   : > { %v8786_v5 = vpop.f32.mrf.mxu0  ;;  %v7710_v63 = vrot.slane %v7709_v24, 2 }
 0xb42   : > { %v8876_v44 = vadd.f32 %v15933_v32, %v8868_v19  ;;  %v7669_v19 = vadd.f32 %v7668_v11, %v7667_v22  ;;  %v7641_v5 = vadd.f32 %v7640_v45, %v7639_v38  ;;  %v7653_v15 = vadd.f32 %v7652_v54, %v7651_v49 }
 0xb43   : > { %v7664_v51 = vrot.slane %v7663_v13, 1  ;;  %v7693_v22 = vadd.f32 %v7692_v30, %v7691_v58  ;;  %v7681_v38 = vadd.f32 %v7680_v6, %v7679_v0  ;;  %v7711_v3 = vadd.f32 %v7710_v63, %v7709_v24 }
 0xb44   : > { %9583 = vmatprep.mubr.msk.f32.mxu0 %vm6399_vm9, %v8876_v44  ;;  %v7675_v44 = vadd.f32 %v7674_v46, %v7673_v25  ;;  %v7670_v43 = vrot.slane %v7669_v19, 1  ;;  %v8849_v34 = vsel %vm5807_vm6, %v7641_v5, %v7635_v37  ;;  %v7715_v25 = vadd.f32 %v7714_v18, %v7530_v21 }
 0xb45   : > { %v8850_v55 = vsel %vm5809_vm8, %v7647_v14, %v8849_v34  ;;  %v7665_v50 = vadd.f32 %v7664_v51, %v7663_v13  ;;  %v7694_v61 = vrot.slane %v7693_v22, 1  ;;  %v7682_v49 = vrot.slane %v7681_v38, 1 }
 0xb46   : > { %v7676_v16 = vrot.slane %v7675_v44, 1  ;;  %v8851_v47 = vsel %vm5811_vm10, %v7653_v15, %v8850_v55  ;;  %v7671_v17 = vadd.f32 %v7670_v43, %v7669_v19  ;;  %v7712_v37 = vrot.slane %v7711_v3, 1 }
 0xb47   : > { %v8852_v10 = vsel %vm5813_vm1, %v7659_v26, %v8851_v47  ;;  %v7695_v20 = vadd.f32 %v7694_v61, %v7693_v22  ;;  %v7683_v53 = vadd.f32 %v7682_v49, %v7681_v38 }
 0xb48   : > { %v7677_v27 = vadd.f32 %v7676_v16, %v7675_v44  ;;  %v8853_v52 = vsel %vm5815_vm3, %v7665_v50, %v8852_v10  ;;  %v7713_v41 = vadd.f32 %v7712_v37, %v7711_v3 }
 0xb49   : > { %v8854_v9 = vsel %vm5817_vm4, %v7671_v17, %v8853_v52  ;;  %v8988_v52 = vld [vmem:[%s16012_s1 + $0x7e0] sm:$0x1] }
 0xb4a   : > { %v8855_v57 = vsel %vm5819_vm5, %v7677_v27, %v8854_v9  ;;  %v8987_v9 = vld [vmem:[%s16012_s1 + $0x7d0] sm:$0xff]  ;;  %9589 = vmatprep.subr.msk.mxu0 %vm6412_vm7, %v8988_v52 }
 0xb4b   : > { %9951 = vrcp.f32 %v8855_v57 }
 0xb58   : > { %v9952_v54 = vpop.eup %9951 }
 0xb72   : > { %v8789_v29 = vpop.f32.mrf.mxu0 }
 0xb73   : > { %v8870_v33 = vmul.f32 %v9950_v48, %v8789_v29  ;;  %v7533_v48 = vpop.xlane.xlu1 %7532  ;;  %v7688_v29 = vrot.slane %v7687_v40, 1 }
 0xb74   : > { %v8791_v7 = vpop.f32.mrf.mxu0  ;;  %v7720_v28 = vrot.slane %v7533_v48, 4 }
 0xb75   : > { %v8877_v60 = vadd.f32 %v15933_v32, %v8870_v33  ;;  %v7704_v33 = vrot.slane %v7703_v4, 2  ;;  %v7716_v7 = vrot.slane %v7715_v25, 2  ;;  %v7689_v11 = vadd.f32 %v7688_v29, %v7687_v40 }
 0xb76   : > { %v7721_v45 = vadd.f32 %v7720_v28, %v7533_v48  ;;  %v8989_v48 = vld [vmem:[%s16012_s1 + $0x7f0] ss:$0 sm:$0xff] }
 0xb77   : > { %9584 = vmatmul.mubr.msk.f32.vlgmr.msra.gmra.mxu0 %vm6399_vm9, %v8877_v60  ;;  %v7700_v60 = vrot.slane %v7699_v56, 1  ;;  %v7705_v46 = vadd.f32 %v7704_v33, %v7703_v4  ;;  %v7717_v36 = vadd.f32 %v7716_v7, %v7715_v25  ;;  %v8856_v12 = vsel %vm5807_vm6, %v7689_v11, %v7683_v53 }
 0xb78   : > { %v7722_v19 = vrot.slane %v7721_v45, 2  ;;  %v8857_v14 = vsel %vm5809_vm8, %v7695_v20, %v8856_v12  ;;  %9590 = vmatpush3.msk.msra.mxu0 %vm6412_vm7, %v8988_v52 }
 0xb79   : > { %v7701_v13 = vadd.f32 %v7700_v60, %v7699_v56  ;;  %v7706_v44 = vrot.slane %v7705_v46, 1  ;;  %v7718_v51 = vrot.slane %v7717_v36, 1  ;;  %9591 = vmatprep.subr.mxu0 %v8987_v9 }
 0xb7a   : > { %v7723_v2 = vadd.f32 %v7722_v19, %v7721_v45  ;;  %9592 = vmatpush3.msra.mxu0 %v8987_v9 }
 0xb7b   : > { %v8858_v34 = vsel %vm5811_vm10, %v7701_v13, %v8857_v14  ;;  %v7707_v16 = vadd.f32 %v7706_v44, %v7705_v46  ;;  %v7719_v26 = vadd.f32 %v7718_v51, %v7717_v36 }
 0xb7c   : > { %v7724_v35 = vrot.slane %v7723_v2, 1 }
 0xb7d   : > { %v8859_v55 = vsel %vm5813_vm1, %v7707_v16, %v8858_v34 }
 0xb7e   : > { %v8860_v47 = vsel %vm5815_vm3, %v7713_v41, %v8859_v55  ;;  %v7725_v17 = vadd.f32 %v7724_v35, %v7723_v2 }
 0xb7f   : > { %v8861_v50 = vsel %vm5817_vm4, %v7719_v26, %v8860_v47 }
 0xb80   : > { %v8862_v8 = vsel %vm5819_vm5, %v7725_v17, %v8861_v50 }
 0xb81   : > { %9953 = vrcp.f32 %v8862_v8 }
 0xb8e   : > { %v9954_v59 = vpop.eup %9953 }
 0xb94   : > { %v8794_v5 = vpop.f32.mrf.mxu0 }
 0xb95   : > { %v8872_v31 = vmul.f32 %v9952_v54, %v8794_v5 }
 0xb96   : > { %v8796_v15 = vpop.f32.mrf.mxu0 }
 0xb97   : > { %v8878_v43 = vadd.f32 %v15933_v32, %v8872_v31 }
 0xb99   : > { %9586 = vmatprep.mubr.msk.f32.mxu0 %vm6399_vm9, %v8878_v43 }
 0xbc6   : > { %v8799_v27 = vpop.f32.mrf.mxu0 }
 0xbc7   : > { %v8874_v58 = vmul.f32 %v9954_v59, %v8799_v27 }
 0xbc8   : > { %v8801_v10 = vpop.f32.mrf.mxu0 }
 0xbc9   : > { %v8879_v0 = vadd.f32 %v15933_v32, %v8874_v58  ;;  %v8882_v32 = vld [vmem:[%s16012_s1 + $0x7c0] ss:$0 sm:$0xff] }
 0xbcb   : > { %9587 = vmatmul.mubr.msk.f32.gmra.mxu0 %vm6399_vm9, %v8879_v0 }
 0xc37   : > { %v9585_v23 = vpop.f32.mrf.mxu0 }
 0xc38   : > { %v8970_v39 = vadd.f32 %v9585_v23, %v8882_v32 }
 0xc39   : > { %v8964_v57 = vpop.f32.mrf.mxu0 }
 0xc3a   : > { %v8965_v21 = vadd.f32 %v8964_v57, %v8882_v32  ;;  %v8984_v30 = vmax.f32 %v8970_v39, 0.0 }
 0xc3c   : > { %v8983_v42 = vmax.f32 %v8965_v21, 0.0 }
 0xc3e   : > { %9593 = vmatprep.mubr.msk.f32.mxu0 %vm6399_vm9, %v8983_v42 }
 0xc3f   : > { %9594 = vmatmul.mubr.msk.f32.vlgmr.msra.gmra.mxu0 %vm6399_vm9, %v8984_v30 }
 0xc8b   : > { %v9588_v6 = vpop.f32.mrf.mxu0 }
 0xc8c   : > { %v8980_v1 = vadd.f32 %v9588_v6, %v8882_v32 }
 0xc8d   : > { %v8974_v18 = vpop.f32.mrf.mxu0 }
 0xc8e   : > { %v8975_v40 = vadd.f32 %v8974_v18, %v8882_v32  ;;  %v8986_v4 = vmax.f32 %v8980_v1, 0.0 }
 0xc90   : > { %v8985_v62 = vmax.f32 %v8975_v40, 0.0 }
 0xc92   : > { %9596 = vmatprep.mubr.msk.f32.mxu0 %vm6399_vm9, %v8985_v62 }
 0xc93   : > { %9597 = vmatmul.mubr.msk.f32.gmra.mxu0 %vm6399_vm9, %v8986_v4 }
 0xcff   : > { %v9595_v22 = vpop.f32.mrf.mxu0 }
 0xd00   : > { %v9077_v25 = vadd.f32 %v9595_v22, %v8989_v48 }
 0xd01   : > { %v9071_v38 = vpop.f32.mrf.mxu0 }
 0xd02   : > { %v9072_v24 = vadd.f32 %v9071_v38, %v8989_v48  ;;  %9092 = vst.msk [vmem:[%s145_s8 + $0x8] sm:$0xff] %vm9090_vm0, %v9077_v25 }
 0xd04   : > { %9091 = vst.msk [vmem:[%s145_s8] sm:$0xff] %vm9090_vm0, %v9072_v24 }
 0xd53   : > { %v9598_v29 = vpop.f32.mrf.mxu0 }
 0xd54   : > { %v9087_v33 = vadd.f32 %v9598_v29, %v8989_v48 }
 0xd55   : > { %v9081_v56 = vpop.f32.mrf.mxu0 }
 0xd56   : > { %v9082_v28 = vadd.f32 %v9081_v56, %v8989_v48  ;;  %9094 = vst.msk [vmem:[%s145_s8 + $0x18] sm:$0xff] %vm9090_vm0, %v9087_v33 }
 0xd58   : > { %9093 = vst.msk [vmem:[%s145_s8 + $0x10] sm:$0xff] %vm9090_vm0, %v9082_v28 }
 0xd59 PF: > { %s12_s9 = sadd.s32 1, %s9992_s9  }
 0xd5a   : > { %p9_p5 = scmp.ge.s32.totalorder %s12_s9, 4  }
 0xd5c   :  { %11 = sbr.rel (!%p9_p5) target bundleno = 1 (0x1), region = 60 }

</bundles_post_ra>
